<compile_context>
chip_gen: v7x
topology: tpu7x:2x2x1
jax: 0.10.0
libtpu: 0.0.40
codegen_flags: <defaults>
</compile_context>

<pallas_src>
import functools

import jax
import jax.numpy as jnp
from jax import lax
from jax.experimental import pallas as pl
from jax.experimental.pallas import tpu as pltpu

# ----------------------------------------------------------------------------
# static network geometry
# ----------------------------------------------------------------------------
K = 5           # conv kernel size
HP1 = 12        # conv1 pooled spatial (24x24 -> 12x12)
P1 = HP1 * HP1  # 144 rows for the 12x12 feature map
HP2 = 4         # conv2 pooled spatial (8x8 -> 4x4)
K1P = 32        # conv1 im2col depth 25 padded to 32
CPAD = 128      # lane-dense channel padding
SCR = 208       # scratch rows: >= 144 + max shift (4*12+4 = 52)


# ----------------------------------------------------------------------------
# fused Pallas kernel: whole forward for `nb` samples per grid step
# ----------------------------------------------------------------------------
def fused_net_kernel(p1_ref, w1_ref, b1_ref, w2_ref, b2_ref, wf_ref, bf_ref,
                     o_ref, y1_scr, s2_scr):
    nb = p1_ref.shape[0]

    w1 = w1_ref[...]          # (K1P, 128) bf16
    b1 = b1_ref[...]          # (1, 128)   f32
    b2 = b2_ref[...]          # (1, 128)   f32
    wf = wf_ref[...]          # (2048,128) bf16
    bf = bf_ref[...]          # (1, 128)   f32

    # Zero the scratch tails: shifted-window reads reach past row 144; those rows only
    # feed discarded output rows, but keep them finite / deterministic.  Cheap (64 rows).
    y1_scr[P1:, :] = jnp.zeros((SCR - P1, CPAD), jnp.bfloat16)
    s2_scr[P1:, :] = jnp.zeros((SCR - P1, CPAD), jnp.float32)

    for n in range(nb):   # nb is small (default 1); static unroll is fine
        # ---- conv1 (matmul on pool-major patches) + bias + 2x2 maxpool + relu ----
        s1 = jnp.dot(p1_ref[n], w1, preferred_element_type=jnp.float32) + b1   # (576,128)
        y1 = jnp.maximum(jnp.maximum(s1[0:P1], s1[P1:2 * P1]),
                         jnp.maximum(s1[2 * P1:3 * P1], s1[3 * P1:4 * P1]))
        y1_scr[0:P1, :] = jnp.maximum(y1, 0.0).astype(jnp.bfloat16)            # (144,128)

        # ---- conv2: 25 shifted-window matmuls over the 12x12 feature map ----
        # valid output row r = oi*12 + oj (oi, oj < 8); contribution (ki, kj) reads
        # input row r + ki*12 + kj, which is always < 144 for valid rows.
        acc = jnp.zeros((P1, CPAD), jnp.float32)
        for ki in range(K):
            for kj in range(K):
                d = ki * HP1 + kj
                acc = acc + jnp.dot(y1_scr[d:d + P1, :], w2_ref[ki * K + kj],
                                    preferred_element_type=jnp.float32)
        s2_scr[0:P1, :] = acc + b2                                             # (144,128)

        # ---- 2x2 maxpool + relu (pooled value lands at row 24*pi + 2*pj) ----
        m2 = jnp.maximum(
            jnp.maximum(s2_scr[0:P1, :], s2_scr[1:P1 + 1, :]),
            jnp.maximum(s2_scr[HP1:HP1 + P1, :], s2_scr[HP1 + 1:HP1 + 1 + P1, :]))
        s2_scr[0:P1, :] = jnp.maximum(m2, 0.0)

        # ---- fc + log_softmax ----
        # Lane-concat the 16 valid pooled rows -> (1, 16*128); fc weight is
        # pre-permuted / zero-padded in the wrapper to match this exact layout.
        xfc = jnp.concatenate(
            [s2_scr[2 * HP1 * pi + 2 * pj: 2 * HP1 * pi + 2 * pj + 1, :]
             for pi in range(HP2) for pj in range(HP2)],
            axis=1).astype(jnp.bfloat16)                                       # (1,2048)
        logits = jnp.dot(xfc, wf, preferred_element_type=jnp.float32) + bf     # (1,128)

        col = lax.broadcasted_iota(jnp.int32, logits.shape, 1)
        lm = jnp.where(col < 10, logits, -1e30)          # mask padded lanes
        mx = jnp.max(lm, axis=-1, keepdims=True)
        lse = jnp.log(jnp.sum(jnp.exp(lm - mx), axis=-1, keepdims=True)) + mx
        o_ref[n] = lm - lse


def fused_net(p1, w1p, b1p, w2k, b2p, wfb, bfp, *, samples_per_block=1):
    n = p1.shape[0]
    nb = samples_per_block
    assert n % nb == 0, "batch must be divisible by samples_per_block"
    return pl.pallas_call(
        fused_net_kernel,
        out_shape=jax.ShapeDtypeStruct((n, 1, CPAD), jnp.float32),
        grid=(n // nb,),
        in_specs=[
            pl.BlockSpec((nb, 4 * P1, K1P), lambda i: (i, 0, 0)),   # conv1 patches
            pl.BlockSpec((K1P, CPAD), lambda i: (0, 0)),            # w1
            pl.BlockSpec((1, CPAD), lambda i: (0, 0)),              # b1
            pl.BlockSpec((K * K, CPAD, CPAD), lambda i: (0, 0, 0)), # w2 (25,128,128)
            pl.BlockSpec((1, CPAD), lambda i: (0, 0)),              # b2
            pl.BlockSpec((16 * CPAD, CPAD), lambda i: (0, 0)),      # fc weight
            pl.BlockSpec((1, CPAD), lambda i: (0, 0)),              # fc bias
        ],
        out_specs=pl.BlockSpec((nb, 1, CPAD), lambda i: (i, 0, 0)),
        scratch_shapes=[pltpu.VMEM((SCR, CPAD), jnp.bfloat16),      # y1 feature map
                        pltpu.VMEM((SCR, CPAD), jnp.float32)],      # conv2 / pooled map
        compiler_params=pltpu.CompilerParams(
            dimension_semantics=("parallel",)),
    )(p1, w1p, b1p, w2k, b2p, wfb, bfp)


# ----------------------------------------------------------------------------
# Plain-JAX glue (cheap static slices only, no gathers)
# ----------------------------------------------------------------------------
def conv1_patches(x):
    """x: (N,1,28,28) f32 -> (N, 4*144, 32) bf16, pool-position-major rows.

    Row = (di*2+dj)*144 + pi*12 + pj  for conv1 output pixel (2pi+di, 2pj+dj);
    column = ki*5 + kj (matches torch conv1.weight.reshape(10, 25)); cols 25..31 zero.
    """
    n = x.shape[0]
    ho = wo = 28 - K + 1                                   # 24
    cols = [x[:, 0, ki:ki + ho, kj:kj + wo] for ki in range(K) for kj in range(K)]
    p = jnp.stack(cols, axis=-1)                           # (N,24,24,25)
    p = p.reshape(n, HP1, 2, HP1, 2, K * K)
    p = p.transpose(0, 2, 4, 1, 3, 5)                      # (N, di, dj, pi, pj, 25)
    p = p.reshape(n, 4 * P1, K * K)
    p = jnp.pad(p, ((0, 0), (0, 0), (0, K1P - K * K)))
    return p.astype(jnp.bfloat16)


def prepare_params(w1, b1, w2, b2, wf, bf):
    """One-time (hoisted) weight repacking into lane-dense, zero-padded layouts."""
    # conv1: (10,1,5,5) -> (25,10) -> (32,128) bf16
    w1m = w1.reshape(10, K * K).T
    w1p = jnp.zeros((K1P, CPAD), jnp.float32).at[:K * K, :10].set(w1m).astype(jnp.bfloat16)
    b1p = jnp.zeros((1, CPAD), jnp.float32).at[0, :10].set(b1)
    # conv2: (20,10,5,5) -> [ki*5+kj, cin, cout] -> (25,128,128) bf16
    w2m = w2.transpose(2, 3, 1, 0).reshape(K * K, 10, 20)
    w2k = jnp.zeros((K * K, CPAD, CPAD), jnp.float32).at[:, :10, :20].set(w2m)
    w2k = w2k.astype(jnp.bfloat16)
    b2p = jnp.zeros((1, CPAD), jnp.float32).at[0, :20].set(b2)
    # fc: (10, 320) with 320 = c*16 + pi*4 + pj  ->  row k*128 + c, k = pi*4 + pj
    wfm = wf.reshape(10, 20, HP2, HP2).transpose(2, 3, 1, 0).reshape(16, 20, 10)
    wfb = jnp.zeros((16, CPAD, CPAD), jnp.float32).at[:, :20, :10].set(wfm)
    wfb = wfb.reshape(16 * CPAD, CPAD).astype(jnp.bfloat16)
    bfp = jnp.zeros((1, CPAD), jnp.float32).at[0, :10].set(bf)
    return w1p, b1p, w2k, b2p, wfb, bfp


def net_forward(x, params, samples_per_block=1):
    w1p, b1p, w2k, b2p, wfb, bfp = params
    p1 = conv1_patches(x)
    out = fused_net(p1, w1p, b1p, w2k, b2p, wfb, bfp,
                    samples_per_block=samples_per_block)
    return out.reshape(x.shape[0], CPAD)[:, :10]


# ----------------------------------------------------------------------------
# Pure-JAX reference (matches the PyTorch module's semantics)
# ----------------------------------------------------------------------------
def reference_forward(x, w1, b1, w2, b2, wf, bf):
    dn = ("NCHW", "OIHW", "NCHW")
    hp = jax.lax.Precision.HIGHEST

    y = lax.conv_general_dilated(x, w1, (1, 1), "VALID",
                                 dimension_numbers=dn, precision=hp)
    y = y + b1[None, :, None, None]
    y = lax.reduce_window(y, -jnp.inf, lax.max, (1, 1, 2, 2), (1, 1, 2, 2), "VALID")
    y = jnp.maximum(y, 0.0)

    y = lax.conv_general_dilated(y, w2, (1, 1), "VALID",
                                 dimension_numbers=dn, precision=hp)
    y = y + b2[None, :, None, None]
    y = lax.reduce_window(y, -jnp.inf, lax.max, (1, 1, 2, 2), (1, 1, 2, 2), "VALID")
    y = jnp.maximum(y, 0.0)

    y = y.reshape(x.shape[0], -1)
    logits = jnp.dot(y, wf.T, precision=hp) + bf
    return jax.nn.log_softmax(logits, axis=1)


# ----------------------------------------------------------------------------
if __name__ == "__main__":
    key = jax.random.PRNGKey(0)
    k1, k2, k3, k4, k5, k6, kx = jax.random.split(key, 7)

    def uinit(k, shape, fan_in):
        bound = 1.0 / (fan_in ** 0.5)
        return jax.random.uniform(k, shape, jnp.float32, -bound, bound)

    # Parameter shapes mirror the PyTorch module's __init__.
    w1 = uinit(k1, (10, 1, 5, 5), 1 * 5 * 5)
    b1 = uinit(k2, (10,), 1 * 5 * 5)
    w2 = uinit(k3, (20, 10, 5, 5), 10 * 5 * 5)
    b2 = uinit(k4, (20,), 10 * 5 * 5)
    wf = uinit(k5, (10, 320), 320)
    bf = uinit(k6, (10,), 320)

    # MNIST-sized input (28x28 is required by fc(320, 10)), small batch.
    x = jax.random.normal(kx, (2, 1, 28, 28), jnp.float32)

    params = prepare_params(w1, b1, w2, b2, wf, bf)   # hoisted weight repacking

    fwd = jax.jit(functools.partial(net_forward, samples_per_block=1))
    out = jax.block_until_ready(fwd(x, params))

    ref = jax.block_until_ready(reference_forward(x, w1, b1, w2, b2, wf, bf))
    assert out.shape == (2, 10)
    # bf16 MXU operands (f32 accumulate) -> slightly relaxed tolerance vs f32 reference.
    assert bool(jnp.allclose(out, ref, atol=5e-2, rtol=5e-2)), (
        f"mismatch: max abs err = {float(jnp.max(jnp.abs(out - ref)))}")

    print("KERNEL_OK")
</pallas_src>

<mosaic_0001>
module attributes {stable_mosaic.version = 11 : i64} {
  func.func @fused_net_kernel(%arg0: i32, %arg1: memref<1x576x32xbf16, #tpu.memory_space<vmem>>, %arg2: memref<32x128xbf16, #tpu.memory_space<vmem>>, %arg3: memref<1x128xf32, #tpu.memory_space<vmem>>, %arg4: memref<25x128x128xbf16, #tpu.memory_space<vmem>>, %arg5: memref<1x128xf32, #tpu.memory_space<vmem>>, %arg6: memref<2048x128xbf16, #tpu.memory_space<vmem>>, %arg7: memref<1x128xf32, #tpu.memory_space<vmem>>, %arg8: memref<1x1x128xf32, #tpu.memory_space<vmem>>, %arg9: memref<208x128xbf16, #tpu.memory_space<vmem>>, %arg10: memref<208x128xf32, #tpu.memory_space<vmem>>) attributes {dimension_semantics = [#tpu.dimension_semantics<parallel>], iteration_bounds = array<i64: 2>, scalar_prefetch = 0 : i64, scratch_operands = 2 : i64, tpu.core_type = #tpu.core_type<tc>, window_params = [{transform_indices = @transform_0, window_bounds = array<i64: 1, 576, 32>}, {pipeline_mode = #tpu.pipeline_mode<synchronous>, transform_indices = @transform_1, window_bounds = array<i64: 32, 128>}, {pipeline_mode = #tpu.pipeline_mode<synchronous>, transform_indices = @transform_2, window_bounds = array<i64: 1, 128>}, {pipeline_mode = #tpu.pipeline_mode<synchronous>, transform_indices = @transform_3, window_bounds = array<i64: 25, 128, 128>}, {pipeline_mode = #tpu.pipeline_mode<synchronous>, transform_indices = @transform_4, window_bounds = array<i64: 1, 128>}, {pipeline_mode = #tpu.pipeline_mode<synchronous>, transform_indices = @transform_5, window_bounds = array<i64: 2048, 128>}, {pipeline_mode = #tpu.pipeline_mode<synchronous>, transform_indices = @transform_6, window_bounds = array<i64: 1, 128>}, {transform_indices = @transform_7, window_bounds = array<i64: 1, 1, 128>}]} {
    %c0 = arith.constant 0 : index
    %c0_0 = arith.constant 0 : index
    %0 = vector.load %arg2[%c0, %c0_0] : memref<32x128xbf16, #tpu.memory_space<vmem>>, vector<32x128xbf16>
    %c0_1 = arith.constant 0 : index
    %c0_2 = arith.constant 0 : index
    %1 = vector.load %arg3[%c0_1, %c0_2] : memref<1x128xf32, #tpu.memory_space<vmem>>, vector<1x128xf32>
    %c0_3 = arith.constant 0 : index
    %c0_4 = arith.constant 0 : index
    %2 = vector.load %arg5[%c0_3, %c0_4] : memref<1x128xf32, #tpu.memory_space<vmem>>, vector<1x128xf32>
    %c0_5 = arith.constant 0 : index
    %c0_6 = arith.constant 0 : index
    %3 = vector.load %arg6[%c0_5, %c0_6] : memref<2048x128xbf16, #tpu.memory_space<vmem>>, vector<2048x128xbf16>
    %c0_7 = arith.constant 0 : index
    %c0_8 = arith.constant 0 : index
    %4 = vector.load %arg7[%c0_7, %c0_8] : memref<1x128xf32, #tpu.memory_space<vmem>>, vector<1x128xf32>
    %cst = arith.constant 0.000000e+00 : bf16
    %5 = vector.broadcast %cst : bf16 to vector<64x128xbf16>
    %c144 = arith.constant 144 : index
    %c0_9 = arith.constant 0 : index
    %6 = vector.load %arg9[%c144, %c0_9] : memref<208x128xbf16, #tpu.memory_space<vmem>>, vector<64x128xbf16>
    tpu.vector_store %arg9[%c144, %c0_9], %5 {strides = array<i32>} : memref<208x128xbf16, #tpu.memory_space<vmem>>, vector<64x128xbf16>,
    %cst_10 = arith.constant 0.000000e+00 : f32
    %7 = vector.broadcast %cst_10 : f32 to vector<64x128xf32>
    %c144_11 = arith.constant 144 : index
    %c0_12 = arith.constant 0 : index
    %8 = vector.load %arg10[%c144_11, %c0_12] : memref<208x128xf32, #tpu.memory_space<vmem>>, vector<64x128xf32>
    tpu.vector_store %arg10[%c144_11, %c0_12], %7 {strides = array<i32>} : memref<208x128xf32, #tpu.memory_space<vmem>>, vector<64x128xf32>,
    %c0_13 = arith.constant 0 : index
    %c0_14 = arith.constant 0 : index
    %c0_15 = arith.constant 0 : index
    %9 = vector.load %arg1[%c0_13, %c0_14, %c0_15] : memref<1x576x32xbf16, #tpu.memory_space<vmem>>, vector<1x576x32xbf16>
    %10 = vector.shape_cast %9 : vector<1x576x32xbf16> to vector<576x32xbf16>
    %cst_16 = arith.constant dense<0.000000e+00> : vector<576x128xf32>
    %11 = tpu.matmul %10, %0, %cst_16 {dimension_numbers = #tpu.dot_dimension_numbers<[1], [0], [0], [1], [0, 0, 1, 1], [], []>} : vector<576x32xbf16>, vector<32x128xbf16>, vector<576x128xf32> -> vector<576x128xf32>
    %12 = vector.broadcast %1 : vector<1x128xf32> to vector<576x128xf32>
    %13 = arith.addf %11, %12 : vector<576x128xf32>
    %14 = vector.extract_strided_slice %13 {offsets = [0, 0], sizes = [144, 128], strides = [1, 1]} : vector<576x128xf32> to vector<144x128xf32>
    %15 = vector.extract_strided_slice %13 {offsets = [144, 0], sizes = [144, 128], strides = [1, 1]} : vector<576x128xf32> to vector<144x128xf32>
    %16 = arith.maximumf %14, %15 : vector<144x128xf32>
    %17 = vector.extract_strided_slice %13 {offsets = [288, 0], sizes = [144, 128], strides = [1, 1]} : vector<576x128xf32> to vector<144x128xf32>
    %18 = vector.extract_strided_slice %13 {offsets = [432, 0], sizes = [144, 128], strides = [1, 1]} : vector<576x128xf32> to vector<144x128xf32>
    %19 = arith.maximumf %17, %18 : vector<144x128xf32>
    %20 = arith.maximumf %16, %19 : vector<144x128xf32>
    %cst_17 = arith.constant 0.000000e+00 : f32
    %21 = vector.broadcast %cst_17 : f32 to vector<144x128xf32>
    %22 = arith.maximumf %20, %21 : vector<144x128xf32>
    %23 = arith.truncf %22 : vector<144x128xf32> to vector<144x128xbf16>
    %c0_18 = arith.constant 0 : index
    %c0_19 = arith.constant 0 : index
    %24 = vector.load %arg9[%c0_18, %c0_19] : memref<208x128xbf16, #tpu.memory_space<vmem>>, vector<144x128xbf16>
    tpu.vector_store %arg9[%c0_18, %c0_19], %23 {strides = array<i32>} : memref<208x128xbf16, #tpu.memory_space<vmem>>, vector<144x128xbf16>,
    %cst_20 = arith.constant 0.000000e+00 : f32
    %25 = vector.broadcast %cst_20 : f32 to vector<144x128xf32>
    %c0_21 = arith.constant 0 : index
    %c0_22 = arith.constant 0 : index
    %26 = vector.load %arg9[%c0_21, %c0_22] : memref<208x128xbf16, #tpu.memory_space<vmem>>, vector<144x128xbf16>
    %c0_23 = arith.constant 0 : index
    %c0_24 = arith.constant 0 : index
    %c0_25 = arith.constant 0 : index
    %27 = vector.load %arg4[%c0_23, %c0_24, %c0_25] : memref<25x128x128xbf16, #tpu.memory_space<vmem>>, vector<1x128x128xbf16>
    %28 = vector.shape_cast %27 : vector<1x128x128xbf16> to vector<128x128xbf16>
    %cst_26 = arith.constant dense<0.000000e+00> : vector<144x128xf32>
    %29 = tpu.matmul %26, %28, %cst_26 {dimension_numbers = #tpu.dot_dimension_numbers<[1], [0], [0], [1], [0, 0, 1, 1], [], []>} : vector<144x128xbf16>, vector<128x128xbf16>, vector<144x128xf32> -> vector<144x128xf32>
    %30 = arith.addf %25, %29 : vector<144x128xf32>
    %c1 = arith.constant 1 : index
    %c0_27 = arith.constant 0 : index
    %31 = vector.load %arg9[%c1, %c0_27] : memref<208x128xbf16, #tpu.memory_space<vmem>>, vector<144x128xbf16>
    %c1_28 = arith.constant 1 : index
    %c0_29 = arith.constant 0 : index
    %c0_30 = arith.constant 0 : index
    %32 = vector.load %arg4[%c1_28, %c0_29, %c0_30] : memref<25x128x128xbf16, #tpu.memory_space<vmem>>, vector<1x128x128xbf16>
    %33 = vector.shape_cast %32 : vector<1x128x128xbf16> to vector<128x128xbf16>
    %cst_31 = arith.constant dense<0.000000e+00> : vector<144x128xf32>
    %34 = tpu.matmul %31, %33, %cst_31 {dimension_numbers = #tpu.dot_dimension_numbers<[1], [0], [0], [1], [0, 0, 1, 1], [], []>} : vector<144x128xbf16>, vector<128x128xbf16>, vector<144x128xf32> -> vector<144x128xf32>
    %35 = arith.addf %30, %34 : vector<144x128xf32>
    %c2 = arith.constant 2 : index
    %c0_32 = arith.constant 0 : index
    %36 = vector.load %arg9[%c2, %c0_32] : memref<208x128xbf16, #tpu.memory_space<vmem>>, vector<144x128xbf16>
    %c2_33 = arith.constant 2 : index
    %c0_34 = arith.constant 0 : index
    %c0_35 = arith.constant 0 : index
    %37 = vector.load %arg4[%c2_33, %c0_34, %c0_35] : memref<25x128x128xbf16, #tpu.memory_space<vmem>>, vector<1x128x128xbf16>
    %38 = vector.shape_cast %37 : vector<1x128x128xbf16> to vector<128x128xbf16>
    %cst_36 = arith.constant dense<0.000000e+00> : vector<144x128xf32>
    %39 = tpu.matmul %36, %38, %cst_36 {dimension_numbers = #tpu.dot_dimension_numbers<[1], [0], [0], [1], [0, 0, 1, 1], [], []>} : vector<144x128xbf16>, vector<128x128xbf16>, vector<144x128xf32> -> vector<144x128xf32>
    %40 = arith.addf %35, %39 : vector<144x128xf32>
    %c3 = arith.constant 3 : index
    %c0_37 = arith.constant 0 : index
    %41 = vector.load %arg9[%c3, %c0_37] : memref<208x128xbf16, #tpu.memory_space<vmem>>, vector<144x128xbf16>
    %c3_38 = arith.constant 3 : index
    %c0_39 = arith.constant 0 : index
    %c0_40 = arith.constant 0 : index
    %42 = vector.load %arg4[%c3_38, %c0_39, %c0_40] : memref<25x128x128xbf16, #tpu.memory_space<vmem>>, vector<1x128x128xbf16>
    %43 = vector.shape_cast %42 : vector<1x128x128xbf16> to vector<128x128xbf16>
    %cst_41 = arith.constant dense<0.000000e+00> : vector<144x128xf32>
    %44 = tpu.matmul %41, %43, %cst_41 {dimension_numbers = #tpu.dot_dimension_numbers<[1], [0], [0], [1], [0, 0, 1, 1], [], []>} : vector<144x128xbf16>, vector<128x128xbf16>, vector<144x128xf32> -> vector<144x128xf32>
    %45 = arith.addf %40, %44 : vector<144x128xf32>
    %c4 = arith.constant 4 : index
    %c0_42 = arith.constant 0 : index
    %46 = vector.load %arg9[%c4, %c0_42] : memref<208x128xbf16, #tpu.memory_space<vmem>>, vector<144x128xbf16>
    %c4_43 = arith.constant 4 : index
    %c0_44 = arith.constant 0 : index
    %c0_45 = arith.constant 0 : index
    %47 = vector.load %arg4[%c4_43, %c0_44, %c0_45] : memref<25x128x128xbf16, #tpu.memory_space<vmem>>, vector<1x128x128xbf16>
    %48 = vector.shape_cast %47 : vector<1x128x128xbf16> to vector<128x128xbf16>
    %cst_46 = arith.constant dense<0.000000e+00> : vector<144x128xf32>
    %49 = tpu.matmul %46, %48, %cst_46 {dimension_numbers = #tpu.dot_dimension_numbers<[1], [0], [0], [1], [0, 0, 1, 1], [], []>} : vector<144x128xbf16>, vector<128x128xbf16>, vector<144x128xf32> -> vector<144x128xf32>
    %50 = arith.addf %45, %49 : vector<144x128xf32>
    %c12 = arith.constant 12 : index
    %c0_47 = arith.constant 0 : index
    %51 = vector.load %arg9[%c12, %c0_47] : memref<208x128xbf16, #tpu.memory_space<vmem>>, vector<144x128xbf16>
    %c5 = arith.constant 5 : index
    %c0_48 = arith.constant 0 : index
    %c0_49 = arith.constant 0 : index
    %52 = vector.load %arg4[%c5, %c0_48, %c0_49] : memref<25x128x128xbf16, #tpu.memory_space<vmem>>, vector<1x128x128xbf16>
    %53 = vector.shape_cast %52 : vector<1x128x128xbf16> to vector<128x128xbf16>
    %cst_50 = arith.constant dense<0.000000e+00> : vector<144x128xf32>
    %54 = tpu.matmul %51, %53, %cst_50 {dimension_numbers = #tpu.dot_dimension_numbers<[1], [0], [0], [1], [0, 0, 1, 1], [], []>} : vector<144x128xbf16>, vector<128x128xbf16>, vector<144x128xf32> -> vector<144x128xf32>
    %55 = arith.addf %50, %54 : vector<144x128xf32>
    %c13 = arith.constant 13 : index
    %c0_51 = arith.constant 0 : index
    %56 = vector.load %arg9[%c13, %c0_51] : memref<208x128xbf16, #tpu.memory_space<vmem>>, vector<144x128xbf16>
    %c6 = arith.constant 6 : index
    %c0_52 = arith.constant 0 : index
    %c0_53 = arith.constant 0 : index
    %57 = vector.load %arg4[%c6, %c0_52, %c0_53] : memref<25x128x128xbf16, #tpu.memory_space<vmem>>, vector<1x128x128xbf16>
    %58 = vector.shape_cast %57 : vector<1x128x128xbf16> to vector<128x128xbf16>
    %cst_54 = arith.constant dense<0.000000e+00> : vector<144x128xf32>
    %59 = tpu.matmul %56, %58, %cst_54 {dimension_numbers = #tpu.dot_dimension_numbers<[1], [0], [0], [1], [0, 0, 1, 1], [], []>} : vector<144x128xbf16>, vector<128x128xbf16>, vector<144x128xf32> -> vector<144x128xf32>
    %60 = arith.addf %55, %59 : vector<144x128xf32>
    %c14 = arith.constant 14 : index
    %c0_55 = arith.constant 0 : index
    %61 = vector.load %arg9[%c14, %c0_55] : memref<208x128xbf16, #tpu.memory_space<vmem>>, vector<144x128xbf16>
    %c7 = arith.constant 7 : index
    %c0_56 = arith.constant 0 : index
    %c0_57 = arith.constant 0 : index
    %62 = vector.load %arg4[%c7, %c0_56, %c0_57] : memref<25x128x128xbf16, #tpu.memory_space<vmem>>, vector<1x128x128xbf16>
    %63 = vector.shape_cast %62 : vector<1x128x128xbf16> to vector<128x128xbf16>
    %cst_58 = arith.constant dense<0.000000e+00> : vector<144x128xf32>
    %64 = tpu.matmul %61, %63, %cst_58 {dimension_numbers = #tpu.dot_dimension_numbers<[1], [0], [0], [1], [0, 0, 1, 1], [], []>} : vector<144x128xbf16>, vector<128x128xbf16>, vector<144x128xf32> -> vector<144x128xf32>
    %65 = arith.addf %60, %64 : vector<144x128xf32>
    %c15 = arith.constant 15 : index
    %c0_59 = arith.constant 0 : index
    %66 = vector.load %arg9[%c15, %c0_59] : memref<208x128xbf16, #tpu.memory_space<vmem>>, vector<144x128xbf16>
    %c8 = arith.constant 8 : index
    %c0_60 = arith.constant 0 : index
    %c0_61 = arith.constant 0 : index
    %67 = vector.load %arg4[%c8, %c0_60, %c0_61] : memref<25x128x128xbf16, #tpu.memory_space<vmem>>, vector<1x128x128xbf16>
    %68 = vector.shape_cast %67 : vector<1x128x128xbf16> to vector<128x128xbf16>
    %cst_62 = arith.constant dense<0.000000e+00> : vector<144x128xf32>
    %69 = tpu.matmul %66, %68, %cst_62 {dimension_numbers = #tpu.dot_dimension_numbers<[1], [0], [0], [1], [0, 0, 1, 1], [], []>} : vector<144x128xbf16>, vector<128x128xbf16>, vector<144x128xf32> -> vector<144x128xf32>
    %70 = arith.addf %65, %69 : vector<144x128xf32>
    %c16 = arith.constant 16 : index
    %c0_63 = arith.constant 0 : index
    %71 = vector.load %arg9[%c16, %c0_63] : memref<208x128xbf16, #tpu.memory_space<vmem>>, vector<144x128xbf16>
    %c9 = arith.constant 9 : index
    %c0_64 = arith.constant 0 : index
    %c0_65 = arith.constant 0 : index
    %72 = vector.load %arg4[%c9, %c0_64, %c0_65] : memref<25x128x128xbf16, #tpu.memory_space<vmem>>, vector<1x128x128xbf16>
    %73 = vector.shape_cast %72 : vector<1x128x128xbf16> to vector<128x128xbf16>
    %cst_66 = arith.constant dense<0.000000e+00> : vector<144x128xf32>
    %74 = tpu.matmul %71, %73, %cst_66 {dimension_numbers = #tpu.dot_dimension_numbers<[1], [0], [0], [1], [0, 0, 1, 1], [], []>} : vector<144x128xbf16>, vector<128x128xbf16>, vector<144x128xf32> -> vector<144x128xf32>
    %75 = arith.addf %70, %74 : vector<144x128xf32>
    %c24 = arith.constant 24 : index
    %c0_67 = arith.constant 0 : index
    %76 = vector.load %arg9[%c24, %c0_67] : memref<208x128xbf16, #tpu.memory_space<vmem>>, vector<144x128xbf16>
    %c10 = arith.constant 10 : index
    %c0_68 = arith.constant 0 : index
    %c0_69 = arith.constant 0 : index
    %77 = vector.load %arg4[%c10, %c0_68, %c0_69] : memref<25x128x128xbf16, #tpu.memory_space<vmem>>, vector<1x128x128xbf16>
    %78 = vector.shape_cast %77 : vector<1x128x128xbf16> to vector<128x128xbf16>
    %cst_70 = arith.constant dense<0.000000e+00> : vector<144x128xf32>
    %79 = tpu.matmul %76, %78, %cst_70 {dimension_numbers = #tpu.dot_dimension_numbers<[1], [0], [0], [1], [0, 0, 1, 1], [], []>} : vector<144x128xbf16>, vector<128x128xbf16>, vector<144x128xf32> -> vector<144x128xf32>
    %80 = arith.addf %75, %79 : vector<144x128xf32>
    %c25 = arith.constant 25 : index
    %c0_71 = arith.constant 0 : index
    %81 = vector.load %arg9[%c25, %c0_71] : memref<208x128xbf16, #tpu.memory_space<vmem>>, vector<144x128xbf16>
    %c11 = arith.constant 11 : index
    %c0_72 = arith.constant 0 : index
    %c0_73 = arith.constant 0 : index
    %82 = vector.load %arg4[%c11, %c0_72, %c0_73] : memref<25x128x128xbf16, #tpu.memory_space<vmem>>, vector<1x128x128xbf16>
    %83 = vector.shape_cast %82 : vector<1x128x128xbf16> to vector<128x128xbf16>
    %cst_74 = arith.constant dense<0.000000e+00> : vector<144x128xf32>
    %84 = tpu.matmul %81, %83, %cst_74 {dimension_numbers = #tpu.dot_dimension_numbers<[1], [0], [0], [1], [0, 0, 1, 1], [], []>} : vector<144x128xbf16>, vector<128x128xbf16>, vector<144x128xf32> -> vector<144x128xf32>
    %85 = arith.addf %80, %84 : vector<144x128xf32>
    %c26 = arith.constant 26 : index
    %c0_75 = arith.constant 0 : index
    %86 = vector.load %arg9[%c26, %c0_75] : memref<208x128xbf16, #tpu.memory_space<vmem>>, vector<144x128xbf16>
    %c12_76 = arith.constant 12 : index
    %c0_77 = arith.constant 0 : index
    %c0_78 = arith.constant 0 : index
    %87 = vector.load %arg4[%c12_76, %c0_77, %c0_78] : memref<25x128x128xbf16, #tpu.memory_space<vmem>>, vector<1x128x128xbf16>
    %88 = vector.shape_cast %87 : vector<1x128x128xbf16> to vector<128x128xbf16>
    %cst_79 = arith.constant dense<0.000000e+00> : vector<144x128xf32>
    %89 = tpu.matmul %86, %88, %cst_79 {dimension_numbers = #tpu.dot_dimension_numbers<[1], [0], [0], [1], [0, 0, 1, 1], [], []>} : vector<144x128xbf16>, vector<128x128xbf16>, vector<144x128xf32> -> vector<144x128xf32>
    %90 = arith.addf %85, %89 : vector<144x128xf32>
    %c27 = arith.constant 27 : index
    %c0_80 = arith.constant 0 : index
    %91 = vector.load %arg9[%c27, %c0_80] : memref<208x128xbf16, #tpu.memory_space<vmem>>, vector<144x128xbf16>
    %c13_81 = arith.constant 13 : index
    %c0_82 = arith.constant 0 : index
    %c0_83 = arith.constant 0 : index
    %92 = vector.load %arg4[%c13_81, %c0_82, %c0_83] : memref<25x128x128xbf16, #tpu.memory_space<vmem>>, vector<1x128x128xbf16>
    %93 = vector.shape_cast %92 : vector<1x128x128xbf16> to vector<128x128xbf16>
    %cst_84 = arith.constant dense<0.000000e+00> : vector<144x128xf32>
    %94 = tpu.matmul %91, %93, %cst_84 {dimension_numbers = #tpu.dot_dimension_numbers<[1], [0], [0], [1], [0, 0, 1, 1], [], []>} : vector<144x128xbf16>, vector<128x128xbf16>, vector<144x128xf32> -> vector<144x128xf32>
    %95 = arith.addf %90, %94 : vector<144x128xf32>
    %c28 = arith.constant 28 : index
    %c0_85 = arith.constant 0 : index
    %96 = vector.load %arg9[%c28, %c0_85] : memref<208x128xbf16, #tpu.memory_space<vmem>>, vector<144x128xbf16>
    %c14_86 = arith.constant 14 : index
    %c0_87 = arith.constant 0 : index
    %c0_88 = arith.constant 0 : index
    %97 = vector.load %arg4[%c14_86, %c0_87, %c0_88] : memref<25x128x128xbf16, #tpu.memory_space<vmem>>, vector<1x128x128xbf16>
    %98 = vector.shape_cast %97 : vector<1x128x128xbf16> to vector<128x128xbf16>
    %cst_89 = arith.constant dense<0.000000e+00> : vector<144x128xf32>
    %99 = tpu.matmul %96, %98, %cst_89 {dimension_numbers = #tpu.dot_dimension_numbers<[1], [0], [0], [1], [0, 0, 1, 1], [], []>} : vector<144x128xbf16>, vector<128x128xbf16>, vector<144x128xf32> -> vector<144x128xf32>
    %100 = arith.addf %95, %99 : vector<144x128xf32>
    %c36 = arith.constant 36 : index
    %c0_90 = arith.constant 0 : index
    %101 = vector.load %arg9[%c36, %c0_90] : memref<208x128xbf16, #tpu.memory_space<vmem>>, vector<144x128xbf16>
    %c15_91 = arith.constant 15 : index
    %c0_92 = arith.constant 0 : index
    %c0_93 = arith.constant 0 : index
    %102 = vector.load %arg4[%c15_91, %c0_92, %c0_93] : memref<25x128x128xbf16, #tpu.memory_space<vmem>>, vector<1x128x128xbf16>
    %103 = vector.shape_cast %102 : vector<1x128x128xbf16> to vector<128x128xbf16>
    %cst_94 = arith.constant dense<0.000000e+00> : vector<144x128xf32>
    %104 = tpu.matmul %101, %103, %cst_94 {dimension_numbers = #tpu.dot_dimension_numbers<[1], [0], [0], [1], [0, 0, 1, 1], [], []>} : vector<144x128xbf16>, vector<128x128xbf16>, vector<144x128xf32> -> vector<144x128xf32>
    %105 = arith.addf %100, %104 : vector<144x128xf32>
    %c37 = arith.constant 37 : index
    %c0_95 = arith.constant 0 : index
    %106 = vector.load %arg9[%c37, %c0_95] : memref<208x128xbf16, #tpu.memory_space<vmem>>, vector<144x128xbf16>
    %c16_96 = arith.constant 16 : index
    %c0_97 = arith.constant 0 : index
    %c0_98 = arith.constant 0 : index
    %107 = vector.load %arg4[%c16_96, %c0_97, %c0_98] : memref<25x128x128xbf16, #tpu.memory_space<vmem>>, vector<1x128x128xbf16>
    %108 = vector.shape_cast %107 : vector<1x128x128xbf16> to vector<128x128xbf16>
    %cst_99 = arith.constant dense<0.000000e+00> : vector<144x128xf32>
    %109 = tpu.matmul %106, %108, %cst_99 {dimension_numbers = #tpu.dot_dimension_numbers<[1], [0], [0], [1], [0, 0, 1, 1], [], []>} : vector<144x128xbf16>, vector<128x128xbf16>, vector<144x128xf32> -> vector<144x128xf32>
    %110 = arith.addf %105, %109 : vector<144x128xf32>
    %c38 = arith.constant 38 : index
    %c0_100 = arith.constant 0 : index
    %111 = vector.load %arg9[%c38, %c0_100] : memref<208x128xbf16, #tpu.memory_space<vmem>>, vector<144x128xbf16>
    %c17 = arith.constant 17 : index
    %c0_101 = arith.constant 0 : index
    %c0_102 = arith.constant 0 : index
    %112 = vector.load %arg4[%c17, %c0_101, %c0_102] : memref<25x128x128xbf16, #tpu.memory_space<vmem>>, vector<1x128x128xbf16>
    %113 = vector.shape_cast %112 : vector<1x128x128xbf16> to vector<128x128xbf16>
    %cst_103 = arith.constant dense<0.000000e+00> : vector<144x128xf32>
    %114 = tpu.matmul %111, %113, %cst_103 {dimension_numbers = #tpu.dot_dimension_numbers<[1], [0], [0], [1], [0, 0, 1, 1], [], []>} : vector<144x128xbf16>, vector<128x128xbf16>, vector<144x128xf32> -> vector<144x128xf32>
    %115 = arith.addf %110, %114 : vector<144x128xf32>
    %c39 = arith.constant 39 : index
    %c0_104 = arith.constant 0 : index
    %116 = vector.load %arg9[%c39, %c0_104] : memref<208x128xbf16, #tpu.memory_space<vmem>>, vector<144x128xbf16>
    %c18 = arith.constant 18 : index
    %c0_105 = arith.constant 0 : index
    %c0_106 = arith.constant 0 : index
    %117 = vector.load %arg4[%c18, %c0_105, %c0_106] : memref<25x128x128xbf16, #tpu.memory_space<vmem>>, vector<1x128x128xbf16>
    %118 = vector.shape_cast %117 : vector<1x128x128xbf16> to vector<128x128xbf16>
    %cst_107 = arith.constant dense<0.000000e+00> : vector<144x128xf32>
    %119 = tpu.matmul %116, %118, %cst_107 {dimension_numbers = #tpu.dot_dimension_numbers<[1], [0], [0], [1], [0, 0, 1, 1], [], []>} : vector<144x128xbf16>, vector<128x128xbf16>, vector<144x128xf32> -> vector<144x128xf32>
    %120 = arith.addf %115, %119 : vector<144x128xf32>
    %c40 = arith.constant 40 : index
    %c0_108 = arith.constant 0 : index
    %121 = vector.load %arg9[%c40, %c0_108] : memref<208x128xbf16, #tpu.memory_space<vmem>>, vector<144x128xbf16>
    %c19 = arith.constant 19 : index
    %c0_109 = arith.constant 0 : index
    %c0_110 = arith.constant 0 : index
    %122 = vector.load %arg4[%c19, %c0_109, %c0_110] : memref<25x128x128xbf16, #tpu.memory_space<vmem>>, vector<1x128x128xbf16>
    %123 = vector.shape_cast %122 : vector<1x128x128xbf16> to vector<128x128xbf16>
    %cst_111 = arith.constant dense<0.000000e+00> : vector<144x128xf32>
    %124 = tpu.matmul %121, %123, %cst_111 {dimension_numbers = #tpu.dot_dimension_numbers<[1], [0], [0], [1], [0, 0, 1, 1], [], []>} : vector<144x128xbf16>, vector<128x128xbf16>, vector<144x128xf32> -> vector<144x128xf32>
    %125 = arith.addf %120, %124 : vector<144x128xf32>
    %c48 = arith.constant 48 : index
    %c0_112 = arith.constant 0 : index
    %126 = vector.load %arg9[%c48, %c0_112] : memref<208x128xbf16, #tpu.memory_space<vmem>>, vector<144x128xbf16>
    %c20 = arith.constant 20 : index
    %c0_113 = arith.constant 0 : index
    %c0_114 = arith.constant 0 : index
    %127 = vector.load %arg4[%c20, %c0_113, %c0_114] : memref<25x128x128xbf16, #tpu.memory_space<vmem>>, vector<1x128x128xbf16>
    %128 = vector.shape_cast %127 : vector<1x128x128xbf16> to vector<128x128xbf16>
    %cst_115 = arith.constant dense<0.000000e+00> : vector<144x128xf32>
    %129 = tpu.matmul %126, %128, %cst_115 {dimension_numbers = #tpu.dot_dimension_numbers<[1], [0], [0], [1], [0, 0, 1, 1], [], []>} : vector<144x128xbf16>, vector<128x128xbf16>, vector<144x128xf32> -> vector<144x128xf32>
    %130 = arith.addf %125, %129 : vector<144x128xf32>
    %c49 = arith.constant 49 : index
    %c0_116 = arith.constant 0 : index
    %131 = vector.load %arg9[%c49, %c0_116] : memref<208x128xbf16, #tpu.memory_space<vmem>>, vector<144x128xbf16>
    %c21 = arith.constant 21 : index
    %c0_117 = arith.constant 0 : index
    %c0_118 = arith.constant 0 : index
    %132 = vector.load %arg4[%c21, %c0_117, %c0_118] : memref<25x128x128xbf16, #tpu.memory_space<vmem>>, vector<1x128x128xbf16>
    %133 = vector.shape_cast %132 : vector<1x128x128xbf16> to vector<128x128xbf16>
    %cst_119 = arith.constant dense<0.000000e+00> : vector<144x128xf32>
    %134 = tpu.matmul %131, %133, %cst_119 {dimension_numbers = #tpu.dot_dimension_numbers<[1], [0], [0], [1], [0, 0, 1, 1], [], []>} : vector<144x128xbf16>, vector<128x128xbf16>, vector<144x128xf32> -> vector<144x128xf32>
    %135 = arith.addf %130, %134 : vector<144x128xf32>
    %c50 = arith.constant 50 : index
    %c0_120 = arith.constant 0 : index
    %136 = vector.load %arg9[%c50, %c0_120] : memref<208x128xbf16, #tpu.memory_space<vmem>>, vector<144x128xbf16>
    %c22 = arith.constant 22 : index
    %c0_121 = arith.constant 0 : index
    %c0_122 = arith.constant 0 : index
    %137 = vector.load %arg4[%c22, %c0_121, %c0_122] : memref<25x128x128xbf16, #tpu.memory_space<vmem>>, vector<1x128x128xbf16>
    %138 = vector.shape_cast %137 : vector<1x128x128xbf16> to vector<128x128xbf16>
    %cst_123 = arith.constant dense<0.000000e+00> : vector<144x128xf32>
    %139 = tpu.matmul %136, %138, %cst_123 {dimension_numbers = #tpu.dot_dimension_numbers<[1], [0], [0], [1], [0, 0, 1, 1], [], []>} : vector<144x128xbf16>, vector<128x128xbf16>, vector<144x128xf32> -> vector<144x128xf32>
    %140 = arith.addf %135, %139 : vector<144x128xf32>
    %c51 = arith.constant 51 : index
    %c0_124 = arith.constant 0 : index
    %141 = vector.load %arg9[%c51, %c0_124] : memref<208x128xbf16, #tpu.memory_space<vmem>>, vector<144x128xbf16>
    %c23 = arith.constant 23 : index
    %c0_125 = arith.constant 0 : index
    %c0_126 = arith.constant 0 : index
    %142 = vector.load %arg4[%c23, %c0_125, %c0_126] : memref<25x128x128xbf16, #tpu.memory_space<vmem>>, vector<1x128x128xbf16>
    %143 = vector.shape_cast %142 : vector<1x128x128xbf16> to vector<128x128xbf16>
    %cst_127 = arith.constant dense<0.000000e+00> : vector<144x128xf32>
    %144 = tpu.matmul %141, %143, %cst_127 {dimension_numbers = #tpu.dot_dimension_numbers<[1], [0], [0], [1], [0, 0, 1, 1], [], []>} : vector<144x128xbf16>, vector<128x128xbf16>, vector<144x128xf32> -> vector<144x128xf32>
    %145 = arith.addf %140, %144 : vector<144x128xf32>
    %c52 = arith.constant 52 : index
    %c0_128 = arith.constant 0 : index
    %146 = vector.load %arg9[%c52, %c0_128] : memref<208x128xbf16, #tpu.memory_space<vmem>>, vector<144x128xbf16>
    %c24_129 = arith.constant 24 : index
    %c0_130 = arith.constant 0 : index
    %c0_131 = arith.constant 0 : index
    %147 = vector.load %arg4[%c24_129, %c0_130, %c0_131] : memref<25x128x128xbf16, #tpu.memory_space<vmem>>, vector<1x128x128xbf16>
    %148 = vector.shape_cast %147 : vector<1x128x128xbf16> to vector<128x128xbf16>
    %cst_132 = arith.constant dense<0.000000e+00> : vector<144x128xf32>
    %149 = tpu.matmul %146, %148, %cst_132 {dimension_numbers = #tpu.dot_dimension_numbers<[1], [0], [0], [1], [0, 0, 1, 1], [], []>} : vector<144x128xbf16>, vector<128x128xbf16>, vector<144x128xf32> -> vector<144x128xf32>
    %150 = arith.addf %145, %149 : vector<144x128xf32>
    %151 = vector.broadcast %2 : vector<1x128xf32> to vector<144x128xf32>
    %152 = arith.addf %150, %151 : vector<144x128xf32>
    %c0_133 = arith.constant 0 : index
    %c0_134 = arith.constant 0 : index
    %153 = vector.load %arg10[%c0_133, %c0_134] : memref<208x128xf32, #tpu.memory_space<vmem>>, vector<144x128xf32>
    tpu.vector_store %arg10[%c0_133, %c0_134], %152 {strides = array<i32>} : memref<208x128xf32, #tpu.memory_space<vmem>>, vector<144x128xf32>,
    %c0_135 = arith.constant 0 : index
    %c0_136 = arith.constant 0 : index
    %154 = vector.load %arg10[%c0_135, %c0_136] : memref<208x128xf32, #tpu.memory_space<vmem>>, vector<144x128xf32>
    %c1_137 = arith.constant 1 : index
    %c0_138 = arith.constant 0 : index
    %155 = vector.load %arg10[%c1_137, %c0_138] : memref<208x128xf32, #tpu.memory_space<vmem>>, vector<144x128xf32>
    %156 = arith.maximumf %154, %155 : vector<144x128xf32>
    %c12_139 = arith.constant 12 : index
    %c0_140 = arith.constant 0 : index
    %157 = vector.load %arg10[%c12_139, %c0_140] : memref<208x128xf32, #tpu.memory_space<vmem>>, vector<144x128xf32>
    %c13_141 = arith.constant 13 : index
    %c0_142 = arith.constant 0 : index
    %158 = vector.load %arg10[%c13_141, %c0_142] : memref<208x128xf32, #tpu.memory_space<vmem>>, vector<144x128xf32>
    %159 = arith.maximumf %157, %158 : vector<144x128xf32>
    %160 = arith.maximumf %156, %159 : vector<144x128xf32>
    %cst_143 = arith.constant 0.000000e+00 : f32
    %161 = vector.broadcast %cst_143 : f32 to vector<144x128xf32>
    %162 = arith.maximumf %160, %161 : vector<144x128xf32>
    %c0_144 = arith.constant 0 : index
    %c0_145 = arith.constant 0 : index
    %163 = vector.load %arg10[%c0_144, %c0_145] : memref<208x128xf32, #tpu.memory_space<vmem>>, vector<144x128xf32>
    tpu.vector_store %arg10[%c0_144, %c0_145], %162 {strides = array<i32>} : memref<208x128xf32, #tpu.memory_space<vmem>>, vector<144x128xf32>,
    %c0_146 = arith.constant 0 : index
    %c0_147 = arith.constant 0 : index
    %164 = vector.load %arg10[%c0_146, %c0_147] : memref<208x128xf32, #tpu.memory_space<vmem>>, vector<1x128xf32>
    %c2_148 = arith.constant 2 : index
    %c0_149 = arith.constant 0 : index
    %165 = vector.load %arg10[%c2_148, %c0_149] : memref<208x128xf32, #tpu.memory_space<vmem>>, vector<1x128xf32>
    %c4_150 = arith.constant 4 : index
    %c0_151 = arith.constant 0 : index
    %166 = vector.load %arg10[%c4_150, %c0_151] : memref<208x128xf32, #tpu.memory_space<vmem>>, vector<1x128xf32>
    %c6_152 = arith.constant 6 : index
    %c0_153 = arith.constant 0 : index
    %167 = vector.load %arg10[%c6_152, %c0_153] : memref<208x128xf32, #tpu.memory_space<vmem>>, vector<1x128xf32>
    %c24_154 = arith.constant 24 : index
    %c0_155 = arith.constant 0 : index
    %168 = vector.load %arg10[%c24_154, %c0_155] : memref<208x128xf32, #tpu.memory_space<vmem>>, vector<1x128xf32>
    %c26_156 = arith.constant 26 : index
    %c0_157 = arith.constant 0 : index
    %169 = vector.load %arg10[%c26_156, %c0_157] : memref<208x128xf32, #tpu.memory_space<vmem>>, vector<1x128xf32>
    %c28_158 = arith.constant 28 : index
    %c0_159 = arith.constant 0 : index
    %170 = vector.load %arg10[%c28_158, %c0_159] : memref<208x128xf32, #tpu.memory_space<vmem>>, vector<1x128xf32>
    %c30 = arith.constant 30 : index
    %c0_160 = arith.constant 0 : index
    %171 = vector.load %arg10[%c30, %c0_160] : memref<208x128xf32, #tpu.memory_space<vmem>>, vector<1x128xf32>
    %c48_161 = arith.constant 48 : index
    %c0_162 = arith.constant 0 : index
    %172 = vector.load %arg10[%c48_161, %c0_162] : memref<208x128xf32, #tpu.memory_space<vmem>>, vector<1x128xf32>
    %c50_163 = arith.constant 50 : index
    %c0_164 = arith.constant 0 : index
    %173 = vector.load %arg10[%c50_163, %c0_164] : memref<208x128xf32, #tpu.memory_space<vmem>>, vector<1x128xf32>
    %c52_165 = arith.constant 52 : index
    %c0_166 = arith.constant 0 : index
    %174 = vector.load %arg10[%c52_165, %c0_166] : memref<208x128xf32, #tpu.memory_space<vmem>>, vector<1x128xf32>
    %c54 = arith.constant 54 : index
    %c0_167 = arith.constant 0 : index
    %175 = vector.load %arg10[%c54, %c0_167] : memref<208x128xf32, #tpu.memory_space<vmem>>, vector<1x128xf32>
    %c72 = arith.constant 72 : index
    %c0_168 = arith.constant 0 : index
    %176 = vector.load %arg10[%c72, %c0_168] : memref<208x128xf32, #tpu.memory_space<vmem>>, vector<1x128xf32>
    %c74 = arith.constant 74 : index
    %c0_169 = arith.constant 0 : index
    %177 = vector.load %arg10[%c74, %c0_169] : memref<208x128xf32, #tpu.memory_space<vmem>>, vector<1x128xf32>
    %c76 = arith.constant 76 : index
    %c0_170 = arith.constant 0 : index
    %178 = vector.load %arg10[%c76, %c0_170] : memref<208x128xf32, #tpu.memory_space<vmem>>, vector<1x128xf32>
    %c78 = arith.constant 78 : index
    %c0_171 = arith.constant 0 : index
    %179 = vector.load %arg10[%c78, %c0_171] : memref<208x128xf32, #tpu.memory_space<vmem>>, vector<1x128xf32>
    %180 = tpu.concatenate %164, %165, %166, %167, %168, %169, %170, %171, %172, %173, %174, %175, %176, %177, %178, %179 in 1 : vector<1x128xf32>, vector<1x128xf32>, vector<1x128xf32>, vector<1x128xf32>, vector<1x128xf32>, vector<1x128xf32>, vector<1x128xf32>, vector<1x128xf32>, vector<1x128xf32>, vector<1x128xf32>, vector<1x128xf32>, vector<1x128xf32>, vector<1x128xf32>, vector<1x128xf32>, vector<1x128xf32>, vector<1x128xf32> -> vector<1x2048xf32>
    %181 = arith.truncf %180 : vector<1x2048xf32> to vector<1x2048xbf16>
    %cst_172 = arith.constant dense<0.000000e+00> : vector<1x128xf32>
    %182 = tpu.matmul %181, %3, %cst_172 {dimension_numbers = #tpu.dot_dimension_numbers<[1], [0], [0], [1], [0, 0, 1, 1], [], []>} : vector<1x2048xbf16>, vector<2048x128xbf16>, vector<1x128xf32> -> vector<1x128xf32>
    %183 = arith.addf %182, %4 : vector<1x128xf32>
    %184 = tpu.iota {dimensions = array<i32: 1>} : vector<1x128xi32>
    %c10_i32 = arith.constant 10 : i32
    %185 = vector.broadcast %c10_i32 : i32 to vector<1x128xi32>
    %186 = arith.cmpi slt, %184, %185 : vector<1x128xi32>
    %cst_173 = arith.constant -1.000000e+30 : f32
    %187 = vector.broadcast %cst_173 : f32 to vector<1x128xf32>
    %188 = arith.select %186, %183, %187 : vector<1x128xi1>, vector<1x128xf32>
    %cst_174 = arith.constant dense<0xFF800000> : vector<1xf32>
    %189 = vector.multi_reduction <maximumf>, %188, %cst_174 [1] : vector<1x128xf32> to vector<1xf32>
    %190 = vector.shape_cast %189 : vector<1xf32> to vector<1x1xf32>
    %191 = vector.broadcast %190 : vector<1x1xf32> to vector<1x128xf32>
    %192 = arith.subf %188, %191 : vector<1x128xf32>
    %193 = math.exp %192 : vector<1x128xf32>
    %cst_175 = arith.constant dense<0.000000e+00> : vector<1xf32>
    %194 = vector.multi_reduction <add>, %193, %cst_175 [1] : vector<1x128xf32> to vector<1xf32>
    %195 = vector.shape_cast %194 : vector<1xf32> to vector<1x1xf32>
    %196 = math.log %195 : vector<1x1xf32>
    %197 = arith.addf %196, %190 : vector<1x1xf32>
    %198 = vector.broadcast %197 : vector<1x1xf32> to vector<1x128xf32>
    %199 = arith.subf %188, %198 : vector<1x128xf32>
    %c0_176 = arith.constant 0 : index
    %c0_177 = arith.constant 0 : index
    %c0_178 = arith.constant 0 : index
    %200 = vector.load %arg8[%c0_176, %c0_177, %c0_178] : memref<1x1x128xf32, #tpu.memory_space<vmem>>, vector<1x1x128xf32>
    %201 = vector.shape_cast %200 : vector<1x1x128xf32> to vector<1x128xf32>
    %202 = vector.shape_cast %199 : vector<1x128xf32> to vector<1x1x128xf32>
    tpu.vector_store %arg8[%c0_176, %c0_177, %c0_178], %202 {strides = array<i32>} : memref<1x1x128xf32, #tpu.memory_space<vmem>>, vector<1x1x128xf32>,
    return
  }
  func.func @transform_0(%arg0: i32) -> (i32, i32, i32) {
    %c0_i32 = arith.constant 0 : i32
    %c0_i32_0 = arith.constant 0 : i32
    %c0_i32_1 = arith.constant 0 : i32
    return %arg0, %c0_i32, %c0_i32_0 : i32, i32, i32
  }
  func.func @transform_1(%arg0: i32) -> (i32, i32) {
    %c0_i32 = arith.constant 0 : i32
    %c0_i32_0 = arith.constant 0 : i32
    %c0_i32_1 = arith.constant 0 : i32
    return %c0_i32, %c0_i32_0 : i32, i32
  }
  func.func @transform_2(%arg0: i32) -> (i32, i32) {
    %c0_i32 = arith.constant 0 : i32
    %c0_i32_0 = arith.constant 0 : i32
    %c0_i32_1 = arith.constant 0 : i32
    return %c0_i32, %c0_i32_0 : i32, i32
  }
  func.func @transform_3(%arg0: i32) -> (i32, i32, i32) {
    %c0_i32 = arith.constant 0 : i32
    %c0_i32_0 = arith.constant 0 : i32
    %c0_i32_1 = arith.constant 0 : i32
    %c0_i32_2 = arith.constant 0 : i32
    return %c0_i32, %c0_i32_0, %c0_i32_1 : i32, i32, i32
  }
  func.func @transform_4(%arg0: i32) -> (i32, i32) {
    %c0_i32 = arith.constant 0 : i32
    %c0_i32_0 = arith.constant 0 : i32
    %c0_i32_1 = arith.constant 0 : i32
    return %c0_i32, %c0_i32_0 : i32, i32
  }
  func.func @transform_5(%arg0: i32) -> (i32, i32) {
    %c0_i32 = arith.constant 0 : i32
    %c0_i32_0 = arith.constant 0 : i32
    %c0_i32_1 = arith.constant 0 : i32
    return %c0_i32, %c0_i32_0 : i32, i32
  }
  func.func @transform_6(%arg0: i32) -> (i32, i32) {
    %c0_i32 = arith.constant 0 : i32
    %c0_i32_0 = arith.constant 0 : i32
    %c0_i32_1 = arith.constant 0 : i32
    return %c0_i32, %c0_i32_0 : i32, i32
  }
  func.func @transform_7(%arg0: i32) -> (i32, i32, i32) {
    %c0_i32 = arith.constant 0 : i32
    %c0_i32_0 = arith.constant 0 : i32
    %c0_i32_1 = arith.constant 0 : i32
    return %arg0, %c0_i32, %c0_i32_0 : i32, i32, i32
  }
}

</mosaic_0001>

<bundles_post_ra>
// kernel: net_forward.1
= control target key start
LH: loop header
LB: loop body
LE: loop exit
PB: predicated region body
PF: predicated region fallthrough
CT: control target
= control target key end

     0   :  { %12 = vsyncpa [#allocation5], 0  ;;  %s16430_s0 = inlined_call_operand.vmem [shape: bf16[2,576,32], index: 0, kind: input, shape index: {}]   ;;  %s16431_s1 = inlined_call_operand.vmem [shape: bf16[32,128], index: 1, kind: input, shape index: {}]   ;;  %s16432_s2 = inlined_call_operand.vmem [shape: f32[1,128], index: 2, kind: input, shape index: {}]   ;;  %s16433_s3 = inlined_call_operand.vmem [shape: bf16[25,128,128], index: 3, kind: input, shape index: {}]   ;;  %s16434_s4 = inlined_call_operand.vmem [shape: f32[1,128], index: 4, kind: input, shape index: {}]   ;;  %s16435_s5 = inlined_call_operand.vmem [shape: bf16[2048,128], index: 5, kind: input, shape index: {}]   ;;  %s16436_s6 = inlined_call_operand.vmem [shape: f32[1,128], index: 6, kind: input, shape index: {}]   ;;  %s16437_s7 = inlined_call_operand.hbm [shape: f32[2,1,128], index: 7, kind: output, shape index: {}]  }
   0x1   :  { %14 = vsyncpa [#allocation5 + $0x1], 0  ;;  %s11956_s24 = smov 0   ;;  %s11958_s25 = smov 0  }
   0x2   :  { %s11960_s26 = smov 0   ;;  %s11962_s27 = smov 0  }
   0x3 LB: > { %s11977_s28 = sadd.s32 4294967295, %s11910_s27   ;;  %s8584_s29 = sadd.s32 4294967294, %s11910_s27   ;;  %s11910_s27 = sphi %s11962_s27, %s16697_s27   ;;  %s11906_s26 = sphi %s11960_s26, %s16696_s26   ;;  %s11902_s25 = sphi %s11958_s25, %s16695_s25   ;;  %s11898_s24 = sphi %s11956_s24, %s16694_s24  }
   0x4   : > { %s11981_s30 = sadd.s32 1, %s11910_s27   ;;  %s179_s8 = sadd.s32 1, %s11906_s26 }
   0x5   : > { %s176_s9 = ssub.s32 %s11910_s27, %s11981_s30  ;;  %p189_p0 = scmp.ne.s32.totalorder %s11906_s26, %s11902_s25 }
   0x6   : > { %p177_p1 = scmp.eq.s32.totalorder %s176_s9, 0  ;;  %p190_p2 = scmp.eq.s32.totalorder %s11977_s28, 1 }
   0x7   : > { %p195_p3 = scmp.ne.s32.totalorder %s11902_s25, %s11898_s24  ;;  %p196_p4 = scmp.eq.s32.totalorder %s8584_s29, 1 }
   0x8   : > { %s11992_s10 = scalar_select %p177_p1, %s11906_s26, %s179_s8  }
   0x9   : > { %p11994_p5 = por %p190_p2, %p189_p0  ;;  %p11998_p6 = por %p196_p4, %p195_p3 }
   0xa   : > { %p8587_p7 = scmp.ge.s32.totalorder %s11910_s27, 1  ;;  %p240_p8 = scmp.lt.s32.totalorder %s11910_s27, 3 }
   0xc   : > { %p241_p9 = pnand %p8587_p7, %p240_p8 }
   0xe   : > { %244 = sbr.rel (%p241_p9) target bundleno = 2167 (0x877), region = 48 }
  0x15   : > { %v11438_v0 = vld [vmem:[%s16431_s1] sm:$0xff]   ;;  %p271_p10 = scmp.lt.s32.totalorder %s11977_s28, 1  ;;  %v11439_v1 = vld [vmem:[%s16431_s1 + $0x8] sm:$0xff]   ;;  %vm822_vm0 = vcmask 261120   ;;  %v11912_v39 = vmov 0.0   ;;  %v11478_v43 = vld [vmem:[%s16433_s3 + $0x90] sm:$0xff]  }
  0x16   : > { %10019 = vmatprep.subr.bf16.mxu0 %v11438_v0  ;;  %v11476_v38 = vld [vmem:[%s16433_s3 + $0x80] sm:$0xff]   ;;  %544 = vst [vmem:[#allocation3 + $0x90] sm:$0xff] %v11912_v39  ;;  %545 = vst [vmem:[#allocation3 + $0x98] sm:$0xff] %v11912_v39  ;;  %10095 = vmatprep.subr.bf16.mxu1 %v11912_v39  ;;  %v11477_v40 = vld [vmem:[%s16433_s3 + $0x88] sm:$0xff]   ;;  %vm11913_vm1 = vmmov 0   ;;  %vm1805_vm2 = vcmask 1046528  }
  0x17   : > { %s272_s17 = scalar_select %p271_p10, %s11977_s28, 1  ;;  %10020 = vmatpush3.bf16.msra.mxu0 %v11438_v0  ;;  %v11479_v41 = vld [vmem:[%s16433_s3 + $0x40] sm:$0xff]   ;;  %v11480_v42 = vld [vmem:[%s16433_s3 + $0x48] sm:$0xff]   ;;  %v11481_v44 = vld [vmem:[%s16433_s3 + $0x50] sm:$0xff]   ;;  %10111 = vmatprep.mubr.msk.bf16.mxu1 %vm11913_vm1, %v11912_v39  ;;  %vm1385_vm3 = vsmask.f32 7424 }
  0x18   : > { %10021 = vmatprep.subr.bf16.mxu0 %v11439_v1  ;;  %10096 = vmatpush3.bf16.msra.mxu1 %v11479_v41  ;;  %v11482_v45 = vld [vmem:[%s16433_s3 + $0x98] sm:$0xff]   ;;  %v11484_v47 = vld [vmem:[%s16433_s3 + $0xa0] sm:$0xff]   ;;  %v11486_v49 = vld [vmem:[%s16433_s3 + $0xa8] sm:$0xff]   ;;  %vm2712_vm4 = vsmask.f32 1280  ;;  %vm2273_vm7 = vcmask 1045504  }
  0x19   : > { %s11395_s18 = smul.u32 288, %s272_s17  ;;  %10097 = vmatprep.subr.bf16.mxu1 %v11912_v39  ;;  %v11483_v46 = vld [vmem:[%s16433_s3 + $0x58] sm:$0xff]   ;;  %v11485_v48 = vld [vmem:[%s16433_s3 + $0x60] sm:$0xff]   ;;  %v11487_v50 = vld [vmem:[%s16433_s3 + $0x68] sm:$0xff]   ;;  %vm2023_vm5 = vsmask.f32 6400 }
  0x1a   : > { %v11488_v51 = vld [vmem:[%s16433_s3 + $0xb0] sm:$0xff]   ;;  %v11490_v53 = vld [vmem:[%s16433_s3 + $0xb8] sm:$0xff]   ;;  %vm3180_vm6 = vsmask.f32 256  ;;  %vm2494_vm8 = vcmask 1041408   ;;  %vm4130_vm9 = vcmask 1042432  }
  0x1b   : > { %s12015_s21 = scalar_lea.vmem %s16430_s0, %s11395_s18  ;;  %10022 = vmatpush3.bf16.msra.mxu0 %v11439_v1  ;;  %v11489_v52 = vld [vmem:[%s16433_s3 + $0x70] sm:$0xff]   ;;  %v11491_v54 = vld [vmem:[%s16433_s3 + $0x78] sm:$0xff]   ;;  %vm3840_vm10 = vsmask.f32 3328  ;;  %vm4348_vm11 = vsmask.f32 2304 }
  0x1c   : > { %v11440_v2 = vld [vmem:[%s12015_s21] sm:$0xff]   ;;  %v11441_v3 = vld [vmem:[%s12015_s21 + $0x8] sm:$0xff]   ;;  %v11442_v4 = vld [vmem:[%s12015_s21 + $0x10] sm:$0xff]   ;;  %10199 = vmatprep.subr.bf16.mxu0 %v11912_v39  ;;  %10098 = vmatpush3.bf16.msra.mxu1 %v11480_v42  ;;  %vm5559_vm12 = vsmask.f32 4352  ;;  %vm3622_vm13 = vcmask 1043456  }
  0x1d   : > { %10023 = vmatprep.mubr.msk.bf16.mxu0 %vm822_vm0, %v11440_v2  ;;  %v11443_v5 = vld [vmem:[%s12015_s21 + $0x18] sm:$0xff]   ;;  %v11444_v6 = vld [vmem:[%s12015_s21 + $0x20] sm:$0xff]   ;;  %v11445_v7 = vld [vmem:[%s12015_s21 + $0x28] sm:$0xff]   ;;  %10099 = vmatprep.subr.bf16.mxu1 %v11912_v39  ;;  %vm2962_vm14 = vcmask 1040384   ;;  %vm5051_vm15 = vsmask.f32 5376 }
  0x1e   : > { %10024 = vmatmul.mubr.msk.bf16.vlgmr.msra.gmra.mrb[0].mxu0 %vm822_vm0, %v11441_v3  ;;  %v11446_v8 = vld [vmem:[%s12015_s21 + $0x30] sm:$0xff]   ;;  %v11447_v9 = vld [vmem:[%s12015_s21 + $0x38] sm:$0xff]   ;;  %v11448_v10 = vld [vmem:[%s12015_s21 + $0x40] sm:$0xff]   ;;  %v11914_v3 = vmov 0   ;;  %s269_s9 = sand.u32 1, %s11902_s25   ;;  %s9377_s13 = sshll.u32 %s11977_s28, 4 }
  0x1f   : > { %10027 = vmatprep.mubr.msk.bf16.mxu0 %vm822_vm0, %v11442_v4  ;;  %v11449_v11 = vld [vmem:[%s12015_s21 + $0x48] sm:$0xff]   ;;  %v11450_v12 = vld [vmem:[%s12015_s21 + $0x50] sm:$0xff]   ;;  %v11451_v13 = vld [vmem:[%s12015_s21 + $0x58] sm:$0xff]   ;;  %10200 = vmatpush3.bf16.msra.mxu0 %v11476_v38  ;;  %540 = vst [vmem:[#allocation2 + $0x48] sm:$0xff] %v11914_v3  ;;  %s270_s14 = scalar_lea.vmem [#allocation4], %s269_s9  ;;  %s16388_s18 = scalar_lea.hbm %s16437_s7, %s9377_s13 }
  0x20   : > { %v11452_v14 = vld [vmem:[%s12015_s21 + $0x60] sm:$0xff]   ;;  %v11453_v15 = vld [vmem:[%s12015_s21 + $0x68] sm:$0xff]   ;;  %v11454_v16 = vld [vmem:[%s12015_s21 + $0x70] sm:$0xff]   ;;  %10201 = vmatprep.subr.bf16.mxu0 %v11912_v39  ;;  %10100 = vmatpush3.bf16.msra.mxu1 %v11481_v44  ;;  %542 = vst [vmem:[#allocation2 + $0x58] sm:$0xff] %v11914_v3  ;;  %s8529_s15 = sshll.u32 %s270_s14, 4  ;;  %s8517_s19 = scalar_lea.sflag [#allocation5], %s269_s9  ;;  %s16390_s15 = int_to_ptr.vmem [resolvable:$true] %s8529_s15 }
  0x21   : > { %v11455_v17 = vld [vmem:[%s12015_s21 + $0x78] sm:$0xff]   ;;  %v11456_v18 = vld [vmem:[%s12015_s21 + $0x80] sm:$0xff]   ;;  %v11457_v19 = vld [vmem:[%s12015_s21 + $0x88] sm:$0xff]   ;;  %10101 = vmatprep.subr.bf16.mxu1 %v11912_v39  ;;  %543 = vst [vmem:[#allocation2 + $0x60] sm:$0xff] %v11914_v3  ;;  %s11848_s20 = scalar_lea.vmem %s16390_s15, 16  ;;  %s11915_s28 = smov [#allocation4]  }
  0x22   : > { %v11458_v20 = vld [vmem:[%s12015_s21 + $0x90] sm:$0xff]   ;;  %v11459_v21 = vld [vmem:[%s12015_s21 + $0x98] sm:$0xff]   ;;  %v11460_v22 = vld [vmem:[%s12015_s21 + $0xa0] sm:$0xff]   ;;  %541 = vst [vmem:[#allocation2 + $0x50] sm:$0xff] %v11914_v3  ;;  %p11849_p11 = scmp.ne.s32.totalorder %s16390_s15, %s11848_s20 }
  0x23   : > { %v11461_v23 = vld [vmem:[%s12015_s21 + $0xa8] sm:$0xff]   ;;  %v11462_v24 = vld [vmem:[%s12015_s21 + $0xb0] sm:$0xff]   ;;  %v11463_v25 = vld [vmem:[%s12015_s21 + $0xb8] sm:$0xff]   ;;  %10202 = vmatpush3.bf16.msra.mxu0 %v11477_v40 }
  0x24   : > { %v11464_v26 = vld [vmem:[%s12015_s21 + $0xc0] sm:$0xff]   ;;  %v11465_v27 = vld [vmem:[%s12015_s21 + $0xc8] sm:$0xff]   ;;  %v11466_v28 = vld [vmem:[%s12015_s21 + $0xd0] sm:$0xff]   ;;  %10203 = vmatprep.subr.bf16.mxu0 %v11912_v39  ;;  %10102 = vmatpush3.bf16.msra.mxu1 %v11483_v46  ;;  %p11850_p12 = pnand %p11849_p11, %p11994_p5 }
  0x25   : > { %v11467_v29 = vld [vmem:[%s12015_s21 + $0xd8] sm:$0xff]   ;;  %v11468_v30 = vld [vmem:[%s12015_s21 + $0xe0] sm:$0xff]   ;;  %v11469_v31 = vld [vmem:[%s12015_s21 + $0xe8] sm:$0xff]   ;;  %10103 = vmatprep.subr.bf16.mxu1 %v11912_v39 }
  0x26   : > { %10028 = vmatmul.mubr.msk.bf16.gmra.mrb[4].mxu0 %vm822_vm0, %v11443_v5  ;;  %v11470_v32 = vld [vmem:[%s12015_s21 + $0xf0] sm:$0xff]   ;;  %v11471_v33 = vld [vmem:[%s12015_s21 + $0xf8] sm:$0xff]   ;;  %v11472_v34 = vld [vmem:[%s12015_s21 + $0x100] sm:$0xff]   ;;  %p11851_p13 = pneg %p11850_p12 }
  0x27   : > { %10031 = vmatprep.mubr.msk.bf16.mxu0 %vm822_vm0, %v11444_v6  ;;  %v11473_v35 = vld [vmem:[%s12015_s21 + $0x108] sm:$0xff]   ;;  %v11474_v36 = vld [vmem:[%s12015_s21 + $0x110] sm:$0xff]   ;;  %v11475_v37 = vld [vmem:[%s12015_s21 + $0x118] sm:$0xff]   ;;  %10204 = vmatpush3.bf16.msra.mxu0 %v11478_v43  ;;  %s11852_s21 = sshll.u32 %s11915_s28, 4  ;;  %s11853_s21 = int_to_ptr.vmem [resolvable:$false] %s11852_s21 }
  0x28   : > { %10205 = vmatprep.subr.bf16.mxu0 %v11912_v39  ;;  %10104 = vmatpush3.bf16.msra.mxu1 %v11485_v48  ;;  %s11854_s22 = scalar_lea.vmem %s11853_s21, 32  ;;  %p11855_p0 = scmp.lt.s32.totalorder %s16390_s15, %s11853_s21 }
  0x29   : > { %10105 = vmatprep.subr.bf16.mxu1 %v11912_v39  ;;  %p11856_p1 = scmp.lt.s32.totalorder %s11854_s22, %s11848_s20 }
  0x2b   : > { %10206 = vmatpush3.bf16.msra.mxu0 %v11482_v45  ;;  %p11857_p2 = por %p11856_p1, %p11855_p0 }
  0x2c   : > { %10207 = vmatprep.subr.bf16.mxu0 %v11912_v39  ;;  %10106 = vmatpush3.bf16.msra.mxu1 %v11487_v50 }
  0x2d   : > { %10107 = vmatprep.subr.bf16.mxu1 %v11912_v39  ;;  %p11858_p3 = pnand %p11857_p2, %p11851_p13 }
  0x2e   : > { %10032 = vmatmul.mubr.msk.bf16.gmra.mrb[8].mxu0 %vm822_vm0, %v11445_v7 }
  0x2f   : > { %10035 = vmatprep.mubr.msk.bf16.mxu0 %vm822_vm0, %v11446_v8  ;;  %10208 = vmatpush3.bf16.msra.mxu0 %v11484_v47  ;;  %v12148_v8 = vld [vmem:[%s16432_s2] ss:$0 sm:$0xff] }
  0x30   : > { %10209 = vmatprep.subr.bf16.mxu0 %v11912_v39  ;;  %10108 = vmatpush3.bf16.msra.mxu1 %v11489_v52 }
  0x31   : > { %10109 = vmatprep.subr.bf16.mxu1 %v11912_v39 }
  0x33   : > { %10210 = vmatpush3.bf16.msra.mxu0 %v11486_v49 }
  0x34   : > { %10211 = vmatprep.subr.bf16.mxu0 %v11912_v39  ;;  %10110 = vmatpush3.bf16.msra.mxu1 %v11491_v54 }
  0x35   : > { %10147 = vmatprep.subr.bf16.mxu1 %v11912_v39 }
  0x36   : > { %10036 = vmatmul.mubr.msk.bf16.gmra.mrb[12].mxu0 %vm822_vm0, %v11447_v9 }
  0x37   : > { %10039 = vmatprep.mubr.msk.bf16.mxu0 %vm822_vm0, %v11448_v10  ;;  %10212 = vmatpush3.bf16.msra.mxu0 %v11488_v51 }
  0x38   : > { %10213 = vmatprep.subr.bf16.mxu0 %v11912_v39 }
  0x3b   : > { %10214 = vmatpush3.bf16.msra.mxu0 %v11490_v53 }
  0x3c   : > { %10303 = vmatprep.subr.bf16.mxu0 %v11912_v39 }
  0x3e   : > { %10040 = vmatmul.mubr.msk.bf16.gmra.mrb[16].mxu0 %vm822_vm0, %v11449_v11 }
  0x3f   : > { %10043 = vmatprep.mubr.msk.bf16.mxu0 %vm822_vm0, %v11450_v12 }
  0x46   : > { %10044 = vmatmul.mubr.msk.bf16.gmra.mrb[20].mxu0 %vm822_vm0, %v11451_v13 }
  0x47   : > { %10047 = vmatprep.mubr.msk.bf16.mxu0 %vm822_vm0, %v11452_v14 }
  0x4e   : > { %10048 = vmatmul.mubr.msk.bf16.gmra.mrb[24].mxu0 %vm822_vm0, %v11453_v15 }
  0x4f   : > { %10051 = vmatprep.mubr.msk.bf16.mxu0 %vm822_vm0, %v11454_v16 }
  0x56   : > { %10052 = vmatmul.mubr.msk.bf16.gmra.mrb[28].mxu0 %vm822_vm0, %v11455_v17 }
  0x57   : > { %10055 = vmatprep.mubr.msk.bf16.mxu0 %vm822_vm0, %v11456_v18 }
  0x5e   : > { %10056 = vmatmul.mubr.msk.bf16.gmra.mrb[32].mxu0 %vm822_vm0, %v11457_v19 }
  0x5f   : > { %10059 = vmatprep.mubr.msk.bf16.mxu0 %vm822_vm0, %v11458_v20 }
  0x66   : > { %10060 = vmatmul.mubr.msk.bf16.gmra.mrb[36].mxu0 %vm822_vm0, %v11459_v21 }
  0x67   : > { %10063 = vmatprep.mubr.msk.bf16.mxu0 %vm822_vm0, %v11460_v22 }
  0x6e   : > { %10064 = vmatmul.mubr.msk.bf16.gmra.mrb[40].mxu0 %vm822_vm0, %v11461_v23 }
  0x6f   : > { %10067 = vmatprep.mubr.msk.bf16.mxu0 %vm822_vm0, %v11462_v24 }
  0x76   : > { %10068 = vmatmul.mubr.msk.bf16.gmra.mrb[44].mxu0 %vm822_vm0, %v11463_v25 }
  0x77   : > { %10071 = vmatprep.mubr.msk.bf16.mxu0 %vm822_vm0, %v11464_v26 }
  0x7e   : > { %10072 = vmatmul.mubr.msk.bf16.gmra.mrb[48].mxu0 %vm822_vm0, %v11465_v27 }
  0x7f   : > { %10075 = vmatprep.mubr.msk.bf16.mxu0 %vm822_vm0, %v11466_v28 }
  0x86   : > { %10076 = vmatmul.mubr.msk.bf16.gmra.mrb[52].mxu0 %vm822_vm0, %v11467_v29 }
  0x87   : > { %10079 = vmatprep.mubr.msk.bf16.mxu0 %vm822_vm0, %v11468_v30 }
  0x8e   : > { %10080 = vmatmul.mubr.msk.bf16.gmra.mrb[56].mxu0 %vm822_vm0, %v11469_v31 }
  0x8f   : > { %10083 = vmatprep.mubr.msk.bf16.mxu0 %vm822_vm0, %v11470_v32 }
  0x96   : > { %10084 = vmatmul.mubr.msk.bf16.gmra.mrb[60].mxu0 %vm822_vm0, %v11471_v33 }
  0x97   : > { %10087 = vmatprep.mubr.msk.bf16.mxu0 %vm822_vm0, %v11472_v34 }
  0x9e   : > { %10088 = vmatmul.mubr.msk.bf16.gmra.mrb[64].mxu0 %vm822_vm0, %v11473_v35 }
  0x9f   : > { %10091 = vmatprep.mubr.msk.bf16.mxu0 %vm822_vm0, %v11474_v36 }
  0xa6   : > { %10092 = vmatmul.mubr.msk.bf16.gmra.mrb[68].mxu0 %vm822_vm0, %v11475_v37  ;;  %vm5341_vm0 = vcmask 1044480  }
  0xa7   : > { %10215 = vmatprep.mubr.msk.bf16.mxu0 %vm11913_vm1, %v11912_v39 }
  0xf1   : > { %v10025_v55 = vpop.f32.mrb[0].mxu0 }
  0xf2   : > { %v965_v56 = vpop.f32.mrb[1].mxu0  ;;  %v12173_v23 = vadd.f32 %v10025_v55, %v12148_v8 }
  0xf3   : > { %v10026_v57 = vpop.f32.mrb[2].mxu0  ;;  %v12151_v10 = vadd.f32 %v12148_v8, %v965_v56 }
  0xf4   : > { %v968_v58 = vpop.f32.mrb[3].mxu0  ;;  %v12187_v30 = vadd.f32 %v10026_v57, %v12148_v8 }
  0xf5   : > { %v12157_v14 = vadd.f32 %v12148_v8, %v968_v58 }
  0xf9   : > { %v10029_v59 = vpop.f32.mrb[4].mxu0 }
  0xfa   : > { %v981_v60 = vpop.f32.mrb[5].mxu0  ;;  %v12205_v39 = vadd.f32 %v10029_v59, %v12148_v8 }
  0xfb   : > { %v10030_v61 = vpop.f32.mrb[6].mxu0  ;;  %v12167_v20 = vadd.f32 %v12148_v8, %v981_v60 }
  0xfc   : > { %v984_v62 = vpop.f32.mrb[7].mxu0  ;;  %v12219_v46 = vadd.f32 %v10030_v61, %v12148_v8 }
  0xfd   : > { %v12179_v26 = vadd.f32 %v12148_v8, %v984_v62 }
 0x101   : > { %v10033_v63 = vpop.f32.mrb[8].mxu0 }
 0x102   : > { %v997_v0 = vpop.f32.mrb[9].mxu0  ;;  %v12237_v55 = vadd.f32 %v10033_v63, %v12148_v8 }
 0x103   : > { %v12139_v1 = vpop.f32.mrb[10].mxu0  ;;  %v12199_v36 = vadd.f32 %v12148_v8, %v997_v0 }
 0x104   : > { %v1000_v2 = vpop.f32.mrb[11].mxu0  ;;  %v12252_v62 = vadd.f32 %v12139_v1, %v12148_v8 }
 0x105   : > { %v12211_v42 = vadd.f32 %v12148_v8, %v1000_v2 }
 0x109   : > { %v12141_v4 = vpop.f32.mrb[12].mxu0 }
 0x10a   : > { %v1013_v5 = vpop.f32.mrb[13].mxu0 }
 0x10b   : > { %v12143_v6 = vpop.f32.mrb[14].mxu0  ;;  %v12231_v52 = vadd.f32 %v12148_v8, %v1013_v5 }
 0x10c   : > { %v1016_v7 = vpop.f32.mrb[15].mxu0 }
 0x10d   : > { %v12243_v58 = vadd.f32 %v12148_v8, %v1016_v7 }
 0x111   : > { %v10041_v9 = vpop.f32.mrb[16].mxu0 }
 0x112   : > { %v12154_v11 = vadd.f32 %v10041_v9, %v12148_v8  ;;  %v1029_v12 = vpop.f32.mrb[17].mxu0 }
 0x113   : > { %v10042_v13 = vpop.f32.mrb[18].mxu0  ;;  %v12264_v7 = vadd.f32 %v12148_v8, %v1029_v12 }
 0x114   : > { %v1252_v15 = vmax.f32 %v12151_v10, %v12154_v11  ;;  %v12162_v16 = vadd.f32 %v10042_v13, %v12148_v8  ;;  %v1032_v17 = vpop.f32.mrb[19].mxu0  ;;  %v12271_v13 = vadd.f32 %v12141_v4, %v12148_v8 }
 0x116   : > { %16484 = vst [vmem:[#allocation7_spill] sm:$0xff] %v12271_v13 }
 0x119   : > { %v10045_v19 = vpop.f32.mrb[20].mxu0 }
 0x11a   : > { %v12170_v21 = vadd.f32 %v10045_v19, %v12148_v8  ;;  %v1045_v22 = vpop.f32.mrb[21].mxu0 }
 0x11b   : > { %v12176_v24 = vadd.f32 %v12148_v8, %v1045_v22  ;;  %v10046_v25 = vpop.f32.mrb[22].mxu0 }
 0x11c   : > { %v12184_v28 = vadd.f32 %v10046_v25, %v12148_v8  ;;  %v1048_v29 = vpop.f32.mrb[23].mxu0  ;;  %v12277_v25 = vadd.f32 %v12148_v8, %v1032_v17 }
 0x11d   : > { %v12192_v32 = vadd.f32 %v12148_v8, %v1048_v29 }
 0x11e   : > { %16486 = vst [vmem:[#allocation9_spill] sm:$0xff] %v12277_v25 }
 0x121   : > { %v10049_v35 = vpop.f32.mrb[24].mxu0 }
 0x122   : > { %v12202_v37 = vadd.f32 %v10049_v35, %v12148_v8  ;;  %v1061_v38 = vpop.f32.mrb[25].mxu0 }
 0x123   : > { %v12208_v40 = vadd.f32 %v12148_v8, %v1061_v38  ;;  %v10050_v41 = vpop.f32.mrb[26].mxu0  ;;  %v12286_v38 = vadd.f32 %v12143_v6, %v12148_v8 }
 0x124   : > { %v12216_v44 = vadd.f32 %v10050_v41, %v12148_v8  ;;  %v1064_v45 = vpop.f32.mrb[27].mxu0 }
 0x125   : > { %v12224_v48 = vadd.f32 %v12148_v8, %v1064_v45  ;;  %16488 = vst [vmem:[#allocation11_spill] sm:$0xff] %v12286_v38 }
 0x129   : > { %v10053_v51 = vpop.f32.mrb[28].mxu0 }
 0x12a   : > { %v12234_v53 = vadd.f32 %v10053_v51, %v12148_v8  ;;  %v1077_v54 = vpop.f32.mrb[29].mxu0 }
 0x12b   : > { %v12240_v56 = vadd.f32 %v12148_v8, %v1077_v54  ;;  %v10054_v57 = vpop.f32.mrb[30].mxu0 }
 0x12c   : > { %v12248_v60 = vadd.f32 %v10054_v57, %v12148_v8  ;;  %v1080_v61 = vpop.f32.mrb[31].mxu0 }
 0x12d   : > { %v12257_v0 = vadd.f32 %v12148_v8, %v1080_v61 }
 0x131   : > { %v10057_v5 = vpop.f32.mrb[32].mxu0 }
 0x132   : > { %v12267_v9 = vadd.f32 %v10057_v5, %v12148_v8  ;;  %v1093_v1 = vpop.f32.mrb[33].mxu0 }
 0x133   : > { %v12274_v19 = vadd.f32 %v12148_v8, %v1093_v1  ;;  %v10058_v22 = vpop.f32.mrb[34].mxu0 }
 0x134   : > { %v12282_v12 = vadd.f32 %v10058_v22, %v12148_v8  ;;  %v1096_v35 = vpop.f32.mrb[35].mxu0 }
 0x135   : > { %16485 = vst [vmem:[#allocation8_spill] sm:$0xff] %v12274_v19  ;;  %v12291_v41 = vadd.f32 %v12148_v8, %v1096_v35 }
 0x136   : > { %16487 = vst [vmem:[#allocation10_spill] sm:$0xff] %v12282_v12 }
 0x137   : > { %16489 = vst [vmem:[#allocation12_spill] sm:$0xff] %v12291_v41 }
 0x139   : > { %v10061_v51 = vpop.f32.mrb[36].mxu0 }
 0x13a   : > { %v1109_v54 = vpop.f32.mrb[37].mxu0 }
 0x13b   : > { %v10062_v57 = vpop.f32.mrb[38].mxu0  ;;  %v1110_v50 = vadd.f32 %v12148_v8, %v1109_v54  ;;  %v16490_v54 = vmax.f32 %v12157_v14, %v12162_v16 }
 0x13c   : > { %v1112_v61 = vpop.f32.mrb[39].mxu0 }
 0x13d   : > { %v1113_v34 = vadd.f32 %v12148_v8, %v1112_v61 }
 0x141   : > { %v10065_v5 = vpop.f32.mrb[40].mxu0 }
 0x142   : > { %v1125_v1 = vpop.f32.mrb[41].mxu0 }
 0x143   : > { %v10066_v6 = vpop.f32.mrb[42].mxu0  ;;  %v1126_v12 = vadd.f32 %v12148_v8, %v1125_v1 }
 0x144   : > { %v1128_v22 = vpop.f32.mrb[43].mxu0  ;;  %v1137_v1 = vadd.f32 %v10066_v6, %v12148_v8 }
 0x145   : > { %v1129_v10 = vadd.f32 %v12148_v8, %v1128_v22 }
 0x149   : > { %v10069_v29 = vpop.f32.mrb[44].mxu0 }
 0x14a   : > { %v1141_v3 = vpop.f32.mrb[45].mxu0 }
 0x14b   : > { %v12297_v4 = vpop.f32.mrb[46].mxu0 }
 0x14c   : > { %v1144_v35 = vpop.f32.mrb[47].mxu0 }
 0x151   : > { %v12299_v2 = vpop.f32.mrb[48].mxu0 }
 0x152   : > { %v12301_v63 = vpop.f32.mrb[49].mxu0 }
 0x153   : > { %v12303_v17 = vpop.f32.mrb[50].mxu0 }
 0x154   : > { %v12305_v45 = vpop.f32.mrb[51].mxu0 }
 0x159   : > { %v10077_v59 = vpop.f32.mrb[52].mxu0 }
 0x15a   : > { %v1182_v49 = vadd.f32 %v10077_v59, %v12148_v8  ;;  %v12309_v47 = vpop.f32.mrb[53].mxu0 }
 0x15b   : > { %v10078_v43 = vpop.f32.mrb[54].mxu0 }
 0x15c   : > { %v1270_v33 = vmax.f32 %v1110_v50, %v1182_v49  ;;  %v1185_v31 = vadd.f32 %v10078_v43, %v12148_v8  ;;  %v12313_v27 = vpop.f32.mrb[55].mxu0  ;;  %v1118_v43 = vadd.f32 %v10061_v51, %v12148_v8 }
 0x15e   : > { %v1288_v18 = vmax.f32 %v1252_v15, %v1270_v33  ;;  %v1271_v41 = vmax.f32 %v1113_v34, %v1185_v31  ;;  %v1121_v31 = vadd.f32 %v10062_v57, %v12148_v8  ;;  %v16491_v34 = vmax.f32 %v12167_v20, %v12170_v21 }
 0x15f   : > { %v1134_v57 = vadd.f32 %v10065_v5, %v12148_v8  ;;  %v16494_v20 = vmax.f32 %v12187_v30, %v12192_v32  ;;  %v1145_v30 = vadd.f32 %v12148_v8, %v1144_v35 }
 0x160   : > { %v1289_v38 = vmax.f32 %v16490_v54, %v1271_v41  ;;  %v1306_v25 = vmax.f32 %v1288_v18, 0.0 }
 0x161   : > { %v10081_v59 = vpop.f32.mrb[56].mxu0 }
 0x162   : > { %v1307_v19 = vmax.f32 %v1289_v38, 0.0  ;;  %v1198_v49 = vadd.f32 %v10081_v59, %v12148_v8  ;;  %v1189_v50 = vpop.f32.mrb[57].mxu0 }
 0x163   : > { %v1190_v61 = vadd.f32 %v12148_v8, %v1189_v50  ;;  %v10082_v13 = vpop.f32.mrb[58].mxu0 }
 0x164   : > { %v12326_v11 = vpack.c.bf16 %v1307_v19, %v1306_v25  ;;  %v1274_v15 = vmax.f32 %v1126_v12, %v1198_v49  ;;  %v1201_v14 = vadd.f32 %v10082_v13, %v12148_v8  ;;  %v1192_v16 = vpop.f32.mrb[59].mxu0  ;;  %v16492_v19 = vmax.f32 %v12173_v23, %v12176_v24 }
 0x165   : > { %v1272_v18 = vmax.f32 %v1118_v43, %v1190_v61  ;;  %v1193_v33 = vadd.f32 %v12148_v8, %v1192_v16  ;;  %v16493_v13 = vmax.f32 %v12179_v26, %v12184_v28  ;;  %v1142_v23 = vadd.f32 %v12148_v8, %v1141_v3 }
 0x166   : > { %1333 = vst [vmem:[#allocation2] sm:$0xff] %v12326_v11  ;;  %v1292_v38 = vmax.f32 %v16491_v34, %v1274_v15  ;;  %v1275_v41 = vmax.f32 %v1129_v10, %v1201_v14  ;;  %v1389_v54 = vshll.u32 %v12326_v11, 16  ;;  %v12350_v49 = vadd.f32 %v10069_v29, %v12148_v8 }
 0x167   : > { %v1290_v25 = vmax.f32 %v16492_v19, %v1272_v18  ;;  %v1273_v12 = vmax.f32 %v1121_v31, %v1193_v33  ;;  %v16495_v18 = vmax.f32 %v12199_v36, %v12202_v37  ;;  %v11497_v36 = vld [vmem:[%s16433_s3 + $0x100] sm:$0xff]   ;;  %v1153_v37 = vadd.f32 %v12297_v4, %v12148_v8 }
 0x168   : > { %v1293_v51 = vmax.f32 %v16493_v13, %v1275_v41  ;;  %v1310_v24 = vmax.f32 %v1292_v38, 0.0  ;;  %v1391_v31 = vrot.slane %v1389_v54, 1  ;;  %v1387_v38 = vshrl.u32 %v12326_v11, 16 }
 0x169   : > { %v1291_v21 = vmax.f32 %v16494_v20, %v1273_v12  ;;  %v10085_v22 = vpop.f32.mrb[60].mxu0  ;;  %v1308_v5 = vmax.f32 %v1290_v25, 0.0  ;;  %v16496_v41 = vmax.f32 %v12205_v39, %v12208_v40  ;;  %v1161_v39 = vadd.f32 %v12148_v8, %v12305_v45 }
 0x16a   : > { %v1311_v59 = vmax.f32 %v1293_v51, 0.0  ;;  %v1214_v26 = vadd.f32 %v10085_v22, %v12148_v8  ;;  %v1205_v28 = vpop.f32.mrb[61].mxu0  ;;  %v1158_v51 = vadd.f32 %v12148_v8, %v12301_v63  ;;  %v16497_v40 = vmax.f32 %v12211_v42, %v12216_v44  ;;  %v11492_v63 = vld [vmem:[%s16433_s3] sm:$0xff]  }
 0x16b   : > { %v1309_v50 = vmax.f32 %v1291_v21, 0.0  ;;  %v1206_v6 = vadd.f32 %v12148_v8, %v1205_v28  ;;  %v10086_v43 = vpop.f32.mrb[62].mxu0  ;;  %v1392_v54 = vor.u32 %v1391_v31, %v1387_v38  ;;  %v16500_v38 = vmax.f32 %v12237_v55, %v12240_v56 }
 0x16c   : > { %v12354_v32 = vpack.c.bf16 %v1311_v59, %v1310_v24  ;;  %v1278_v61 = vmax.f32 %v1142_v23, %v1214_v26  ;;  %v1217_v3 = vadd.f32 %v10086_v43, %v12148_v8  ;;  %v1208_v10 = vpop.f32.mrb[63].mxu0  ;;  %v1174_v55 = vadd.f32 %v12148_v8, %v12309_v47 }
 0x16d   : > { %v12357_v15 = vpack.c.bf16 %v1309_v50, %v1308_v5  ;;  %v1276_v14 = vmax.f32 %v1134_v57, %v1206_v6  ;;  %v1209_v16 = vadd.f32 %v12148_v8, %v1208_v10  ;;  %v12360_v29 = vld [vmem:[#allocation2] sm:$0xfe]  ;;  %v12402_v5 = vld [vmem:[#allocation3 + $0x90] sm:$0xff]  ;;  %v1177_v56 = vadd.f32 %v12148_v8, %v12313_v27 }
 0x16e   : > { %1335 = vst [vmem:[#allocation2 + $0x10] sm:$0xff] %v12354_v32  ;;  %v1296_v35 = vmax.f32 %v16495_v18, %v1278_v61  ;;  %v1279_v33 = vmax.f32 %v1145_v30, %v1217_v3  ;;  %v1806_v34 = vrot.slane %v12360_v29, 1  ;;  %v11498_v50 = vld [vmem:[%s16433_s3 + $0x108] sm:$0xff]   ;;  %v12413_v3 = vshll.u32 %v12354_v32, 16 }
 0x16f   : > { %1334 = vst [vmem:[#allocation2 + $0x8] sm:$0xff] %v12357_v15  ;;  %v1294_v19 = vmax.f32 %v16496_v41, %v1276_v14  ;;  %v1277_v25 = vmax.f32 %v1137_v1, %v1209_v16  ;;  %v1807_v12 = vrot.slane %v12357_v15, 1  ;;  %v12374_v13 = vshll.u32 %v12357_v15, 16  ;;  %v11493_v18 = vld [vmem:[%s16433_s3 + $0x8] sm:$0xff]  }
 0x170   : > { %v1297_v57 = vmax.f32 %v16497_v40, %v1279_v33  ;;  %v16498_v1 = vmax.f32 %v12219_v46, %v12224_v48  ;;  %v1314_v23 = vmax.f32 %v1296_v35, 0.0  ;;  %v12398_v44 = vshrl.u32 %v12357_v15, 16 }
 0x171   : > { %v10089_v21 = vpop.f32.mrb[64].mxu0  ;;  %v1808_v22 = vsel %vm1805_vm2, %v1806_v34, %v1807_v12  ;;  %v1396_v4 = vrot.slane %v12374_v13, 1  ;;  %v1312_v46 = vmax.f32 %v1294_v19, 0.0  ;;  %v1809_v31 = vrot.slane %v12354_v32, 1 }
 0x172   : > { %v1295_v20 = vmax.f32 %v16498_v1, %v1277_v25  ;;  %v1315_v45 = vmax.f32 %v1297_v57, 0.0  ;;  %v1230_v24 = vadd.f32 %v10089_v21, %v12148_v8  ;;  %v1221_v42 = vpop.f32.mrb[65].mxu0  ;;  %10216 = vmatmul.mubr.bf16.vlgmr.msra.gmra.mrb[72].mxu0 %v1808_v22  ;;  %v16499_v35 = vmax.f32 %v12231_v52, %v12234_v53  ;;  %v11500_v25 = vld [vmem:[%s16433_s3 + $0x110] sm:$0xff]   ;;  %v11501_v22 = vld [vmem:[%s16433_s3 + $0x118] sm:$0xff]  }
 0x173   : > { %v1222_v59 = vadd.f32 %v12148_v8, %v1221_v42  ;;  %v10090_v26 = vpop.f32.mrb[66].mxu0  ;;  %v1397_v28 = vsel %vm1385_vm3, %v1392_v54, %v1396_v4  ;;  %10219 = vmatprep.mubr.msk.bf16.mxu0 %vm11913_vm1, %v12402_v5  ;;  %10304 = vmatpush3.bf16.msra.mxu0 %v11497_v36  ;;  %v1166_v52 = vadd.f32 %v12299_v2, %v12148_v8 }
 0x174   : > { %v1313_v48 = vmax.f32 %v1295_v20, 0.0  ;;  %v12409_v6 = vpack.c.bf16 %v1315_v45, %v1314_v23  ;;  %v1282_v43 = vmax.f32 %v1158_v51, %v1230_v24  ;;  %v1233_v30 = vadd.f32 %v10090_v26, %v12148_v8  ;;  %v1224_v61 = vpop.f32.mrb[67].mxu0  ;;  %10112 = vmatmul.mubr.bf16.vlgmr.msra.gmra.mrb[0].mxu1 %v1397_v28  ;;  %10305 = vmatprep.subr.bf16.mxu0 %v12402_v5 }
 0x175   : > { %v1280_v14 = vmax.f32 %v12350_v49, %v1222_v59  ;;  %v1225_v16 = vadd.f32 %v12148_v8, %v1224_v61  ;;  %10148 = vmatpush3.bf16.msra.mxu1 %v11492_v63  ;;  %10115 = vmatprep.mubr.msk.bf16.mxu1 %vm11913_vm1, %v12402_v5  ;;  %v1400_v49 = vor.u32 %v12398_v44, %v1396_v4 }
 0x176   : > { %v12416_v10 = vpack.c.bf16 %v1313_v48, %v1312_v46  ;;  %1337 = vst [vmem:[#allocation2 + $0x20] sm:$0xff] %v12409_v6  ;;  %v1300_v33 = vmax.f32 %v16499_v35, %v1282_v43  ;;  %v1283_v34 = vmax.f32 %v1161_v39, %v1233_v30  ;;  %10149 = vmatprep.subr.bf16.mxu1 %v12402_v5  ;;  %v1404_v39 = vrot.slane %v12413_v3, 1  ;;  %v11495_v48 = vld [vmem:[%s16433_s3 + $0x18] sm:$0xff]  }
 0x177   : > { %v1298_v41 = vmax.f32 %v16500_v38, %v1280_v14  ;;  %v1281_v19 = vmax.f32 %v1153_v37, %v1225_v16  ;;  %10306 = vmatpush3.bf16.msra.mxu0 %v11498_v50  ;;  %v1169_v53 = vadd.f32 %v12303_v17, %v12148_v8  ;;  %v16501_v36 = vmax.f32 %v12243_v58, %v12248_v60  ;;  %v11494_v60 = vld [vmem:[%s16433_s3 + $0x10] sm:$0xff]   ;;  %v16508_v35 = vld [vmem:[#allocation10_spill] sm:$0xff] }
 0x178   : > { %1336 = vst [vmem:[#allocation2 + $0x18] sm:$0xff] %v12416_v10  ;;  %10307 = vmatprep.subr.bf16.mxu0 %v12402_v5  ;;  %v16502_v2 = vmax.f32 %v12252_v62, %v12257_v0  ;;  %v1810_v58 = vsel %vm1805_vm2, %v1807_v12, %v1809_v31  ;;  %v1318_v17 = vmax.f32 %v1300_v33, 0.0  ;;  %v1405_v27 = vsel %vm1385_vm3, %v1400_v49, %v1404_v39  ;;  %v16505_v50 = vld [vmem:[#allocation8_spill] sm:$0xff]  ;;  %v16510_v49 = vld [vmem:[#allocation11_spill] sm:$0xff] }
 0x179   : > { %v1301_v51 = vmax.f32 %v16501_v36, %v1283_v34  ;;  %v10093_v40 = vpop.f32.mrb[68].mxu0  ;;  %10150 = vmatpush3.bf16.msra.mxu1 %v11493_v18  ;;  %v1316_v62 = vmax.f32 %v1298_v41, 0.0  ;;  %v12468_v21 = vshll.u32 %v12416_v10, 16  ;;  %v1811_v46 = vrot.slane %v12416_v10, 1  ;;  %v16507_v18 = vld [vmem:[#allocation9_spill] sm:$0xff]  ;;  %v16511_v38 = vld [vmem:[#allocation12_spill] sm:$0xff] }
 0x17a   : > { %v1299_v37 = vmax.f32 %v16502_v2, %v1281_v19  ;;  %v1246_v47 = vadd.f32 %v10093_v40, %v12148_v8  ;;  %v1237_v1 = vpop.f32.mrb[69].mxu0  ;;  %10220 = vmatmul.mubr.bf16.gmra.mrb[76].mxu0 %v1810_v58  ;;  %10151 = vmatprep.subr.bf16.mxu1 %v12402_v5  ;;  %v16503_v59 = vmax.f32 %v12264_v7, %v12267_v9  ;;  %v12496_v14 = vshrl.u32 %v12354_v32, 16  ;;  %v11503_v7 = vld [vmem:[%s16433_s3 + $0x120] sm:$0xff]   ;;  %v2694_v9 = vld [vmem:[#allocation2 + $0x48] sm:$0x7f] }
 0x17b   : > { %v1319_v57 = vmax.f32 %v1301_v51, 0.0  ;;  %v1238_v20 = vadd.f32 %v12148_v8, %v1237_v1  ;;  %v10094_v12 = vpop.f32.mrb[70].mxu0  ;;  %10223 = vmatprep.mubr.msk.bf16.mxu0 %vm11913_vm1, %v12402_v5  ;;  %10308 = vmatpush3.bf16.msra.mxu0 %v11500_v25  ;;  %v1412_v16 = vrot.slane %v12468_v21, 1  ;;  %v16509_v33 = vmax.f32 %v16507_v18, %v16508_v35  ;;  %v11496_v36 = vld [vmem:[%s16433_s3 + $0x20] sm:$0xff]   ;;  %v12521_v51 = vld [vmem:[#allocation2 + $0x48] sm:$0x3] }
 0x17c   : > { %v1317_v0 = vmax.f32 %v1299_v37, 0.0  ;;  %v1286_v4 = vmax.f32 %v1174_v55, %v1246_v47  ;;  %v1249_v63 = vadd.f32 %v10094_v12, %v12148_v8  ;;  %v1240_v23 = vpop.f32.mrb[71].mxu0  ;;  %10116 = vmatmul.mubr.bf16.gmra.mrb[4].mxu1 %v1405_v27  ;;  %10309 = vmatprep.subr.bf16.mxu0 %v12402_v5  ;;  %v16512_v41 = vmax.f32 %v16510_v49, %v16511_v38 }
 0x17d   : > { %v12473_v54 = vpack.c.bf16 %v1319_v57, %v1318_v17  ;;  %v1284_v24 = vmax.f32 %v1166_v52, %v1238_v20  ;;  %v1241_v42 = vadd.f32 %v12148_v8, %v1240_v23  ;;  %10119 = vmatprep.mubr.msk.bf16.mxu1 %vm11913_vm1, %v12402_v5  ;;  %10152 = vmatpush3.bf16.msra.mxu1 %v11494_v60  ;;  %v16504_v8 = vld [vmem:[#allocation7_spill] sm:$0xff]  ;;  %v2754_v2 = vshrl.u32 %v2694_v9, 16 }
 0x17e   : > { %v12477_v45 = vpack.c.bf16 %v1317_v0, %v1316_v62  ;;  %v1304_v26 = vmax.f32 %v16503_v59, %v1286_v4  ;;  %v1287_v28 = vmax.f32 %v1177_v56, %v1249_v63  ;;  %10153 = vmatprep.subr.bf16.mxu1 %v12402_v5  ;;  %v16506_v43 = vmax.f32 %v16504_v8, %v16505_v50  ;;  %v11504_v60 = vld [vmem:[%s16433_s3 + $0x128] sm:$0xff]  }
 0x17f   : > { %1339 = vst [vmem:[#allocation2 + $0x30] sm:$0xff] %v12473_v54  ;;  %v1285_v61 = vmax.f32 %v1169_v53, %v1241_v42  ;;  %10310 = vmatpush3.bf16.msra.mxu0 %v11501_v22  ;;  %v1812_v25 = vsel %vm1805_vm2, %v1809_v31, %v1811_v46  ;;  %v1408_v52 = vor.u32 %v12496_v14, %v1404_v39  ;;  %v2757_v37 = vshll.u32 %v2694_v9, 16  ;;  %v11499_v20 = vld [vmem:[%s16433_s3 + $0x28] sm:$0xff]   ;;  %v11506_v42 = vld [vmem:[%s16433_s3 + $0x130] sm:$0xff]  }
 0x180   : > { %1338 = vst [vmem:[#allocation2 + $0x28] sm:$0xff] %v12477_v45  ;;  %v1302_v30 = vmax.f32 %v16506_v43, %v1284_v24  ;;  %v1305_v34 = vmax.f32 %v16509_v33, %v1287_v28  ;;  %10311 = vmatprep.subr.bf16.mxu0 %v12402_v5  ;;  %v12516_v53 = vshll.u32 %v12477_v45, 16  ;;  %v1322_v55 = vmax.f32 %v1304_v26, 0.0 }
 0x181   : > { %v1303_v19 = vmax.f32 %v16512_v41, %v1285_v61  ;;  %10154 = vmatpush3.bf16.msra.mxu1 %v11495_v48  ;;  %v1413_v39 = vsel %vm1385_vm3, %v1408_v52, %v1412_v16  ;;  %v12528_v58 = vshll.u32 %v12409_v6, 16  ;;  %v2065_v57 = vshrl.u32 %v12521_v51, 16 }
 0x182   : > { %v1323_v56 = vmax.f32 %v1305_v34, 0.0  ;;  %10224 = vmatmul.mubr.bf16.gmra.mrb[80].mxu0 %v1812_v25  ;;  %10155 = vmatprep.subr.bf16.mxu1 %v12402_v5  ;;  %v1320_v31 = vmax.f32 %v1302_v30, 0.0  ;;  %v2068_v47 = vshll.u32 %v12521_v51, 16  ;;  %v1813_v27 = vrot.slane %v12409_v6, 1  ;;  %v11502_v30 = vld [vmem:[%s16433_s3 + $0x30] sm:$0xff]   ;;  %v11505_v25 = vld [vmem:[%s16433_s3 + $0x38] sm:$0xff]  }
 0x183   : > { %v1321_v40 = vmax.f32 %v1303_v19, 0.0  ;;  %10227 = vmatprep.mubr.msk.bf16.mxu0 %vm11913_vm1, %v12402_v5  ;;  %10312 = vmatpush3.bf16.msra.mxu0 %v11503_v7  ;;  %v12544_v62 = vshrl.u32 %v12416_v10, 16  ;;  %v1428_v0 = vrot.slane %v12516_v53, 1  ;;  %v12552_v12 = vrot.slane %v2754_v2, 6  ;;  %v11507_v7 = vld [vmem:[%s16433_s3 + $0x138] sm:$0xff]  }
 0x184   : > { %v12533_v17 = vpack.c.bf16 %v1323_v56, %v1322_v55  ;;  %10120 = vmatmul.mubr.bf16.gmra.mrb[8].mxu1 %v1413_v39  ;;  %10313 = vmatprep.subr.bf16.mxu0 %v12402_v5  ;;  %v12554_v22 = vrot.slane %v2757_v37, 7  ;;  %v1420_v63 = vrot.slane %v12528_v58, 1  ;;  %v12560_v23 = vshrl.u32 %v12477_v45, 16 }
 0x185   : > { %v12538_v1 = vpack.c.bf16 %v1321_v40, %v1320_v31  ;;  %10123 = vmatprep.mubr.msk.bf16.mxu1 %vm11913_vm1, %v12402_v5  ;;  %10156 = vmatpush3.bf16.msra.mxu1 %v11496_v36  ;;  %v1416_v4 = vor.u32 %v12544_v62, %v1412_v16  ;;  %v12563_v24 = vshll.u32 %v12473_v54, 16  ;;  %v1815_v48 = vrot.slane %v12477_v45, 1 }
 0x186   : > { %1341 = vst [vmem:[#allocation2 + $0x40] sm:$0xff] %v12533_v17  ;;  %10157 = vmatprep.subr.bf16.mxu1 %v12402_v5  ;;  %v1817_v59 = vrot.slane %v12473_v54, 1  ;;  %v12571_v26 = vrot.slane %v2065_v57, 1  ;;  %v12573_v28 = vrot.slane %v2068_v47, 2  ;;  %v1814_v8 = vsel %vm1805_vm2, %v1811_v46, %v1813_v27 }
 0x187   : > { %1340 = vst [vmem:[#allocation2 + $0x38] sm:$0xff] %v12538_v1  ;;  %10314 = vmatpush3.bf16.msra.mxu0 %v11504_v60  ;;  %v12579_v50 = vshrl.u32 %v12409_v6, 16  ;;  %v1432_v43 = vor.u32 %v12560_v23, %v1428_v0  ;;  %v1421_v61 = vsel %vm1385_vm3, %v1416_v4, %v1420_v63  ;;  %v1436_v16 = vrot.slane %v12563_v24, 1 }
 0x188   : > { %10315 = vmatprep.subr.bf16.mxu0 %v12402_v5  ;;  %v1816_v18 = vsel %vm1805_vm2, %v1813_v27, %v1815_v48  ;;  %v12600_v35 = vsel %vm1805_vm2, %v1815_v48, %v1817_v59  ;;  %v12603_v33 = vshrl.u32 %v12473_v54, 16  ;;  %v1819_v41 = vrot.slane %v12538_v1, 1 }
 0x189   : > { %10158 = vmatpush3.bf16.msra.mxu1 %v11499_v20  ;;  %v1424_v46 = vor.u32 %v12579_v50, %v1420_v63  ;;  %v12614_v38 = vsel %vm1385_vm3, %v1432_v43, %v1436_v16  ;;  %v12618_v19 = vshll.u32 %v12533_v17, 16  ;;  %v12624_v52 = vshll.u32 %v12538_v1, 16 }
 0x18a   : > { %10228 = vmatmul.mubr.bf16.gmra.mrb[84].mxu0 %v1814_v8  ;;  %10159 = vmatprep.subr.bf16.mxu1 %v12402_v5  ;;  %v2721_v36 = vrot.slane %v12398_v44, 6  ;;  %v2722_v55 = vrot.slane %v12374_v13, 7  ;;  %v2025_v56 = vshrl.u32 %v12360_v29, 16  ;;  %v2028_v2 = vshll.u32 %v12360_v29, 16 }
 0x18b   : > { %10231 = vmatprep.mubr.msk.bf16.mxu0 %vm11913_vm1, %v12402_v5  ;;  %10316 = vmatpush3.bf16.msra.mxu0 %v11506_v42  ;;  %v1429_v49 = vsel %vm1385_vm3, %v1424_v46, %v1428_v0  ;;  %v2032_v37 = vrot.slane %v12398_v44, 1  ;;  %v2033_v31 = vrot.slane %v12374_v13, 2  ;;  %v2725_v40 = vrot.slane %v12496_v14, 6 }
 0x18c   : > { %10124 = vmatmul.mubr.bf16.gmra.mrb[12].mxu1 %v1421_v61  ;;  %10317 = vmatprep.subr.bf16.mxu0 %v12402_v5  ;;  %v12635_v39 = vshrl.u32 %v12538_v1, 16  ;;  %v12638_v60 = vor.u32 %v2722_v55, %v2721_v36  ;;  %v2027_v57 = vrot.slane %v2025_v56, 1  ;;  %v2726_v47 = vrot.slane %v12413_v3, 7 }
 0x18d   : > { %10127 = vmatprep.mubr.msk.bf16.mxu1 %vm11913_vm1, %v12402_v5  ;;  %10160 = vmatpush3.bf16.msra.mxu1 %v11502_v30  ;;  %v2030_v27 = vrot.slane %v2028_v2, 2  ;;  %v2034_v0 = vor.u32 %v2033_v31, %v2032_v37  ;;  %v2036_v29 = vrot.slane %v12496_v14, 1  ;;  %v2037_v20 = vrot.slane %v12413_v3, 2 }
 0x18e   : > { %10161 = vmatprep.subr.bf16.mxu1 %v12402_v5  ;;  %v12644_v4 = vshrl.u32 %v12533_v17, 16  ;;  %v2727_v63 = vor.u32 %v2726_v47, %v2725_v40  ;;  %v2729_v42 = vrot.slane %v12544_v62, 6  ;;  %v2730_v48 = vrot.slane %v12468_v21, 7 }
 0x18f   : > { %10318 = vmatpush3.bf16.msra.mxu0 %v11507_v7  ;;  %v2031_v8 = vor.u32 %v2030_v27, %v2027_v57  ;;  %v2038_v43 = vor.u32 %v2037_v20, %v2036_v29  ;;  %v2040_v30 = vrot.slane %v12544_v62, 1  ;;  %v2041_v61 = vrot.slane %v12468_v21, 2 }
 0x190   : > { %10407 = vmatprep.subr.bf16.mxu0 %v12402_v5  ;;  %v12655_v46 = vsel %vm2712_vm4, %v12638_v60, %v2727_v63  ;;  %v2731_v7 = vor.u32 %v2730_v48, %v2729_v42  ;;  %v2045_v31 = vrot.slane %v12528_v58, 2  ;;  %v2737_v40 = vrot.slane %v12560_v23, 6 }
 0x191   : > { %10162 = vmatpush3.bf16.msra.mxu1 %v11505_v25  ;;  %v2734_v25 = vrot.slane %v12528_v58, 7  ;;  %v12662_v36 = vsel %vm2023_vm5, %v2031_v8, %v2034_v0  ;;  %v12665_v55 = vsel %vm2023_vm5, %v2034_v0, %v2038_v43  ;;  %v2042_v56 = vor.u32 %v2041_v61, %v2040_v30 }
 0x192   : > { %10232 = vmatmul.mubr.bf16.gmra.mrb[88].mxu0 %v1816_v18  ;;  %10251 = vmatprep.subr.bf16.mxu1 %v12402_v5  ;;  %v2733_v18 = vrot.slane %v12579_v50, 6  ;;  %v12669_v2 = vsel %vm2712_vm4, %v2727_v63, %v2731_v7  ;;  %v2738_v47 = vrot.slane %v12516_v53, 7  ;;  %v2048_v27 = vrot.slane %v12560_v23, 1 }
 0x193   : > { %10235 = vmatprep.mubr.msk.bf16.mxu0 %vm11913_vm1, %v12402_v5  ;;  %v12674_v57 = vsel %vm2023_vm5, %v2038_v43, %v2042_v56  ;;  %v2049_v0 = vrot.slane %v12516_v53, 2  ;;  %v2741_v63 = vrot.slane %v12603_v33, 6  ;;  %v2742_v42 = vrot.slane %v12563_v24, 7 }
 0x194   : > { %10128 = vmatmul.mubr.bf16.gmra.mrb[16].mxu1 %v1429_v49  ;;  %v2044_v49 = vrot.slane %v12579_v50, 1  ;;  %v2735_v37 = vor.u32 %v2734_v25, %v2733_v18  ;;  %v2739_v48 = vor.u32 %v2738_v47, %v2737_v40  ;;  %v2052_v30 = vrot.slane %v12603_v33, 1 }
 0x195   : > { %10131 = vmatprep.mubr.msk.bf16.mxu1 %vm11913_vm1, %v12402_v5  ;;  %v2050_v8 = vor.u32 %v2049_v0, %v2048_v27  ;;  %v2053_v43 = vrot.slane %v12563_v24, 2  ;;  %v2743_v18 = vor.u32 %v2742_v42, %v2741_v63  ;;  %v2746_v25 = vrot.slane %v12624_v52, 7 }
 0x196   : > { %v12680_v29 = vsel %vm2712_vm4, %v2731_v7, %v2735_v37  ;;  %v2046_v20 = vor.u32 %v2045_v31, %v2044_v49  ;;  %v2745_v7 = vrot.slane %v12635_v39, 6  ;;  %v12695_v49 = vsel %vm2712_vm4, %v2735_v37, %v2739_v48 }
 0x197   : > { %v2054_v40 = vor.u32 %v2053_v43, %v2052_v30  ;;  %v2057_v27 = vrot.slane %v12624_v52, 2  ;;  %v2749_v0 = vrot.slane %v12644_v4, 6  ;;  %v2060_v63 = vrot.slane %v12644_v4, 1  ;;  %v11809_v43 = vld [vmem:[#allocation2 + $0x48] sm:$0xff] }
 0x198   : > { %v12688_v61 = vsel %vm2023_vm5, %v2042_v56, %v2046_v20  ;;  %v12698_v31 = vsel %vm2023_vm5, %v2046_v20, %v2050_v8  ;;  %v12703_v56 = vsel %vm2712_vm4, %v2739_v48, %v2743_v18  ;;  %v2747_v47 = vor.u32 %v2746_v25, %v2745_v7 }
 0x199   : > { %v12710_v37 = vsel %vm2023_vm5, %v2050_v8, %v2054_v40  ;;  %v2750_v20 = vrot.slane %v12618_v19, 7  ;;  %v3185_v30 = vrot.slane %v12398_v44, 7  ;;  %v12719_v7 = vshrl.u32 %v11809_v43, 16 }
 0x19a   : > { %10236 = vmatmul.mubr.bf16.gmra.mrb[92].mxu0 %v12600_v35  ;;  %v2056_v35 = vrot.slane %v12635_v39, 1  ;;  %v12716_v42 = vsel %vm2712_vm4, %v2743_v18, %v2747_v47  ;;  %v1440_v8 = vor.u32 %v12603_v33, %v1436_v16  ;;  %v1444_v25 = vrot.slane %v12624_v52, 1 }
 0x19b   : > { %10239 = vmatprep.mubr.msk.bf16.mxu0 %vm11913_vm1, %v12402_v5  ;;  %16513 = vst [vmem:[#allocation7_spill] sm:$0xff] %v12719_v7  ;;  %v2751_v34 = vor.u32 %v2750_v20, %v2749_v0  ;;  %v1820_v18 = vsel %vm1805_vm2, %v1817_v59, %v1819_v41  ;;  %v12734_v44 = vor.u32 %v3185_v30, %v12374_v13 }
 0x19c   : > { %10132 = vmatmul.mubr.bf16.gmra.mrb[20].mxu1 %v12614_v38  ;;  %v2061_v38 = vrot.slane %v12618_v19, 2  ;;  %v2058_v48 = vor.u32 %v2057_v27, %v2056_v35  ;;  %v3188_v27 = vrot.slane %v12496_v14, 7  ;;  %v16514_v20 = vor.u32 %v12554_v22, %v12552_v12 }
 0x19d   : > { %10135 = vmatprep.mubr.msk.bf16.mxu1 %vm11913_vm1, %v12402_v5  ;;  %v12738_v16 = vsel %vm2712_vm4, %v2747_v47, %v2751_v34  ;;  %v16515_v59 = vor.u32 %v12573_v28, %v12571_v26  ;;  %v12757_v47 = vshll.u32 %v11809_v43, 16  ;;  %v3191_v12 = vrot.slane %v12544_v62, 7 }
 0x19e   : > { %v2062_v9 = vor.u32 %v2061_v38, %v2060_v63  ;;  %v12731_v35 = vsel %vm2023_vm5, %v2054_v40, %v2058_v48  ;;  %v12747_v63 = vsel %vm2712_vm4, %v2751_v34, %v16514_v20  ;;  %v3189_v14 = vor.u32 %v3188_v27, %v12413_v3 }
 0x19f   : > { %v3212_v40 = vrot.slane %v12719_v7, 7  ;;  %16516 = vst [vmem:[#allocation8_spill] sm:$0xff] %v12757_v47  ;;  %v1445_v38 = vsel %vm1385_vm3, %v1440_v8, %v1444_v25  ;;  %v3194_v22 = vrot.slane %v12579_v50, 7  ;;  %v3197_v28 = vrot.slane %v12560_v23, 7 }
 0x1a0   : > { %v12741_v0 = vsel %vm2023_vm5, %v2058_v48, %v2062_v9  ;;  %v12753_v13 = vsel %vm2023_vm5, %v2062_v9, %v16515_v59  ;;  %v12765_v26 = vsel %vm3180_vm6, %v3185_v30, %v3189_v14  ;;  %v1821_v3 = vrot.slane %v12533_v17, 1 }
 0x1a1   : > { %v3192_v9 = vor.u32 %v3191_v12, %v12468_v21  ;;  %v3195_v34 = vor.u32 %v3194_v22, %v12528_v58  ;;  %v3198_v48 = vor.u32 %v3197_v28, %v12516_v53  ;;  %v3200_v62 = vrot.slane %v12603_v33, 7 }
 0x1a2   : > { %10240 = vmatmul.mubr.bf16.gmra.mrb[96].mxu0 %v1820_v18  ;;  %v3215_v50 = vor.u32 %v12757_v47, %v3212_v40  ;;  %v1448_v30 = vor.u32 %v12635_v39, %v1444_v25  ;;  %v3203_v8 = vrot.slane %v12635_v39, 7  ;;  %v3206_v53 = vrot.slane %v12644_v4, 7 }
 0x1a3   : > { %10243 = vmatprep.mubr.msk.bf16.mxu0 %vm11913_vm1, %v12402_v5  ;;  %v12778_v43 = vsel %vm3180_vm6, %v3188_v27, %v3192_v9  ;;  %v12781_v23 = vsel %vm3180_vm6, %v3191_v12, %v3195_v34  ;;  %v12785_v21 = vsel %vm3180_vm6, %v3194_v22, %v3198_v48  ;;  %v3201_v58 = vor.u32 %v3200_v62, %v12563_v24  ;;  %v1367_v27 = vld [vmem:[#allocation2 + $0x48] sm:$0x1]  ;;  %v2253_v12 = vld [vmem:[#allocation2] sm:$0xfc] }
 0x1a4   : > { %10136 = vmatmul.mubr.bf16.gmra.mrb[24].mxu1 %v1445_v38  ;;  %16517 = vst [vmem:[#allocation9_spill] sm:$0xff] %v12785_v21  ;;  %v1822_v33 = vsel %vm1805_vm2, %v1819_v41, %v1821_v3  ;;  %v1452_v25 = vrot.slane %v12618_v19, 1  ;;  %v3204_v18 = vor.u32 %v3203_v8, %v12624_v52  ;;  %v3207_v39 = vor.u32 %v3206_v53, %v12618_v19  ;;  %v12816_v9 = vld [vmem:[#allocation2 + $0x20] sm:$0xff] }
 0x1a5   : > { %10139 = vmatprep.mubr.msk.bf16.mxu1 %vm11913_vm1, %v12402_v5  ;;  %v12795_v20 = vsel %vm3180_vm6, %v3197_v28, %v3201_v58  ;;  %v12799_v59 = vsel %vm3180_vm6, %v3206_v53, %v3215_v50  ;;  %v1458_v41 = vshll.u32 %v1367_v27, 16  ;;  %v1823_v40 = vrot.slane %v1367_v27, 1  ;;  %v12814_v28 = vld [vmem:[#allocation2 + $0x10] sm:$0xff]  ;;  %v12821_v50 = vld [vmem:[#allocation2 + $0x28] sm:$0xff]  ;;  %v12830_v58 = vld [vmem:[#allocation2 + $0x40] sm:$0xff] }
 0x1a6   : > { %16518 = vst [vmem:[#allocation10_spill] sm:$0xff] %v12795_v20  ;;  %16519 = vst [vmem:[#allocation11_spill] sm:$0xff] %v12799_v59  ;;  %v1453_v24 = vsel %vm1385_vm3, %v1448_v30, %v1452_v25  ;;  %v12805_v14 = vsel %vm3180_vm6, %v3200_v62, %v3204_v18  ;;  %v12808_v52 = vsel %vm3180_vm6, %v3203_v8, %v3207_v39  ;;  %v2274_v34 = vrot.slane %v2253_v12, 2  ;;  %v12819_v62 = vld [vmem:[#allocation2 + $0x18] sm:$0xff]  ;;  %v12823_v30 = vld [vmem:[#allocation2 + $0x30] sm:$0xff] }
 0x1a7   : > { %16520 = vst [vmem:[#allocation12_spill] sm:$0xff] %v12805_v14  ;;  %16521 = vst [vmem:[#allocation13_spill] sm:$0xff] %v12808_v52  ;;  %v1456_v19 = vor.u32 %v12644_v4, %v1452_v25  ;;  %v1460_v38 = vrot.slane %v1458_v41, 1  ;;  %v1824_v22 = vsel %vm1805_vm2, %v1821_v3, %v1823_v40  ;;  %v2275_v48 = vrot.slane %v12357_v15, 2  ;;  %v3585_v3 = vld [vmem:[#allocation2 + $0x8] sm:$0xf0] }
 0x1a8   : > { %v12828_v8 = vld [vmem:[#allocation2 + $0x38] sm:$0xff]  ;;  %16522 = vst [vmem:[#allocation14_spill] sm:$0xff] %v12830_v58  ;;  %v16445_v53 = vrot.slane %v12354_v32, 2  ;;  %v16444_v25 = vrot.slane %v12814_v28, 5  ;;  %v4134_v18 = vrot.slane %v12819_v62, 5  ;;  %v4136_v27 = vrot.slane %v12816_v9, 5 }
 0x1a9   : > { %v1461_v4 = vsel %vm1385_vm3, %v1456_v19, %v1460_v38  ;;  %v4138_v39 = vrot.slane %v12821_v50, 5  ;;  %v2276_v41 = vsel %vm2273_vm7, %v2274_v34, %v2275_v48  ;;  %v4142_v40 = vrot.slane %v12828_v8, 5  ;;  %v11513_v12 = vld [vmem:[%s16433_s3 + $0x180] sm:$0xff]   ;;  %v11516_v20 = vld [vmem:[%s16433_s3 + $0x190] sm:$0xff]  }
 0x1aa   : > { %10244 = vmatmul.mubr.bf16.gmra.mrb[100].mxu0 %v1822_v33  ;;  %v3842_v38 = vshrl.u32 %v3585_v3, 16  ;;  %v2278_v19 = vsel %vm2273_vm7, %v2275_v48, %v16445_v53  ;;  %v16446_v48 = vshll.u32 %v12814_v28, 16  ;;  %v4601_v53 = vrot.slane %v12819_v62, 6 }
 0x1ab   : > { %10247 = vmatprep.mubr.msk.bf16.mxu0 %vm11913_vm1, %v12402_v5  ;;  %v12856_v33 = vsel %vm4130_vm9, %v4136_v27, %v4138_v39  ;;  %v3862_v59 = vshll.u32 %v12819_v62, 16 }
 0x1ac   : > { %10140 = vmatmul.mubr.bf16.gmra.mrb[28].mxu1 %v1453_v24  ;;  %v4140_v24 = vrot.slane %v12823_v30, 5  ;;  %16525 = vst [vmem:[#allocation17_spill] sm:$0xff] %v12856_v33  ;;  %v16447_v33 = vshrl.u32 %v12814_v28, 16 }
 0x1ad   : > { %10143 = vmatprep.mubr.msk.bf16.mxu1 %vm11913_vm1, %v12402_v5 }
 0x1ae   : > { %v12859_v34 = vsel %vm4130_vm9, %v4138_v39, %v4140_v24  ;;  %v12866_v52 = vsel %vm4130_vm9, %v4140_v24, %v4142_v40  ;;  %v3844_v39 = vrot.slane %v3842_v38, 4  ;;  %v3859_v24 = vshrl.u32 %v12819_v62, 16 }
 0x1af   : > { %16526 = vst [vmem:[#allocation18_spill] sm:$0xff] %v12859_v34  ;;  %16527 = vst [vmem:[#allocation19_spill] sm:$0xff] %v12866_v52  ;;  %v3845_v34 = vshll.u32 %v3585_v3, 16  ;;  %v11514_v3 = vld [vmem:[%s16433_s3 + $0x188] sm:$0xff]   ;;  %v3855_v38 = vrot.slane %v16446_v48, 5  ;;  %v16530_v62 = vrot.slane %v12814_v28, 6 }
 0x1b0   : > { %v3861_v52 = vrot.slane %v3859_v24, 4  ;;  %v11509_v48 = vld [vmem:[%s16433_s3 + $0xc8] sm:$0xff]  }
 0x1b2   : > { %10248 = vmatmul.mubr.bf16.gmra.mrb[104].mxu0 %v1824_v22  ;;  %v12850_v22 = vsel %vm4130_vm9, %v16444_v25, %v4134_v18  ;;  %v16528_v25 = vrot.slane %v12830_v58, 5 }
 0x1b3   : > { %10319 = vmatprep.mubr.msk.bf16.mxu0 %vm11913_vm1, %v12402_v5  ;;  %16523 = vst [vmem:[#allocation15_spill] sm:$0xff] %v12850_v22  ;;  %v4362_v22 = vrot.slane %v3862_v59, 6 }
 0x1b4   : > { %10144 = vmatmul.mubr.bf16.gmra.mrb[32].mxu1 %v1461_v4  ;;  %v12853_v4 = vsel %vm4130_vm9, %v4134_v18, %v4136_v27  ;;  %v12871_v18 = vsel %vm4130_vm9, %v4142_v40, %v16528_v25  ;;  %v11508_v27 = vld [vmem:[%s16433_s3 + $0xc0] sm:$0xff]   ;;  %v4603_v25 = vrot.slane %v12816_v9, 6  ;;  %v3847_v40 = vrot.slane %v3845_v34, 5 }
 0x1b5   : > { %10163 = vmatprep.mubr.msk.bf16.mxu1 %vm11913_vm1, %v12402_v5  ;;  %16524 = vst [vmem:[#allocation16_spill] sm:$0xff] %v12853_v4  ;;  %16529 = vst [vmem:[#allocation20_spill] sm:$0xff] %v12871_v18  ;;  %v3868_v18 = vshrl.u32 %v12816_v9, 16  ;;  %v3864_v4 = vrot.slane %v3862_v59, 5  ;;  %v4361_v34 = vrot.slane %v3859_v24, 5  ;;  %v3871_v24 = vshll.u32 %v12816_v9, 16 }
 0x1b6   : > { %v12905_v14 = vsel %vm2494_vm8, %v4601_v53, %v4603_v25  ;;  %v4605_v59 = vrot.slane %v12821_v50, 6 }
 0x1b7   : > { %16532 = vst [vmem:[#allocation22_spill] sm:$0xff] %v12905_v14  ;;  %v3873_v9 = vrot.slane %v3871_v24, 5  ;;  %v11556_v14 = vld [vmem:[%s16433_s3 + $0x240] sm:$0xff]  }
 0x1ba   : > { %10320 = vmatmul.mubr.bf16.vlgmr.msra.gmra.mrb[108].mxu0 %v2276_v41  ;;  %v3852_v41 = vrot.slane %v16447_v33, 4  ;;  %v3848_v33 = vor.u32 %v3847_v40, %v3844_v39  ;;  %v12915_v39 = vor.u32 %v4362_v22, %v4361_v34  ;;  %v12928_v22 = vsel %vm2494_vm8, %v4603_v25, %v4605_v59 }
 0x1bb   : > { %10323 = vmatprep.mubr.msk.bf16.mxu0 %vm11913_vm1, %v12402_v5  ;;  %10408 = vmatpush3.bf16.msra.mxu0 %v11513_v12  ;;  %v12897_v12 = vsel %vm2494_vm8, %v16530_v62, %v4601_v53  ;;  %v3865_v62 = vor.u32 %v3864_v4, %v3861_v52  ;;  %v3877_v53 = vshrl.u32 %v12821_v50, 16  ;;  %v4366_v4 = vrot.slane %v3871_v24, 6  ;;  %16535 = vst [vmem:[#allocation25_spill] sm:$0xff] %v12928_v22 }
 0x1bc   : > { %10164 = vmatmul.mubr.bf16.vlgmr.msra.gmra.mrb[36].mxu1 %v12326_v11  ;;  %10409 = vmatprep.subr.bf16.mxu0 %v12402_v5  ;;  %16531 = vst [vmem:[#allocation21_spill] sm:$0xff] %v12897_v12  ;;  %v3856_v11 = vor.u32 %v3855_v38, %v3852_v41  ;;  %v3870_v12 = vrot.slane %v3868_v18, 4  ;;  %v4607_v41 = vrot.slane %v12823_v30, 6  ;;  %v3889_v24 = vshll.u32 %v12823_v30, 16 }
 0x1bd   : > { %10252 = vmatpush3.bf16.msra.mxu1 %v11508_v27  ;;  %10167 = vmatprep.mubr.msk.bf16.mxu1 %vm11913_vm1, %v12402_v5  ;;  %v4365_v27 = vrot.slane %v3868_v18, 5  ;;  %v3880_v18 = vshll.u32 %v12821_v50, 16  ;;  %v4369_v40 = vrot.slane %v3877_v53, 5 }
 0x1be   : > { %10253 = vmatprep.subr.bf16.mxu1 %v12402_v5  ;;  %v12913_v21 = vsel %vm3840_vm10, %v3848_v33, %v3856_v11  ;;  %v12921_v52 = vsel %vm3840_vm10, %v3856_v11, %v3865_v62  ;;  %v11510_v33 = vld [vmem:[%s16433_s3 + $0xd0] sm:$0xff]   ;;  %v3874_v38 = vor.u32 %v3873_v9, %v3870_v12  ;;  %v12940_v25 = vsel %vm2494_vm8, %v4605_v59, %v4607_v41 }
 0x1bf   : > { %10410 = vmatpush3.bf16.msra.mxu0 %v11514_v3  ;;  %16533 = vst [vmem:[#allocation23_spill] sm:$0xff] %v12913_v21  ;;  %16534 = vst [vmem:[#allocation24_spill] sm:$0xff] %v12921_v52  ;;  %v3879_v3 = vrot.slane %v3877_v53, 4  ;;  %v12932_v34 = vor.u32 %v4366_v4, %v4365_v27  ;;  %v3882_v11 = vrot.slane %v3880_v18, 5  ;;  %v4370_v50 = vrot.slane %v3880_v18, 6 }
 0x1c0   : > { %10411 = vmatprep.subr.bf16.mxu0 %v12402_v5  ;;  %16536 = vst [vmem:[#allocation26_spill] sm:$0xff] %v12940_v25  ;;  %v4609_v12 = vrot.slane %v12828_v8, 6  ;;  %v12948_v27 = vsel %vm3840_vm10, %v3865_v62, %v3874_v38  ;;  %v3895_v9 = vshrl.u32 %v12828_v8, 16  ;;  %v4374_v18 = vrot.slane %v3889_v24, 6 }
 0x1c1   : > { %10254 = vmatpush3.bf16.msra.mxu1 %v11509_v48  ;;  %v11517_v48 = vld [vmem:[%s16433_s3 + $0x198] sm:$0xff]   ;;  %16537 = vst [vmem:[#allocation27_spill] sm:$0xff] %v12948_v27  ;;  %v12950_v53 = vor.u32 %v4370_v50, %v4369_v40 }
 0x1c2   : > { %10324 = vmatmul.mubr.bf16.gmra.mrb[112].mxu0 %v2278_v19  ;;  %10255 = vmatprep.subr.bf16.mxu1 %v12402_v5  ;;  %v3886_v19 = vshrl.u32 %v12823_v30, 16  ;;  %v11511_v30 = vld [vmem:[%s16433_s3 + $0xd8] sm:$0xff]   ;;  %v3897_v40 = vrot.slane %v3895_v9, 4 }
 0x1c3   : > { %10327 = vmatprep.mubr.msk.bf16.mxu0 %vm11913_vm1, %v12402_v5  ;;  %10412 = vmatpush3.bf16.msra.mxu0 %v11516_v20  ;;  %v3883_v20 = vor.u32 %v3882_v11, %v3879_v3  ;;  %v12963_v3 = vsel %vm2494_vm8, %v4607_v41, %v4609_v12  ;;  %v3898_v11 = vshll.u32 %v12828_v8, 16  ;;  %v3904_v41 = vshrl.u32 %v12830_v58, 16 }
 0x1c4   : > { %10168 = vmatmul.mubr.bf16.gmra.mrb[40].mxu1 %v12357_v15  ;;  %10413 = vmatprep.subr.bf16.mxu0 %v12402_v5  ;;  %v3888_v59 = vrot.slane %v3886_v19, 4  ;;  %v3891_v15 = vrot.slane %v3889_v24, 5  ;;  %v4373_v4 = vrot.slane %v3886_v19, 5  ;;  %16539 = vst [vmem:[#allocation29_spill] sm:$0xff] %v12963_v3  ;;  %v4377_v19 = vrot.slane %v3895_v9, 5  ;;  %v11512_v9 = vld [vmem:[%s16433_s3 + $0xe0] sm:$0xff]  }
 0x1c5   : > { %10171 = vmatprep.mubr.msk.bf16.mxu1 %vm11913_vm1, %v12402_v5  ;;  %10256 = vmatpush3.bf16.msra.mxu1 %v11510_v33  ;;  %v12960_v62 = vsel %vm3840_vm10, %v3874_v38, %v3883_v20  ;;  %v11519_v33 = vld [vmem:[%s16433_s3 + $0x1a0] sm:$0xff]   ;;  %v16448_v24 = vrot.slane %v12830_v58, 6  ;;  %v3900_v38 = vrot.slane %v3898_v11, 5  ;;  %v3907_v3 = vshll.u32 %v12830_v58, 16 }
 0x1c6   : > { %10257 = vmatprep.subr.bf16.mxu1 %v12402_v5  ;;  %16538 = vst [vmem:[#allocation28_spill] sm:$0xff] %v12960_v62  ;;  %v3892_v50 = vor.u32 %v3891_v15, %v3888_v59  ;;  %v12969_v25 = vor.u32 %v4374_v18, %v4373_v4  ;;  %v4378_v62 = vrot.slane %v3898_v11, 6  ;;  %v16540_v8 = vrot.slane %v12416_v10, 2  ;;  %v4110_v4 = vld [vmem:[#allocation2 + $0x8] sm:$0xe0] }
 0x1c7   : > { %10414 = vmatpush3.bf16.msra.mxu0 %v11517_v48  ;;  %v16541_v48 = vrot.slane %v12354_v32, 2  ;;  %v12989_v15 = vsel %vm2494_vm8, %v4609_v12, %v16448_v24  ;;  %v3901_v18 = vor.u32 %v3900_v38, %v3897_v40  ;;  %v11515_v40 = vld [vmem:[%s16433_s3 + $0xe8] sm:$0xff]  }
 0x1c8   : > { %10415 = vmatprep.subr.bf16.mxu0 %v12402_v5  ;;  %v12984_v59 = vsel %vm3840_vm10, %v3883_v20, %v3892_v50  ;;  %16543 = vst [vmem:[#allocation31_spill] sm:$0xff] %v12989_v15  ;;  %v4379_v11 = vor.u32 %v4378_v62, %v4377_v19  ;;  %v11520_v20 = vld [vmem:[%s16433_s3 + $0x1a8] sm:$0xff]   ;;  %v2281_v62 = vrot.slane %v12409_v6, 2  ;;  %v11522_v19 = vld [vmem:[%s16433_s3 + $0x1b0] sm:$0xff]  }
 0x1c9   : > { %v2280_v22 = vsel %vm2273_vm7, %v16541_v48, %v16540_v8  ;;  %10258 = vmatpush3.bf16.msra.mxu1 %v11511_v30  ;;  %16542 = vst [vmem:[#allocation30_spill] sm:$0xff] %v12984_v59  ;;  %v3906_v8 = vrot.slane %v3904_v41, 4  ;;  %v3909_v30 = vrot.slane %v3907_v3, 5  ;;  %v4381_v48 = vrot.slane %v3904_v41, 5 }
 0x1ca   : > { %10328 = vmatmul.mubr.bf16.gmra.mrb[116].mxu0 %v2280_v22  ;;  %10259 = vmatprep.subr.bf16.mxu1 %v12402_v5  ;;  %v4382_v59 = vrot.slane %v3907_v3, 6  ;;  %v13000_v22 = vsel %vm3840_vm10, %v3892_v50, %v3901_v18 }
 0x1cb   : > { %10331 = vmatprep.mubr.msk.bf16.mxu0 %vm11913_vm1, %v12402_v5  ;;  %10416 = vmatpush3.bf16.msra.mxu0 %v11519_v33  ;;  %16544 = vst [vmem:[#allocation32_spill] sm:$0xff] %v13000_v22  ;;  %v13002_v12 = vor.u32 %v3909_v30, %v3906_v8  ;;  %v4353_v33 = vshll.u32 %v4110_v4, 16  ;;  %v16550_v30 = vrot.slane %v12416_v10, 2  ;;  %v11820_v22 = vld [vmem:[#allocation2 + $0x10] sm:$0xff] }
 0x1cc   : > { %10172 = vmatmul.mubr.bf16.gmra.mrb[44].mxu1 %v12354_v32  ;;  %10417 = vmatprep.subr.bf16.mxu0 %v12402_v5  ;;  %v13010_v3 = vor.u32 %v4382_v59, %v4381_v48  ;;  %v4350_v32 = vshrl.u32 %v4110_v4, 16  ;;  %v16549_v59 = vshll.u32 %v12814_v28, 16  ;;  %v3624_v27 = vrot.slane %v11820_v22, 4 }
 0x1cd   : > { %16545 = vst [vmem:[#allocation33_spill] sm:$0xff] %v13002_v12  ;;  %10175 = vmatprep.mubr.msk.bf16.mxu1 %vm11913_vm1, %v12402_v5  ;;  %10260 = vmatpush3.bf16.msra.mxu1 %v11512_v9  ;;  %v13015_v50 = vsel %vm3840_vm10, %v3901_v18, %v13002_v12  ;;  %v4355_v41 = vrot.slane %v4353_v33, 6  ;;  %v16548_v9 = vshrl.u32 %v12814_v28, 16  ;;  %v2282_v18 = vsel %vm2273_vm7, %v16550_v30, %v2281_v62 }
 0x1ce   : > { %16546 = vst [vmem:[#allocation34_spill] sm:$0xff] %v13010_v3  ;;  %10261 = vmatprep.subr.bf16.mxu1 %v12402_v5  ;;  %16547 = vst [vmem:[#allocation35_spill] sm:$0xff] %v13015_v50  ;;  %v4352_v38 = vrot.slane %v4350_v32, 5  ;;  %v4358_v4 = vrot.slane %v16549_v59, 6  ;;  %v13034_v32 = vsel %vm4348_vm11, %v12915_v39, %v12932_v34  ;;  %v13064_v59 = vsel %vm4348_vm11, %v12932_v34, %v12950_v53  ;;  %v13078_v34 = vld [vmem:[#allocation2 + $0x30] sm:$0xff] }
 0x1cf   : > { %10418 = vmatpush3.bf16.msra.mxu0 %v11520_v20  ;;  %v4357_v8 = vrot.slane %v16548_v9, 5  ;;  %v11518_v20 = vld [vmem:[%s16433_s3 + $0xf0] sm:$0xff]   ;;  %16551 = vst [vmem:[#allocation36_spill] sm:$0xff] %v13034_v32  ;;  %v13042_v9 = vld [vmem:[#allocation2 + $0x18] sm:$0xff]  ;;  %16556 = vst [vmem:[#allocation41_spill] sm:$0xff] %v13064_v59  ;;  %v13072_v30 = vsel %vm4348_vm11, %v12950_v53, %v12969_v25  ;;  %v16570_v32 = vshrl.u32 %v13078_v34, 16 }
 0x1d0   : > { %10419 = vmatprep.subr.bf16.mxu0 %v12402_v5  ;;  %v4356_v48 = vor.u32 %v4355_v41, %v4352_v38  ;;  %16552 = vst [vmem:[#allocation37_spill] sm:$0xff] %v13042_v9  ;;  %16557 = vst [vmem:[#allocation42_spill] sm:$0xff] %v13072_v30 }
 0x1d1   : > { %10262 = vmatpush3.bf16.msra.mxu1 %v11515_v40  ;;  %v4359_v33 = vor.u32 %v4358_v4, %v4357_v8  ;;  %v11523_v40 = vld [vmem:[%s16433_s3 + $0x1b8] sm:$0xff]   ;;  %v2283_v8 = vrot.slane %v12477_v45, 2  ;;  %16559 = vst [vmem:[#allocation44_spill] sm:$0xff] %v13078_v34  ;;  %v13093_v4 = vld [vmem:[#allocation2 + $0x38] sm:$0xff] }
 0x1d2   : > { %10332 = vmatmul.mubr.bf16.gmra.mrb[120].mxu0 %v2282_v18  ;;  %10263 = vmatprep.subr.bf16.mxu1 %v12402_v5  ;;  %v13074_v18 = vld [vmem:[#allocation2 + $0x28] sm:$0xff]  ;;  %16562 = vst [vmem:[#allocation47_spill] sm:$0xff] %v13093_v4 }
 0x1d3   : > { %10335 = vmatprep.mubr.msk.bf16.mxu0 %vm11913_vm1, %v12402_v5  ;;  %10420 = vmatpush3.bf16.msra.mxu0 %v11522_v19  ;;  %v13047_v38 = vsel %vm4348_vm11, %v4356_v48, %v4359_v33  ;;  %v13051_v41 = vsel %vm4348_vm11, %v4359_v33, %v12915_v39  ;;  %v11521_v19 = vld [vmem:[%s16433_s3 + $0xf8] sm:$0xff]   ;;  %v16450_v39 = vshrl.u32 %v13042_v9, 16  ;;  %16558 = vst [vmem:[#allocation43_spill] sm:$0xff] %v13074_v18 }
 0x1d4   : > { %10176 = vmatmul.mubr.bf16.gmra.mrb[48].mxu1 %v12416_v10  ;;  %10421 = vmatprep.subr.bf16.mxu0 %v12402_v5  ;;  %16553 = vst [vmem:[#allocation38_spill] sm:$0xff] %v13047_v38  ;;  %16554 = vst [vmem:[#allocation39_spill] sm:$0xff] %v13051_v41  ;;  %v13059_v10 = vld [vmem:[#allocation2 + $0x20] sm:$0xff]  ;;  %v13082_v48 = vsel %vm4348_vm11, %v12969_v25, %v4379_v11  ;;  %v13086_v33 = vsel %vm4348_vm11, %v4379_v11, %v13010_v3  ;;  %v16563_v11 = vshll.u32 %v13042_v9, 16 }
 0x1d5   : > { %10179 = vmatprep.mubr.msk.bf16.mxu1 %vm11913_vm1, %v12402_v5  ;;  %10264 = vmatpush3.bf16.msra.mxu1 %v11518_v20  ;;  %16555 = vst [vmem:[#allocation40_spill] sm:$0xff] %v13059_v10  ;;  %16560 = vst [vmem:[#allocation45_spill] sm:$0xff] %v13082_v48  ;;  %v2284_v53 = vsel %vm2273_vm7, %v2281_v62, %v2283_v8  ;;  %v5568_v25 = vrot.slane %v16450_v39, 3  ;;  %v16566_v24 = vshrl.u32 %v13059_v10, 16  ;;  %v2285_v39 = vrot.slane %v12473_v54, 2 }
 0x1d6   : > { %10265 = vmatprep.subr.bf16.mxu1 %v12402_v5  ;;  %16561 = vst [vmem:[#allocation46_spill] sm:$0xff] %v13086_v33  ;;  %v5569_v3 = vrot.slane %v16563_v11, 4  ;;  %v13111_v33 = vld [vmem:[#allocation3 + $0x90] sm:$0xff]  ;;  %v16567_v11 = vshll.u32 %v13059_v10, 16  ;;  %v16569_v62 = vshll.u32 %v13074_v18, 16  ;;  %v16571_v41 = vshll.u32 %v13078_v34, 16 }
 0x1d7   : > { %10422 = vmatpush3.bf16.msra.mxu0 %v11523_v40  ;;  %v5572_v40 = vrot.slane %v16566_v24, 3 }
 0x1d8   : > { %10511 = vmatprep.subr.bf16.mxu0 %v12402_v5  ;;  %v13106_v20 = vor.u32 %v5569_v3, %v5568_v25  ;;  %v16568_v25 = vshrl.u32 %v13074_v18, 16  ;;  %v5577_v48 = vrot.slane %v16569_v62, 4  ;;  %v5581_v38 = vrot.slane %v16571_v41, 4 }
 0x1d9   : > { %10266 = vmatpush3.bf16.msra.mxu1 %v11521_v19  ;;  %v5573_v19 = vrot.slane %v16567_v11, 4  ;;  %v16573_v18 = vshrl.u32 %v13093_v4, 16 }
 0x1da   : > { %10336 = vmatmul.mubr.bf16.gmra.mrb[124].mxu0 %v2284_v53  ;;  %10355 = vmatprep.subr.bf16.mxu1 %v12402_v5  ;;  %v13103_v53 = vld [vmem:[#allocation2 + $0x40] sm:$0xff]  ;;  %16565 = vst [vmem:[#allocation49_spill] sm:$0xff] %v13106_v20  ;;  %v5576_v24 = vrot.slane %v16568_v25, 3 }
 0x1db   : > { %10339 = vmatprep.mubr.msk.bf16.mxu0 %vm11913_vm1, %v12402_v5  ;;  %16564 = vst [vmem:[#allocation48_spill] sm:$0xff] %v13103_v53  ;;  %v16453_v30 = vshll.u32 %v13103_v53, 16  ;;  %v5574_v59 = vor.u32 %v5573_v19, %v5572_v40  ;;  %v5580_v5 = vrot.slane %v16570_v32, 3  ;;  %v5584_v62 = vrot.slane %v16573_v18, 3 }
 0x1dc   : > { %10180 = vmatmul.mubr.bf16.gmra.mrb[52].mxu1 %v12409_v6  ;;  %v5578_v11 = vor.u32 %v5577_v48, %v5576_v24  ;;  %v2286_v6 = vsel %vm2273_vm7, %v2283_v8, %v2285_v39  ;;  %v16575_v32 = vshll.u32 %v13093_v4, 16  ;;  %v16577_v8 = vshrl.u32 %v13103_v53, 16  ;;  %v13196_v53 = vld [vmem:[#allocation2 + $0x40] sm:$0xff] }
 0x1dd   : > { %10183 = vmatprep.mubr.msk.bf16.mxu1 %vm11913_vm1, %v13111_v33  ;;  %v13132_v3 = vsel %vm5559_vm12, %v13106_v20, %v5574_v59  ;;  %v5582_v25 = vor.u32 %v5581_v38, %v5580_v5  ;;  %v5589_v38 = vrot.slane %v16453_v30, 4  ;;  %16584 = vst [vmem:[#allocation59_spill] sm:$0xff] %v13196_v53 }
 0x1de   : > { %16572 = vst [vmem:[#allocation50_spill] sm:$0xff] %v13132_v3  ;;  %v13137_v40 = vsel %vm5559_vm12, %v5574_v59, %v5578_v11  ;;  %v5585_v19 = vrot.slane %v16575_v32, 4  ;;  %v5588_v48 = vrot.slane %v16577_v8, 3  ;;  %v2287_v59 = vrot.slane %v12538_v1, 2  ;;  %v6199_v32 = vld [vmem:[#allocation2 + $0x28] sm:$0xff]  ;;  %v13175_v8 = vld [vmem:[#allocation2 + $0x30] sm:$0xff] }
 0x1df   : > { %16574 = vst [vmem:[#allocation51_spill] sm:$0xff] %v13137_v40  ;;  %v13144_v41 = vsel %vm5559_vm12, %v5578_v11, %v5582_v25  ;;  %v6240_v30 = vshll.u32 %v6199_v32, 16  ;;  %v6244_v20 = vshrl.u32 %v6199_v32, 16  ;;  %v6248_v4 = vshll.u32 %v13175_v8, 16 }
 0x1e0   : > { %16576 = vst [vmem:[#allocation52_spill] sm:$0xff] %v13144_v41  ;;  %v5586_v18 = vor.u32 %v5585_v19, %v5584_v62  ;;  %v13154_v5 = vor.u32 %v5589_v38, %v5588_v48  ;;  %v2288_v11 = vsel %vm2273_vm7, %v2285_v39, %v2287_v59  ;;  %v13170_v62 = vld [vmem:[#allocation2] sm:$0xc0] }
 0x1e1   : > { %v2714_v39 = vshrl.u32 %v13170_v62, 16  ;;  %v2717_v48 = vshll.u32 %v13170_v62, 16  ;;  %v6242_v40 = vrot.slane %v6240_v30, 1 }
 0x1e2   : > { %10340 = vmatmul.mubr.bf16.gmra.mrb[128].mxu0 %v2286_v6  ;;  %16578 = vst [vmem:[#allocation53_spill] sm:$0xff] %v13154_v5  ;;  %v13157_v6 = vsel %vm5559_vm12, %v5582_v25, %v5586_v18  ;;  %v13161_v24 = vsel %vm5559_vm12, %v5586_v18, %v13154_v5  ;;  %v13172_v25 = vld [vmem:[#allocation2 + $0x20] sm:$0xff]  ;;  %v6977_v18 = vrot.slane %v6199_v32, 2  ;;  %v6252_v32 = vshrl.u32 %v13175_v8, 16 }
 0x1e3   : > { %10343 = vmatprep.mubr.msk.bf16.mxu0 %vm11913_vm1, %v13111_v33  ;;  %16579 = vst [vmem:[#allocation54_spill] sm:$0xff] %v13157_v6  ;;  %16580 = vst [vmem:[#allocation55_spill] sm:$0xff] %v13161_v24  ;;  %v16467_v38 = vrot.slane %v13172_v25, 2  ;;  %v6979_v6 = vrot.slane %v13175_v8, 2  ;;  %v2719_v34 = vrot.slane %v2717_v48, 7  ;;  %v6246_v9 = vor.u32 %v6244_v20, %v6242_v40 }
 0x1e4   : > { %10184 = vmatmul.mubr.bf16.gmra.mrb[56].mxu1 %v12477_v45  ;;  %v2289_v45 = vrot.slane %v12533_v17, 2  ;;  %16581 = vst [vmem:[#allocation56_spill] sm:$0xff] %v13172_v25 }
 0x1e5   : > { %10187 = vmatprep.mubr.msk.bf16.mxu1 %vm11913_vm1, %v13111_v33  ;;  %v13194_v41 = vsel %vm2273_vm7, %v16467_v38, %v6977_v18 }
 0x1e6   : > { %v2290_v19 = vsel %vm2273_vm7, %v2287_v59, %v2289_v45  ;;  %v2291_v59 = vrot.slane %v12521_v51, 2  ;;  %16583 = vst [vmem:[#allocation58_spill] sm:$0xff] %v13194_v41  ;;  %v6250_v41 = vrot.slane %v6248_v4, 1 }
 0x1e8   : > { %v2292_v12 = vsel %vm2273_vm7, %v2289_v45, %v2291_v59 }
 0x1ea   : > { %10344 = vmatmul.mubr.bf16.gmra.mrb[132].mxu0 %v2288_v11  ;;  %v6236_v11 = vshrl.u32 %v13172_v25, 16 }
 0x1eb   : > { %10347 = vmatprep.mubr.msk.bf16.mxu0 %vm11913_vm1, %v13111_v33 }
 0x1ec   : > { %10188 = vmatmul.mubr.bf16.gmra.mrb[60].mxu1 %v12473_v54  ;;  %v6232_v54 = vshll.u32 %v13172_v25, 16  ;;  %v6733_v3 = vrot.slane %v6236_v11, 1 }
 0x1ed   : > { %10191 = vmatprep.mubr.msk.bf16.mxu1 %vm11913_vm1, %v13111_v33 }
 0x1ee   : > { %v13186_v5 = vrot.slane %v6232_v54, 1  ;;  %v6734_v24 = vrot.slane %v6232_v54, 2  ;;  %v13200_v54 = vsel %vm2273_vm7, %v6977_v18, %v6979_v6  ;;  %v16469_v18 = vrot.slane %v13196_v53, 2 }
 0x1ef   : > { %16585 = vst [vmem:[#allocation60_spill] sm:$0xff] %v13200_v54  ;;  %v6264_v54 = vshll.u32 %v13196_v53, 16 }
 0x1f0   : > { %16582 = vst [vmem:[#allocation57_spill] sm:$0xff] %v13186_v5  ;;  %v6238_v51 = vor.u32 %v6236_v11, %v13186_v5  ;;  %v6735_v10 = vor.u32 %v6734_v24, %v6733_v3  ;;  %v6480_v3 = vld [vmem:[#allocation2 + $0x18] sm:$0xfe]  ;;  %v13214_v24 = vsel %vm1385_vm3, %v6246_v9, %v6250_v41 }
 0x1f1   : > { %16588 = vst [vmem:[#allocation63_spill] sm:$0xff] %v13214_v24  ;;  %v13227_v9 = vrot.slane %v6264_v54, 1  ;;  %v6726_v59 = vshrl.u32 %v6480_v3, 16  ;;  %v16593_v24 = vshrl.u32 %v13196_v53, 16  ;;  %v16605_v5 = vld [vmem:[#allocation11_spill] sm:$0xff] }
 0x1f2   : > { %10348 = vmatmul.mubr.bf16.gmra.mrb[136].mxu0 %v2290_v19  ;;  %v6201_v19 = vld [vmem:[#allocation2 + $0x38] sm:$0xff]  ;;  %v13204_v38 = vsel %vm1385_vm3, %v6238_v51, %v6242_v40  ;;  %v6254_v40 = vor.u32 %v6252_v32, %v6250_v41 }
 0x1f3   : > { %10351 = vmatprep.mubr.msk.bf16.mxu0 %vm11913_vm1, %v13111_v33  ;;  %v6981_v25 = vrot.slane %v6201_v19, 2  ;;  %16586 = vst [vmem:[#allocation61_spill] sm:$0xff] %v13204_v38  ;;  %v6260_v51 = vshrl.u32 %v6201_v19, 16  ;;  %16591 = vst [vmem:[#allocation66_spill] sm:$0xff] %v13227_v9 }
 0x1f4   : > { %10192 = vmatmul.mubr.bf16.gmra.mrb[64].mxu1 %v12538_v1  ;;  %v2716_v1 = vrot.slane %v2714_v39, 6  ;;  %v6256_v39 = vshll.u32 %v6201_v19, 16 }
 0x1f5   : > { %10195 = vmatprep.mubr.msk.bf16.mxu1 %vm11913_vm1, %v13111_v33  ;;  %v13209_v11 = vsel %vm2273_vm7, %v6979_v6, %v6981_v25  ;;  %v13221_v6 = vsel %vm2273_vm7, %v6981_v25, %v16469_v18  ;;  %v6737_v25 = vrot.slane %v6244_v20, 1  ;;  %v6728_v18 = vrot.slane %v6726_v59, 1 }
 0x1f6   : > { %16587 = vst [vmem:[#allocation62_spill] sm:$0xff] %v13209_v11  ;;  %v6258_v48 = vrot.slane %v6256_v39, 1  ;;  %v2720_v8 = vor.u32 %v2719_v34, %v2716_v1  ;;  %16589 = vst [vmem:[#allocation64_spill] sm:$0xff] %v13221_v6  ;;  %v6729_v34 = vshll.u32 %v6480_v3, 16  ;;  %v6738_v1 = vrot.slane %v6240_v30, 2  ;;  %v11524_v30 = vld [vmem:[%s16433_s3 + $0x140] sm:$0xff]  }
 0x1f7   : > { %v6742_v6 = vrot.slane %v6248_v4, 2  ;;  %v6745_v11 = vrot.slane %v6260_v51, 1  ;;  %v6746_v3 = vrot.slane %v6256_v39, 2  ;;  %v11530_v39 = vld [vmem:[%s16433_s3 + $0x208] sm:$0xff]  }
 0x1f8   : > { %v6262_v45 = vor.u32 %v6260_v51, %v6258_v48  ;;  %v6731_v41 = vrot.slane %v6729_v34, 2  ;;  %v6754_v51 = vrot.slane %v12757_v47, 2  ;;  %v11526_v34 = vld [vmem:[%s16433_s3 + $0x150] sm:$0xff]  }
 0x1f9   : > { %v6747_v4 = vor.u32 %v6746_v3, %v6745_v11 }
 0x1fa   : > { %10352 = vmatmul.mubr.bf16.gmra.mrb[140].mxu0 %v2292_v12  ;;  %v13225_v12 = vsel %vm1385_vm3, %v6254_v40, %v6258_v48  ;;  %v13234_v19 = vsel %vm1385_vm3, %v6262_v45, %v13227_v9  ;;  %v2724_v40 = vsel %vm2712_vm4, %v2720_v8, %v12638_v60  ;;  %v11529_v48 = vld [vmem:[%s16433_s3 + $0x200] sm:$0xff]   ;;  %v6749_v45 = vrot.slane %v16593_v24, 1 }
 0x1fb   : > { %10423 = vmatprep.mubr.msk.bf16.mxu0 %vm11913_vm1, %v13111_v33  ;;  %16590 = vst [vmem:[#allocation65_spill] sm:$0xff] %v13225_v12  ;;  %16592 = vst [vmem:[#allocation67_spill] sm:$0xff] %v13234_v19  ;;  %v6739_v12 = vor.u32 %v6738_v1, %v6737_v25  ;;  %v6732_v20 = vor.u32 %v6731_v41, %v6728_v18  ;;  %v6750_v60 = vrot.slane %v6264_v54, 2  ;;  %v6753_v8 = vrot.slane %v12719_v7, 1  ;;  %v11532_v41 = vld [vmem:[%s16433_s3 + $0x210] sm:$0xff]   ;;  %v11533_v25 = vld [vmem:[%s16433_s3 + $0x218] sm:$0xff]  }
 0x1fc   : > { %10196 = vmatmul.mubr.bf16.gmra.mrb[68].mxu1 %v12533_v17  ;;  %v6741_v17 = vrot.slane %v6252_v32, 1  ;;  %v11535_v1 = vld [vmem:[%s16433_s3 + $0x220] sm:$0xff]  }
 0x1fd   : > { %10267 = vmatprep.mubr.msk.bf16.mxu1 %vm11913_vm1, %v13111_v33  ;;  %v13248_v59 = vsel %vm2023_vm5, %v6735_v10, %v6739_v12  ;;  %v13257_v18 = vsel %vm2023_vm5, %v6732_v20, %v6735_v10  ;;  %v6751_v24 = vor.u32 %v6750_v60, %v6749_v45  ;;  %v11525_v10 = vld [vmem:[%s16433_s3 + $0x148] sm:$0xff]  }
 0x1fe   : > { %v6743_v32 = vor.u32 %v6742_v6, %v6741_v17  ;;  %16594 = vst [vmem:[#allocation68_spill] sm:$0xff] %v13248_v59  ;;  %16595 = vst [vmem:[#allocation69_spill] sm:$0xff] %v13257_v18  ;;  %v13267_v6 = vor.u32 %v6754_v51, %v6753_v8  ;;  %v11536_v17 = vld [vmem:[%s16433_s3 + $0x228] sm:$0xff]  }
 0x1ff   : > { %v11546_v8 = vld [vmem:[%s16433_s3 + $0x288] sm:$0xff]  }
 0x200   : > { %v13260_v54 = vsel %vm2023_vm5, %v6739_v12, %v6743_v32  ;;  %v13265_v11 = vsel %vm2023_vm5, %v6743_v32, %v6747_v4  ;;  %16598 = vst [vmem:[#allocation72_spill] sm:$0xff] %v13267_v6  ;;  %v13275_v12 = vsel %vm2023_vm5, %v6747_v4, %v6751_v24  ;;  %v11540_v32 = vld [vmem:[%s16433_s3 + $0x1c0] sm:$0xff]   ;;  %v11541_v4 = vld [vmem:[%s16433_s3 + $0x1c8] sm:$0xff]  }
 0x201   : > { %16596 = vst [vmem:[#allocation70_spill] sm:$0xff] %v13260_v54  ;;  %16597 = vst [vmem:[#allocation71_spill] sm:$0xff] %v13265_v11 }
 0x202   : > { %10424 = vmatmul.mubr.bf16.vlgmr.msra.gmra.mrb[144].mxu0 %v2724_v40  ;;  %16599 = vst [vmem:[#allocation73_spill] sm:$0xff] %v13275_v12  ;;  %v11538_v40 = vld [vmem:[%s16433_s3 + $0x230] sm:$0xff]  }
 0x203   : > { %10427 = vmatprep.mubr.msk.bf16.mxu0 %vm11913_vm1, %v13111_v33  ;;  %10512 = vmatpush3.bf16.msra.mxu0 %v11529_v48  ;;  %v11539_v48 = vld [vmem:[%s16433_s3 + $0x238] sm:$0xff]  }
 0x204   : > { %10268 = vmatmul.mubr.bf16.vlgmr.msra.gmra.mrb[72].mxu1 %v12662_v36  ;;  %10513 = vmatprep.subr.bf16.mxu0 %v13111_v33  ;;  %v13280_v36 = vsel %vm2023_vm5, %v6751_v24, %v13267_v6 }
 0x205   : > { %10356 = vmatpush3.bf16.msra.mxu1 %v11524_v30  ;;  %10271 = vmatprep.mubr.msk.bf16.mxu1 %vm11913_vm1, %v13111_v33  ;;  %16600 = vst [vmem:[#allocation74_spill] sm:$0xff] %v13280_v36 }
 0x206   : > { %10357 = vmatprep.subr.bf16.mxu1 %v13111_v33 }
 0x207   : > { %10514 = vmatpush3.bf16.msra.mxu0 %v11530_v39 }
 0x208   : > { %10515 = vmatprep.subr.bf16.mxu0 %v13111_v33 }
 0x209   : > { %10358 = vmatpush3.bf16.msra.mxu1 %v11525_v10  ;;  %v13422_v10 = vld [vmem:[#allocation2 + $0x10] sm:$0xff] }
 0x20a   : > { %10428 = vmatmul.mubr.bf16.gmra.mrb[148].mxu0 %v12655_v46  ;;  %10359 = vmatprep.subr.bf16.mxu1 %v13111_v33  ;;  %v11527_v46 = vld [vmem:[%s16433_s3 + $0x158] sm:$0xff]  }
 0x20b   : > { %10431 = vmatprep.mubr.msk.bf16.mxu0 %vm11913_vm1, %v13111_v33  ;;  %10516 = vmatpush3.bf16.msra.mxu0 %v11532_v41  ;;  %v2498_v41 = vrot.slane %v13422_v10, 6 }
 0x20c   : > { %10272 = vmatmul.mubr.bf16.gmra.mrb[76].mxu1 %v12665_v55  ;;  %10517 = vmatprep.subr.bf16.mxu0 %v13111_v33  ;;  %v11528_v55 = vld [vmem:[%s16433_s3 + $0x160] sm:$0xff]  }
 0x20d   : > { %10275 = vmatprep.mubr.msk.bf16.mxu1 %vm11913_vm1, %v13111_v33  ;;  %10360 = vmatpush3.bf16.msra.mxu1 %v11526_v34  ;;  %v11548_v34 = vld [vmem:[%s16433_s3 + $0x290] sm:$0xff]  }
 0x20e   : > { %10361 = vmatprep.subr.bf16.mxu1 %v13111_v33 }
 0x20f   : > { %10518 = vmatpush3.bf16.msra.mxu0 %v11533_v25 }
 0x210   : > { %10519 = vmatprep.subr.bf16.mxu0 %v13111_v33 }
 0x211   : > { %10362 = vmatpush3.bf16.msra.mxu1 %v11527_v46 }
 0x212   : > { %10432 = vmatmul.mubr.bf16.gmra.mrb[152].mxu0 %v12669_v2  ;;  %10363 = vmatprep.subr.bf16.mxu1 %v13111_v33  ;;  %v11531_v2 = vld [vmem:[%s16433_s3 + $0x168] sm:$0xff]  }
 0x213   : > { %10435 = vmatprep.mubr.msk.bf16.mxu0 %vm11913_vm1, %v13111_v33  ;;  %10520 = vmatpush3.bf16.msra.mxu0 %v11535_v1 }
 0x214   : > { %10276 = vmatmul.mubr.bf16.gmra.mrb[80].mxu1 %v12674_v57  ;;  %10521 = vmatprep.subr.bf16.mxu0 %v13111_v33  ;;  %v11534_v57 = vld [vmem:[%s16433_s3 + $0x170] sm:$0xff]  }
 0x215   : > { %10279 = vmatprep.mubr.msk.bf16.mxu1 %vm11913_vm1, %v13111_v33  ;;  %10364 = vmatpush3.bf16.msra.mxu1 %v11528_v55  ;;  %v11542_v55 = vld [vmem:[%s16433_s3 + $0x1d0] sm:$0xff]  }
 0x216   : > { %10365 = vmatprep.subr.bf16.mxu1 %v13111_v33 }
 0x217   : > { %10522 = vmatpush3.bf16.msra.mxu0 %v11536_v17 }
 0x218   : > { %10523 = vmatprep.subr.bf16.mxu0 %v13111_v33 }
 0x219   : > { %10366 = vmatpush3.bf16.msra.mxu1 %v11531_v2 }
 0x21a   : > { %10436 = vmatmul.mubr.bf16.gmra.mrb[156].mxu0 %v12680_v29  ;;  %10367 = vmatprep.subr.bf16.mxu1 %v13111_v33  ;;  %v11537_v29 = vld [vmem:[%s16433_s3 + $0x178] sm:$0xff]  }
 0x21b   : > { %10439 = vmatprep.mubr.msk.bf16.mxu0 %vm11913_vm1, %v13111_v33  ;;  %10524 = vmatpush3.bf16.msra.mxu0 %v11538_v40  ;;  %v11549_v40 = vld [vmem:[%s16433_s3 + $0x298] sm:$0xff]  }
 0x21c   : > { %10280 = vmatmul.mubr.bf16.gmra.mrb[84].mxu1 %v12688_v61  ;;  %10525 = vmatprep.subr.bf16.mxu0 %v13111_v33  ;;  %v13374_v61 = vld [vmem:[#allocation2] sm:$0x80] }
 0x21d   : > { %10283 = vmatprep.mubr.msk.bf16.mxu1 %vm11913_vm1, %v13111_v33  ;;  %10368 = vmatpush3.bf16.msra.mxu1 %v11534_v57 }
 0x21e   : > { %10369 = vmatprep.subr.bf16.mxu1 %v13111_v33 }
 0x21f   : > { %10526 = vmatpush3.bf16.msra.mxu0 %v11539_v48 }
 0x220   : > { %10615 = vmatprep.subr.bf16.mxu0 %v13111_v33 }
 0x221   : > { %10370 = vmatpush3.bf16.msra.mxu1 %v11537_v29 }
 0x222   : > { %10440 = vmatmul.mubr.bf16.gmra.mrb[160].mxu0 %v12695_v49  ;;  %10459 = vmatprep.subr.bf16.mxu1 %v13111_v33  ;;  %v3182_v49 = vshrl.u32 %v13374_v61, 16 }
 0x223   : > { %10443 = vmatprep.mubr.msk.bf16.mxu0 %vm11913_vm1, %v13111_v33 }
 0x224   : > { %10284 = vmatmul.mubr.bf16.gmra.mrb[88].mxu1 %v12698_v31 }
 0x225   : > { %10287 = vmatprep.mubr.msk.bf16.mxu1 %vm11913_vm1, %v13111_v33 }
 0x22a   : > { %10444 = vmatmul.mubr.bf16.gmra.mrb[164].mxu0 %v12703_v56 }
 0x22b   : > { %10447 = vmatprep.mubr.msk.bf16.mxu0 %vm11913_vm1, %v13111_v33 }
 0x22c   : > { %10288 = vmatmul.mubr.bf16.gmra.mrb[92].mxu1 %v12710_v37 }
 0x22d   : > { %10291 = vmatprep.mubr.msk.bf16.mxu1 %vm11913_vm1, %v13111_v33 }
 0x232   : > { %10448 = vmatmul.mubr.bf16.gmra.mrb[168].mxu0 %v12716_v42 }
 0x233   : > { %10451 = vmatprep.mubr.msk.bf16.mxu0 %vm11913_vm1, %v13111_v33 }
 0x234   : > { %10292 = vmatmul.mubr.bf16.gmra.mrb[96].mxu1 %v12731_v35  ;;  %v3184_v35 = vrot.slane %v3182_v49, 7 }
 0x235   : > { %10295 = vmatprep.mubr.msk.bf16.mxu1 %vm11913_vm1, %v13111_v33 }
 0x236   : > { %v3187_v20 = vsel %vm3180_vm6, %v3184_v35, %v12734_v44 }
 0x23a   : > { %10452 = vmatmul.mubr.bf16.gmra.mrb[172].mxu0 %v12738_v16  ;;  %v2495_v16 = vrot.slane %v13170_v62, 6 }
 0x23b   : > { %10455 = vmatprep.mubr.msk.bf16.mxu0 %vm11913_vm1, %v13111_v33 }
 0x23c   : > { %10296 = vmatmul.mubr.bf16.gmra.mrb[100].mxu1 %v12741_v0  ;;  %v13390_v0 = vld [vmem:[#allocation2 + $0x8] sm:$0xff] }
 0x23d   : > { %10299 = vmatprep.mubr.msk.bf16.mxu1 %vm11913_vm1, %v13111_v33 }
 0x242   : > { %10456 = vmatmul.mubr.bf16.gmra.mrb[176].mxu0 %v12747_v63  ;;  %v2496_v63 = vrot.slane %v13390_v0, 6 }
 0x243   : > { %10527 = vmatprep.mubr.msk.bf16.mxu0 %vm11913_vm1, %v13111_v33 }
 0x244   : > { %10300 = vmatmul.mubr.bf16.gmra.mrb[104].mxu1 %v12753_v13  ;;  %v11545_v13 = vld [vmem:[%s16433_s3 + $0x280] sm:$0xff]   ;;  %v2497_v60 = vsel %vm2494_vm8, %v2495_v16, %v2496_v63  ;;  %v2499_v2 = vsel %vm2494_vm8, %v2496_v63, %v2498_v41 }
 0x245   : > { %v13381_v31 = vpop.f32.mrb[72].mxu0  ;;  %10371 = vmatprep.mubr.msk.bf16.mxu1 %vm11913_vm1, %v13111_v33  ;;  %v11551_v16 = vld [vmem:[%s16433_s3 + $0x2a0] sm:$0xff]  }
 0x246   : > { %v10217_v56 = vpop.f32.mrb[73].mxu0 }
 0x247   : > { %v13385_v37 = vpop.f32.mrb[0].mxu1  ;;  %v13387_v42 = vpop.f32.mrb[74].mxu0  ;;  %v13455_v56 = vld [vmem:[#allocation2 + $0x18] sm:$0xff] }
 0x248   : > { %v10113_v3 = vpop.f32.mrb[1].mxu1  ;;  %v10218_v45 = vpop.f32.mrb[75].mxu0  ;;  %v2500_v35 = vrot.slane %v13455_v56, 6 }
 0x249   : > { %v13396_v30 = vpop.f32.mrb[2].mxu1  ;;  %v11544_v45 = vld [vmem:[%s16433_s3 + $0x1e0] sm:$0xff]  }
 0x24a   : > { %v10114_v62 = vpop.f32.mrb[3].mxu1  ;;  %10528 = vmatmul.mubr.bf16.vlgmr.msra.gmra.mrb[180].mxu0 %v3187_v20 }
 0x24b   : > { %10531 = vmatprep.mubr.msk.bf16.mxu0 %vm11913_vm1, %v13111_v33  ;;  %10616 = vmatpush3.bf16.msra.mxu0 %v11545_v13  ;;  %v11552_v62 = vld [vmem:[%s16433_s3 + $0x2a8] sm:$0xff]  }
 0x24c   : > { %10372 = vmatmul.mubr.bf16.vlgmr.msra.gmra.mrb[108].mxu1 %v2497_v60  ;;  %10617 = vmatprep.subr.bf16.mxu0 %v13111_v33 }
 0x24d   : > { %10460 = vmatpush3.bf16.msra.mxu1 %v11540_v32  ;;  %v13410_v44 = vpop.f32.mrb[76].mxu0  ;;  %10375 = vmatprep.mubr.msk.bf16.mxu1 %vm11913_vm1, %v13111_v33  ;;  %v2501_v32 = vsel %vm2494_vm8, %v2498_v41, %v2500_v35  ;;  %v13488_v41 = vld [vmem:[#allocation2 + $0x20] sm:$0xff] }
 0x24e   : > { %v10221_v51 = vpop.f32.mrb[77].mxu0  ;;  %10461 = vmatprep.subr.bf16.mxu1 %v13111_v33 }
 0x24f   : > { %v13418_v39 = vpop.f32.mrb[4].mxu1  ;;  %v13420_v24 = vpop.f32.mrb[78].mxu0  ;;  %10618 = vmatpush3.bf16.msra.mxu0 %v11546_v8 }
 0x250   : > { %v10117_v25 = vpop.f32.mrb[5].mxu1  ;;  %v10222_v46 = vpop.f32.mrb[79].mxu0  ;;  %10619 = vmatprep.subr.bf16.mxu0 %v13111_v33 }
 0x251   : > { %v13429_v1 = vpop.f32.mrb[6].mxu1  ;;  %10462 = vmatpush3.bf16.msra.mxu1 %v11541_v4  ;;  %v11554_v25 = vld [vmem:[%s16433_s3 + $0x2b0] sm:$0xff]  }
 0x252   : > { %v10118_v17 = vpop.f32.mrb[7].mxu1  ;;  %10532 = vmatmul.mubr.bf16.gmra.mrb[184].mxu0 %v12765_v26  ;;  %10463 = vmatprep.subr.bf16.mxu1 %v13111_v33  ;;  %v11543_v26 = vld [vmem:[%s16433_s3 + $0x1d8] sm:$0xff]  }
 0x253   : > { %10535 = vmatprep.mubr.msk.bf16.mxu0 %vm11913_vm1, %v13111_v33  ;;  %10620 = vmatpush3.bf16.msra.mxu0 %v11548_v34  ;;  %v2502_v34 = vrot.slane %v13488_v41, 6 }
 0x254   : > { %10376 = vmatmul.mubr.bf16.gmra.mrb[112].mxu1 %v2499_v2  ;;  %10621 = vmatprep.subr.bf16.mxu0 %v13111_v33  ;;  %v11550_v2 = vld [vmem:[%s16433_s3 + $0x1f0] sm:$0xff]  }
 0x255   : > { %v13443_v57 = vpop.f32.mrb[80].mxu0  ;;  %10379 = vmatprep.mubr.msk.bf16.mxu1 %vm11913_vm1, %v13111_v33  ;;  %10464 = vmatpush3.bf16.msra.mxu1 %v11542_v55 }
 0x256   : > { %v10225_v48 = vpop.f32.mrb[81].mxu0  ;;  %10465 = vmatprep.subr.bf16.mxu1 %v13111_v33 }
 0x257   : > { %v13451_v29 = vpop.f32.mrb[8].mxu1  ;;  %v13453_v49 = vpop.f32.mrb[82].mxu0  ;;  %10622 = vmatpush3.bf16.msra.mxu0 %v11549_v40  ;;  %v11555_v48 = vld [vmem:[%s16433_s3 + $0x2b8] sm:$0xff]  }
 0x258   : > { %v10121_v63 = vpop.f32.mrb[9].mxu1  ;;  %v10226_v13 = vpop.f32.mrb[83].mxu0  ;;  %10623 = vmatprep.subr.bf16.mxu0 %v13111_v33 }
 0x259   : > { %v13462_v3 = vpop.f32.mrb[10].mxu1  ;;  %10466 = vmatpush3.bf16.msra.mxu1 %v11543_v26  ;;  %v2503_v26 = vsel %vm2494_vm8, %v2500_v35, %v2502_v34 }
 0x25a   : > { %v10122_v20 = vpop.f32.mrb[11].mxu1  ;;  %10536 = vmatmul.mubr.bf16.gmra.mrb[188].mxu0 %v12778_v43  ;;  %10467 = vmatprep.subr.bf16.mxu1 %v13111_v33  ;;  %v11547_v43 = vld [vmem:[%s16433_s3 + $0x1e8] sm:$0xff]  }
 0x25b   : > { %10539 = vmatprep.mubr.msk.bf16.mxu0 %vm11913_vm1, %v13111_v33  ;;  %10624 = vmatpush3.bf16.msra.mxu0 %v11551_v16 }
 0x25c   : > { %10380 = vmatmul.mubr.bf16.gmra.mrb[116].mxu1 %v2501_v32  ;;  %10625 = vmatprep.subr.bf16.mxu0 %v13111_v33 }
 0x25d   : > { %v13476_v60 = vpop.f32.mrb[84].mxu0  ;;  %10383 = vmatprep.mubr.msk.bf16.mxu1 %vm11913_vm1, %v13111_v33  ;;  %10468 = vmatpush3.bf16.msra.mxu1 %v11544_v45  ;;  %v13521_v45 = vld [vmem:[#allocation2 + $0x28] sm:$0xff] }
 0x25e   : > { %v10229_v8 = vpop.f32.mrb[85].mxu0  ;;  %10469 = vmatprep.subr.bf16.mxu1 %v13111_v33  ;;  %v2504_v20 = vrot.slane %v13521_v45, 6 }
 0x25f   : > { %v13484_v4 = vpop.f32.mrb[12].mxu1  ;;  %v13486_v51 = vpop.f32.mrb[86].mxu0  ;;  %10626 = vmatpush3.bf16.msra.mxu0 %v11552_v62 }
 0x260   : > { %v10125_v46 = vpop.f32.mrb[13].mxu1  ;;  %v10230_v55 = vpop.f32.mrb[87].mxu0  ;;  %10627 = vmatprep.subr.bf16.mxu0 %v13111_v33 }
 0x261   : > { %v13495_v17 = vpop.f32.mrb[14].mxu1  ;;  %10470 = vmatpush3.bf16.msra.mxu1 %v11547_v43  ;;  %v2505_v46 = vsel %vm2494_vm8, %v2502_v34, %v2504_v20 }
 0x262   : > { %v10126_v40 = vpop.f32.mrb[15].mxu1  ;;  %10540 = vmatmul.mubr.bf16.gmra.mrb[192].mxu0 %v12781_v23  ;;  %10471 = vmatprep.subr.bf16.mxu1 %v13111_v33  ;;  %v11553_v23 = vld [vmem:[%s16433_s3 + $0x1f8] sm:$0xff]  }
 0x263   : > { %10543 = vmatprep.mubr.msk.bf16.mxu0 %vm11913_vm1, %v13111_v33  ;;  %10628 = vmatpush3.bf16.msra.mxu0 %v11554_v25  ;;  %v16601_v25 = vld [vmem:[#allocation9_spill] sm:$0xff] }
 0x264   : > { %10384 = vmatmul.mubr.bf16.gmra.mrb[120].mxu1 %v2503_v26  ;;  %10629 = vmatprep.subr.bf16.mxu0 %v13111_v33 }
 0x265   : > { %v13509_v16 = vpop.f32.mrb[88].mxu0  ;;  %10387 = vmatprep.mubr.msk.bf16.mxu1 %vm11913_vm1, %v13111_v33  ;;  %10472 = vmatpush3.bf16.msra.mxu1 %v11550_v2 }
 0x266   : > { %v10233_v35 = vpop.f32.mrb[89].mxu0  ;;  %10473 = vmatprep.subr.bf16.mxu1 %v13111_v33 }
 0x267   : > { %v13517_v63 = vpop.f32.mrb[16].mxu1  ;;  %v13519_v13 = vpop.f32.mrb[90].mxu0  ;;  %10630 = vmatpush3.bf16.msra.mxu0 %v11555_v48  ;;  %v13540_v48 = vld [vmem:[#allocation2 + $0x30] sm:$0xff] }
 0x268   : > { %v10129_v32 = vpop.f32.mrb[17].mxu1  ;;  %v10234_v62 = vpop.f32.mrb[91].mxu0  ;;  %10719 = vmatprep.subr.bf16.mxu0 %v13111_v33 }
 0x269   : > { %v13525_v43 = vpop.f32.mrb[18].mxu1  ;;  %10474 = vmatpush3.bf16.msra.mxu1 %v11553_v23  ;;  %v2506_v23 = vrot.slane %v13540_v48, 6 }
 0x26a   : > { %v10130_v8 = vpop.f32.mrb[19].mxu1  ;;  %10544 = vmatmul.mubr.bf16.gmra.mrb[196].mxu0 %v16601_v25  ;;  %10563 = vmatprep.subr.bf16.mxu1 %v13111_v33 }
 0x26b   : > { %10547 = vmatprep.mubr.msk.bf16.mxu0 %vm11913_vm1, %v13111_v33  ;;  %v16602_v8 = vld [vmem:[#allocation10_spill] sm:$0xff]  ;;  %v2507_v25 = vsel %vm2494_vm8, %v2504_v20, %v2506_v23 }
 0x26c   : > { %10388 = vmatmul.mubr.bf16.gmra.mrb[124].mxu1 %v2505_v46 }
 0x26d   : > { %v13532_v55 = vpop.f32.mrb[92].mxu0  ;;  %10391 = vmatprep.mubr.msk.bf16.mxu1 %vm11913_vm1, %v13111_v33 }
 0x26e   : > { %v10237_v2 = vpop.f32.mrb[93].mxu0 }
 0x26f   : > { %v13536_v40 = vpop.f32.mrb[20].mxu1  ;;  %v13538_v26 = vpop.f32.mrb[94].mxu0 }
 0x270   : > { %v10133_v35 = vpop.f32.mrb[21].mxu1  ;;  %v10238_v34 = vpop.f32.mrb[95].mxu0 }
 0x271   : > { %v13543_v32 = vpop.f32.mrb[22].mxu1  ;;  %v13557_v34 = vld [vmem:[#allocation2 + $0x38] sm:$0xff] }
 0x272   : > { %v10134_v62 = vpop.f32.mrb[23].mxu1  ;;  %10548 = vmatmul.mubr.bf16.gmra.mrb[200].mxu0 %v16602_v8 }
 0x273   : > { %10551 = vmatprep.mubr.msk.bf16.mxu0 %vm11913_vm1, %v13111_v33  ;;  %v2508_v62 = vrot.slane %v13557_v34, 6 }
 0x274   : > { %10392 = vmatmul.mubr.bf16.gmra.mrb[128].mxu1 %v2507_v25  ;;  %v16603_v25 = vld [vmem:[#allocation12_spill] sm:$0xff] }
 0x275   : > { %v13549_v46 = vpop.f32.mrb[96].mxu0  ;;  %10395 = vmatprep.mubr.msk.bf16.mxu1 %vm11913_vm1, %v13111_v33  ;;  %v2509_v54 = vsel %vm2494_vm8, %v2506_v23, %v2508_v62 }
 0x276   : > { %v10241_v2 = vpop.f32.mrb[97].mxu0 }
 0x277   : > { %v13553_v36 = vpop.f32.mrb[24].mxu1  ;;  %v13555_v35 = vpop.f32.mrb[98].mxu0 }
 0x278   : > { %v10137_v8 = vpop.f32.mrb[25].mxu1  ;;  %v10242_v20 = vpop.f32.mrb[99].mxu0 }
 0x279   : > { %v13560_v12 = vpop.f32.mrb[26].mxu1  ;;  %v13574_v20 = vld [vmem:[#allocation2 + $0x40] sm:$0xff] }
 0x27a   : > { %v10138_v11 = vpop.f32.mrb[27].mxu1  ;;  %10552 = vmatmul.mubr.bf16.gmra.mrb[204].mxu0 %v16603_v25 }
 0x27b   : > { %10555 = vmatprep.mubr.msk.bf16.mxu0 %vm11913_vm1, %v13111_v33  ;;  %v2510_v11 = vrot.slane %v13574_v20, 6 }
 0x27c   : > { %10396 = vmatmul.mubr.bf16.gmra.mrb[132].mxu1 %v2509_v54  ;;  %v16604_v54 = vld [vmem:[#allocation13_spill] sm:$0xff] }
 0x27d   : > { %v13566_v2 = vpop.f32.mrb[100].mxu0  ;;  %10399 = vmatprep.mubr.msk.bf16.mxu1 %vm11913_vm1, %v13111_v33  ;;  %v2511_v53 = vsel %vm2494_vm8, %v2508_v62, %v2510_v11 }
 0x27e   : > { %v10245_v59 = vpop.f32.mrb[101].mxu0 }
 0x27f   : > { %v13570_v18 = vpop.f32.mrb[28].mxu1  ;;  %v13572_v8 = vpop.f32.mrb[102].mxu0  ;;  %v2474_v59 = vld [vmem:[#allocation2 + $0x48] sm:$0x3f] }
 0x280   : > { %v10141_v25 = vpop.f32.mrb[29].mxu1  ;;  %v10246_v23 = vpop.f32.mrb[103].mxu0 }
 0x281   : > { %v13577_v7 = vpop.f32.mrb[30].mxu1 }
 0x282   : > { %v10142_v47 = vpop.f32.mrb[31].mxu1  ;;  %10556 = vmatmul.mubr.bf16.gmra.mrb[208].mxu0 %v16604_v54 }
 0x283   : > { %10559 = vmatprep.mubr.msk.bf16.mxu0 %vm11913_vm1, %v13111_v33  ;;  %v2512_v47 = vrot.slane %v2474_v59, 6 }
 0x284   : > { %10400 = vmatmul.mubr.bf16.gmra.mrb[136].mxu1 %v2511_v53 }
 0x285   : > { %v13583_v9 = vpop.f32.mrb[104].mxu0  ;;  %10403 = vmatprep.mubr.msk.bf16.mxu1 %vm11913_vm1, %v13111_v33  ;;  %v2513_v53 = vsel %vm2494_vm8, %v2510_v11, %v2512_v47  ;;  %v2964_v11 = vrot.slane %v13390_v0, 7  ;;  %v11561_v47 = vld [vmem:[%s16433_s3 + $0x300] sm:$0xff]  }
 0x286   : > { %v10249_v19 = vpop.f32.mrb[105].mxu0 }
 0x287   : > { %v13587_v25 = vpop.f32.mrb[32].mxu1  ;;  %v13589_v23 = vpop.f32.mrb[106].mxu0  ;;  %v11819_v19 = vld [vmem:[#allocation2 + $0x8] sm:$0xf0] }
 0x288   : > { %v10145_v6 = vpop.f32.mrb[33].mxu1  ;;  %v10250_v54 = vpop.f32.mrb[107].mxu0  ;;  %v3623_v15 = vrot.slane %v11819_v19, 4 }
 0x289   : > { %v13591_v38 = vpop.f32.mrb[34].mxu1 }
 0x28a   : > { %v10146_v62 = vpop.f32.mrb[35].mxu1  ;;  %10560 = vmatmul.mubr.bf16.gmra.mrb[212].mxu0 %v16605_v5  ;;  %v2963_v5 = vrot.slane %v13374_v61, 7 }
 0x28b   : > { %10631 = vmatprep.mubr.msk.bf16.mxu0 %vm11913_vm1, %v13111_v33 }
 0x28c   : > { %10404 = vmatmul.mubr.bf16.gmra.mrb[140].mxu1 %v2513_v53  ;;  %v2965_v58 = vsel %vm2962_vm14, %v2963_v5, %v2964_v11 }
 0x28d   : > { %v13597_v50 = vpop.f32.mrb[108].mxu0  ;;  %10475 = vmatprep.mubr.msk.bf16.mxu1 %vm11913_vm1, %v13111_v33 }
 0x28e   : > { %v10321_v6 = vpop.f32.mrb[109].mxu0 }
 0x28f   : > { %v1706_v59 = vpop.f32.mrb[36].mxu1  ;;  %v13601_v54 = vpop.f32.mrb[110].mxu0  ;;  %v3625_v6 = vsel %vm3622_vm13, %v3623_v15, %v3624_v27  ;;  %v11562_v15 = vld [vmem:[%s16433_s3 + $0x308] sm:$0xff]  }
 0x290   : > { %v1707_v62 = vadd.f32 %v1706_v59, %v13385_v37  ;;  %v10165_v53 = vpop.f32.mrb[37].mxu1  ;;  %v10322_v22 = vpop.f32.mrb[111].mxu0  ;;  %v11557_v59 = vld [vmem:[%s16433_s3 + $0x248] sm:$0xff]  }
 0x291   : > { %v1709_v19 = vpop.f32.mrb[38].mxu1 }
 0x292   : > { %v1710_v61 = vadd.f32 %v1709_v19, %v13396_v30  ;;  %v10166_v52 = vpop.f32.mrb[39].mxu1  ;;  %10632 = vmatmul.mubr.bf16.vlgmr.msra.gmra.mrb[216].mxu0 %v3625_v6  ;;  %v13615_v21 = vadd.f32 %v13381_v31, %v1707_v62  ;;  %v11821_v31 = vld [vmem:[#allocation2 + $0x18] sm:$0xff] }
 0x293   : > { %10635 = vmatprep.mubr.msk.bf16.mxu0 %vm11913_vm1, %v13111_v33  ;;  %10720 = vmatpush3.bf16.msra.mxu0 %v11561_v47  ;;  %v3626_v30 = vrot.slane %v11821_v31, 4 }
 0x294   : > { %10476 = vmatmul.mubr.bf16.vlgmr.msra.gmra.mrb[144].mxu1 %v2965_v58  ;;  %10721 = vmatprep.subr.bf16.mxu0 %v13111_v33  ;;  %v13625_v37 = vadd.f32 %v13387_v42, %v1710_v61  ;;  %v2966_v42 = vrot.slane %v13422_v10, 7  ;;  %v11558_v61 = vld [vmem:[%s16433_s3 + $0x250] sm:$0xff]  }
 0x295   : > { %10564 = vmatpush3.bf16.msra.mxu1 %v11556_v14  ;;  %v13627_v52 = vpop.f32.mrb[112].mxu0  ;;  %10479 = vmatprep.mubr.msk.bf16.mxu1 %vm11913_vm1, %v13111_v33  ;;  %v11564_v14 = vld [vmem:[%s16433_s3 + $0x310] sm:$0xff]   ;;  %v3627_v6 = vsel %vm3622_vm13, %v3624_v27, %v3626_v30  ;;  %v11565_v27 = vld [vmem:[%s16433_s3 + $0x318] sm:$0xff]  }
 0x296   : > { %v10325_v5 = vpop.f32.mrb[113].mxu0  ;;  %10565 = vmatprep.subr.bf16.mxu1 %v13111_v33 }
 0x297   : > { %v1714_v58 = vpop.f32.mrb[40].mxu1  ;;  %v13635_v47 = vpop.f32.mrb[114].mxu0  ;;  %10722 = vmatpush3.bf16.msra.mxu0 %v11562_v15  ;;  %v2967_v5 = vsel %vm2962_vm14, %v2964_v11, %v2966_v42  ;;  %v11559_v11 = vld [vmem:[%s16433_s3 + $0x258] sm:$0xff]  }
 0x298   : > { %v1715_v62 = vadd.f32 %v1714_v58, %v13418_v39  ;;  %v10169_v53 = vpop.f32.mrb[41].mxu1  ;;  %v10326_v22 = vpop.f32.mrb[115].mxu0  ;;  %10723 = vmatprep.subr.bf16.mxu0 %v13111_v33 }
 0x299   : > { %v1717_v19 = vpop.f32.mrb[42].mxu1  ;;  %10566 = vmatpush3.bf16.msra.mxu1 %v11557_v59  ;;  %v11567_v22 = vld [vmem:[%s16433_s3 + $0x320] sm:$0xff]  }
 0x29a   : > { %v1718_v15 = vadd.f32 %v1717_v19, %v13429_v1  ;;  %v10170_v31 = vpop.f32.mrb[43].mxu1  ;;  %10636 = vmatmul.mubr.bf16.gmra.mrb[220].mxu0 %v3627_v6  ;;  %10567 = vmatprep.subr.bf16.mxu1 %v13111_v33  ;;  %v13650_v39 = vadd.f32 %v13410_v44, %v1715_v62  ;;  %v11822_v44 = vld [vmem:[#allocation2 + $0x20] sm:$0xff] }
 0x29b   : > { %10639 = vmatprep.mubr.msk.bf16.mxu0 %vm11913_vm1, %v13111_v33  ;;  %10724 = vmatpush3.bf16.msra.mxu0 %v11564_v14  ;;  %v3628_v58 = vrot.slane %v11822_v44, 4 }
 0x29c   : > { %10480 = vmatmul.mubr.bf16.gmra.mrb[148].mxu1 %v2967_v5  ;;  %10725 = vmatprep.subr.bf16.mxu0 %v13111_v33  ;;  %v13660_v1 = vadd.f32 %v13420_v24, %v1718_v15  ;;  %v2968_v24 = vrot.slane %v13455_v56, 7  ;;  %v11560_v5 = vld [vmem:[%s16433_s3 + $0x260] sm:$0xff]  }
 0x29d   : > { %v13662_v59 = vpop.f32.mrb[116].mxu0  ;;  %10483 = vmatprep.mubr.msk.bf16.mxu1 %vm11913_vm1, %v13111_v33  ;;  %10568 = vmatpush3.bf16.msra.mxu1 %v11558_v61  ;;  %v3629_v31 = vsel %vm3622_vm13, %v3626_v30, %v3628_v58  ;;  %v11568_v30 = vld [vmem:[%s16433_s3 + $0x328] sm:$0xff]  }
 0x29e   : > { %v10329_v14 = vpop.f32.mrb[117].mxu0  ;;  %10569 = vmatprep.subr.bf16.mxu1 %v13111_v33 }
 0x29f   : > { %v1722_v62 = vpop.f32.mrb[44].mxu1  ;;  %v13670_v53 = vpop.f32.mrb[118].mxu0  ;;  %10726 = vmatpush3.bf16.msra.mxu0 %v11565_v27  ;;  %v2969_v14 = vsel %vm2962_vm14, %v2966_v42, %v2968_v24  ;;  %v11563_v42 = vld [vmem:[%s16433_s3 + $0x268] sm:$0xff]  }
 0x2a0   : > { %v1723_v19 = vadd.f32 %v1722_v62, %v13451_v29  ;;  %v10173_v6 = vpop.f32.mrb[45].mxu1  ;;  %v10330_v61 = vpop.f32.mrb[119].mxu0  ;;  %10727 = vmatprep.subr.bf16.mxu0 %v13111_v33 }
 0x2a1   : > { %v1725_v15 = vpop.f32.mrb[46].mxu1  ;;  %10570 = vmatpush3.bf16.msra.mxu1 %v11559_v11  ;;  %v11570_v61 = vld [vmem:[%s16433_s3 + $0x330] sm:$0xff]  }
 0x2a2   : > { %v1726_v27 = vadd.f32 %v1725_v15, %v13462_v3  ;;  %v10174_v44 = vpop.f32.mrb[47].mxu1  ;;  %10640 = vmatmul.mubr.bf16.gmra.mrb[224].mxu0 %v3629_v31  ;;  %10571 = vmatprep.subr.bf16.mxu1 %v13111_v33  ;;  %v13685_v29 = vadd.f32 %v13443_v57, %v1723_v19  ;;  %v11823_v57 = vld [vmem:[#allocation2 + $0x28] sm:$0xff] }
 0x2a3   : > { %10643 = vmatprep.mubr.msk.bf16.mxu0 %vm11913_vm1, %v13111_v33  ;;  %10728 = vmatpush3.bf16.msra.mxu0 %v11567_v22  ;;  %v3630_v62 = vrot.slane %v11823_v57, 4 }
 0x2a4   : > { %10484 = vmatmul.mubr.bf16.gmra.mrb[152].mxu1 %v2969_v14  ;;  %10729 = vmatprep.subr.bf16.mxu0 %v13111_v33  ;;  %v13695_v3 = vadd.f32 %v13453_v49, %v1726_v27  ;;  %v2970_v49 = vrot.slane %v13488_v41, 7  ;;  %v11566_v14 = vld [vmem:[%s16433_s3 + $0x270] sm:$0xff]  }
 0x2a5   : > { %v13697_v11 = vpop.f32.mrb[120].mxu0  ;;  %10487 = vmatprep.mubr.msk.bf16.mxu1 %vm11913_vm1, %v13111_v33  ;;  %10572 = vmatpush3.bf16.msra.mxu1 %v11560_v5  ;;  %v3631_v44 = vsel %vm3622_vm13, %v3628_v58, %v3630_v62  ;;  %v11571_v58 = vld [vmem:[%s16433_s3 + $0x338] sm:$0xff]  }
 0x2a6   : > { %v10333_v22 = vpop.f32.mrb[121].mxu0  ;;  %10573 = vmatprep.subr.bf16.mxu1 %v13111_v33 }
 0x2a7   : > { %v1730_v19 = vpop.f32.mrb[48].mxu1  ;;  %v13705_v6 = vpop.f32.mrb[122].mxu0  ;;  %10730 = vmatpush3.bf16.msra.mxu0 %v11568_v30  ;;  %v2971_v22 = vsel %vm2962_vm14, %v2968_v24, %v2970_v49  ;;  %v11569_v24 = vld [vmem:[%s16433_s3 + $0x278] sm:$0xff]  }
 0x2a8   : > { %v1731_v15 = vadd.f32 %v1730_v19, %v13484_v4  ;;  %v10177_v31 = vpop.f32.mrb[49].mxu1  ;;  %v10334_v5 = vpop.f32.mrb[123].mxu0  ;;  %10731 = vmatprep.subr.bf16.mxu0 %v13111_v33 }
 0x2a9   : > { %v1733_v27 = vpop.f32.mrb[50].mxu1  ;;  %10574 = vmatpush3.bf16.msra.mxu1 %v11563_v42  ;;  %v2972_v31 = vrot.slane %v13521_v45, 7 }
 0x2aa   : > { %v1734_v30 = vadd.f32 %v1733_v27, %v13495_v17  ;;  %v10178_v57 = vpop.f32.mrb[51].mxu1  ;;  %10644 = vmatmul.mubr.bf16.gmra.mrb[228].mxu0 %v3631_v44  ;;  %10575 = vmatprep.subr.bf16.mxu1 %v13111_v33  ;;  %v13720_v4 = vadd.f32 %v13476_v60, %v1731_v15  ;;  %v11824_v60 = vld [vmem:[#allocation2 + $0x30] sm:$0xff]  ;;  %v13734_v15 = vld [vmem:[#allocation3 + $0x90] sm:$0xff] }
 0x2ab   : > { %10647 = vmatprep.mubr.msk.bf16.mxu0 %vm11913_vm1, %v13111_v33  ;;  %10732 = vmatpush3.bf16.msra.mxu0 %v11570_v61  ;;  %v3632_v19 = vrot.slane %v11824_v60, 4 }
 0x2ac   : > { %10488 = vmatmul.mubr.bf16.gmra.mrb[156].mxu1 %v2971_v22  ;;  %10733 = vmatprep.subr.bf16.mxu0 %v13111_v33  ;;  %v13730_v17 = vadd.f32 %v13486_v51, %v1734_v30 }
 0x2ad   : > { %v13732_v42 = vpop.f32.mrb[124].mxu0  ;;  %10491 = vmatprep.mubr.msk.bf16.mxu1 %vm11913_vm1, %v13734_v15  ;;  %10576 = vmatpush3.bf16.msra.mxu1 %v11566_v14  ;;  %v3633_v30 = vsel %vm3622_vm13, %v3630_v62, %v3632_v19 }
 0x2ae   : > { %v10337_v61 = vpop.f32.mrb[125].mxu0  ;;  %10577 = vmatprep.subr.bf16.mxu1 %v13734_v15 }
 0x2af   : > { %v1738_v33 = vpop.f32.mrb[52].mxu1  ;;  %v13742_v51 = vpop.f32.mrb[126].mxu0  ;;  %10734 = vmatpush3.bf16.msra.mxu0 %v11571_v58  ;;  %v2973_v58 = vsel %vm2962_vm14, %v2970_v49, %v2972_v31  ;;  %v2974_v49 = vrot.slane %v13540_v48, 7 }
 0x2b0   : > { %v1739_v5 = vadd.f32 %v1738_v33, %v13517_v63  ;;  %v10181_v27 = vpop.f32.mrb[53].mxu1  ;;  %v10338_v44 = vpop.f32.mrb[127].mxu0  ;;  %10823 = vmatprep.subr.bf16.mxu0 %v13734_v15 }
 0x2b1   : > { %v1741_v14 = vpop.f32.mrb[54].mxu1  ;;  %10578 = vmatpush3.bf16.msra.mxu1 %v11569_v24  ;;  %v11826_v24 = vld [vmem:[#allocation2 + $0x38] sm:$0xff] }
 0x2b2   : > { %v1742_v57 = vadd.f32 %v1741_v14, %v13525_v43  ;;  %v10182_v22 = vpop.f32.mrb[55].mxu1  ;;  %10648 = vmatmul.mubr.bf16.gmra.mrb[232].mxu0 %v3633_v30  ;;  %10667 = vmatprep.subr.bf16.mxu1 %v13734_v15  ;;  %v13751_v60 = vadd.f32 %v13509_v16, %v1739_v5  ;;  %v3634_v43 = vrot.slane %v11826_v24, 4 }
 0x2b3   : > { %10651 = vmatprep.mubr.msk.bf16.mxu0 %vm11913_vm1, %v13734_v15 }
 0x2b4   : > { %10492 = vmatmul.mubr.bf16.gmra.mrb[160].mxu1 %v2973_v58  ;;  %v13757_v63 = vadd.f32 %v13519_v13, %v1742_v57  ;;  %v3635_v13 = vsel %vm3622_vm13, %v3632_v19, %v3634_v43  ;;  %v2975_v58 = vsel %vm2962_vm14, %v2972_v31, %v2974_v49  ;;  %v2976_v31 = vrot.slane %v13557_v34, 7 }
 0x2b5   : > { %v13759_v62 = vpop.f32.mrb[128].mxu0  ;;  %10495 = vmatprep.mubr.msk.bf16.mxu1 %vm11913_vm1, %v13734_v15 }
 0x2b6   : > { %v10341_v61 = vpop.f32.mrb[129].mxu0 }
 0x2b7   : > { %v1746_v33 = vpop.f32.mrb[56].mxu1  ;;  %v13763_v16 = vpop.f32.mrb[130].mxu0  ;;  %v11827_v61 = vld [vmem:[#allocation2 + $0x40] sm:$0xff] }
 0x2b8   : > { %v1747_v5 = vadd.f32 %v1746_v33, %v13536_v40  ;;  %v10185_v27 = vpop.f32.mrb[57].mxu1  ;;  %v10342_v44 = vpop.f32.mrb[131].mxu0  ;;  %v3636_v19 = vrot.slane %v11827_v61, 4 }
 0x2b9   : > { %v1749_v14 = vpop.f32.mrb[58].mxu1 }
 0x2ba   : > { %v1750_v30 = vadd.f32 %v1749_v14, %v13543_v32  ;;  %v10186_v57 = vpop.f32.mrb[59].mxu1  ;;  %10652 = vmatmul.mubr.bf16.gmra.mrb[236].mxu0 %v3635_v13  ;;  %v13770_v22 = vadd.f32 %v13532_v55, %v1747_v5 }
 0x2bb   : > { %10655 = vmatprep.mubr.msk.bf16.mxu0 %vm11913_vm1, %v13734_v15 }
 0x2bc   : > { %10496 = vmatmul.mubr.bf16.gmra.mrb[164].mxu1 %v2975_v58  ;;  %v13776_v40 = vadd.f32 %v13538_v26, %v1750_v30  ;;  %v3637_v26 = vsel %vm3622_vm13, %v3634_v43, %v3636_v19  ;;  %v2977_v58 = vsel %vm2962_vm14, %v2974_v49, %v2976_v31  ;;  %v2978_v49 = vrot.slane %v13574_v20, 7 }
 0x2bd   : > { %v13778_v24 = vpop.f32.mrb[132].mxu0  ;;  %10499 = vmatprep.mubr.msk.bf16.mxu1 %vm11913_vm1, %v13734_v15 }
 0x2be   : > { %v10345_v32 = vpop.f32.mrb[133].mxu0 }
 0x2bf   : > { %v1754_v33 = vpop.f32.mrb[60].mxu1  ;;  %v13782_v55 = vpop.f32.mrb[134].mxu0  ;;  %v13799_v32 = vld [vmem:[#allocation2 + $0x48] sm:$0xff] }
 0x2c0   : > { %v1755_v5 = vadd.f32 %v1754_v33, %v13553_v36  ;;  %v10189_v27 = vpop.f32.mrb[61].mxu1  ;;  %v10346_v44 = vpop.f32.mrb[135].mxu0 }
 0x2c1   : > { %v1757_v14 = vpop.f32.mrb[62].mxu1  ;;  %v3594_v44 = vld [vmem:[#allocation2 + $0x50] sm:$0xf] }
 0x2c2   : > { %v1758_v13 = vadd.f32 %v1757_v14, %v13560_v12  ;;  %v10190_v30 = vpop.f32.mrb[63].mxu1  ;;  %10656 = vmatmul.mubr.bf16.gmra.mrb[240].mxu0 %v3637_v26  ;;  %v13789_v57 = vadd.f32 %v13549_v46, %v1755_v5  ;;  %v3638_v12 = vrot.slane %v13799_v32, 4 }
 0x2c3   : > { %10659 = vmatprep.mubr.msk.bf16.mxu0 %vm11913_vm1, %v13734_v15 }
 0x2c4   : > { %10500 = vmatmul.mubr.bf16.gmra.mrb[168].mxu1 %v2977_v58  ;;  %v13795_v36 = vadd.f32 %v13555_v35, %v1758_v13  ;;  %v3639_v26 = vsel %vm3622_vm13, %v3636_v19, %v3638_v12 }
 0x2c5   : > { %v13797_v61 = vpop.f32.mrb[136].mxu0  ;;  %10503 = vmatprep.mubr.msk.bf16.mxu1 %vm11913_vm1, %v13734_v15 }
 0x2c6   : > { %v10349_v46 = vpop.f32.mrb[137].mxu0 }
 0x2c7   : > { %v1762_v43 = vpop.f32.mrb[64].mxu1  ;;  %v13804_v33 = vpop.f32.mrb[138].mxu0  ;;  %v2979_v46 = vsel %vm2962_vm14, %v2976_v31, %v2978_v49  ;;  %v11829_v31 = vld [vmem:[#allocation2 + $0x48] sm:$0x7f] }
 0x2c8   : > { %16606 = vst [vmem:[#allocation9_spill] sm:$0xff] %v13804_v33  ;;  %v1763_v5 = vadd.f32 %v1762_v43, %v13570_v18  ;;  %v10193_v27 = vpop.f32.mrb[65].mxu1  ;;  %v10350_v35 = vpop.f32.mrb[139].mxu0  ;;  %v3640_v33 = vrot.slane %v3594_v44, 4 }
 0x2c9   : > { %v1765_v14 = vpop.f32.mrb[66].mxu1 }
 0x2ca   : > { %v1766_v13 = vadd.f32 %v1765_v14, %v13577_v7  ;;  %v10194_v30 = vpop.f32.mrb[67].mxu1  ;;  %10660 = vmatmul.mubr.bf16.gmra.mrb[244].mxu0 %v3639_v26  ;;  %v13811_v58 = vadd.f32 %v13566_v2, %v1763_v5  ;;  %v3641_v2 = vsel %vm3622_vm13, %v3638_v12, %v3640_v33  ;;  %v2980_v5 = vrot.slane %v11829_v31, 7  ;;  %v11830_v33 = vld [vmem:[#allocation2 + $0x8] sm:$0xe0] }
 0x2cb   : > { %10663 = vmatprep.mubr.msk.bf16.mxu0 %vm11913_vm1, %v13734_v15 }
 0x2cc   : > { %10504 = vmatmul.mubr.bf16.gmra.mrb[172].mxu1 %v2979_v46  ;;  %v13817_v18 = vadd.f32 %v13572_v8, %v1766_v13  ;;  %v2981_v46 = vsel %vm2962_vm14, %v2978_v49, %v2980_v5  ;;  %v11577_v49 = vld [vmem:[%s16433_s3 + $0x380] sm:$0xff]  }
 0x2cd   : > { %v13819_v43 = vpop.f32.mrb[140].mxu0  ;;  %10507 = vmatprep.mubr.msk.bf16.mxu1 %vm11913_vm1, %v13734_v15 }
 0x2ce   : > { %v10353_v7 = vpop.f32.mrb[141].mxu0 }
 0x2cf   : > { %v1770_v19 = vpop.f32.mrb[68].mxu1  ;;  %v13823_v27 = vpop.f32.mrb[142].mxu0  ;;  %v4131_v7 = vrot.slane %v11830_v33, 5 }
 0x2d0   : > { %v1771_v35 = vadd.f32 %v1770_v19, %v13587_v25  ;;  %v10197_v44 = vpop.f32.mrb[69].mxu1  ;;  %v10354_v14 = vpop.f32.mrb[143].mxu0 }
 0x2d1   : > { %v1773_v26 = vpop.f32.mrb[70].mxu1  ;;  %v11572_v14 = vld [vmem:[%s16433_s3 + $0x2c0] sm:$0xff]  }
 0x2d2   : > { %v1774_v8 = vadd.f32 %v1773_v26, %v13591_v38  ;;  %v10198_v13 = vpop.f32.mrb[71].mxu1  ;;  %10664 = vmatmul.mubr.bf16.gmra.mrb[248].mxu0 %v3641_v2  ;;  %v13829_v30 = vadd.f32 %v13583_v9, %v1771_v35  ;;  %v16607_v35 = vrot.slane %v12814_v28, 5 }
 0x2d3   : > { %10735 = vmatprep.mubr.msk.bf16.mxu0 %vm11913_vm1, %v13734_v15 }
 0x2d4   : > { %10508 = vmatmul.mubr.bf16.gmra.mrb[176].mxu1 %v2981_v46  ;;  %v13835_v12 = vadd.f32 %v13589_v23, %v1774_v8  ;;  %v4133_v44 = vsel %vm4130_vm9, %v4131_v7, %v16607_v35  ;;  %v16608_v35 = vld [vmem:[#allocation15_spill] sm:$0xff] }
 0x2d5   : > { %v13837_v25 = vpop.f32.mrb[144].mxu0  ;;  %10579 = vmatprep.mubr.msk.bf16.mxu1 %vm11913_vm1, %v13734_v15 }
 0x2d6   : > { %v10425_v38 = vpop.f32.mrb[145].mxu0 }
 0x2d7   : > { %v2164_v19 = vpop.f32.mrb[72].mxu1  ;;  %v13841_v9 = vpop.f32.mrb[146].mxu0 }
 0x2d8   : > { %v2235_v2 = vadd.f32 %v2164_v19, %v13615_v21  ;;  %v10269_v31 = vpop.f32.mrb[73].mxu1  ;;  %v10426_v23 = vpop.f32.mrb[147].mxu0  ;;  %v11578_v21 = vld [vmem:[%s16433_s3 + $0x388] sm:$0xff]  }
 0x2d9   : > { %v2167_v5 = vpop.f32.mrb[74].mxu1  ;;  %v11574_v31 = vld [vmem:[%s16433_s3 + $0x2d0] sm:$0xff]  }
 0x2da   : > { %v2236_v26 = vadd.f32 %v2167_v5, %v13625_v37  ;;  %v10270_v8 = vpop.f32.mrb[75].mxu1  ;;  %10736 = vmatmul.mubr.bf16.vlgmr.msra.gmra.mrb[252].mxu0 %v4133_v44  ;;  %v13855_v13 = vadd.f32 %v13597_v50, %v2235_v2  ;;  %v11573_v50 = vld [vmem:[%s16433_s3 + $0x2c8] sm:$0xff]  }
 0x2db   : > { %10739 = vmatprep.mubr.msk.bf16.mxu0 %vm11913_vm1, %v13734_v15  ;;  %10824 = vmatpush3.bf16.msra.mxu0 %v11577_v49 }
 0x2dc   : > { %10580 = vmatmul.mubr.bf16.vlgmr.msra.gmra.mrb[180].mxu1 %v13390_v0  ;;  %10825 = vmatprep.subr.bf16.mxu0 %v13734_v15  ;;  %v13865_v46 = vadd.f32 %v13601_v54, %v2236_v26  ;;  %v11580_v54 = vld [vmem:[%s16433_s3 + $0x390] sm:$0xff]  }
 0x2dd   : > { %10668 = vmatpush3.bf16.msra.mxu1 %v11572_v14  ;;  %v13867_v37 = vpop.f32.mrb[148].mxu0  ;;  %10583 = vmatprep.mubr.msk.bf16.mxu1 %vm11913_vm1, %v13734_v15 }
 0x2de   : > { %v10429_v33 = vpop.f32.mrb[149].mxu0  ;;  %10669 = vmatprep.subr.bf16.mxu1 %v13734_v15 }
 0x2df   : > { %v2172_v7 = vpop.f32.mrb[76].mxu1  ;;  %v13875_v0 = vpop.f32.mrb[150].mxu0  ;;  %10826 = vmatpush3.bf16.msra.mxu0 %v11578_v21 }
 0x2e0   : > { %v2237_v38 = vadd.f32 %v2172_v7, %v13650_v39  ;;  %v10273_v19 = vpop.f32.mrb[77].mxu1  ;;  %v10430_v49 = vpop.f32.mrb[151].mxu0  ;;  %10827 = vmatprep.subr.bf16.mxu0 %v13734_v15  ;;  %v11581_v39 = vld [vmem:[%s16433_s3 + $0x398] sm:$0xff]  }
 0x2e1   : > { %v2175_v2 = vpop.f32.mrb[78].mxu1  ;;  %10670 = vmatpush3.bf16.msra.mxu1 %v11573_v50  ;;  %v16609_v49 = vld [vmem:[#allocation16_spill] sm:$0xff] }
 0x2e2   : > { %v2238_v23 = vadd.f32 %v2175_v2, %v13660_v1  ;;  %v10274_v5 = vpop.f32.mrb[79].mxu1  ;;  %10740 = vmatmul.mubr.bf16.gmra.mrb[0].mxu0 %v16608_v35  ;;  %10671 = vmatprep.subr.bf16.mxu1 %v13734_v15  ;;  %v13889_v44 = vadd.f32 %v13627_v52, %v2237_v38  ;;  %v11575_v52 = vld [vmem:[%s16433_s3 + $0x2d8] sm:$0xff]  }
 0x2e3   : > { %10743 = vmatprep.mubr.msk.bf16.mxu0 %vm11913_vm1, %v13734_v15  ;;  %10828 = vmatpush3.bf16.msra.mxu0 %v11580_v54  ;;  %v11576_v54 = vld [vmem:[%s16433_s3 + $0x2e0] sm:$0xff]  }
 0x2e4   : > { %10584 = vmatmul.mubr.bf16.gmra.mrb[184].mxu1 %v13422_v10  ;;  %10829 = vmatprep.subr.bf16.mxu0 %v13734_v15  ;;  %v13899_v1 = vadd.f32 %v13635_v47, %v2238_v23  ;;  %v11583_v47 = vld [vmem:[%s16433_s3 + $0x3a0] sm:$0xff]  }
 0x2e5   : > { %v13901_v14 = vpop.f32.mrb[152].mxu0  ;;  %10587 = vmatprep.mubr.msk.bf16.mxu1 %vm11913_vm1, %v13734_v15  ;;  %10672 = vmatpush3.bf16.msra.mxu1 %v11574_v31 }
 0x2e6   : > { %v10433_v26 = vpop.f32.mrb[153].mxu0  ;;  %10673 = vmatprep.subr.bf16.mxu1 %v13734_v15 }
 0x2e7   : > { %v2180_v8 = vpop.f32.mrb[80].mxu1  ;;  %v13909_v10 = vpop.f32.mrb[154].mxu0  ;;  %10830 = vmatpush3.bf16.msra.mxu0 %v11581_v39 }
 0x2e8   : > { %v2239_v21 = vadd.f32 %v2180_v8, %v13685_v29  ;;  %v10277_v50 = vpop.f32.mrb[81].mxu1  ;;  %v10434_v33 = vpop.f32.mrb[155].mxu0  ;;  %10831 = vmatprep.subr.bf16.mxu0 %v13734_v15  ;;  %v11584_v29 = vld [vmem:[%s16433_s3 + $0x3a8] sm:$0xff]   ;;  %v11582_v8 = vld [vmem:[%s16433_s3 + $0x2f0] sm:$0xff]  }
 0x2e9   : > { %v2183_v7 = vpop.f32.mrb[82].mxu1  ;;  %10674 = vmatpush3.bf16.msra.mxu1 %v11575_v52  ;;  %v16610_v50 = vld [vmem:[#allocation17_spill] sm:$0xff] }
 0x2ea   : > { %v2240_v38 = vadd.f32 %v2183_v7, %v13695_v3  ;;  %v10278_v19 = vpop.f32.mrb[83].mxu1  ;;  %10744 = vmatmul.mubr.bf16.gmra.mrb[4].mxu0 %v16609_v49  ;;  %10675 = vmatprep.subr.bf16.mxu1 %v13734_v15  ;;  %v13923_v2 = vadd.f32 %v13662_v59, %v2239_v21  ;;  %v11579_v59 = vld [vmem:[%s16433_s3 + $0x2e8] sm:$0xff]  }
 0x2eb   : > { %10747 = vmatprep.mubr.msk.bf16.mxu0 %vm11913_vm1, %v13734_v15  ;;  %10832 = vmatpush3.bf16.msra.mxu0 %v11583_v47 }
 0x2ec   : > { %10588 = vmatmul.mubr.bf16.gmra.mrb[188].mxu1 %v13455_v56  ;;  %10833 = vmatprep.subr.bf16.mxu0 %v13734_v15  ;;  %v13933_v3 = vadd.f32 %v13670_v53, %v2240_v38  ;;  %v11586_v53 = vld [vmem:[%s16433_s3 + $0x3b0] sm:$0xff]  }
 0x2ed   : > { %v13935_v31 = vpop.f32.mrb[156].mxu0  ;;  %10591 = vmatprep.mubr.msk.bf16.mxu1 %vm11913_vm1, %v13734_v15  ;;  %10676 = vmatpush3.bf16.msra.mxu1 %v11576_v54 }
 0x2ee   : > { %v10437_v23 = vpop.f32.mrb[157].mxu0  ;;  %10677 = vmatprep.subr.bf16.mxu1 %v13734_v15 }
 0x2ef   : > { %v2188_v5 = vpop.f32.mrb[84].mxu1  ;;  %v13943_v56 = vpop.f32.mrb[158].mxu0  ;;  %10834 = vmatpush3.bf16.msra.mxu0 %v11584_v29 }
 0x2f0   : > { %v2241_v35 = vadd.f32 %v2188_v5, %v13720_v4  ;;  %v10281_v39 = vpop.f32.mrb[85].mxu1  ;;  %v10438_v52 = vpop.f32.mrb[159].mxu0  ;;  %10835 = vmatprep.subr.bf16.mxu0 %v13734_v15  ;;  %v11587_v4 = vld [vmem:[%s16433_s3 + $0x3b8] sm:$0xff]  }
 0x2f1   : > { %v2191_v26 = vpop.f32.mrb[86].mxu1  ;;  %10678 = vmatpush3.bf16.msra.mxu1 %v11579_v59  ;;  %v16611_v5 = vld [vmem:[#allocation18_spill] sm:$0xff] }
 0x2f2   : > { %v2242_v47 = vadd.f32 %v2191_v26, %v13730_v17  ;;  %v10282_v21 = vpop.f32.mrb[87].mxu1  ;;  %10748 = vmatmul.mubr.bf16.gmra.mrb[8].mxu0 %v16610_v50  ;;  %10679 = vmatprep.subr.bf16.mxu1 %v13734_v15  ;;  %v13957_v33 = vadd.f32 %v13697_v11, %v2241_v35  ;;  %v11585_v11 = vld [vmem:[%s16433_s3 + $0x2f8] sm:$0xff]   ;;  %v16612_v50 = vld [vmem:[#allocation19_spill] sm:$0xff] }
 0x2f3   : > { %10751 = vmatprep.mubr.msk.bf16.mxu0 %vm11913_vm1, %v13734_v15  ;;  %10836 = vmatpush3.bf16.msra.mxu0 %v11586_v53 }
 0x2f4   : > { %10592 = vmatmul.mubr.bf16.gmra.mrb[192].mxu1 %v13488_v41  ;;  %10837 = vmatprep.subr.bf16.mxu0 %v13734_v15  ;;  %v13967_v17 = vadd.f32 %v13705_v6, %v2242_v47 }
 0x2f5   : > { %v13969_v7 = vpop.f32.mrb[160].mxu0  ;;  %10595 = vmatprep.mubr.msk.bf16.mxu1 %vm11913_vm1, %v13734_v15  ;;  %10680 = vmatpush3.bf16.msra.mxu1 %v11582_v8 }
 0x2f6   : > { %v10441_v54 = vpop.f32.mrb[161].mxu0  ;;  %10681 = vmatprep.subr.bf16.mxu1 %v13734_v15 }
 0x2f7   : > { %v2196_v38 = vpop.f32.mrb[88].mxu1  ;;  %v13977_v41 = vpop.f32.mrb[162].mxu0  ;;  %10838 = vmatpush3.bf16.msra.mxu0 %v11587_v4 }
 0x2f8   : > { %v2243_v6 = vadd.f32 %v2196_v38, %v13751_v60  ;;  %v10285_v19 = vpop.f32.mrb[89].mxu1  ;;  %v10442_v49 = vpop.f32.mrb[163].mxu0  ;;  %10927 = vmatprep.subr.bf16.mxu0 %v13734_v15 }
 0x2f9   : > { %v2199_v29 = vpop.f32.mrb[90].mxu1  ;;  %10682 = vmatpush3.bf16.msra.mxu1 %v11585_v11 }
 0x2fa   : > { %v2244_v59 = vadd.f32 %v2199_v29, %v13757_v63  ;;  %v10286_v23 = vpop.f32.mrb[91].mxu1  ;;  %10752 = vmatmul.mubr.bf16.gmra.mrb[12].mxu0 %v16611_v5  ;;  %10771 = vmatprep.subr.bf16.mxu1 %v13734_v15  ;;  %v13985_v53 = vadd.f32 %v13732_v42, %v2243_v6  ;;  %v16613_v29 = vld [vmem:[#allocation20_spill] sm:$0xff] }
 0x2fb   : > { %10755 = vmatprep.mubr.msk.bf16.mxu0 %vm11913_vm1, %v13734_v15  ;;  %v4146_v23 = vrot.slane %v13799_v32, 5 }
 0x2fc   : > { %10596 = vmatmul.mubr.bf16.gmra.mrb[196].mxu1 %v13521_v45  ;;  %v13991_v60 = vadd.f32 %v13742_v51, %v2244_v59 }
 0x2fd   : > { %v13993_v35 = vpop.f32.mrb[164].mxu0  ;;  %10599 = vmatprep.mubr.msk.bf16.mxu1 %vm11913_vm1, %v13734_v15 }
 0x2fe   : > { %v10445_v63 = vpop.f32.mrb[165].mxu0 }
 0x2ff   : > { %v2204_v39 = vpop.f32.mrb[92].mxu1  ;;  %v13997_v52 = vpop.f32.mrb[166].mxu0 }
 0x300   : > { %v2245_v42 = vadd.f32 %v2204_v39, %v13770_v22  ;;  %v10289_v26 = vpop.f32.mrb[93].mxu1  ;;  %v10446_v8 = vpop.f32.mrb[167].mxu0 }
 0x301   : > { %v2207_v47 = vpop.f32.mrb[94].mxu1  ;;  %v14037_v26 = vld [vmem:[#allocation2 + $0x50] sm:$0x1f] }
 0x302   : > { %v2246_v21 = vadd.f32 %v2207_v47, %v13776_v40  ;;  %v10290_v45 = vpop.f32.mrb[95].mxu1  ;;  %10756 = vmatmul.mubr.bf16.gmra.mrb[16].mxu0 %v16612_v50  ;;  %v14003_v51 = vadd.f32 %v13759_v62, %v2245_v42 }
 0x303   : > { %10759 = vmatprep.mubr.msk.bf16.mxu0 %vm11913_vm1, %v13734_v15 }
 0x304   : > { %10600 = vmatmul.mubr.bf16.gmra.mrb[200].mxu1 %v13540_v48  ;;  %v14009_v4 = vadd.f32 %v13763_v16, %v2246_v21 }
 0x305   : > { %v14011_v22 = vpop.f32.mrb[168].mxu0  ;;  %10603 = vmatprep.mubr.msk.bf16.mxu1 %vm11913_vm1, %v13734_v15 }
 0x306   : > { %v10449_v40 = vpop.f32.mrb[169].mxu0 }
 0x307   : > { %v2212_v11 = vpop.f32.mrb[96].mxu1  ;;  %v14015_v54 = vpop.f32.mrb[170].mxu0  ;;  %v16616_v40 = vld [vmem:[#allocation9_spill] sm:$0xff] }
 0x308   : > { %v2247_v62 = vadd.f32 %v2212_v11, %v13789_v57  ;;  %v10293_v38 = vpop.f32.mrb[97].mxu1  ;;  %v10450_v6 = vpop.f32.mrb[171].mxu0 }
 0x309   : > { %v2215_v19 = vpop.f32.mrb[98].mxu1 }
 0x30a   : > { %v2248_v49 = vadd.f32 %v2215_v19, %v13795_v36  ;;  %v10294_v48 = vpop.f32.mrb[99].mxu1  ;;  %10760 = vmatmul.mubr.bf16.gmra.mrb[20].mxu0 %v16613_v29  ;;  %v14021_v16 = vadd.f32 %v13778_v24, %v2247_v62 }
 0x30b   : > { %10763 = vmatprep.mubr.msk.bf16.mxu0 %vm11913_vm1, %v13734_v15 }
 0x30c   : > { %10604 = vmatmul.mubr.bf16.gmra.mrb[204].mxu1 %v13557_v34  ;;  %v14027_v59 = vadd.f32 %v13782_v55, %v2248_v49  ;;  %v16614_v55 = vld [vmem:[#allocation14_spill] sm:$0xff] }
 0x30d   : > { %v14029_v57 = vpop.f32.mrb[172].mxu0  ;;  %10607 = vmatprep.mubr.msk.bf16.mxu1 %vm11913_vm1, %v13734_v15  ;;  %v16615_v8 = vrot.slane %v16614_v55, 5 }
 0x30e   : > { %v10453_v36 = vpop.f32.mrb[173].mxu0 }
 0x30f   : > { %v2220_v5 = vpop.f32.mrb[100].mxu1  ;;  %v14034_v63 = vpop.f32.mrb[174].mxu0  ;;  %v4147_v47 = vsel %vm4130_vm9, %v16615_v8, %v4146_v23 }
 0x310   : > { %v2249_v24 = vadd.f32 %v2220_v5, %v13811_v58  ;;  %v10297_v39 = vpop.f32.mrb[101].mxu1  ;;  %v10454_v42 = vpop.f32.mrb[175].mxu0  ;;  %v4148_v58 = vrot.slane %v14037_v26, 5  ;;  %v4578_v5 = vld [vmem:[#allocation2 + $0x8] sm:$0xc0] }
 0x311   : > { %v2223_v34 = vpop.f32.mrb[102].mxu1  ;;  %v4598_v39 = vrot.slane %v4578_v5, 6 }
 0x312   : > { %v2250_v21 = vadd.f32 %v2223_v34, %v13817_v18  ;;  %v10298_v45 = vpop.f32.mrb[103].mxu1  ;;  %10764 = vmatmul.mubr.bf16.gmra.mrb[24].mxu0 %v4147_v47  ;;  %v14044_v50 = vadd.f32 %v13797_v61, %v2249_v24  ;;  %v4149_v61 = vsel %vm4130_vm9, %v4146_v23, %v4148_v58 }
 0x313   : > { %10767 = vmatprep.mubr.msk.bf16.mxu0 %vm11913_vm1, %v13734_v15  ;;  %v16617_v45 = vrot.slane %v12814_v28, 6  ;;  %v11594_v28 = vld [vmem:[%s16433_s3 + $0x408] sm:$0xff]  }
 0x314   : > { %10608 = vmatmul.mubr.bf16.gmra.mrb[208].mxu1 %v13574_v20  ;;  %v14051_v11 = vadd.f32 %v16616_v40, %v2250_v21  ;;  %v11588_v40 = vld [vmem:[%s16433_s3 + $0x340] sm:$0xff]  }
 0x315   : > { %v14053_v62 = vpop.f32.mrb[176].mxu0  ;;  %10611 = vmatprep.mubr.msk.bf16.mxu1 %vm11913_vm1, %v13734_v15  ;;  %v4600_v58 = vsel %vm2494_vm8, %v4598_v39, %v16617_v45 }
 0x316   : > { %v10457_v18 = vpop.f32.mrb[177].mxu0 }
 0x317   : > { %v2228_v38 = vpop.f32.mrb[104].mxu1  ;;  %v14057_v6 = vpop.f32.mrb[178].mxu0 }
 0x318   : > { %v2251_v19 = vadd.f32 %v2228_v38, %v13829_v30  ;;  %v10301_v49 = vpop.f32.mrb[105].mxu1  ;;  %v10458_v48 = vpop.f32.mrb[179].mxu0 }
 0x319   : > { %v2231_v29 = vpop.f32.mrb[106].mxu1 }
 0x31a   : > { %v2252_v20 = vadd.f32 %v2231_v29, %v13835_v12  ;;  %v10302_v36 = vpop.f32.mrb[107].mxu1  ;;  %10768 = vmatmul.mubr.bf16.gmra.mrb[28].mxu0 %v4149_v61  ;;  %v14063_v24 = vadd.f32 %v13819_v43, %v2251_v19  ;;  %v11593_v43 = vld [vmem:[%s16433_s3 + $0x400] sm:$0xff]  }
 0x31b   : > { %10839 = vmatprep.mubr.msk.bf16.mxu0 %vm11913_vm1, %v13734_v15 }
 0x31c   : > { %10612 = vmatmul.mubr.bf16.gmra.mrb[212].mxu1 %v13799_v32  ;;  %v14069_v23 = vadd.f32 %v13823_v27, %v2252_v20 }
 0x31d   : > { %v14071_v30 = vpop.f32.mrb[180].mxu0  ;;  %10683 = vmatprep.mubr.msk.bf16.mxu1 %vm11913_vm1, %v13734_v15 }
 0x31e   : > { %v10529_v12 = vpop.f32.mrb[181].mxu0 }
 0x31f   : > { %v2605_v42 = vpop.f32.mrb[108].mxu1  ;;  %v14075_v34 = vpop.f32.mrb[182].mxu0  ;;  %v11590_v12 = vld [vmem:[%s16433_s3 + $0x350] sm:$0xff]  }
 0x320   : > { %v2676_v8 = vadd.f32 %v2605_v42, %v13855_v13  ;;  %v10373_v47 = vpop.f32.mrb[109].mxu1  ;;  %v10530_v21 = vpop.f32.mrb[183].mxu0  ;;  %v16618_v13 = vld [vmem:[#allocation23_spill] sm:$0xff] }
 0x321   : > { %v2608_v27 = vpop.f32.mrb[110].mxu1  ;;  %v16620_v21 = vld [vmem:[#allocation24_spill] sm:$0xff] }
 0x322   : > { %v2677_v18 = vadd.f32 %v2608_v27, %v13865_v46  ;;  %v10374_v38 = vpop.f32.mrb[111].mxu1  ;;  %10840 = vmatmul.mubr.bf16.vlgmr.msra.gmra.mrb[32].mxu0 %v4600_v58  ;;  %v14089_v61 = vadd.f32 %v13837_v25, %v2676_v8  ;;  %v11589_v25 = vld [vmem:[%s16433_s3 + $0x348] sm:$0xff]   ;;  %v16619_v8 = vld [vmem:[#allocation21_spill] sm:$0xff] }
 0x323   : > { %10843 = vmatprep.mubr.msk.bf16.mxu0 %vm11913_vm1, %v13734_v15  ;;  %10928 = vmatpush3.bf16.msra.mxu0 %v11593_v43 }
 0x324   : > { %10684 = vmatmul.mubr.bf16.vlgmr.msra.gmra.mrb[216].mxu1 %v16618_v13  ;;  %10929 = vmatprep.subr.bf16.mxu0 %v13734_v15  ;;  %v14099_v19 = vadd.f32 %v13841_v9, %v2677_v18  ;;  %v11596_v9 = vld [vmem:[%s16433_s3 + $0x410] sm:$0xff]  }
 0x325   : > { %10772 = vmatpush3.bf16.msra.mxu1 %v11588_v40  ;;  %v14101_v46 = vpop.f32.mrb[184].mxu0  ;;  %10687 = vmatprep.mubr.msk.bf16.mxu1 %vm11913_vm1, %v13734_v15 }
 0x326   : > { %v10533_v49 = vpop.f32.mrb[185].mxu0  ;;  %10773 = vmatprep.subr.bf16.mxu1 %v13734_v15 }
 0x327   : > { %v2613_v48 = vpop.f32.mrb[112].mxu1  ;;  %v14109_v29 = vpop.f32.mrb[186].mxu0  ;;  %10930 = vmatpush3.bf16.msra.mxu0 %v11594_v28 }
 0x328   : > { %v2678_v20 = vadd.f32 %v2613_v48, %v13889_v44  ;;  %v10377_v36 = vpop.f32.mrb[113].mxu1  ;;  %v10534_v5 = vpop.f32.mrb[187].mxu0  ;;  %10931 = vmatprep.subr.bf16.mxu0 %v13734_v15  ;;  %v11597_v44 = vld [vmem:[%s16433_s3 + $0x418] sm:$0xff]  }
 0x329   : > { %v2616_v39 = vpop.f32.mrb[114].mxu1  ;;  %10774 = vmatpush3.bf16.msra.mxu1 %v11589_v25  ;;  %v11592_v25 = vld [vmem:[%s16433_s3 + $0x360] sm:$0xff]  }
 0x32a   : > { %v2679_v42 = vadd.f32 %v2616_v39, %v13899_v1  ;;  %v10378_v43 = vpop.f32.mrb[115].mxu1  ;;  %10844 = vmatmul.mubr.bf16.gmra.mrb[36].mxu0 %v16619_v8  ;;  %10775 = vmatprep.subr.bf16.mxu1 %v13734_v15  ;;  %v14123_v47 = vadd.f32 %v13867_v37, %v2678_v20  ;;  %v11591_v37 = vld [vmem:[%s16433_s3 + $0x358] sm:$0xff]   ;;  %v16622_v36 = vld [vmem:[#allocation27_spill] sm:$0xff] }
 0x32b   : > { %10847 = vmatprep.mubr.msk.bf16.mxu0 %vm11913_vm1, %v13734_v15  ;;  %10932 = vmatpush3.bf16.msra.mxu0 %v11596_v9  ;;  %v16621_v9 = vld [vmem:[#allocation22_spill] sm:$0xff] }
 0x32c   : > { %10688 = vmatmul.mubr.bf16.gmra.mrb[220].mxu1 %v16620_v21  ;;  %10933 = vmatprep.subr.bf16.mxu0 %v13734_v15  ;;  %v14133_v1 = vadd.f32 %v13875_v0, %v2679_v42  ;;  %v11599_v0 = vld [vmem:[%s16433_s3 + $0x420] sm:$0xff]  }
 0x32d   : > { %v14135_v27 = vpop.f32.mrb[188].mxu0  ;;  %10691 = vmatprep.mubr.msk.bf16.mxu1 %vm11913_vm1, %v13734_v15  ;;  %10776 = vmatpush3.bf16.msra.mxu1 %v11590_v12 }
 0x32e   : > { %v10537_v45 = vpop.f32.mrb[189].mxu0  ;;  %10777 = vmatprep.subr.bf16.mxu1 %v13734_v15 }
 0x32f   : > { %v2621_v58 = vpop.f32.mrb[116].mxu1  ;;  %v14143_v40 = vpop.f32.mrb[190].mxu0  ;;  %10934 = vmatpush3.bf16.msra.mxu0 %v11597_v44 }
 0x330   : > { %v2680_v18 = vadd.f32 %v2621_v58, %v13923_v2  ;;  %v10381_v38 = vpop.f32.mrb[117].mxu1  ;;  %v10538_v28 = vpop.f32.mrb[191].mxu0  ;;  %10935 = vmatprep.subr.bf16.mxu0 %v13734_v15  ;;  %v11600_v2 = vld [vmem:[%s16433_s3 + $0x428] sm:$0xff]  }
 0x331   : > { %v2624_v13 = vpop.f32.mrb[118].mxu1  ;;  %10778 = vmatpush3.bf16.msra.mxu1 %v11591_v37  ;;  %v11598_v37 = vld [vmem:[%s16433_s3 + $0x370] sm:$0xff]  }
 0x332   : > { %v2681_v49 = vadd.f32 %v2624_v13, %v13933_v3  ;;  %v10382_v48 = vpop.f32.mrb[119].mxu1  ;;  %10848 = vmatmul.mubr.bf16.gmra.mrb[40].mxu0 %v16621_v9  ;;  %10779 = vmatprep.subr.bf16.mxu1 %v13734_v15  ;;  %v14157_v20 = vadd.f32 %v13901_v14, %v2680_v18  ;;  %v11595_v14 = vld [vmem:[%s16433_s3 + $0x368] sm:$0xff]  }
 0x333   : > { %10851 = vmatprep.mubr.msk.bf16.mxu0 %vm11913_vm1, %v13734_v15  ;;  %10936 = vmatpush3.bf16.msra.mxu0 %v11599_v0  ;;  %v16623_v0 = vld [vmem:[#allocation25_spill] sm:$0xff]  ;;  %v16624_v38 = vld [vmem:[#allocation28_spill] sm:$0xff] }
 0x334   : > { %10692 = vmatmul.mubr.bf16.gmra.mrb[224].mxu1 %v16622_v36  ;;  %10937 = vmatprep.subr.bf16.mxu0 %v13734_v15  ;;  %v14167_v3 = vadd.f32 %v13909_v10, %v2681_v49  ;;  %v11602_v10 = vld [vmem:[%s16433_s3 + $0x430] sm:$0xff]  }
 0x335   : > { %v14169_v5 = vpop.f32.mrb[192].mxu0  ;;  %10695 = vmatprep.mubr.msk.bf16.mxu1 %vm11913_vm1, %v13734_v15  ;;  %10780 = vmatpush3.bf16.msra.mxu1 %v11592_v25 }
 0x336   : > { %v10541_v39 = vpop.f32.mrb[193].mxu0  ;;  %10781 = vmatprep.subr.bf16.mxu1 %v13734_v15 }
 0x337   : > { %v2629_v12 = vpop.f32.mrb[120].mxu1  ;;  %v14177_v42 = vpop.f32.mrb[194].mxu0  ;;  %10938 = vmatpush3.bf16.msra.mxu0 %v11600_v2  ;;  %v16625_v39 = vld [vmem:[#allocation26_spill] sm:$0xff] }
 0x338   : > { %v2682_v43 = vadd.f32 %v2629_v12, %v13957_v33  ;;  %v10385_v8 = vpop.f32.mrb[121].mxu1  ;;  %v10542_v44 = vpop.f32.mrb[195].mxu0  ;;  %10939 = vmatprep.subr.bf16.mxu0 %v13734_v15  ;;  %v11603_v33 = vld [vmem:[%s16433_s3 + $0x438] sm:$0xff]  }
 0x339   : > { %v2632_v21 = vpop.f32.mrb[122].mxu1  ;;  %10782 = vmatpush3.bf16.msra.mxu1 %v11595_v14 }
 0x33a   : > { %v2683_v45 = vadd.f32 %v2632_v21, %v13967_v17  ;;  %v10386_v58 = vpop.f32.mrb[123].mxu1  ;;  %10852 = vmatmul.mubr.bf16.gmra.mrb[44].mxu0 %v16623_v0  ;;  %10783 = vmatprep.subr.bf16.mxu1 %v13734_v15  ;;  %v14191_v18 = vadd.f32 %v13935_v31, %v2682_v43  ;;  %v11601_v31 = vld [vmem:[%s16433_s3 + $0x378] sm:$0xff]  }
 0x33b   : > { %10855 = vmatprep.mubr.msk.bf16.mxu0 %vm11913_vm1, %v13734_v15  ;;  %10940 = vmatpush3.bf16.msra.mxu0 %v11602_v10 }
 0x33c   : > { %10696 = vmatmul.mubr.bf16.gmra.mrb[228].mxu1 %v16624_v38  ;;  %10941 = vmatprep.subr.bf16.mxu0 %v13734_v15  ;;  %v14201_v17 = vadd.f32 %v13943_v56, %v2683_v45  ;;  %v16628_v38 = vld [vmem:[#allocation32_spill] sm:$0xff] }
 0x33d   : > { %v14203_v28 = vpop.f32.mrb[196].mxu0  ;;  %10699 = vmatprep.mubr.msk.bf16.mxu1 %vm11913_vm1, %v13734_v15  ;;  %10784 = vmatpush3.bf16.msra.mxu1 %v11598_v37 }
 0x33e   : > { %v10545_v13 = vpop.f32.mrb[197].mxu0  ;;  %10785 = vmatprep.subr.bf16.mxu1 %v13734_v15 }
 0x33f   : > { %v2637_v25 = vpop.f32.mrb[124].mxu1  ;;  %v14211_v49 = vpop.f32.mrb[198].mxu0  ;;  %10942 = vmatpush3.bf16.msra.mxu0 %v11603_v33  ;;  %v16627_v33 = vld [vmem:[#allocation29_spill] sm:$0xff] }
 0x340   : > { %v2684_v56 = vadd.f32 %v2637_v25, %v13985_v53  ;;  %v10389_v48 = vpop.f32.mrb[125].mxu1  ;;  %v10546_v9 = vpop.f32.mrb[199].mxu0  ;;  %11031 = vmatprep.subr.bf16.mxu0 %v13734_v15  ;;  %v16626_v53 = vld [vmem:[#allocation30_spill] sm:$0xff] }
 0x341   : > { %v2640_v2 = vpop.f32.mrb[126].mxu1  ;;  %10786 = vmatpush3.bf16.msra.mxu1 %v11601_v31 }
 0x342   : > { %v2685_v36 = vadd.f32 %v2640_v2, %v13991_v60  ;;  %v10390_v14 = vpop.f32.mrb[127].mxu1  ;;  %10856 = vmatmul.mubr.bf16.gmra.mrb[48].mxu0 %v16625_v39  ;;  %10875 = vmatprep.subr.bf16.mxu1 %v13734_v15  ;;  %v14219_v12 = vadd.f32 %v13969_v7, %v2684_v56  ;;  %v14255_v56 = vshll.u32 %v13799_v32, 16  ;;  %v16629_v39 = vld [vmem:[#allocation31_spill] sm:$0xff] }
 0x343   : > { %10859 = vmatprep.mubr.msk.bf16.mxu0 %vm11913_vm1, %v13734_v15 }
 0x344   : > { %10700 = vmatmul.mubr.bf16.gmra.mrb[232].mxu1 %v16626_v53  ;;  %v14225_v10 = vadd.f32 %v13977_v41, %v2685_v36 }
 0x345   : > { %v14227_v43 = vpop.f32.mrb[200].mxu0  ;;  %10703 = vmatprep.mubr.msk.bf16.mxu1 %vm11913_vm1, %v13734_v15 }
 0x346   : > { %v10549_v60 = vpop.f32.mrb[201].mxu0 }
 0x347   : > { %v2645_v8 = vpop.f32.mrb[128].mxu1  ;;  %v14231_v44 = vpop.f32.mrb[202].mxu0 }
 0x348   : > { %v2686_v7 = vadd.f32 %v2645_v8, %v14003_v51  ;;  %v10393_v21 = vpop.f32.mrb[129].mxu1  ;;  %v10550_v37 = vpop.f32.mrb[203].mxu0  ;;  %v3918_v8 = vrot.slane %v14255_v56, 5 }
 0x349   : > { %v2648_v45 = vpop.f32.mrb[130].mxu1  ;;  %v3925_v37 = vshll.u32 %v14037_v26, 16 }
 0x34a   : > { %v2687_v58 = vadd.f32 %v2648_v45, %v14009_v4  ;;  %v10394_v0 = vpop.f32.mrb[131].mxu1  ;;  %10860 = vmatmul.mubr.bf16.gmra.mrb[52].mxu0 %v16627_v33  ;;  %v14237_v41 = vadd.f32 %v13993_v35, %v2686_v7  ;;  %v14252_v35 = vshrl.u32 %v13799_v32, 16  ;;  %v16630_v7 = vld [vmem:[#allocation35_spill] sm:$0xff] }
 0x34b   : > { %10863 = vmatprep.mubr.msk.bf16.mxu0 %vm11913_vm1, %v13734_v15 }
 0x34c   : > { %10704 = vmatmul.mubr.bf16.gmra.mrb[236].mxu1 %v16628_v38  ;;  %v14243_v31 = vadd.f32 %v13997_v52, %v2687_v58  ;;  %v3915_v60 = vrot.slane %v14252_v35, 4 }
 0x34d   : > { %v14245_v51 = vpop.f32.mrb[204].mxu0  ;;  %10707 = vmatprep.mubr.msk.bf16.mxu1 %vm11913_vm1, %v13734_v15 }
 0x34e   : > { %v10553_v4 = vpop.f32.mrb[205].mxu0  ;;  %v3919_v33 = vor.u32 %v3918_v8, %v3915_v60 }
 0x34f   : > { %v2653_v13 = vpop.f32.mrb[132].mxu1  ;;  %v14249_v25 = vpop.f32.mrb[206].mxu0 }
 0x350   : > { %v2688_v48 = vadd.f32 %v2653_v13, %v14021_v16  ;;  %v10397_v9 = vpop.f32.mrb[133].mxu1  ;;  %v10554_v52 = vpop.f32.mrb[207].mxu0  ;;  %v14281_v13 = vld [vmem:[#allocation2 + $0x50] sm:$0x3f] }
 0x351   : > { %v2656_v2 = vpop.f32.mrb[134].mxu1  ;;  %v4615_v60 = vrot.slane %v14281_v13, 6 }
 0x352   : > { %v2689_v36 = vadd.f32 %v2656_v2, %v14027_v59  ;;  %v10398_v14 = vpop.f32.mrb[135].mxu1  ;;  %10864 = vmatmul.mubr.bf16.gmra.mrb[56].mxu0 %v16629_v39  ;;  %v14261_v53 = vadd.f32 %v14011_v22, %v2688_v48  ;;  %v4613_v59 = vrot.slane %v13799_v32, 6  ;;  %v3922_v22 = vshrl.u32 %v14037_v26, 16  ;;  %v16632_v39 = vld [vmem:[#allocation33_spill] sm:$0xff] }
 0x353   : > { %10867 = vmatprep.mubr.msk.bf16.mxu0 %vm11913_vm1, %v13734_v15  ;;  %v16631_v32 = vrot.slane %v16614_v55, 6  ;;  %v3927_v2 = vrot.slane %v3925_v37, 5  ;;  %v14295_v55 = vld [vmem:[#allocation2 + $0x10] sm:$0xfc] }
 0x354   : > { %10708 = vmatmul.mubr.bf16.gmra.mrb[240].mxu1 %v16630_v7  ;;  %v14269_v16 = vadd.f32 %v14015_v54, %v2689_v36  ;;  %v3924_v52 = vrot.slane %v3922_v22, 4 }
 0x355   : > { %v14271_v21 = vpop.f32.mrb[208].mxu0  ;;  %10711 = vmatprep.mubr.msk.bf16.mxu1 %vm11913_vm1, %v13734_v15  ;;  %v4614_v9 = vsel %vm2494_vm8, %v16631_v32, %v4613_v59 }
 0x356   : > { %v10557_v45 = vpop.f32.mrb[209].mxu0 }
 0x357   : > { %v2661_v58 = vpop.f32.mrb[136].mxu1  ;;  %v14278_v0 = vpop.f32.mrb[210].mxu0  ;;  %v4616_v45 = vsel %vm2494_vm8, %v4613_v59, %v4615_v60 }
 0x358   : > { %v2690_v38 = vadd.f32 %v2661_v58, %v14044_v50  ;;  %v10401_v54 = vpop.f32.mrb[137].mxu1  ;;  %v10558_v4 = vpop.f32.mrb[211].mxu0  ;;  %v3920_v50 = vsel %vm3840_vm10, %v16632_v39, %v3919_v33  ;;  %v5053_v58 = vshrl.u32 %v14295_v55, 16 }
 0x359   : > { %v2664_v48 = vpop.f32.mrb[138].mxu1 }
 0x35a   : > { %v2691_v26 = vadd.f32 %v2664_v48, %v14051_v11  ;;  %v10402_v36 = vpop.f32.mrb[139].mxu1  ;;  %10868 = vmatmul.mubr.bf16.gmra.mrb[60].mxu0 %v4614_v9  ;;  %v14288_v14 = vadd.f32 %v14029_v57, %v2690_v38  ;;  %v3928_v57 = vor.u32 %v3927_v2, %v3924_v52  ;;  %v5056_v38 = vshll.u32 %v14295_v55, 16  ;;  %v16633_v9 = vld [vmem:[#allocation37_spill] sm:$0xff] }
 0x35b   : > { %10871 = vmatprep.mubr.msk.bf16.mxu0 %vm11913_vm1, %v13734_v15  ;;  %v16635_v2 = vshll.u32 %v16633_v9, 16 }
 0x35c   : > { %10712 = vmatmul.mubr.bf16.gmra.mrb[244].mxu1 %v3920_v50  ;;  %v14298_v8 = vadd.f32 %v14034_v63, %v2691_v26  ;;  %v3929_v32 = vsel %vm3840_vm10, %v3919_v33, %v3928_v57  ;;  %v14319_v50 = vld [vmem:[#allocation3 + $0x90] sm:$0xff]  ;;  %v5058_v33 = vrot.slane %v5056_v38, 3 }
 0x35d   : > { %v14300_v11 = vpop.f32.mrb[212].mxu0  ;;  %10715 = vmatprep.mubr.msk.bf16.mxu1 %vm11913_vm1, %v13734_v15  ;;  %v16634_v15 = vshrl.u32 %v16633_v9, 16  ;;  %v5066_v26 = vrot.slane %v16635_v2, 3 }
 0x35e   : > { %v10561_v7 = vpop.f32.mrb[213].mxu0 }
 0x35f   : > { %v2669_v22 = vpop.f32.mrb[140].mxu1  ;;  %v14304_v37 = vpop.f32.mrb[214].mxu0  ;;  %v5063_v52 = vrot.slane %v16634_v15, 2 }
 0x360   : > { %v2692_v54 = vadd.f32 %v2669_v22, %v14063_v24  ;;  %v10405_v63 = vpop.f32.mrb[141].mxu1  ;;  %v10562_v4 = vpop.f32.mrb[215].mxu0  ;;  %v5055_v24 = vrot.slane %v5053_v58, 2  ;;  %v11609_v58 = vld [vmem:[%s16433_s3 + $0x480] sm:$0xff]  }
 0x361   : > { %v2672_v48 = vpop.f32.mrb[142].mxu1  ;;  %v5067_v7 = vor.u32 %v5066_v26, %v5063_v52 }
 0x362   : > { %v2693_v36 = vadd.f32 %v2672_v48, %v14069_v23  ;;  %v10406_v59 = vpop.f32.mrb[143].mxu1  ;;  %10872 = vmatmul.mubr.bf16.gmra.mrb[64].mxu0 %v4616_v45  ;;  %v14317_v39 = vadd.f32 %v14053_v62, %v2692_v54  ;;  %v5059_v45 = vor.u32 %v5058_v33, %v5055_v24  ;;  %v11604_v48 = vld [vmem:[%s16433_s3 + $0x3c0] sm:$0xff]  }
 0x363   : > { %10943 = vmatprep.mubr.msk.bf16.mxu0 %vm11913_vm1, %v14319_v50  ;;  %v11610_v59 = vld [vmem:[%s16433_s3 + $0x488] sm:$0xff]   ;;  %v16639_v24 = vld [vmem:[#allocation38_spill] sm:$0xff] }
 0x364   : > { %10716 = vmatmul.mubr.bf16.gmra.mrb[248].mxu1 %v3929_v32  ;;  %v14324_v60 = vadd.f32 %v14057_v6, %v2693_v36  ;;  %v5068_v4 = vsel %vm5051_vm15, %v5059_v45, %v5067_v7  ;;  %v16636_v32 = vld [vmem:[#allocation40_spill] sm:$0xff] }
 0x365   : > { %v14326_v57 = vpop.f32.mrb[216].mxu0  ;;  %10787 = vmatprep.mubr.msk.bf16.mxu1 %vm11913_vm1, %v14319_v50  ;;  %v16637_v9 = vshrl.u32 %v16636_v32, 16  ;;  %v16638_v52 = vshll.u32 %v16636_v32, 16 }
 0x366   : > { %v10633_v23 = vpop.f32.mrb[217].mxu0 }
 0x367   : > { %v3073_v62 = vpop.f32.mrb[144].mxu1  ;;  %v14330_v22 = vpop.f32.mrb[218].mxu0  ;;  %v5072_v15 = vrot.slane %v16637_v9, 2  ;;  %v5075_v2 = vrot.slane %v16638_v52, 3  ;;  %v11605_v23 = vld [vmem:[%s16433_s3 + $0x3c8] sm:$0xff]  }
 0x368   : > { %v3144_v38 = vadd.f32 %v3073_v62, %v14089_v61  ;;  %v10477_v6 = vpop.f32.mrb[145].mxu1  ;;  %v10634_v54 = vpop.f32.mrb[219].mxu0 }
 0x369   : > { %v3076_v63 = vpop.f32.mrb[146].mxu1 }
 0x36a   : > { %v3145_v26 = vadd.f32 %v3076_v63, %v14099_v19  ;;  %v10478_v36 = vpop.f32.mrb[147].mxu1  ;;  %10944 = vmatmul.mubr.bf16.vlgmr.msra.gmra.mrb[68].mxu0 %v5068_v4  ;;  %v14346_v61 = vadd.f32 %v14071_v30, %v3144_v38  ;;  %v5076_v30 = vor.u32 %v5075_v2, %v5072_v15  ;;  %v11606_v2 = vld [vmem:[%s16433_s3 + $0x3d0] sm:$0xff]  }
 0x36b   : > { %10947 = vmatprep.mubr.msk.bf16.mxu0 %vm11913_vm1, %v14319_v50  ;;  %11032 = vmatpush3.bf16.msra.mxu0 %v11609_v58 }
 0x36c   : > { %10788 = vmatmul.mubr.bf16.vlgmr.msra.gmra.mrb[252].mxu1 %v16639_v24  ;;  %11033 = vmatprep.subr.bf16.mxu0 %v14319_v50  ;;  %v14356_v33 = vadd.f32 %v14075_v34, %v3145_v26  ;;  %v11612_v34 = vld [vmem:[%s16433_s3 + $0x490] sm:$0xff]   ;;  %v5077_v4 = vsel %vm5051_vm15, %v5067_v7, %v5076_v30  ;;  %v11613_v7 = vld [vmem:[%s16433_s3 + $0x498] sm:$0xff]  }
 0x36d   : > { %10876 = vmatpush3.bf16.msra.mxu1 %v11604_v48  ;;  %v14358_v19 = vpop.f32.mrb[220].mxu0  ;;  %10791 = vmatprep.mubr.msk.bf16.mxu1 %vm11913_vm1, %v14319_v50  ;;  %v16640_v48 = vld [vmem:[#allocation43_spill] sm:$0xff] }
 0x36e   : > { %v10637_v62 = vpop.f32.mrb[221].mxu0  ;;  %10877 = vmatprep.subr.bf16.mxu1 %v14319_v50  ;;  %v16641_v32 = vshrl.u32 %v16640_v48, 16  ;;  %v16642_v15 = vshll.u32 %v16640_v48, 16  ;;  %v16644_v48 = vld [vmem:[#allocation44_spill] sm:$0xff] }
 0x36f   : > { %v3081_v45 = vpop.f32.mrb[148].mxu1  ;;  %v14366_v58 = vpop.f32.mrb[222].mxu0  ;;  %11034 = vmatpush3.bf16.msra.mxu0 %v11610_v59  ;;  %v16643_v59 = vld [vmem:[#allocation39_spill] sm:$0xff] }
 0x370   : > { %v3146_v38 = vadd.f32 %v3081_v45, %v14123_v47  ;;  %v10481_v6 = vpop.f32.mrb[149].mxu1  ;;  %v10638_v54 = vpop.f32.mrb[223].mxu0  ;;  %11035 = vmatprep.subr.bf16.mxu0 %v14319_v50  ;;  %v5081_v9 = vrot.slane %v16641_v32, 2  ;;  %v5084_v52 = vrot.slane %v16642_v15, 3  ;;  %v16645_v32 = vshrl.u32 %v16644_v48, 16 }
 0x371   : > { %v3084_v63 = vpop.f32.mrb[150].mxu1  ;;  %10878 = vmatpush3.bf16.msra.mxu1 %v11605_v23  ;;  %v16646_v15 = vshll.u32 %v16644_v48, 16  ;;  %v16648_v48 = vld [vmem:[#allocation47_spill] sm:$0xff] }
 0x372   : > { %v3147_v47 = vadd.f32 %v3084_v63, %v14133_v1  ;;  %v10482_v26 = vpop.f32.mrb[151].mxu1  ;;  %10948 = vmatmul.mubr.bf16.gmra.mrb[72].mxu0 %v5077_v4  ;;  %10879 = vmatprep.subr.bf16.mxu1 %v14319_v50  ;;  %v14384_v36 = vadd.f32 %v14101_v46, %v3146_v38  ;;  %v5085_v23 = vor.u32 %v5084_v52, %v5081_v9  ;;  %v11607_v46 = vld [vmem:[%s16433_s3 + $0x3d8] sm:$0xff]   ;;  %v5090_v9 = vrot.slane %v16645_v32, 2 }
 0x373   : > { %10951 = vmatprep.mubr.msk.bf16.mxu0 %vm11913_vm1, %v14319_v50  ;;  %11036 = vmatpush3.bf16.msra.mxu0 %v11612_v34  ;;  %v5093_v52 = vrot.slane %v16646_v15, 3  ;;  %v16649_v32 = vshrl.u32 %v16648_v48, 16  ;;  %v16650_v15 = vshll.u32 %v16648_v48, 16 }
 0x374   : > { %10792 = vmatmul.mubr.bf16.gmra.mrb[0].mxu1 %v16643_v59  ;;  %11037 = vmatprep.subr.bf16.mxu0 %v14319_v50  ;;  %v14394_v1 = vadd.f32 %v14109_v29, %v3147_v47  ;;  %v11615_v29 = vld [vmem:[%s16433_s3 + $0x4a0] sm:$0xff]   ;;  %v5086_v4 = vsel %vm5051_vm15, %v5076_v30, %v5085_v23  ;;  %v11616_v30 = vld [vmem:[%s16433_s3 + $0x4a8] sm:$0xff]  }
 0x375   : > { %v14396_v24 = vpop.f32.mrb[224].mxu0  ;;  %10795 = vmatprep.mubr.msk.bf16.mxu1 %vm11913_vm1, %v14319_v50  ;;  %10880 = vmatpush3.bf16.msra.mxu1 %v11606_v2  ;;  %v11608_v2 = vld [vmem:[%s16433_s3 + $0x3e0] sm:$0xff]  }
 0x376   : > { %v10641_v62 = vpop.f32.mrb[225].mxu0  ;;  %10881 = vmatprep.subr.bf16.mxu1 %v14319_v50 }
 0x377   : > { %v3089_v45 = vpop.f32.mrb[152].mxu1  ;;  %v14404_v34 = vpop.f32.mrb[226].mxu0  ;;  %11038 = vmatpush3.bf16.msra.mxu0 %v11613_v7  ;;  %v16647_v7 = vld [vmem:[#allocation36_spill] sm:$0xff] }
 0x378   : > { %v3148_v38 = vadd.f32 %v3089_v45, %v14157_v20  ;;  %v10485_v6 = vpop.f32.mrb[153].mxu1  ;;  %v10642_v54 = vpop.f32.mrb[227].mxu0  ;;  %11039 = vmatprep.subr.bf16.mxu0 %v14319_v50 }
 0x379   : > { %v3092_v63 = vpop.f32.mrb[154].mxu1  ;;  %10882 = vmatpush3.bf16.msra.mxu1 %v11607_v46  ;;  %v5094_v46 = vor.u32 %v5093_v52, %v5090_v9  ;;  %v5099_v9 = vrot.slane %v16649_v32, 2  ;;  %v5102_v52 = vrot.slane %v16650_v15, 3 }
 0x37a   : > { %v3149_v20 = vadd.f32 %v3092_v63, %v14167_v3  ;;  %v10486_v47 = vpop.f32.mrb[155].mxu1  ;;  %10952 = vmatmul.mubr.bf16.gmra.mrb[76].mxu0 %v5086_v4  ;;  %10883 = vmatprep.subr.bf16.mxu1 %v14319_v50  ;;  %v14422_v26 = vadd.f32 %v14135_v27, %v3148_v38  ;;  %v11611_v27 = vld [vmem:[%s16433_s3 + $0x3e8] sm:$0xff]  }
 0x37b   : > { %10955 = vmatprep.mubr.msk.bf16.mxu0 %vm11913_vm1, %v14319_v50  ;;  %11040 = vmatpush3.bf16.msra.mxu0 %v11615_v29  ;;  %v5095_v4 = vsel %vm5051_vm15, %v5085_v23, %v5094_v46  ;;  %v11619_v23 = vld [vmem:[%s16433_s3 + $0x4b8] sm:$0xff]  }
 0x37c   : > { %10796 = vmatmul.mubr.bf16.gmra.mrb[4].mxu1 %v16647_v7  ;;  %11041 = vmatprep.subr.bf16.mxu0 %v14319_v50  ;;  %v14432_v3 = vadd.f32 %v14143_v40, %v3149_v20  ;;  %v11618_v40 = vld [vmem:[%s16433_s3 + $0x4b0] sm:$0xff]  }
 0x37d   : > { %v14434_v59 = vpop.f32.mrb[228].mxu0  ;;  %10799 = vmatprep.mubr.msk.bf16.mxu1 %vm11913_vm1, %v14319_v50  ;;  %10884 = vmatpush3.bf16.msra.mxu1 %v11608_v2  ;;  %v11614_v2 = vld [vmem:[%s16433_s3 + $0x3f0] sm:$0xff]  }
 0x37e   : > { %v10645_v62 = vpop.f32.mrb[229].mxu0  ;;  %10885 = vmatprep.subr.bf16.mxu1 %v14319_v50 }
 0x37f   : > { %v3097_v45 = vpop.f32.mrb[156].mxu1  ;;  %v14442_v29 = vpop.f32.mrb[230].mxu0  ;;  %11042 = vmatpush3.bf16.msra.mxu0 %v11616_v30  ;;  %v16651_v30 = vld [vmem:[#allocation41_spill] sm:$0xff] }
 0x380   : > { %v3150_v38 = vadd.f32 %v3097_v45, %v14191_v18  ;;  %v10489_v6 = vpop.f32.mrb[157].mxu1  ;;  %v10646_v54 = vpop.f32.mrb[231].mxu0  ;;  %11043 = vmatprep.subr.bf16.mxu0 %v14319_v50 }
 0x381   : > { %v3100_v63 = vpop.f32.mrb[158].mxu1  ;;  %10886 = vmatpush3.bf16.msra.mxu1 %v11611_v27  ;;  %v5103_v27 = vor.u32 %v5102_v52, %v5099_v9 }
 0x382   : > { %v3151_v18 = vadd.f32 %v3100_v63, %v14201_v17  ;;  %v10490_v20 = vpop.f32.mrb[159].mxu1  ;;  %10956 = vmatmul.mubr.bf16.gmra.mrb[80].mxu0 %v5095_v4  ;;  %10887 = vmatprep.subr.bf16.mxu1 %v14319_v50  ;;  %v14460_v47 = vadd.f32 %v14169_v5, %v3150_v38  ;;  %v11617_v5 = vld [vmem:[%s16433_s3 + $0x3f8] sm:$0xff]   ;;  %v16652_v4 = vld [vmem:[#allocation48_spill] sm:$0xff] }
 0x383   : > { %10959 = vmatprep.mubr.msk.bf16.mxu0 %vm11913_vm1, %v14319_v50  ;;  %11044 = vmatpush3.bf16.msra.mxu0 %v11618_v40  ;;  %v5104_v63 = vsel %vm5051_vm15, %v5094_v46, %v5103_v27  ;;  %v16653_v48 = vshrl.u32 %v16652_v4, 16  ;;  %v16654_v9 = vshll.u32 %v16652_v4, 16  ;;  %v16655_v46 = vld [vmem:[#allocation42_spill] sm:$0xff] }
 0x384   : > { %10800 = vmatmul.mubr.bf16.gmra.mrb[8].mxu1 %v16651_v30  ;;  %11045 = vmatprep.subr.bf16.mxu0 %v14319_v50  ;;  %v14470_v17 = vadd.f32 %v14177_v42, %v3151_v18 }
 0x385   : > { %v14472_v7 = vpop.f32.mrb[232].mxu0  ;;  %10803 = vmatprep.mubr.msk.bf16.mxu1 %vm11913_vm1, %v14319_v50  ;;  %10888 = vmatpush3.bf16.msra.mxu1 %v11614_v2  ;;  %v5108_v32 = vrot.slane %v16653_v48, 2  ;;  %v5111_v15 = vrot.slane %v16654_v9, 3 }
 0x386   : > { %v10649_v62 = vpop.f32.mrb[233].mxu0  ;;  %10889 = vmatprep.subr.bf16.mxu1 %v14319_v50 }
 0x387   : > { %v3105_v45 = vpop.f32.mrb[160].mxu1  ;;  %v14480_v40 = vpop.f32.mrb[234].mxu0  ;;  %11046 = vmatpush3.bf16.msra.mxu0 %v11619_v23  ;;  %v5112_v23 = vor.u32 %v5111_v15, %v5108_v32 }
 0x388   : > { %v3152_v42 = vadd.f32 %v3105_v45, %v14219_v12  ;;  %v10493_v38 = vpop.f32.mrb[161].mxu1  ;;  %v10650_v6 = vpop.f32.mrb[235].mxu0  ;;  %11135 = vmatprep.subr.bf16.mxu0 %v14319_v50 }
 0x389   : > { %v3108_v54 = vpop.f32.mrb[162].mxu1  ;;  %10890 = vmatpush3.bf16.msra.mxu1 %v11617_v5  ;;  %v5113_v38 = vsel %vm5051_vm15, %v5103_v27, %v5112_v23  ;;  %v5120_v6 = vrot.slane %v14255_v56, 3 }
 0x38a   : > { %v3153_v52 = vadd.f32 %v3108_v54, %v14225_v10  ;;  %v10494_v2 = vpop.f32.mrb[163].mxu1  ;;  %10960 = vmatmul.mubr.bf16.gmra.mrb[84].mxu0 %v5104_v63  ;;  %10979 = vmatprep.subr.bf16.mxu1 %v14319_v50  ;;  %v14492_v12 = vadd.f32 %v14203_v28, %v3152_v42 }
 0x38b   : > { %10963 = vmatprep.mubr.msk.bf16.mxu0 %vm11913_vm1, %v14319_v50 }
 0x38c   : > { %10804 = vmatmul.mubr.bf16.gmra.mrb[12].mxu1 %v16655_v46  ;;  %v14498_v18 = vadd.f32 %v14211_v49, %v3153_v52  ;;  %v5117_v49 = vrot.slane %v14252_v35, 2  ;;  %v14527_v46 = vld [vmem:[#allocation2 + $0x58] sm:$0x7] }
 0x38d   : > { %v14500_v20 = vpop.f32.mrb[236].mxu0  ;;  %10807 = vmatprep.mubr.msk.bf16.mxu1 %vm11913_vm1, %v14319_v50  ;;  %16657 = vst [vmem:[#allocation10_spill] sm:$0xff] %v14527_v46 }
 0x38e   : > { %v10653_v10 = vpop.f32.mrb[237].mxu0  ;;  %v5121_v32 = vor.u32 %v5120_v6, %v5117_v49  ;;  %v16658_v49 = vld [vmem:[#allocation46_spill] sm:$0xff]  ;;  %v4393_v6 = vshll.u32 %v14281_v13, 16 }
 0x38f   : > { %v3113_v30 = vpop.f32.mrb[164].mxu1  ;;  %v14504_v5 = vpop.f32.mrb[238].mxu0 }
 0x390   : > { %v3154_v28 = vadd.f32 %v3113_v30, %v14237_v41  ;;  %v10497_v62 = vpop.f32.mrb[165].mxu1  ;;  %v10654_v45 = vpop.f32.mrb[239].mxu0  ;;  %v16656_v41 = vld [vmem:[#allocation45_spill] sm:$0xff]  ;;  %v4385_v30 = vrot.slane %v14252_v35, 5 }
 0x391   : > { %v3116_v42 = vpop.f32.mrb[166].mxu1 }
 0x392   : > { %v3155_v54 = vadd.f32 %v3116_v42, %v14243_v31  ;;  %v10498_v63 = vpop.f32.mrb[167].mxu1  ;;  %10964 = vmatmul.mubr.bf16.gmra.mrb[88].mxu0 %v5113_v38  ;;  %v14512_v4 = vadd.f32 %v14227_v43, %v3154_v28  ;;  %v4386_v42 = vrot.slane %v14255_v56, 6  ;;  %v5136_v38 = vshll.u32 %v14527_v46, 16 }
 0x393   : > { %10967 = vmatprep.mubr.msk.bf16.mxu0 %vm11913_vm1, %v14319_v50 }
 0x394   : > { %10808 = vmatmul.mubr.bf16.gmra.mrb[16].mxu1 %v16656_v41  ;;  %v14518_v48 = vadd.f32 %v14231_v44, %v3155_v54  ;;  %v5122_v44 = vsel %vm5051_vm15, %v5112_v23, %v5121_v32  ;;  %v4387_v63 = vor.u32 %v4386_v42, %v4385_v30  ;;  %v16659_v30 = vld [vmem:[#allocation34_spill] sm:$0xff] }
 0x395   : > { %v14520_v27 = vpop.f32.mrb[240].mxu0  ;;  %10811 = vmatprep.mubr.msk.bf16.mxu1 %vm11913_vm1, %v14319_v50 }
 0x396   : > { %v10657_v31 = vpop.f32.mrb[241].mxu0  ;;  %v4388_v42 = vsel %vm4348_vm11, %v16659_v30, %v4387_v63 }
 0x397   : > { %v3121_v9 = vpop.f32.mrb[168].mxu1  ;;  %v14524_v15 = vpop.f32.mrb[242].mxu0 }
 0x398   : > { %v3156_v43 = vadd.f32 %v3121_v9, %v14261_v53  ;;  %v10501_v52 = vpop.f32.mrb[169].mxu1  ;;  %v10658_v2 = vpop.f32.mrb[243].mxu0  ;;  %v5133_v53 = vshrl.u32 %v14527_v46, 16  ;;  %v5131_v9 = vsel %vm5051_vm15, %v5121_v32, %v5121_v32 }
 0x399   : > { %v3124_v10 = vpop.f32.mrb[170].mxu1  ;;  %v5138_v52 = vrot.slane %v5136_v38, 3 }
 0x39a   : > { %v3157_v28 = vadd.f32 %v3124_v10, %v14269_v16  ;;  %v10502_v62 = vpop.f32.mrb[171].mxu1  ;;  %10968 = vmatmul.mubr.bf16.gmra.mrb[92].mxu0 %v5122_v44  ;;  %v14533_v45 = vadd.f32 %v14245_v51, %v3156_v43  ;;  %v4390_v51 = vshrl.u32 %v14281_v13, 16  ;;  %v5135_v43 = vrot.slane %v5133_v53, 2 }
 0x39b   : > { %10971 = vmatprep.mubr.msk.bf16.mxu0 %vm11913_vm1, %v14319_v50  ;;  %v4395_v62 = vrot.slane %v4393_v6, 6 }
 0x39c   : > { %10812 = vmatmul.mubr.bf16.gmra.mrb[20].mxu1 %v16658_v49  ;;  %v14542_v23 = vadd.f32 %v14249_v25, %v3157_v28  ;;  %v4392_v28 = vrot.slane %v4390_v51, 5  ;;  %v5139_v53 = vor.u32 %v5138_v52, %v5135_v43 }
 0x39d   : > { %v14544_v16 = vpop.f32.mrb[244].mxu0  ;;  %10815 = vmatprep.mubr.msk.bf16.mxu1 %vm11913_vm1, %v14319_v50 }
 0x39e   : > { %v10661_v54 = vpop.f32.mrb[245].mxu0  ;;  %v5140_v6 = vsel %vm5051_vm15, %v5121_v32, %v5139_v53 }
 0x39f   : > { %v3129_v41 = vpop.f32.mrb[172].mxu1  ;;  %v14550_v31 = vpop.f32.mrb[246].mxu0 }
 0x3a0   : > { %v3158_v25 = vadd.f32 %v3129_v41, %v14288_v14  ;;  %v10505_v2 = vpop.f32.mrb[173].mxu1  ;;  %v10662_v10 = vpop.f32.mrb[247].mxu0  ;;  %v14562_v14 = vld [vmem:[#allocation2 + $0x10] sm:$0xf8] }
 0x3a1   : > { %v3132_v44 = vpop.f32.mrb[174].mxu1  ;;  %v5561_v41 = vshrl.u32 %v14562_v14, 16 }
 0x3a2   : > { %v3159_v49 = vadd.f32 %v3132_v44, %v14298_v8  ;;  %v10506_v46 = vpop.f32.mrb[175].mxu1  ;;  %10972 = vmatmul.mubr.bf16.gmra.mrb[96].mxu0 %v5131_v9  ;;  %v14556_v13 = vadd.f32 %v14271_v21, %v3158_v25  ;;  %v4396_v21 = vor.u32 %v4395_v62, %v4392_v28  ;;  %v5564_v9 = vshll.u32 %v14562_v14, 16 }
 0x3a3   : > { %10975 = vmatprep.mubr.msk.bf16.mxu0 %vm11913_vm1, %v14319_v50  ;;  %v5563_v32 = vrot.slane %v5561_v41, 3  ;;  %v16660_v41 = vld [vmem:[#allocation49_spill] sm:$0xff] }
 0x3a4   : > { %10816 = vmatmul.mubr.bf16.gmra.mrb[24].mxu1 %v4388_v42  ;;  %v14565_v38 = vadd.f32 %v14278_v0, %v3159_v49  ;;  %v4397_v2 = vsel %vm4348_vm11, %v4387_v63, %v4396_v21  ;;  %v5566_v62 = vrot.slane %v5564_v9, 4  ;;  %v14593_v42 = vld [vmem:[#allocation2 + $0x18] sm:$0xff] }
 0x3a5   : > { %v14567_v51 = vpop.f32.mrb[248].mxu0  ;;  %10819 = vmatprep.mubr.msk.bf16.mxu1 %vm11913_vm1, %v14319_v50  ;;  %v4835_v53 = vrot.slane %v14593_v42, 2  ;;  %v11625_v21 = vld [vmem:[%s16433_s3 + $0x500] sm:$0xff]  }
 0x3a6   : > { %v10665_v8 = vpop.f32.mrb[249].mxu0 }
 0x3a7   : > { %v3137_v46 = vpop.f32.mrb[176].mxu1  ;;  %v14572_v54 = vpop.f32.mrb[250].mxu0 }
 0x3a8   : > { %v3160_v43 = vadd.f32 %v3137_v46, %v14317_v39  ;;  %v10509_v0 = vpop.f32.mrb[177].mxu1  ;;  %v10666_v52 = vpop.f32.mrb[251].mxu0 }
 0x3a9   : > { %v3140_v25 = vpop.f32.mrb[178].mxu1  ;;  %v11620_v0 = vld [vmem:[%s16433_s3 + $0x440] sm:$0xff]  }
 0x3aa   : > { %v3161_v10 = vadd.f32 %v3140_v25, %v14324_v60  ;;  %v10510_v44 = vpop.f32.mrb[179].mxu1  ;;  %10976 = vmatmul.mubr.bf16.gmra.mrb[100].mxu0 %v5140_v6  ;;  %v14580_v28 = vadd.f32 %v14300_v11, %v3160_v43  ;;  %v5567_v11 = vor.u32 %v5566_v62, %v5563_v32  ;;  %v4834_v43 = vrot.slane %v14295_v55, 2  ;;  %v11626_v55 = vld [vmem:[%s16433_s3 + $0x508] sm:$0xff]  }
 0x3ab   : > { %11047 = vmatprep.mubr.msk.bf16.mxu0 %vm11913_vm1, %v14319_v50 }
 0x3ac   : > { %10820 = vmatmul.mubr.bf16.gmra.mrb[28].mxu1 %v4397_v2  ;;  %v14585_v39 = vadd.f32 %v14304_v37, %v3161_v10  ;;  %v5571_v9 = vsel %vm5559_vm12, %v5567_v11, %v16660_v41 }
 0x3ad   : > { %v14587_v49 = vpop.f32.mrb[252].mxu0  ;;  %10891 = vmatprep.mubr.msk.bf16.mxu1 %vm11913_vm1, %v14319_v50 }
 0x3ae   : > { %v10737_v60 = vpop.f32.mrb[253].mxu0 }
 0x3af   : > { %v3496_v63 = vpop.f32.mrb[180].mxu1  ;;  %v14591_v30 = vpop.f32.mrb[254].mxu0  ;;  %v14630_v60 = vld [vmem:[#allocation2 + $0x20] sm:$0xff] }
 0x3b0   : > { %v3567_v37 = vadd.f32 %v3496_v63, %v14346_v61  ;;  %v10581_v8 = vpop.f32.mrb[181].mxu1  ;;  %v10738_v46 = vpop.f32.mrb[255].mxu0  ;;  %v4836_v61 = vsel %vm2273_vm7, %v4834_v43, %v4835_v53  ;;  %v11628_v63 = vld [vmem:[%s16433_s3 + $0x510] sm:$0xff]  }
 0x3b1   : > { %v3499_v6 = vpop.f32.mrb[182].mxu1  ;;  %v11622_v46 = vld [vmem:[%s16433_s3 + $0x450] sm:$0xff]  }
 0x3b2   : > { %v3568_v52 = vadd.f32 %v3499_v6, %v14356_v33  ;;  %v10582_v25 = vpop.f32.mrb[183].mxu1  ;;  %11048 = vmatmul.mubr.bf16.vlgmr.msra.gmra.mrb[104].mxu0 %v5571_v9  ;;  %v14608_v2 = vadd.f32 %v14326_v57, %v3567_v37  ;;  %v11621_v57 = vld [vmem:[%s16433_s3 + $0x448] sm:$0xff]   ;;  %v16661_v9 = vld [vmem:[#allocation50_spill] sm:$0xff] }
 0x3b3   : > { %11051 = vmatprep.mubr.msk.bf16.mxu0 %vm11913_vm1, %v14319_v50  ;;  %11136 = vmatpush3.bf16.msra.mxu0 %v11625_v21 }
 0x3b4   : > { %10892 = vmatmul.mubr.bf16.vlgmr.msra.gmra.mrb[32].mxu1 %v4836_v61  ;;  %11137 = vmatprep.subr.bf16.mxu0 %v14319_v50  ;;  %v14618_v33 = vadd.f32 %v14330_v22, %v3568_v52  ;;  %v4837_v22 = vrot.slane %v14630_v60, 2 }
 0x3b5   : > { %10980 = vmatpush3.bf16.msra.mxu1 %v11620_v0  ;;  %v14620_v10 = vpop.f32.mrb[0].mxu0  ;;  %10895 = vmatprep.mubr.msk.bf16.mxu1 %vm11913_vm1, %v14319_v50  ;;  %v11629_v0 = vld [vmem:[%s16433_s3 + $0x518] sm:$0xff]  }
 0x3b6   : > { %v10741_v44 = vpop.f32.mrb[1].mxu0  ;;  %10981 = vmatprep.subr.bf16.mxu1 %v14319_v50 }
 0x3b7   : > { %v3504_v32 = vpop.f32.mrb[184].mxu1  ;;  %v14628_v62 = vpop.f32.mrb[2].mxu0  ;;  %11138 = vmatpush3.bf16.msra.mxu0 %v11626_v55  ;;  %v14667_v55 = vld [vmem:[#allocation2 + $0x28] sm:$0xff] }
 0x3b8   : > { %v3569_v11 = vadd.f32 %v3504_v32, %v14384_v36  ;;  %v10585_v21 = vpop.f32.mrb[185].mxu1  ;;  %v10742_v37 = vpop.f32.mrb[3].mxu0  ;;  %11139 = vmatprep.subr.bf16.mxu0 %v14319_v50  ;;  %v4838_v36 = vsel %vm2273_vm7, %v4835_v53, %v4837_v22 }
 0x3b9   : > { %v3507_v8 = vpop.f32.mrb[186].mxu1  ;;  %10982 = vmatpush3.bf16.msra.mxu1 %v11621_v57  ;;  %v11631_v57 = vld [vmem:[%s16433_s3 + $0x520] sm:$0xff]  }
 0x3ba   : > { %v3570_v6 = vadd.f32 %v3507_v8, %v14394_v1  ;;  %v10586_v41 = vpop.f32.mrb[187].mxu1  ;;  %11052 = vmatmul.mubr.bf16.gmra.mrb[108].mxu0 %v16661_v9  ;;  %10983 = vmatprep.subr.bf16.mxu1 %v14319_v50  ;;  %v14645_v43 = vadd.f32 %v14358_v19, %v3569_v11  ;;  %v11623_v19 = vld [vmem:[%s16433_s3 + $0x458] sm:$0xff]   ;;  %v11624_v21 = vld [vmem:[%s16433_s3 + $0x460] sm:$0xff]  }
 0x3bb   : > { %11055 = vmatprep.mubr.msk.bf16.mxu0 %vm11913_vm1, %v14319_v50  ;;  %11140 = vmatpush3.bf16.msra.mxu0 %v11628_v63  ;;  %v11632_v41 = vld [vmem:[%s16433_s3 + $0x528] sm:$0xff]  }
 0x3bc   : > { %10896 = vmatmul.mubr.bf16.gmra.mrb[36].mxu1 %v4838_v36  ;;  %11141 = vmatprep.subr.bf16.mxu0 %v14319_v50  ;;  %v14655_v1 = vadd.f32 %v14366_v58, %v3570_v6  ;;  %v4839_v58 = vrot.slane %v14667_v55, 2 }
 0x3bd   : > { %v14657_v52 = vpop.f32.mrb[4].mxu0  ;;  %10899 = vmatprep.mubr.msk.bf16.mxu1 %vm11913_vm1, %v14319_v50  ;;  %10984 = vmatpush3.bf16.msra.mxu1 %v11622_v46  ;;  %v16662_v46 = vld [vmem:[#allocation51_spill] sm:$0xff] }
 0x3be   : > { %v10745_v53 = vpop.f32.mrb[5].mxu0  ;;  %10985 = vmatprep.subr.bf16.mxu1 %v14319_v50 }
 0x3bf   : > { %v3512_v25 = vpop.f32.mrb[188].mxu1  ;;  %v14665_v61 = vpop.f32.mrb[6].mxu0  ;;  %11142 = vmatpush3.bf16.msra.mxu0 %v11629_v0  ;;  %v11634_v53 = vld [vmem:[%s16433_s3 + $0x530] sm:$0xff]  }
 0x3c0   : > { %v3571_v44 = vadd.f32 %v3512_v25, %v14422_v26  ;;  %v10589_v32 = vpop.f32.mrb[189].mxu1  ;;  %v10746_v63 = vpop.f32.mrb[7].mxu0  ;;  %11143 = vmatprep.subr.bf16.mxu0 %v14319_v50  ;;  %v4840_v26 = vsel %vm2273_vm7, %v4837_v22, %v4839_v58 }
 0x3c1   : > { %v3515_v11 = vpop.f32.mrb[190].mxu1  ;;  %10986 = vmatpush3.bf16.msra.mxu1 %v11623_v19  ;;  %v14704_v19 = vld [vmem:[#allocation2 + $0x30] sm:$0xff]  ;;  %v11630_v63 = vld [vmem:[%s16433_s3 + $0x470] sm:$0xff]  }
 0x3c2   : > { %v3572_v37 = vadd.f32 %v3515_v11, %v14432_v3  ;;  %v10590_v8 = vpop.f32.mrb[191].mxu1  ;;  %11056 = vmatmul.mubr.bf16.gmra.mrb[112].mxu0 %v16662_v46  ;;  %10987 = vmatprep.subr.bf16.mxu1 %v14319_v50  ;;  %v14682_v6 = vadd.f32 %v14396_v24, %v3571_v44  ;;  %v11627_v24 = vld [vmem:[%s16433_s3 + $0x468] sm:$0xff]   ;;  %v11635_v46 = vld [vmem:[%s16433_s3 + $0x538] sm:$0xff]  }
 0x3c3   : > { %11059 = vmatprep.mubr.msk.bf16.mxu0 %vm11913_vm1, %v14319_v50  ;;  %11144 = vmatpush3.bf16.msra.mxu0 %v11631_v57 }
 0x3c4   : > { %10900 = vmatmul.mubr.bf16.gmra.mrb[40].mxu1 %v4840_v26  ;;  %11145 = vmatprep.subr.bf16.mxu0 %v14319_v50  ;;  %v14692_v3 = vadd.f32 %v14404_v34, %v3572_v37  ;;  %v4841_v34 = vrot.slane %v14704_v19, 2  ;;  %v16663_v37 = vld [vmem:[#allocation52_spill] sm:$0xff] }
 0x3c5   : > { %v14694_v9 = vpop.f32.mrb[8].mxu0  ;;  %10903 = vmatprep.mubr.msk.bf16.mxu1 %vm11913_vm1, %v14319_v50  ;;  %10988 = vmatpush3.bf16.msra.mxu1 %v11624_v21 }
 0x3c6   : > { %v10749_v22 = vpop.f32.mrb[9].mxu0  ;;  %10989 = vmatprep.subr.bf16.mxu1 %v14319_v50 }
 0x3c7   : > { %v3520_v36 = vpop.f32.mrb[192].mxu1  ;;  %v14702_v0 = vpop.f32.mrb[10].mxu0  ;;  %11146 = vmatpush3.bf16.msra.mxu0 %v11632_v41  ;;  %v14741_v22 = vld [vmem:[#allocation2 + $0x38] sm:$0xff] }
 0x3c8   : > { %v3573_v25 = vadd.f32 %v3520_v36, %v14460_v47  ;;  %v10593_v57 = vpop.f32.mrb[193].mxu1  ;;  %v10750_v44 = vpop.f32.mrb[11].mxu0  ;;  %11147 = vmatprep.subr.bf16.mxu0 %v14319_v50  ;;  %v4842_v47 = vsel %vm2273_vm7, %v4839_v58, %v4841_v34 }
 0x3c9   : > { %v3523_v32 = vpop.f32.mrb[194].mxu1  ;;  %10990 = vmatpush3.bf16.msra.mxu1 %v11627_v24 }
 0x3ca   : > { %v3574_v11 = vadd.f32 %v3523_v32, %v14470_v17  ;;  %v10594_v21 = vpop.f32.mrb[195].mxu1  ;;  %11060 = vmatmul.mubr.bf16.gmra.mrb[116].mxu0 %v16663_v37  ;;  %10991 = vmatprep.subr.bf16.mxu1 %v14319_v50  ;;  %v14719_v8 = vadd.f32 %v14434_v59, %v3573_v25  ;;  %v11633_v59 = vld [vmem:[%s16433_s3 + $0x478] sm:$0xff]  }
 0x3cb   : > { %11063 = vmatprep.mubr.msk.bf16.mxu0 %vm11913_vm1, %v14319_v50  ;;  %11148 = vmatpush3.bf16.msra.mxu0 %v11634_v53 }
 0x3cc   : > { %10904 = vmatmul.mubr.bf16.gmra.mrb[44].mxu1 %v4842_v47  ;;  %11149 = vmatprep.subr.bf16.mxu0 %v14319_v50  ;;  %v14729_v17 = vadd.f32 %v14442_v29, %v3574_v11  ;;  %v4843_v29 = vrot.slane %v14741_v22, 2 }
 0x3cd   : > { %v14731_v26 = vpop.f32.mrb[12].mxu0  ;;  %10907 = vmatprep.mubr.msk.bf16.mxu1 %vm11913_vm1, %v14319_v50  ;;  %10992 = vmatpush3.bf16.msra.mxu1 %v11630_v63  ;;  %v16664_v63 = vld [vmem:[#allocation54_spill] sm:$0xff] }
 0x3ce   : > { %v10753_v58 = vpop.f32.mrb[13].mxu0  ;;  %10993 = vmatprep.subr.bf16.mxu1 %v14319_v50  ;;  %v4844_v21 = vsel %vm2273_vm7, %v4841_v34, %v4843_v29 }
 0x3cf   : > { %v3528_v41 = vpop.f32.mrb[196].mxu1  ;;  %v14739_v24 = vpop.f32.mrb[14].mxu0  ;;  %11150 = vmatpush3.bf16.msra.mxu0 %v11635_v46 }
 0x3d0   : > { %v3575_v36 = vadd.f32 %v3528_v41, %v14492_v12  ;;  %v10597_v53 = vpop.f32.mrb[197].mxu1  ;;  %v10754_v25 = vpop.f32.mrb[15].mxu0  ;;  %11239 = vmatprep.subr.bf16.mxu0 %v14319_v50 }
 0x3d1   : > { %v3531_v57 = vpop.f32.mrb[198].mxu1  ;;  %10994 = vmatpush3.bf16.msra.mxu1 %v11633_v59  ;;  %v5593_v53 = vrot.slane %v14255_v56, 4 }
 0x3d2   : > { %v3576_v44 = vadd.f32 %v3531_v57, %v14498_v18  ;;  %v10598_v32 = vpop.f32.mrb[199].mxu1  ;;  %11064 = vmatmul.mubr.bf16.gmra.mrb[120].mxu0 %v16664_v63  ;;  %11083 = vmatprep.subr.bf16.mxu1 %v14319_v50  ;;  %v14750_v11 = vadd.f32 %v14472_v7, %v3575_v36  ;;  %v14764_v7 = vld [vmem:[#allocation2 + $0x40] sm:$0xff] }
 0x3d3   : > { %11067 = vmatprep.mubr.msk.bf16.mxu0 %vm11913_vm1, %v14319_v50  ;;  %v4845_v34 = vrot.slane %v14764_v7, 2 }
 0x3d4   : > { %10908 = vmatmul.mubr.bf16.gmra.mrb[48].mxu1 %v4844_v21  ;;  %v14756_v12 = vadd.f32 %v14480_v40, %v3576_v44  ;;  %v5592_v40 = vrot.slane %v14252_v35, 3  ;;  %v16665_v44 = vld [vmem:[#allocation55_spill] sm:$0xff] }
 0x3d5   : > { %v14758_v37 = vpop.f32.mrb[16].mxu0  ;;  %10911 = vmatprep.mubr.msk.bf16.mxu1 %vm11913_vm1, %v14319_v50  ;;  %v4846_v63 = vsel %vm2273_vm7, %v4843_v29, %v4845_v34 }
 0x3d6   : > { %v10757_v18 = vpop.f32.mrb[17].mxu0  ;;  %v5594_v56 = vor.u32 %v5593_v53, %v5592_v40 }
 0x3d7   : > { %v3536_v47 = vpop.f32.mrb[200].mxu1  ;;  %v14762_v46 = vpop.f32.mrb[18].mxu0 }
 0x3d8   : > { %v3577_v59 = vadd.f32 %v3536_v47, %v14512_v4  ;;  %v10601_v58 = vpop.f32.mrb[201].mxu1  ;;  %v10758_v41 = vpop.f32.mrb[19].mxu0 }
 0x3d9   : > { %v3539_v36 = vpop.f32.mrb[202].mxu1 }
 0x3da   : > { %v3578_v25 = vadd.f32 %v3539_v36, %v14518_v48  ;;  %v10602_v57 = vpop.f32.mrb[203].mxu1  ;;  %11068 = vmatmul.mubr.bf16.gmra.mrb[124].mxu0 %v16665_v44  ;;  %v14773_v32 = vadd.f32 %v14500_v20, %v3577_v59  ;;  %v14787_v20 = vld [vmem:[#allocation2 + $0x48] sm:$0xff] }
 0x3db   : > { %11071 = vmatprep.mubr.msk.bf16.mxu0 %vm11913_vm1, %v14319_v50  ;;  %v4847_v29 = vrot.slane %v14787_v20, 2  ;;  %v16667_v36 = vld [vmem:[#allocation53_spill] sm:$0xff] }
 0x3dc   : > { %10912 = vmatmul.mubr.bf16.gmra.mrb[52].mxu1 %v4846_v63  ;;  %v14779_v4 = vadd.f32 %v14504_v5, %v3578_v25  ;;  %v14791_v5 = vld [vmem:[#allocation2 + $0x58] sm:$0xf]  ;;  %v5595_v40 = vsel %vm5559_vm12, %v16667_v36, %v5594_v56 }
 0x3dd   : > { %v14781_v35 = vpop.f32.mrb[20].mxu0  ;;  %10915 = vmatprep.mubr.msk.bf16.mxu1 %vm11913_vm1, %v14319_v50  ;;  %16666 = vst [vmem:[#allocation12_spill] sm:$0xff] %v14791_v5  ;;  %v4848_v44 = vsel %vm2273_vm7, %v4845_v34, %v4847_v29  ;;  %v5604_v63 = vshll.u32 %v14791_v5, 16  ;;  %v5599_v34 = vsel %vm5559_vm12, %v5594_v56, %v5594_v56 }
 0x3de   : > { %v10761_v48 = vpop.f32.mrb[21].mxu0 }
 0x3df   : > { %v3544_v21 = vpop.f32.mrb[204].mxu1  ;;  %v14785_v18 = vpop.f32.mrb[22].mxu0 }
 0x3e0   : > { %v3579_v47 = vadd.f32 %v3544_v21, %v14533_v45  ;;  %v10605_v59 = vpop.f32.mrb[205].mxu1  ;;  %v10762_v58 = vpop.f32.mrb[23].mxu0  ;;  %v5601_v45 = vshrl.u32 %v14791_v5, 16 }
 0x3e1   : > { %v3547_v41 = vpop.f32.mrb[206].mxu1  ;;  %v5606_v58 = vrot.slane %v5604_v63, 4 }
 0x3e2   : > { %v3580_v53 = vadd.f32 %v3547_v41, %v14542_v23  ;;  %v10606_v25 = vpop.f32.mrb[207].mxu1  ;;  %11072 = vmatmul.mubr.bf16.gmra.mrb[128].mxu0 %v5595_v40  ;;  %v14797_v57 = vadd.f32 %v14520_v27, %v3579_v47  ;;  %v5603_v59 = vrot.slane %v5601_v45, 3 }
 0x3e3   : > { %11075 = vmatprep.mubr.msk.bf16.mxu0 %vm11913_vm1, %v14319_v50 }
 0x3e4   : > { %10916 = vmatmul.mubr.bf16.gmra.mrb[56].mxu1 %v4848_v44  ;;  %v14805_v48 = vadd.f32 %v14524_v15, %v3580_v53  ;;  %v4806_v44 = vld [vmem:[#allocation2 + $0x58] sm:$0x3] }
 0x3e5   : > { %v14807_v21 = vpop.f32.mrb[24].mxu0  ;;  %10919 = vmatprep.mubr.msk.bf16.mxu1 %vm11913_vm1, %v14319_v50 }
 0x3e6   : > { %v10765_v27 = vpop.f32.mrb[25].mxu0 }
 0x3e7   : > { %v3552_v23 = vpop.f32.mrb[208].mxu1  ;;  %v14811_v47 = vpop.f32.mrb[26].mxu0  ;;  %v5607_v27 = vor.u32 %v5606_v58, %v5603_v59 }
 0x3e8   : > { %v3581_v41 = vadd.f32 %v3552_v23, %v14556_v13  ;;  %v10609_v36 = vpop.f32.mrb[209].mxu1  ;;  %v10766_v40 = vpop.f32.mrb[27].mxu0 }
 0x3e9   : > { %v3555_v25 = vpop.f32.mrb[210].mxu1 }
 0x3ea   : > { %v3582_v15 = vadd.f32 %v3555_v25, %v14565_v38  ;;  %v10610_v53 = vpop.f32.mrb[211].mxu1  ;;  %11076 = vmatmul.mubr.bf16.gmra.mrb[132].mxu0 %v5599_v34  ;;  %v14817_v5 = vadd.f32 %v14544_v16, %v3581_v41  ;;  %v4851_v38 = vrot.slane %v4806_v44, 2  ;;  %v5608_v34 = vsel %vm5559_vm12, %v5594_v56, %v5607_v27 }
 0x3eb   : > { %11079 = vmatprep.mubr.msk.bf16.mxu0 %vm11913_vm1, %v14319_v50  ;;  %v5343_v44 = vrot.slane %v14593_v42, 3 }
 0x3ec   : > { %10920 = vmatmul.mubr.bf16.gmra.mrb[60].mxu1 %v4847_v29  ;;  %v14822_v45 = vadd.f32 %v14550_v31, %v3582_v15  ;;  %v4852_v31 = vsel %vm2273_vm7, %v4847_v29, %v4851_v38 }
 0x3ed   : > { %v14824_v13 = vpop.f32.mrb[28].mxu0  ;;  %10923 = vmatprep.mubr.msk.bf16.mxu1 %vm11913_vm1, %v14319_v50 }
 0x3ee   : > { %v10769_v63 = vpop.f32.mrb[29].mxu0 }
 0x3ef   : > { %v3560_v23 = vpop.f32.mrb[212].mxu1  ;;  %v14829_v16 = vpop.f32.mrb[30].mxu0 }
 0x3f0   : > { %v3583_v41 = vadd.f32 %v3560_v23, %v14580_v28  ;;  %v10613_v36 = vpop.f32.mrb[213].mxu1  ;;  %v10770_v59 = vpop.f32.mrb[31].mxu0  ;;  %v5342_v23 = vrot.slane %v14562_v14, 3  ;;  %v11642_v14 = vld [vmem:[%s16433_s3 + $0x588] sm:$0xff]  }
 0x3f1   : > { %v3563_v58 = vpop.f32.mrb[214].mxu1 }
 0x3f2   : > { %v3584_v40 = vadd.f32 %v3563_v58, %v14585_v39  ;;  %v10614_v25 = vpop.f32.mrb[215].mxu1  ;;  %11080 = vmatmul.mubr.bf16.gmra.mrb[136].mxu0 %v5608_v34  ;;  %v14835_v15 = vadd.f32 %v14567_v51, %v3583_v41  ;;  %v11641_v51 = vld [vmem:[%s16433_s3 + $0x580] sm:$0xff]  }
 0x3f3   : > { %11151 = vmatprep.mubr.msk.bf16.mxu0 %vm11913_vm1, %v14319_v50  ;;  %v11636_v34 = vld [vmem:[%s16433_s3 + $0x4c0] sm:$0xff]  }
 0x3f4   : > { %10924 = vmatmul.mubr.bf16.gmra.mrb[64].mxu1 %v4852_v31  ;;  %v14840_v56 = vadd.f32 %v14572_v54, %v3584_v40 }
 0x3f5   : > { %v14842_v28 = vpop.f32.mrb[32].mxu0  ;;  %10995 = vmatprep.mubr.msk.bf16.mxu1 %vm11913_vm1, %v14319_v50 }
 0x3f6   : > { %v10841_v29 = vpop.f32.mrb[33].mxu0 }
 0x3f7   : > { %v4021_v53 = vpop.f32.mrb[216].mxu1  ;;  %v14846_v39 = vpop.f32.mrb[34].mxu0  ;;  %v5345_v29 = vrot.slane %v14630_v60, 3 }
 0x3f8   : > { %v4092_v27 = vadd.f32 %v4021_v53, %v14608_v2  ;;  %v10685_v38 = vpop.f32.mrb[217].mxu1  ;;  %v10842_v54 = vpop.f32.mrb[35].mxu0  ;;  %v5344_v2 = vsel %vm5341_vm0, %v5342_v23, %v5343_v44 }
 0x3f9   : > { %v4024_v63 = vpop.f32.mrb[218].mxu1  ;;  %v14887_v38 = vld [vmem:[#allocation3 + $0x90] sm:$0xff] }
 0x3fa   : > { %v4093_v41 = vadd.f32 %v4024_v63, %v14618_v33  ;;  %v10686_v36 = vpop.f32.mrb[219].mxu1  ;;  %11152 = vmatmul.mubr.bf16.vlgmr.msra.gmra.mrb[140].mxu0 %v14593_v42  ;;  %v14860_v59 = vadd.f32 %v14587_v49, %v4092_v27  ;;  %v11637_v49 = vld [vmem:[%s16433_s3 + $0x4c8] sm:$0xff]  }
 0x3fb   : > { %11155 = vmatprep.mubr.msk.bf16.mxu0 %vm11913_vm1, %v14319_v50  ;;  %11240 = vmatpush3.bf16.msra.mxu0 %v11641_v51 }
 0x3fc   : > { %10996 = vmatmul.mubr.bf16.vlgmr.msra.gmra.mrb[68].mxu1 %v5344_v2  ;;  %11241 = vmatprep.subr.bf16.mxu0 %v14319_v50  ;;  %v14870_v33 = vadd.f32 %v14591_v30, %v4093_v41  ;;  %v11644_v30 = vld [vmem:[%s16433_s3 + $0x590] sm:$0xff]   ;;  %v11645_v41 = vld [vmem:[%s16433_s3 + $0x598] sm:$0xff]  }
 0x3fd   : > { %11084 = vmatpush3.bf16.msra.mxu1 %v11636_v34  ;;  %v14872_v58 = vpop.f32.mrb[36].mxu0  ;;  %10999 = vmatprep.mubr.msk.bf16.mxu1 %vm11913_vm1, %v14319_v50  ;;  %v5346_v34 = vsel %vm5341_vm0, %v5343_v44, %v5345_v29 }
 0x3fe   : > { %v10845_v31 = vpop.f32.mrb[37].mxu0  ;;  %11085 = vmatprep.subr.bf16.mxu1 %v14319_v50  ;;  %v11638_v50 = vld [vmem:[%s16433_s3 + $0x4d0] sm:$0xff]  }
 0x3ff   : > { %v4029_v40 = vpop.f32.mrb[220].mxu1  ;;  %v14880_v25 = vpop.f32.mrb[38].mxu0  ;;  %11242 = vmatpush3.bf16.msra.mxu0 %v11642_v14 }
 0x400   : > { %v4094_v53 = vadd.f32 %v4029_v40, %v14645_v43  ;;  %v10689_v51 = vpop.f32.mrb[221].mxu1  ;;  %v10846_v27 = vpop.f32.mrb[39].mxu0  ;;  %11243 = vmatprep.subr.bf16.mxu0 %v14887_v38 }
 0x401   : > { %v4032_v54 = vpop.f32.mrb[222].mxu1  ;;  %11086 = vmatpush3.bf16.msra.mxu1 %v11637_v49  ;;  %v5347_v49 = vrot.slane %v14667_v55, 3  ;;  %v11640_v51 = vld [vmem:[%s16433_s3 + $0x4e0] sm:$0xff]  }
 0x402   : > { %v4095_v63 = vadd.f32 %v4032_v54, %v14655_v1  ;;  %v10690_v23 = vpop.f32.mrb[223].mxu1  ;;  %11156 = vmatmul.mubr.bf16.gmra.mrb[144].mxu0 %v14630_v60  ;;  %11087 = vmatprep.subr.bf16.mxu1 %v14887_v38  ;;  %v14897_v43 = vadd.f32 %v14620_v10, %v4094_v53  ;;  %v11639_v10 = vld [vmem:[%s16433_s3 + $0x4d8] sm:$0xff]  }
 0x403   : > { %11159 = vmatprep.mubr.msk.bf16.mxu0 %vm11913_vm1, %v14887_v38  ;;  %11244 = vmatpush3.bf16.msra.mxu0 %v11644_v30 }
 0x404   : > { %11000 = vmatmul.mubr.bf16.gmra.mrb[72].mxu1 %v5346_v34  ;;  %11245 = vmatprep.subr.bf16.mxu0 %v14887_v38  ;;  %v14907_v1 = vadd.f32 %v14628_v62, %v4095_v63  ;;  %v11647_v62 = vld [vmem:[%s16433_s3 + $0x5a0] sm:$0xff]   ;;  %v11648_v63 = vld [vmem:[%s16433_s3 + $0x5a8] sm:$0xff]  }
 0x405   : > { %v14909_v36 = vpop.f32.mrb[40].mxu0  ;;  %11003 = vmatprep.mubr.msk.bf16.mxu1 %vm11913_vm1, %v14887_v38  ;;  %11088 = vmatpush3.bf16.msra.mxu1 %v11638_v50 }
 0x406   : > { %v10849_v44 = vpop.f32.mrb[41].mxu0  ;;  %11089 = vmatprep.subr.bf16.mxu1 %v14887_v38 }
 0x407   : > { %v4037_v2 = vpop.f32.mrb[224].mxu1  ;;  %v14917_v14 = vpop.f32.mrb[42].mxu0  ;;  %11246 = vmatpush3.bf16.msra.mxu0 %v11645_v41 }
 0x408   : > { %v4096_v31 = vadd.f32 %v4037_v2, %v14682_v6  ;;  %v10693_v40 = vpop.f32.mrb[225].mxu1  ;;  %v10850_v30 = vpop.f32.mrb[43].mxu0  ;;  %11247 = vmatprep.subr.bf16.mxu0 %v14887_v38  ;;  %v5348_v6 = vsel %vm5341_vm0, %v5345_v29, %v5347_v49 }
 0x409   : > { %v4040_v53 = vpop.f32.mrb[226].mxu1  ;;  %11090 = vmatpush3.bf16.msra.mxu1 %v11639_v10  ;;  %v5349_v10 = vrot.slane %v14704_v19, 3  ;;  %v11646_v40 = vld [vmem:[%s16433_s3 + $0x4f0] sm:$0xff]  }
 0x40a   : > { %v4097_v27 = vadd.f32 %v4040_v53, %v14692_v3  ;;  %v10694_v54 = vpop.f32.mrb[227].mxu1  ;;  %11160 = vmatmul.mubr.bf16.gmra.mrb[148].mxu0 %v14667_v55  ;;  %11091 = vmatprep.subr.bf16.mxu1 %v14887_v38  ;;  %v14932_v50 = vadd.f32 %v14657_v52, %v4096_v31  ;;  %v11643_v52 = vld [vmem:[%s16433_s3 + $0x4e8] sm:$0xff]  }
 0x40b   : > { %11163 = vmatprep.mubr.msk.bf16.mxu0 %vm11913_vm1, %v14887_v38  ;;  %11248 = vmatpush3.bf16.msra.mxu0 %v11647_v62 }
 0x40c   : > { %11004 = vmatmul.mubr.bf16.gmra.mrb[76].mxu1 %v5348_v6  ;;  %11249 = vmatprep.subr.bf16.mxu0 %v14887_v38  ;;  %v14942_v3 = vadd.f32 %v14665_v61, %v4097_v27  ;;  %v11650_v61 = vld [vmem:[%s16433_s3 + $0x5b0] sm:$0xff]   ;;  %v11651_v27 = vld [vmem:[%s16433_s3 + $0x5b8] sm:$0xff]  }
 0x40d   : > { %v14944_v23 = vpop.f32.mrb[44].mxu0  ;;  %11007 = vmatprep.mubr.msk.bf16.mxu1 %vm11913_vm1, %v14887_v38  ;;  %11092 = vmatpush3.bf16.msra.mxu1 %v11640_v51 }
 0x40e   : > { %v10853_v29 = vpop.f32.mrb[45].mxu0  ;;  %11093 = vmatprep.subr.bf16.mxu1 %v14887_v38 }
 0x40f   : > { %v4045_v34 = vpop.f32.mrb[228].mxu1  ;;  %v14952_v41 = vpop.f32.mrb[46].mxu0  ;;  %11250 = vmatpush3.bf16.msra.mxu0 %v11648_v63 }
 0x410   : > { %v4098_v44 = vadd.f32 %v4045_v34, %v14719_v8  ;;  %v10697_v2 = vpop.f32.mrb[229].mxu1  ;;  %v10854_v62 = vpop.f32.mrb[47].mxu0  ;;  %11251 = vmatprep.subr.bf16.mxu0 %v14887_v38  ;;  %v5350_v8 = vsel %vm5341_vm0, %v5347_v49, %v5349_v10 }
 0x411   : > { %v4048_v31 = vpop.f32.mrb[230].mxu1  ;;  %11094 = vmatpush3.bf16.msra.mxu1 %v11643_v52  ;;  %v5351_v52 = vrot.slane %v14741_v22, 3 }
 0x412   : > { %v4099_v30 = vadd.f32 %v4048_v31, %v14729_v17  ;;  %v10698_v53 = vpop.f32.mrb[231].mxu1  ;;  %11164 = vmatmul.mubr.bf16.gmra.mrb[152].mxu0 %v14704_v19  ;;  %11095 = vmatprep.subr.bf16.mxu1 %v14887_v38  ;;  %v14967_v51 = vadd.f32 %v14694_v9, %v4098_v44  ;;  %v11649_v9 = vld [vmem:[%s16433_s3 + $0x4f8] sm:$0xff]  }
 0x413   : > { %11167 = vmatprep.mubr.msk.bf16.mxu0 %vm11913_vm1, %v14887_v38  ;;  %11252 = vmatpush3.bf16.msra.mxu0 %v11650_v61  ;;  %v5352_v31 = vsel %vm5341_vm0, %v5349_v10, %v5351_v52 }
 0x414   : > { %11008 = vmatmul.mubr.bf16.gmra.mrb[80].mxu1 %v5350_v8  ;;  %11253 = vmatprep.subr.bf16.mxu0 %v14887_v38  ;;  %v14977_v17 = vadd.f32 %v14702_v0, %v4099_v30 }
 0x415   : > { %v14979_v54 = vpop.f32.mrb[48].mxu0  ;;  %11011 = vmatprep.mubr.msk.bf16.mxu1 %vm11913_vm1, %v14887_v38  ;;  %11096 = vmatpush3.bf16.msra.mxu1 %v11646_v40 }
 0x416   : > { %v10857_v49 = vpop.f32.mrb[49].mxu0  ;;  %11097 = vmatprep.subr.bf16.mxu1 %v14887_v38 }
 0x417   : > { %v4053_v6 = vpop.f32.mrb[232].mxu1  ;;  %v14987_v63 = vpop.f32.mrb[50].mxu0  ;;  %11254 = vmatpush3.bf16.msra.mxu0 %v11651_v27 }
 0x418   : > { %v4100_v0 = vadd.f32 %v4053_v6, %v14750_v11  ;;  %v10701_v29 = vpop.f32.mrb[233].mxu1  ;;  %v10858_v34 = vpop.f32.mrb[51].mxu0  ;;  %11343 = vmatprep.subr.bf16.mxu0 %v14887_v38 }
 0x419   : > { %v4056_v61 = vpop.f32.mrb[234].mxu1  ;;  %11098 = vmatpush3.bf16.msra.mxu1 %v11649_v9 }
 0x41a   : > { %v4101_v44 = vadd.f32 %v4056_v61, %v14756_v12  ;;  %v10702_v2 = vpop.f32.mrb[235].mxu1  ;;  %11168 = vmatmul.mubr.bf16.gmra.mrb[156].mxu0 %v14741_v22  ;;  %11187 = vmatprep.subr.bf16.mxu1 %v14887_v38  ;;  %v14996_v62 = vadd.f32 %v14731_v26, %v4100_v0  ;;  %v5353_v26 = vrot.slane %v14764_v7, 3 }
 0x41b   : > { %11171 = vmatprep.mubr.msk.bf16.mxu0 %vm11913_vm1, %v14887_v38 }
 0x41c   : > { %11012 = vmatmul.mubr.bf16.gmra.mrb[84].mxu1 %v5352_v31  ;;  %v15002_v11 = vadd.f32 %v14739_v24, %v4101_v44  ;;  %v5354_v0 = vsel %vm5341_vm0, %v5351_v52, %v5353_v26 }
 0x41d   : > { %v15004_v40 = vpop.f32.mrb[52].mxu0  ;;  %11015 = vmatprep.mubr.msk.bf16.mxu1 %vm11913_vm1, %v14887_v38 }
 0x41e   : > { %v10861_v12 = vpop.f32.mrb[53].mxu0 }
 0x41f   : > { %v4061_v30 = vpop.f32.mrb[236].mxu1  ;;  %v15008_v53 = vpop.f32.mrb[54].mxu0 }
 0x420   : > { %v4102_v10 = vadd.f32 %v4061_v30, %v14773_v32  ;;  %v10705_v8 = vpop.f32.mrb[237].mxu1  ;;  %v10862_v27 = vpop.f32.mrb[55].mxu0 }
 0x421   : > { %v4064_v9 = vpop.f32.mrb[238].mxu1 }
 0x422   : > { %v4103_v49 = vadd.f32 %v4064_v9, %v14779_v4  ;;  %v10706_v24 = vpop.f32.mrb[239].mxu1  ;;  %11172 = vmatmul.mubr.bf16.gmra.mrb[160].mxu0 %v14764_v7  ;;  %v15015_v6 = vadd.f32 %v14758_v37, %v4102_v10  ;;  %v5355_v37 = vrot.slane %v14787_v20, 3 }
 0x423   : > { %11175 = vmatprep.mubr.msk.bf16.mxu0 %vm11913_vm1, %v14887_v38 }
 0x424   : > { %11016 = vmatmul.mubr.bf16.gmra.mrb[88].mxu1 %v5354_v0  ;;  %v15021_v29 = vadd.f32 %v14762_v46, %v4103_v49  ;;  %v5356_v10 = vsel %vm5341_vm0, %v5353_v26, %v5355_v37 }
 0x425   : > { %v15023_v32 = vpop.f32.mrb[56].mxu0  ;;  %11019 = vmatprep.mubr.msk.bf16.mxu1 %vm11913_vm1, %v14887_v38 }
 0x426   : > { %v10865_v4 = vpop.f32.mrb[57].mxu0 }
 0x427   : > { %v4069_v34 = vpop.f32.mrb[240].mxu1  ;;  %v15027_v61 = vpop.f32.mrb[58].mxu0 }
 0x428   : > { %v4104_v52 = vadd.f32 %v4069_v34, %v14797_v57  ;;  %v10709_v44 = vpop.f32.mrb[241].mxu1  ;;  %v10866_v2 = vpop.f32.mrb[59].mxu0 }
 0x429   : > { %v4072_v31 = vpop.f32.mrb[242].mxu1 }
 0x42a   : > { %v4105_v12 = vadd.f32 %v4072_v31, %v14805_v48  ;;  %v10710_v46 = vpop.f32.mrb[243].mxu1  ;;  %11176 = vmatmul.mubr.bf16.gmra.mrb[164].mxu0 %v14787_v20  ;;  %v15034_v30 = vadd.f32 %v14781_v35, %v4104_v52 }
 0x42b   : > { %11179 = vmatprep.mubr.msk.bf16.mxu0 %vm11913_vm1, %v14887_v38 }
 0x42c   : > { %11020 = vmatmul.mubr.bf16.gmra.mrb[92].mxu1 %v5356_v10  ;;  %v15040_v8 = vadd.f32 %v14785_v18, %v4105_v12 }
 0x42d   : > { %v15042_v57 = vpop.f32.mrb[60].mxu0  ;;  %11023 = vmatprep.mubr.msk.bf16.mxu1 %vm11913_vm1, %v14887_v38 }
 0x42e   : > { %v10869_v48 = vpop.f32.mrb[61].mxu0 }
 0x42f   : > { %v4077_v27 = vpop.f32.mrb[244].mxu1  ;;  %v15046_v9 = vpop.f32.mrb[62].mxu0 }
 0x430   : > { %v4106_v35 = vadd.f32 %v4077_v27, %v14817_v5  ;;  %v10713_v49 = vpop.f32.mrb[245].mxu1  ;;  %v10870_v26 = vpop.f32.mrb[63].mxu0  ;;  %v16668_v5 = vld [vmem:[#allocation10_spill] sm:$0xff] }
 0x431   : > { %v4080_v24 = vpop.f32.mrb[246].mxu1  ;;  %v11840_v26 = vld [vmem:[#allocation2 + $0x18] sm:$0xfe] }
 0x432   : > { %v4107_v0 = vadd.f32 %v4080_v24, %v14822_v45  ;;  %v10714_v4 = vpop.f32.mrb[247].mxu1  ;;  %11180 = vmatmul.mubr.bf16.gmra.mrb[168].mxu0 %v14787_v20  ;;  %v15052_v18 = vadd.f32 %v14807_v21, %v4106_v35  ;;  %v5359_v45 = vrot.slane %v16668_v5, 3  ;;  %v6508_v24 = vrot.slane %v11840_v26, 1 }
 0x433   : > { %11183 = vmatprep.mubr.msk.bf16.mxu0 %vm11913_vm1, %v14887_v38  ;;  %v5789_v4 = vld [vmem:[#allocation2 + $0x10] sm:$0xf0] }
 0x434   : > { %11024 = vmatmul.mubr.bf16.gmra.mrb[96].mxu1 %v5355_v37  ;;  %v15057_v34 = vadd.f32 %v14811_v47, %v4107_v0  ;;  %v5360_v48 = vsel %vm5341_vm0, %v5355_v37, %v5359_v45  ;;  %v11841_v37 = vld [vmem:[#allocation2 + $0x20] sm:$0xff]  ;;  %v5810_v45 = vrot.slane %v14593_v42, 4 }
 0x435   : > { %v15059_v52 = vpop.f32.mrb[64].mxu0  ;;  %11027 = vmatprep.mubr.msk.bf16.mxu1 %vm11913_vm1, %v14887_v38  ;;  %v6509_v0 = vrot.slane %v11841_v37, 1 }
 0x436   : > { %v10873_v44 = vpop.f32.mrb[65].mxu0 }
 0x437   : > { %v4085_v2 = vpop.f32.mrb[248].mxu1  ;;  %v15064_v31 = vpop.f32.mrb[66].mxu0 }
 0x438   : > { %v4108_v21 = vadd.f32 %v4085_v2, %v14835_v15  ;;  %v10717_v12 = vpop.f32.mrb[249].mxu1  ;;  %v10874_v46 = vpop.f32.mrb[67].mxu0 }
 0x439   : > { %v4088_v10 = vpop.f32.mrb[250].mxu1  ;;  %v6510_v46 = vsel %vm1805_vm2, %v6508_v24, %v6509_v0 }
 0x43a   : > { %v4109_v47 = vadd.f32 %v4088_v10, %v14840_v56  ;;  %v10718_v27 = vpop.f32.mrb[251].mxu1  ;;  %11184 = vmatmul.mubr.bf16.gmra.mrb[172].mxu0 %v14787_v20  ;;  %v15071_v35 = vadd.f32 %v14824_v13, %v4108_v21  ;;  %v5809_v10 = vrot.slane %v5789_v4, 4 }
 0x43b   : > { %11255 = vmatprep.mubr.msk.bf16.mxu0 %vm11913_vm1, %v14887_v38 }
 0x43c   : > { %11028 = vmatmul.mubr.bf16.gmra.mrb[100].mxu1 %v5360_v48  ;;  %v15076_v49 = vadd.f32 %v14829_v16, %v4109_v47  ;;  %v11657_v16 = vld [vmem:[%s16433_s3 + $0x600] sm:$0xff]   ;;  %v5811_v26 = vsel %vm3622_vm13, %v5809_v10, %v5810_v45 }
 0x43d   : > { %v15078_v15 = vpop.f32.mrb[68].mxu0  ;;  %11099 = vmatprep.mubr.msk.bf16.mxu1 %vm11913_vm1, %v14887_v38  ;;  %v11652_v48 = vld [vmem:[%s16433_s3 + $0x540] sm:$0xff]  }
 0x43e   : > { %v10945_v56 = vpop.f32.mrb[69].mxu0 }
 0x43f   : > { %v4489_v13 = vpop.f32.mrb[252].mxu1  ;;  %v15082_v5 = vpop.f32.mrb[70].mxu0  ;;  %v11653_v56 = vld [vmem:[%s16433_s3 + $0x548] sm:$0xff]  }
 0x440   : > { %v4560_v44 = vadd.f32 %v4489_v13, %v14860_v59  ;;  %v10789_v2 = vpop.f32.mrb[253].mxu1  ;;  %v10946_v21 = vpop.f32.mrb[71].mxu0  ;;  %v11658_v59 = vld [vmem:[%s16433_s3 + $0x608] sm:$0xff]  }
 0x441   : > { %v4492_v12 = vpop.f32.mrb[254].mxu1 }
 0x442   : > { %v4561_v47 = vadd.f32 %v4492_v12, %v14870_v33  ;;  %v10790_v27 = vpop.f32.mrb[255].mxu1  ;;  %11256 = vmatmul.mubr.bf16.vlgmr.msra.gmra.mrb[176].mxu0 %v6510_v46  ;;  %v15095_v42 = vadd.f32 %v14842_v28, %v4560_v44  ;;  %v11842_v28 = vld [vmem:[#allocation2 + $0x28] sm:$0xff] }
 0x443   : > { %11259 = vmatprep.mubr.msk.bf16.mxu0 %vm11913_vm1, %v14887_v38  ;;  %11344 = vmatpush3.bf16.msra.mxu0 %v11657_v16  ;;  %v6511_v37 = vrot.slane %v11842_v28, 1  ;;  %v11660_v44 = vld [vmem:[%s16433_s3 + $0x610] sm:$0xff]  }
 0x444   : > { %11100 = vmatmul.mubr.bf16.vlgmr.msra.gmra.mrb[104].mxu1 %v5811_v26  ;;  %11345 = vmatprep.subr.bf16.mxu0 %v14887_v38  ;;  %v15105_v33 = vadd.f32 %v14846_v39, %v4561_v47  ;;  %v5812_v39 = vrot.slane %v14630_v60, 4 }
 0x445   : > { %11188 = vmatpush3.bf16.msra.mxu1 %v11652_v48  ;;  %v15107_v24 = vpop.f32.mrb[72].mxu0  ;;  %11103 = vmatprep.mubr.msk.bf16.mxu1 %vm11913_vm1, %v14887_v38  ;;  %v6512_v10 = vsel %vm1805_vm2, %v6509_v0, %v6511_v37  ;;  %v11654_v48 = vld [vmem:[%s16433_s3 + $0x550] sm:$0xff]   ;;  %v11661_v0 = vld [vmem:[%s16433_s3 + $0x618] sm:$0xff]  }
 0x446   : > { %v10949_v4 = vpop.f32.mrb[73].mxu0  ;;  %11189 = vmatprep.subr.bf16.mxu1 %v14887_v38  ;;  %v5813_v27 = vsel %vm3622_vm13, %v5810_v45, %v5812_v39  ;;  %v11655_v45 = vld [vmem:[%s16433_s3 + $0x558] sm:$0xff]  }
 0x447   : > { %v4497_v13 = vpop.f32.mrb[0].mxu1  ;;  %v15115_v16 = vpop.f32.mrb[74].mxu0  ;;  %11346 = vmatpush3.bf16.msra.mxu0 %v11658_v59 }
 0x448   : > { %v4562_v2 = vadd.f32 %v4497_v13, %v14897_v43  ;;  %v10793_v21 = vpop.f32.mrb[1].mxu1  ;;  %v10950_v12 = vpop.f32.mrb[75].mxu0  ;;  %11347 = vmatprep.subr.bf16.mxu0 %v14887_v38  ;;  %v11663_v13 = vld [vmem:[%s16433_s3 + $0x620] sm:$0xff]  }
 0x449   : > { %v4500_v46 = vpop.f32.mrb[2].mxu1  ;;  %11190 = vmatpush3.bf16.msra.mxu1 %v11653_v56 }
 0x44a   : > { %v4563_v60 = vadd.f32 %v4500_v46, %v14907_v1  ;;  %v10794_v47 = vpop.f32.mrb[3].mxu1  ;;  %11260 = vmatmul.mubr.bf16.gmra.mrb[180].mxu0 %v6512_v10  ;;  %11191 = vmatprep.subr.bf16.mxu1 %v14887_v38  ;;  %v15130_v43 = vadd.f32 %v14872_v58, %v4562_v2  ;;  %v11843_v58 = vld [vmem:[#allocation2 + $0x30] sm:$0xff]  ;;  %v11656_v10 = vld [vmem:[%s16433_s3 + $0x560] sm:$0xff]  }
 0x44b   : > { %11263 = vmatprep.mubr.msk.bf16.mxu0 %vm11913_vm1, %v14887_v38  ;;  %11348 = vmatpush3.bf16.msra.mxu0 %v11660_v44  ;;  %v6513_v59 = vrot.slane %v11843_v58, 1 }
 0x44c   : > { %11104 = vmatmul.mubr.bf16.gmra.mrb[108].mxu1 %v5813_v27  ;;  %11349 = vmatprep.subr.bf16.mxu0 %v14887_v38  ;;  %v15140_v1 = vadd.f32 %v14880_v25, %v4563_v60  ;;  %v5814_v25 = vrot.slane %v14667_v55, 4 }
 0x44d   : > { %v15142_v26 = vpop.f32.mrb[76].mxu0  ;;  %11107 = vmatprep.mubr.msk.bf16.mxu1 %vm11913_vm1, %v14887_v38  ;;  %11192 = vmatpush3.bf16.msra.mxu1 %v11654_v48  ;;  %v6514_v46 = vsel %vm1805_vm2, %v6511_v37, %v6513_v59  ;;  %v11664_v37 = vld [vmem:[%s16433_s3 + $0x628] sm:$0xff]  }
 0x44e   : > { %v10953_v28 = vpop.f32.mrb[77].mxu0  ;;  %11193 = vmatprep.subr.bf16.mxu1 %v14887_v38  ;;  %v5815_v60 = vsel %vm3622_vm13, %v5812_v39, %v5814_v25  ;;  %v11659_v39 = vld [vmem:[%s16433_s3 + $0x568] sm:$0xff]  }
 0x44f   : > { %v4505_v56 = vpop.f32.mrb[4].mxu1  ;;  %v15150_v4 = vpop.f32.mrb[78].mxu0  ;;  %11350 = vmatpush3.bf16.msra.mxu0 %v11661_v0  ;;  %v11666_v28 = vld [vmem:[%s16433_s3 + $0x630] sm:$0xff]  }
 0x450   : > { %v4564_v44 = vadd.f32 %v4505_v56, %v14932_v50  ;;  %v10797_v2 = vpop.f32.mrb[5].mxu1  ;;  %v10954_v21 = vpop.f32.mrb[79].mxu0  ;;  %11351 = vmatprep.subr.bf16.mxu0 %v14887_v38 }
 0x451   : > { %v4508_v12 = vpop.f32.mrb[6].mxu1  ;;  %11194 = vmatpush3.bf16.msra.mxu1 %v11655_v45 }
 0x452   : > { %v4565_v55 = vadd.f32 %v4508_v12, %v14942_v3  ;;  %v10798_v48 = vpop.f32.mrb[7].mxu1  ;;  %11264 = vmatmul.mubr.bf16.gmra.mrb[184].mxu0 %v6514_v46  ;;  %11195 = vmatprep.subr.bf16.mxu1 %v14887_v38  ;;  %v15165_v50 = vadd.f32 %v14909_v36, %v4564_v44  ;;  %v11844_v36 = vld [vmem:[#allocation2 + $0x38] sm:$0xff]  ;;  %v11662_v12 = vld [vmem:[%s16433_s3 + $0x570] sm:$0xff]  }
 0x453   : > { %11267 = vmatprep.mubr.msk.bf16.mxu0 %vm11913_vm1, %v14887_v38  ;;  %11352 = vmatpush3.bf16.msra.mxu0 %v11663_v13  ;;  %v6515_v27 = vrot.slane %v11844_v36, 1 }
 0x454   : > { %11108 = vmatmul.mubr.bf16.gmra.mrb[112].mxu1 %v5815_v60  ;;  %11353 = vmatprep.subr.bf16.mxu0 %v14887_v38  ;;  %v15175_v3 = vadd.f32 %v14917_v14, %v4565_v55  ;;  %v5816_v14 = vrot.slane %v14704_v19, 4 }
 0x455   : > { %v15177_v47 = vpop.f32.mrb[80].mxu0  ;;  %11111 = vmatprep.mubr.msk.bf16.mxu1 %vm11913_vm1, %v14887_v38  ;;  %11196 = vmatpush3.bf16.msra.mxu1 %v11656_v10  ;;  %v6516_v21 = vsel %vm1805_vm2, %v6513_v59, %v6515_v27  ;;  %v11667_v59 = vld [vmem:[%s16433_s3 + $0x638] sm:$0xff]  }
 0x456   : > { %v10957_v0 = vpop.f32.mrb[81].mxu0  ;;  %11197 = vmatprep.subr.bf16.mxu1 %v14887_v38  ;;  %v5817_v10 = vsel %vm3622_vm13, %v5814_v25, %v5816_v14  ;;  %v11665_v25 = vld [vmem:[%s16433_s3 + $0x578] sm:$0xff]  }
 0x457   : > { %v4513_v58 = vpop.f32.mrb[8].mxu1  ;;  %v15185_v45 = vpop.f32.mrb[82].mxu0  ;;  %11354 = vmatpush3.bf16.msra.mxu0 %v11664_v37 }
 0x458   : > { %v4566_v56 = vadd.f32 %v4513_v58, %v14967_v51  ;;  %v10801_v13 = vpop.f32.mrb[9].mxu1  ;;  %v10958_v44 = vpop.f32.mrb[83].mxu0  ;;  %11355 = vmatprep.subr.bf16.mxu0 %v14887_v38 }
 0x459   : > { %v4516_v2 = vpop.f32.mrb[10].mxu1  ;;  %11198 = vmatpush3.bf16.msra.mxu1 %v11659_v39 }
 0x45a   : > { %v4567_v19 = vadd.f32 %v4516_v2, %v14977_v17  ;;  %v10802_v46 = vpop.f32.mrb[11].mxu1  ;;  %11268 = vmatmul.mubr.bf16.gmra.mrb[188].mxu0 %v6516_v21  ;;  %11199 = vmatprep.subr.bf16.mxu1 %v14887_v38  ;;  %v15200_v51 = vadd.f32 %v14944_v23, %v4566_v56  ;;  %v11845_v23 = vld [vmem:[#allocation2 + $0x40] sm:$0xff] }
 0x45b   : > { %11271 = vmatprep.mubr.msk.bf16.mxu0 %vm11913_vm1, %v14887_v38  ;;  %11356 = vmatpush3.bf16.msra.mxu0 %v11666_v28  ;;  %v6517_v48 = vrot.slane %v11845_v23, 1 }
 0x45c   : > { %11112 = vmatmul.mubr.bf16.gmra.mrb[116].mxu1 %v5817_v10  ;;  %11357 = vmatprep.subr.bf16.mxu0 %v14887_v38  ;;  %v15210_v17 = vadd.f32 %v14952_v41, %v4567_v19  ;;  %v5818_v41 = vrot.slane %v14741_v22, 4 }
 0x45d   : > { %v15212_v55 = vpop.f32.mrb[84].mxu0  ;;  %11115 = vmatprep.mubr.msk.bf16.mxu1 %vm11913_vm1, %v14887_v38  ;;  %11200 = vmatpush3.bf16.msra.mxu1 %v11662_v12  ;;  %v6518_v56 = vsel %vm1805_vm2, %v6515_v27, %v6517_v48 }
 0x45e   : > { %v10961_v60 = vpop.f32.mrb[85].mxu0  ;;  %11201 = vmatprep.subr.bf16.mxu1 %v14887_v38  ;;  %v5819_v22 = vsel %vm3622_vm13, %v5816_v14, %v5818_v41  ;;  %v5820_v14 = vrot.slane %v14764_v7, 4 }
 0x45f   : > { %v4521_v37 = vpop.f32.mrb[12].mxu1  ;;  %v15220_v36 = vpop.f32.mrb[86].mxu0  ;;  %11358 = vmatpush3.bf16.msra.mxu0 %v11667_v59 }
 0x460   : > { %v4568_v39 = vadd.f32 %v4521_v37, %v14996_v62  ;;  %v10805_v0 = vpop.f32.mrb[13].mxu1  ;;  %v10962_v58 = vpop.f32.mrb[87].mxu0  ;;  %v5821_v37 = vsel %vm3622_vm13, %v5818_v41, %v5820_v14 }
 0x461   : > { %v4524_v28 = vpop.f32.mrb[14].mxu1  ;;  %11202 = vmatpush3.bf16.msra.mxu1 %v11665_v25 }
 0x462   : > { %v4569_v13 = vadd.f32 %v4524_v28, %v15002_v11  ;;  %v10806_v44 = vpop.f32.mrb[15].mxu1  ;;  %11272 = vmatmul.mubr.bf16.gmra.mrb[192].mxu0 %v6518_v56  ;;  %11291 = vmatprep.subr.bf16.mxu1 %v14887_v38  ;;  %v15228_v2 = vadd.f32 %v14979_v54, %v4568_v39  ;;  %v6519_v11 = vrot.slane %v14787_v20, 1 }
 0x463   : > { %11275 = vmatprep.mubr.msk.bf16.mxu0 %vm11913_vm1, %v14887_v38 }
 0x464   : > { %11116 = vmatmul.mubr.bf16.gmra.mrb[120].mxu1 %v5819_v22  ;;  %v15234_v62 = vadd.f32 %v14987_v63, %v4569_v13  ;;  %v6520_v63 = vsel %vm1805_vm2, %v6517_v48, %v6519_v11 }
 0x465   : > { %v15236_v27 = vpop.f32.mrb[88].mxu0  ;;  %11119 = vmatprep.mubr.msk.bf16.mxu1 %vm11913_vm1, %v14887_v38 }
 0x466   : > { %v10965_v21 = vpop.f32.mrb[89].mxu0 }
 0x467   : > { %v4529_v12 = vpop.f32.mrb[16].mxu1  ;;  %v15241_v54 = vpop.f32.mrb[90].mxu0 }
 0x468   : > { %v4570_v19 = vadd.f32 %v4529_v12, %v15015_v6  ;;  %v10809_v46 = vpop.f32.mrb[17].mxu1  ;;  %v10966_v10 = vpop.f32.mrb[91].mxu0 }
 0x469   : > { %v4532_v59 = vpop.f32.mrb[18].mxu1 }
 0x46a   : > { %v4571_v23 = vadd.f32 %v4532_v59, %v15021_v29  ;;  %v10810_v25 = vpop.f32.mrb[19].mxu1  ;;  %11276 = vmatmul.mubr.bf16.gmra.mrb[196].mxu0 %v6520_v63  ;;  %v15248_v60 = vadd.f32 %v15004_v40, %v4570_v19  ;;  %v5822_v40 = vrot.slane %v14787_v20, 4  ;;  %v15281_v19 = vld [vmem:[#allocation2 + $0x60] sm:$0x1] }
 0x46b   : > { %11279 = vmatprep.mubr.msk.bf16.mxu0 %vm11913_vm1, %v14887_v38  ;;  %v6525_v63 = vrot.slane %v15281_v19, 1 }
 0x46c   : > { %11120 = vmatmul.mubr.bf16.gmra.mrb[124].mxu1 %v5821_v37  ;;  %v15254_v7 = vadd.f32 %v15008_v53, %v4571_v23  ;;  %v5823_v44 = vsel %vm3622_vm13, %v5820_v14, %v5822_v40  ;;  %v6197_v23 = vld [vmem:[#allocation2 + $0x18] sm:$0xff] }
 0x46d   : > { %v15256_v6 = vpop.f32.mrb[92].mxu0  ;;  %11123 = vmatprep.mubr.msk.bf16.mxu1 %vm11913_vm1, %v14887_v38 }
 0x46e   : > { %v10969_v29 = vpop.f32.mrb[93].mxu0 }
 0x46f   : > { %v4537_v48 = vpop.f32.mrb[20].mxu1  ;;  %v15260_v39 = vpop.f32.mrb[94].mxu0 }
 0x470   : > { %v4572_v41 = vadd.f32 %v4537_v48, %v15034_v30  ;;  %v10813_v0 = vpop.f32.mrb[21].mxu1  ;;  %v10970_v58 = vpop.f32.mrb[95].mxu0  ;;  %v6526_v48 = vsel %vm1805_vm2, %v6519_v11, %v6525_v63 }
 0x471   : > { %v4540_v28 = vpop.f32.mrb[22].mxu1  ;;  %v6227_v0 = vshll.u32 %v6197_v23, 16 }
 0x472   : > { %v4573_v56 = vadd.f32 %v4540_v28, %v15040_v8  ;;  %v10814_v53 = vpop.f32.mrb[23].mxu1  ;;  %11280 = vmatmul.mubr.bf16.gmra.mrb[200].mxu0 %v6519_v11  ;;  %v15266_v13 = vadd.f32 %v15023_v32, %v4572_v41 }
 0x473   : > { %11283 = vmatprep.mubr.msk.bf16.mxu0 %vm11913_vm1, %v14887_v38 }
 0x474   : > { %11124 = vmatmul.mubr.bf16.gmra.mrb[128].mxu1 %v5823_v44  ;;  %v15272_v20 = vadd.f32 %v15027_v61, %v4573_v56 }
 0x475   : > { %11127 = vmatprep.mubr.msk.bf16.mxu1 %vm11913_vm1, %v14887_v38  ;;  %v15276_v30 = vpop.f32.mrb[96].mxu0 }
 0x476   : > { %v10973_v8 = vpop.f32.mrb[97].mxu0 }
 0x477   : > { %v4545_v22 = vpop.f32.mrb[24].mxu1  ;;  %v15278_v21 = vpop.f32.mrb[98].mxu0 }
 0x478   : > { %v4574_v32 = vadd.f32 %v4545_v22, %v15052_v18  ;;  %v10817_v12 = vpop.f32.mrb[25].mxu1  ;;  %v10974_v14 = vpop.f32.mrb[99].mxu0  ;;  %v6954_v22 = vld [vmem:[#allocation2 + $0x18] sm:$0xfc] }
 0x479   : > { %v4548_v46 = vpop.f32.mrb[26].mxu1  ;;  %v6974_v14 = vrot.slane %v6954_v22, 2 }
 0x47a   : > { %v4575_v10 = vadd.f32 %v4548_v46, %v15057_v34  ;;  %v10818_v61 = vpop.f32.mrb[27].mxu1  ;;  %11284 = vmatmul.mubr.bf16.gmra.mrb[204].mxu0 %v6519_v11  ;;  %v15285_v59 = vadd.f32 %v15042_v57, %v4574_v32  ;;  %v16669_v34 = vld [vmem:[#allocation12_spill] sm:$0xff]  ;;  %v6229_v11 = vrot.slane %v6227_v0, 1 }
 0x47b   : > { %11287 = vmatprep.mubr.msk.bf16.mxu0 %vm11913_vm1, %v14887_v38  ;;  %v5826_v37 = vrot.slane %v16669_v34, 4 }
 0x47c   : > { %11128 = vmatmul.mubr.bf16.gmra.mrb[132].mxu1 %v5822_v40  ;;  %v15291_v18 = vadd.f32 %v15046_v9, %v4575_v10 }
 0x47d   : > { %v15293_v25 = vpop.f32.mrb[100].mxu0  ;;  %11131 = vmatprep.mubr.msk.bf16.mxu1 %vm11913_vm1, %v14887_v38  ;;  %v5827_v53 = vsel %vm3622_vm13, %v5822_v40, %v5826_v37 }
 0x47e   : > { %v10977_v29 = vpop.f32.mrb[101].mxu0 }
 0x47f   : > { %v4553_v57 = vpop.f32.mrb[28].mxu1  ;;  %v15299_v41 = vpop.f32.mrb[102].mxu0  ;;  %v16670_v29 = vld [vmem:[#allocation56_spill] sm:$0xff] }
 0x480   : > { %v4576_v58 = vadd.f32 %v4553_v57, %v15071_v35  ;;  %v10821_v28 = vpop.f32.mrb[29].mxu1  ;;  %v10978_v56 = vpop.f32.mrb[103].mxu0 }
 0x481   : > { %v4556_v9 = vpop.f32.mrb[30].mxu1  ;;  %v16672_v28 = vld [vmem:[#allocation57_spill] sm:$0xff] }
 0x482   : > { %v4577_v44 = vadd.f32 %v4556_v9, %v15076_v49  ;;  %v10822_v8 = vpop.f32.mrb[31].mxu1  ;;  %11288 = vmatmul.mubr.bf16.gmra.mrb[208].mxu0 %v6526_v48  ;;  %v15305_v32 = vadd.f32 %v15059_v52, %v4576_v58  ;;  %v6225_v49 = vshrl.u32 %v6197_v23, 16  ;;  %v11668_v48 = vld [vmem:[%s16433_s3 + $0x5c0] sm:$0xff]  }
 0x483   : > { %11359 = vmatprep.mubr.msk.bf16.mxu0 %vm11913_vm1, %v14887_v38 }
 0x484   : > { %11132 = vmatmul.mubr.bf16.gmra.mrb[136].mxu1 %v5827_v53  ;;  %v15310_v35 = vadd.f32 %v15064_v31, %v4577_v44  ;;  %v6230_v52 = vor.u32 %v6229_v11, %v6225_v49  ;;  %v16671_v31 = vrot.slane %v16670_v29, 2 }
 0x485   : > { %v15312_v12 = vpop.f32.mrb[104].mxu0  ;;  %11203 = vmatprep.mubr.msk.bf16.mxu1 %vm11913_vm1, %v14887_v38 }
 0x486   : > { %v11049_v40 = vpop.f32.mrb[105].mxu0  ;;  %v6976_v57 = vsel %vm2273_vm7, %v6974_v14, %v16671_v31  ;;  %v11670_v14 = vld [vmem:[%s16433_s3 + $0x5d0] sm:$0xff]  }
 0x487   : > { %v4944_v46 = vpop.f32.mrb[32].mxu1  ;;  %v15316_v10 = vpop.f32.mrb[106].mxu0 }
 0x488   : > { %v5015_v61 = vadd.f32 %v4944_v46, %v15095_v42  ;;  %v10893_v63 = vpop.f32.mrb[33].mxu1  ;;  %v11050_v34 = vpop.f32.mrb[107].mxu0  ;;  %v6235_v42 = vsel %vm1385_vm3, %v6230_v52, %v16672_v28  ;;  %v16673_v46 = vld [vmem:[#allocation58_spill] sm:$0xff] }
 0x489   : > { %v4947_v37 = vpop.f32.mrb[34].mxu1  ;;  %v16674_v34 = vld [vmem:[#allocation61_spill] sm:$0xff] }
 0x48a   : > { %v5016_v23 = vadd.f32 %v4947_v37, %v15105_v33  ;;  %v10894_v0 = vpop.f32.mrb[35].mxu1  ;;  %11360 = vmatmul.mubr.bf16.vlgmr.msra.gmra.mrb[212].mxu0 %v6976_v57  ;;  %v15327_v58 = vadd.f32 %v15078_v15, %v5015_v61  ;;  %v11669_v15 = vld [vmem:[%s16433_s3 + $0x5c8] sm:$0xff]  }
 0x48b   : > { %11363 = vmatprep.mubr.msk.bf16.mxu0 %vm11913_vm1, %v14887_v38  ;;  %v15356_v61 = vld [vmem:[#allocation2 + $0x60] sm:$0x3] }
 0x48c   : > { %11204 = vmatmul.mubr.bf16.vlgmr.msra.gmra.mrb[140].mxu1 %v6235_v42  ;;  %v15334_v56 = vadd.f32 %v15082_v5, %v5016_v23  ;;  %v6769_v63 = vshll.u32 %v15356_v61, 16 }
 0x48d   : > { %11292 = vmatpush3.bf16.msra.mxu1 %v11668_v48  ;;  %v15336_v9 = vpop.f32.mrb[108].mxu0  ;;  %11207 = vmatprep.mubr.msk.bf16.mxu1 %vm11913_vm1, %v14887_v38 }
 0x48e   : > { %v11053_v33 = vpop.f32.mrb[109].mxu0  ;;  %11293 = vmatprep.subr.bf16.mxu1 %v14887_v38  ;;  %v6771_v31 = vrot.slane %v6769_v63, 2 }
 0x48f   : > { %v4952_v53 = vpop.f32.mrb[36].mxu1  ;;  %v15344_v44 = vpop.f32.mrb[110].mxu0  ;;  %v11672_v33 = vld [vmem:[%s16433_s3 + $0x5e0] sm:$0xff]  }
 0x490   : > { %v5017_v8 = vadd.f32 %v4952_v53, %v15130_v43  ;;  %v10897_v5 = vpop.f32.mrb[37].mxu1  ;;  %v11054_v22 = vpop.f32.mrb[111].mxu0  ;;  %v6766_v43 = vshrl.u32 %v15356_v61, 16  ;;  %v16675_v53 = vld [vmem:[#allocation72_spill] sm:$0xff] }
 0x491   : > { %v4955_v11 = vpop.f32.mrb[38].mxu1  ;;  %11294 = vmatpush3.bf16.msra.mxu1 %v11669_v15 }
 0x492   : > { %v5018_v49 = vadd.f32 %v4955_v11, %v15140_v1  ;;  %v10898_v40 = vpop.f32.mrb[39].mxu1  ;;  %11364 = vmatmul.mubr.bf16.gmra.mrb[216].mxu0 %v16673_v46  ;;  %11295 = vmatprep.subr.bf16.mxu1 %v14887_v38  ;;  %v15354_v52 = vadd.f32 %v15107_v24, %v5017_v8  ;;  %v11671_v24 = vld [vmem:[%s16433_s3 + $0x5d8] sm:$0xff]   ;;  %v6768_v29 = vrot.slane %v6766_v43, 1  ;;  %v16676_v11 = vld [vmem:[#allocation60_spill] sm:$0xff] }
 0x493   : > { %11367 = vmatprep.mubr.msk.bf16.mxu0 %vm11913_vm1, %v14887_v38 }
 0x494   : > { %11208 = vmatmul.mubr.bf16.gmra.mrb[144].mxu1 %v16674_v34  ;;  %v15364_v1 = vadd.f32 %v15115_v16, %v5018_v49  ;;  %v6772_v16 = vor.u32 %v6771_v31, %v6768_v29  ;;  %v11674_v29 = vld [vmem:[%s16433_s3 + $0x5f0] sm:$0xff]  }
 0x495   : > { %v15366_v37 = vpop.f32.mrb[112].mxu0  ;;  %11211 = vmatprep.mubr.msk.bf16.mxu1 %vm11913_vm1, %v14887_v38  ;;  %11296 = vmatpush3.bf16.msra.mxu1 %v11670_v14  ;;  %v16677_v14 = vld [vmem:[#allocation63_spill] sm:$0xff] }
 0x496   : > { %v11057_v57 = vpop.f32.mrb[113].mxu0  ;;  %11297 = vmatprep.subr.bf16.mxu1 %v14887_v38  ;;  %v15382_v8 = vsel %vm2023_vm5, %v16675_v53, %v6772_v16 }
 0x497   : > { %v4960_v48 = vpop.f32.mrb[40].mxu1  ;;  %v15374_v23 = vpop.f32.mrb[114].mxu0 }
 0x498   : > { %v5019_v0 = vadd.f32 %v4960_v48, %v15165_v50  ;;  %v10901_v28 = vpop.f32.mrb[41].mxu1  ;;  %v11058_v42 = vpop.f32.mrb[115].mxu0  ;;  %v16678_v48 = vld [vmem:[#allocation62_spill] sm:$0xff] }
 0x499   : > { %v4963_v15 = vpop.f32.mrb[42].mxu1  ;;  %11298 = vmatpush3.bf16.msra.mxu1 %v11671_v24 }
 0x49a   : > { %v5020_v5 = vadd.f32 %v4963_v15, %v15175_v3  ;;  %v10902_v22 = vpop.f32.mrb[43].mxu1  ;;  %11368 = vmatmul.mubr.bf16.gmra.mrb[220].mxu0 %v16676_v11  ;;  %11299 = vmatprep.subr.bf16.mxu1 %v14887_v38  ;;  %v15388_v50 = vadd.f32 %v15142_v26, %v5019_v0  ;;  %v11673_v3 = vld [vmem:[%s16433_s3 + $0x5e8] sm:$0xff]  }
 0x49b   : > { %11371 = vmatprep.mubr.msk.bf16.mxu0 %vm11913_vm1, %v14887_v38 }
 0x49c   : > { %11212 = vmatmul.mubr.bf16.gmra.mrb[148].mxu1 %v16677_v14  ;;  %v15394_v49 = vadd.f32 %v15150_v4, %v5020_v5 }
 0x49d   : > { %v15396_v40 = vpop.f32.mrb[116].mxu0  ;;  %11215 = vmatprep.mubr.msk.bf16.mxu1 %vm11913_vm1, %v14887_v38  ;;  %11300 = vmatpush3.bf16.msra.mxu1 %v11672_v33 }
 0x49e   : > { %v11061_v26 = vpop.f32.mrb[117].mxu0  ;;  %11301 = vmatprep.subr.bf16.mxu1 %v14887_v38 }
 0x49f   : > { %v4968_v46 = vpop.f32.mrb[44].mxu1  ;;  %v15404_v43 = vpop.f32.mrb[118].mxu0 }
 0x4a0   : > { %v5021_v63 = vadd.f32 %v4968_v46, %v15200_v51  ;;  %v10905_v4 = vpop.f32.mrb[45].mxu1  ;;  %v11062_v34 = vpop.f32.mrb[119].mxu0  ;;  %v16679_v51 = vld [vmem:[#allocation65_spill] sm:$0xff]  ;;  %v15438_v46 = vld [vmem:[#allocation3 + $0x90] sm:$0xff] }
 0x4a1   : > { %v4971_v24 = vpop.f32.mrb[46].mxu1  ;;  %11302 = vmatpush3.bf16.msra.mxu1 %v11673_v3  ;;  %v16680_v3 = vld [vmem:[#allocation64_spill] sm:$0xff] }
 0x4a2   : > { %v5022_v31 = vadd.f32 %v4971_v24, %v15210_v17  ;;  %v10906_v57 = vpop.f32.mrb[47].mxu1  ;;  %11372 = vmatmul.mubr.bf16.gmra.mrb[224].mxu0 %v16678_v48  ;;  %11303 = vmatprep.subr.bf16.mxu1 %v14887_v38  ;;  %v15414_v16 = vadd.f32 %v15177_v47, %v5021_v63  ;;  %v11675_v17 = vld [vmem:[%s16433_s3 + $0x5f8] sm:$0xff]   ;;  %v11847_v4 = vld [vmem:[#allocation2 + $0x48] sm:$0xff] }
 0x4a3   : > { %11375 = vmatprep.mubr.msk.bf16.mxu0 %vm11913_vm1, %v14887_v38 }
 0x4a4   : > { %11216 = vmatmul.mubr.bf16.gmra.mrb[152].mxu1 %v16679_v51  ;;  %v15420_v0 = vadd.f32 %v15185_v45, %v5022_v31  ;;  %v16683_v31 = vld [vmem:[#allocation59_spill] sm:$0xff]  ;;  %v16685_v51 = vld [vmem:[#allocation8_spill] sm:$0xff] }
 0x4a5   : > { %v15422_v28 = vpop.f32.mrb[120].mxu0  ;;  %11219 = vmatprep.mubr.msk.bf16.mxu1 %vm11913_vm1, %v14887_v38  ;;  %11304 = vmatpush3.bf16.msra.mxu1 %v11674_v29  ;;  %v16682_v29 = vld [vmem:[#allocation66_spill] sm:$0xff]  ;;  %v16684_v57 = vshrl.u32 %v16683_v31, 16 }
 0x4a6   : > { %v11065_v47 = vpop.f32.mrb[121].mxu0  ;;  %11305 = vmatprep.subr.bf16.mxu1 %v14887_v38  ;;  %v16681_v38 = vld [vmem:[#allocation67_spill] sm:$0xff] }
 0x4a7   : > { %v4976_v42 = vpop.f32.mrb[48].mxu1  ;;  %v15430_v15 = vpop.f32.mrb[122].mxu0  ;;  %v6270_v48 = vor.u32 %v16684_v57, %v16682_v29 }
 0x4a8   : > { %v5023_v33 = vadd.f32 %v4976_v42, %v15228_v2  ;;  %v10909_v45 = vpop.f32.mrb[49].mxu1  ;;  %v11066_v5 = vpop.f32.mrb[123].mxu0 }
 0x4a9   : > { %v4979_v22 = vpop.f32.mrb[50].mxu1  ;;  %11306 = vmatpush3.bf16.msra.mxu1 %v11675_v17  ;;  %v6274_v17 = vrot.slane %v16685_v51, 1  ;;  %v16686_v45 = vrot.slane %v16683_v31, 2 }
 0x4aa   : > { %v5024_v11 = vadd.f32 %v4979_v22, %v15234_v62  ;;  %v10910_v14 = vpop.f32.mrb[51].mxu1  ;;  %11376 = vmatmul.mubr.bf16.gmra.mrb[228].mxu0 %v16680_v3  ;;  %v15436_v26 = vadd.f32 %v15212_v55, %v5023_v33  ;;  %v15448_v62 = vrot.slane %v11847_v4, 2 }
 0x4ab   : > { %11379 = vmatprep.mubr.msk.bf16.mxu0 %vm11913_vm1, %v15438_v46  ;;  %v6275_v3 = vsel %vm1385_vm3, %v6270_v48, %v6274_v17 }
 0x4ac   : > { %11220 = vmatmul.mubr.bf16.gmra.mrb[156].mxu1 %v16681_v38  ;;  %v15444_v2 = vadd.f32 %v15220_v36, %v5024_v11  ;;  %v6986_v5 = vsel %vm2273_vm7, %v16686_v45, %v15448_v62 }
 0x4ad   : > { %v15446_v63 = vpop.f32.mrb[124].mxu0  ;;  %11223 = vmatprep.mubr.msk.bf16.mxu1 %vm11913_vm1, %v15438_v46 }
 0x4ae   : > { %v11069_v55 = vpop.f32.mrb[125].mxu0 }
 0x4af   : > { %v4984_v34 = vpop.f32.mrb[52].mxu1  ;;  %v15452_v24 = vpop.f32.mrb[126].mxu0 }
 0x4b0   : > { %v5025_v36 = vadd.f32 %v4984_v34, %v15248_v60  ;;  %v10913_v47 = vpop.f32.mrb[53].mxu1  ;;  %v11070_v42 = vpop.f32.mrb[127].mxu0 }
 0x4b1   : > { %v4987_v33 = vpop.f32.mrb[54].mxu1 }
 0x4b2   : > { %v5026_v22 = vadd.f32 %v4987_v33, %v15254_v7  ;;  %v10914_v11 = vpop.f32.mrb[55].mxu1  ;;  %11380 = vmatmul.mubr.bf16.gmra.mrb[232].mxu0 %v6986_v5  ;;  %v15465_v14 = vadd.f32 %v15236_v27, %v5025_v36  ;;  %v16687_v7 = vld [vmem:[#allocation7_spill] sm:$0xff] }
 0x4b3   : > { %11383 = vmatprep.mubr.msk.bf16.mxu0 %vm11913_vm1, %v15438_v46  ;;  %v6278_v4 = vor.u32 %v6274_v17, %v16687_v7  ;;  %v6296_v11 = vshll.u32 %v15281_v19, 16 }
 0x4b4   : > { %11224 = vmatmul.mubr.bf16.gmra.mrb[160].mxu1 %v6275_v3  ;;  %v15471_v60 = vadd.f32 %v15241_v54, %v5026_v22 }
 0x4b5   : > { %v15473_v38 = vpop.f32.mrb[128].mxu0  ;;  %11227 = vmatprep.mubr.msk.bf16.mxu1 %vm11913_vm1, %v15438_v46  ;;  %v6283_v51 = vsel %vm1385_vm3, %v6278_v4, %v6274_v17  ;;  %v6298_v19 = vrot.slane %v6296_v11, 1 }
 0x4b6   : > { %v11073_v55 = vpop.f32.mrb[129].mxu0 }
 0x4b7   : > { %v4992_v34 = vpop.f32.mrb[56].mxu1  ;;  %v15478_v27 = vpop.f32.mrb[130].mxu0  ;;  %v6991_v55 = vrot.slane %v15356_v61, 2 }
 0x4b8   : > { %v5027_v29 = vadd.f32 %v4992_v34, %v15266_v13  ;;  %v10917_v31 = vpop.f32.mrb[57].mxu1  ;;  %v11074_v57 = vpop.f32.mrb[131].mxu0 }
 0x4b9   : > { %v4995_v48 = vpop.f32.mrb[58].mxu1  ;;  %v6992_v31 = vsel %vm2273_vm7, %v15448_v62, %v6991_v55 }
 0x4ba   : > { %v5028_v54 = vadd.f32 %v4995_v48, %v15272_v20  ;;  %v10918_v36 = vpop.f32.mrb[59].mxu1  ;;  %v15484_v47 = vadd.f32 %v15256_v6, %v5027_v29  ;;  %11384 = vmatmul.mubr.bf16.gmra.mrb[236].mxu0 %v15448_v62 }
 0x4bb   : > { %11387 = vmatprep.mubr.msk.bf16.mxu0 %vm11913_vm1, %v15438_v46 }
 0x4bc   : > { %11228 = vmatmul.mubr.bf16.gmra.mrb[164].mxu1 %v6283_v51  ;;  %v15490_v42 = vadd.f32 %v15260_v39, %v5028_v54 }
 0x4bd   : > { %11231 = vmatprep.mubr.msk.bf16.mxu1 %vm11913_vm1, %v15438_v46  ;;  %v15494_v13 = vpop.f32.mrb[132].mxu0 }
 0x4be   : > { %v11077_v17 = vpop.f32.mrb[133].mxu0 }
 0x4bf   : > { %v5000_v20 = vpop.f32.mrb[60].mxu1  ;;  %v15496_v33 = vpop.f32.mrb[134].mxu0 }
 0x4c0   : > { %v5029_v6 = vadd.f32 %v5000_v20, %v15285_v59  ;;  %v10921_v45 = vpop.f32.mrb[61].mxu1  ;;  %v11078_v5 = vpop.f32.mrb[135].mxu0 }
 0x4c1   : > { %v5003_v22 = vpop.f32.mrb[62].mxu1 }
 0x4c2   : > { %v5030_v3 = vadd.f32 %v5003_v22, %v15291_v18  ;;  %v10922_v39 = vpop.f32.mrb[63].mxu1  ;;  %v15502_v7 = vadd.f32 %v15276_v30, %v5029_v6  ;;  %11388 = vmatmul.mubr.bf16.gmra.mrb[240].mxu0 %v15448_v62 }
 0x4c3   : > { %11391 = vmatprep.mubr.msk.bf16.mxu0 %vm11913_vm1, %v15438_v46 }
 0x4c4   : > { %11232 = vmatmul.mubr.bf16.gmra.mrb[168].mxu1 %v6283_v51  ;;  %v15509_v59 = vadd.f32 %v15278_v21, %v5030_v3  ;;  %v6299_v21 = vsel %vm1385_vm3, %v6278_v4, %v6298_v19  ;;  %v16688_v3 = vld [vmem:[#allocation69_spill] sm:$0xff] }
 0x4c5   : > { %v15511_v34 = vpop.f32.mrb[136].mxu0  ;;  %11235 = vmatprep.mubr.msk.bf16.mxu1 %vm11913_vm1, %v15438_v46 }
 0x4c6   : > { %v11081_v18 = vpop.f32.mrb[137].mxu0 }
 0x4c7   : > { %v5008_v30 = vpop.f32.mrb[64].mxu1  ;;  %v15515_v29 = vpop.f32.mrb[138].mxu0 }
 0x4c8   : > { %v5031_v57 = vadd.f32 %v5008_v30, %v15305_v32  ;;  %v10925_v61 = vpop.f32.mrb[65].mxu1  ;;  %v11082_v48 = vpop.f32.mrb[139].mxu0 }
 0x4c9   : > { %v5011_v51 = vpop.f32.mrb[66].mxu1  ;;  %v16689_v48 = vld [vmem:[#allocation68_spill] sm:$0xff] }
 0x4ca   : > { %v5032_v54 = vadd.f32 %v5011_v51, %v15310_v35  ;;  %v10926_v36 = vpop.f32.mrb[67].mxu1  ;;  %v15523_v17 = vadd.f32 %v15293_v25, %v5031_v57  ;;  %11392 = vmatmul.mubr.bf16.gmra.mrb[244].mxu0 %v6992_v31 }
 0x4cc   : > { %11236 = vmatmul.mubr.bf16.gmra.mrb[172].mxu1 %v6299_v21  ;;  %v15526_v20 = vadd.f32 %v15299_v41, %v5032_v54 }
 0x4cd   : > { %v15528_v6 = vpop.f32.mrb[140].mxu0  ;;  %11307 = vmatprep.mubr.msk.bf16.mxu1 %vm11913_vm1, %v15438_v46 }
 0x4ce   : > { %v11153_v32 = vpop.f32.mrb[141].mxu0 }
 0x4cf   : > { %v5452_v62 = vpop.f32.mrb[68].mxu1  ;;  %v15532_v45 = vpop.f32.mrb[142].mxu0 }
 0x4d0   : > { %v5523_v35 = vadd.f32 %v5452_v62, %v15327_v58  ;;  %v10997_v4 = vpop.f32.mrb[69].mxu1  ;;  %v11154_v5 = vpop.f32.mrb[143].mxu0 }
 0x4d1   : > { %v5455_v25 = vpop.f32.mrb[70].mxu1  ;;  %v16690_v5 = vld [vmem:[#allocation70_spill] sm:$0xff] }
 0x4d2   : > { %v5524_v22 = vadd.f32 %v5455_v25, %v15334_v56  ;;  %v10998_v11 = vpop.f32.mrb[71].mxu1  ;;  %v15537_v41 = vadd.f32 %v15312_v12, %v5523_v35 }
 0x4d4   : > { %11308 = vmatmul.mubr.bf16.vlgmr.msra.gmra.mrb[176].mxu1 %v16688_v3  ;;  %v15541_v39 = vadd.f32 %v15316_v10, %v5524_v22 }
 0x4d5   : > { %v15543_v55 = vpop.f32.mrb[144].mxu0  ;;  %11311 = vmatprep.mubr.msk.bf16.mxu1 %vm11913_vm1, %v15438_v46 }
 0x4d6   : > { %v11157_v58 = vpop.f32.mrb[145].mxu0 }
 0x4d7   : > { %v5460_v19 = vpop.f32.mrb[72].mxu1  ;;  %v15547_v18 = vpop.f32.mrb[146].mxu0 }
 0x4d8   : > { %v5525_v56 = vadd.f32 %v5460_v19, %v15354_v52  ;;  %v11001_v30 = vpop.f32.mrb[73].mxu1  ;;  %v11158_v31 = vpop.f32.mrb[147].mxu0 }
 0x4d9   : > { %v5463_v12 = vpop.f32.mrb[74].mxu1  ;;  %v16691_v31 = vld [vmem:[#allocation71_spill] sm:$0xff] }
 0x4da   : > { %v5526_v57 = vadd.f32 %v5463_v12, %v15364_v1  ;;  %v11002_v61 = vpop.f32.mrb[75].mxu1  ;;  %v15552_v10 = vadd.f32 %v15336_v9, %v5525_v56 }
 0x4dc   : > { %11312 = vmatmul.mubr.bf16.gmra.mrb[180].mxu1 %v16689_v48  ;;  %v15556_v51 = vadd.f32 %v15344_v44, %v5526_v57 }
 0x4dd   : > { %v15558_v21 = vpop.f32.mrb[148].mxu0  ;;  %11315 = vmatprep.mubr.msk.bf16.mxu1 %vm11913_vm1, %v15438_v46 }
 0x4de   : > { %v11161_v52 = vpop.f32.mrb[149].mxu0 }
 0x4df   : > { %v5468_v54 = vpop.f32.mrb[76].mxu1  ;;  %v15562_v36 = vpop.f32.mrb[150].mxu0 }
 0x4e0   : > { %v5527_v1 = vadd.f32 %v5468_v54, %v15388_v50  ;;  %v11005_v32 = vpop.f32.mrb[77].mxu1  ;;  %v11162_v62 = vpop.f32.mrb[151].mxu0 }
 0x4e1   : > { %v5471_v9 = vpop.f32.mrb[78].mxu1  ;;  %v16692_v62 = vld [vmem:[#allocation73_spill] sm:$0xff] }
 0x4e2   : > { %v5528_v35 = vadd.f32 %v5471_v9, %v15394_v49  ;;  %v11006_v4 = vpop.f32.mrb[79].mxu1  ;;  %v15567_v44 = vadd.f32 %v15366_v37, %v5527_v1 }
 0x4e4   : > { %11316 = vmatmul.mubr.bf16.gmra.mrb[184].mxu1 %v16690_v5  ;;  %v15571_v25 = vadd.f32 %v15374_v23, %v5528_v35 }
 0x4e5   : > { %v15573_v22 = vpop.f32.mrb[152].mxu0  ;;  %11319 = vmatprep.mubr.msk.bf16.mxu1 %vm11913_vm1, %v15438_v46 }
 0x4e6   : > { %v11165_v50 = vpop.f32.mrb[153].mxu0 }
 0x4e7   : > { %v5476_v11 = vpop.f32.mrb[80].mxu1  ;;  %v15577_v3 = vpop.f32.mrb[154].mxu0 }
 0x4e8   : > { %v5529_v49 = vadd.f32 %v5476_v11, %v15414_v16  ;;  %v11009_v58 = vpop.f32.mrb[81].mxu1  ;;  %v11166_v19 = vpop.f32.mrb[155].mxu0 }
 0x4e9   : > { %v5479_v37 = vpop.f32.mrb[82].mxu1  ;;  %v16693_v19 = vld [vmem:[#allocation74_spill] sm:$0xff] }
 0x4ea   : > { %v5530_v56 = vadd.f32 %v5479_v37, %v15420_v0  ;;  %v11010_v30 = vpop.f32.mrb[83].mxu1  ;;  %v15582_v23 = vadd.f32 %v15396_v40, %v5529_v49 }
 0x4ec   : > { %11320 = vmatmul.mubr.bf16.gmra.mrb[188].mxu1 %v16691_v31  ;;  %v15586_v12 = vadd.f32 %v15404_v43, %v5530_v56 }
 0x4ed   : > { %v15588_v57 = vpop.f32.mrb[156].mxu0  ;;  %11323 = vmatprep.mubr.msk.bf16.mxu1 %vm11913_vm1, %v15438_v46 }
 0x4ee   : > { %v11169_v16 = vpop.f32.mrb[157].mxu0 }
 0x4ef   : > { %v5484_v61 = vpop.f32.mrb[84].mxu1  ;;  %v15592_v48 = vpop.f32.mrb[158].mxu0 }
 0x4f0   : > { %v5531_v0 = vadd.f32 %v5484_v61, %v15436_v26  ;;  %v11013_v52 = vpop.f32.mrb[85].mxu1  ;;  %v11170_v54 = vpop.f32.mrb[159].mxu0 }
 0x4f1   : > { %v5487_v40 = vpop.f32.mrb[86].mxu1 }
 0x4f2   : > { %v5532_v1 = vadd.f32 %v5487_v40, %v15444_v2  ;;  %v11014_v32 = vpop.f32.mrb[87].mxu1  ;;  %v15597_v43 = vadd.f32 %v15422_v28, %v5531_v0 }
 0x4f4   : > { %11324 = vmatmul.mubr.bf16.gmra.mrb[192].mxu1 %v16692_v62  ;;  %v15601_v9 = vadd.f32 %v15430_v15, %v5532_v1  ;;  %v11676_v1 = vld [vmem:[%s16435_s5 + $0x40] sm:$0xff]  }
 0x4f5   : > { %v15603_v35 = vpop.f32.mrb[160].mxu0  ;;  %11327 = vmatprep.mubr.msk.bf16.mxu1 %vm11913_vm1, %v15438_v46  ;;  %9843 = vmatprep.subr.bf16.mxu1 %v11676_v1 }
 0x4f6   : > { %v11173_v26 = vpop.f32.mrb[161].mxu0 }
 0x4f7   : > { %v5492_v4 = vpop.f32.mrb[88].mxu1  ;;  %v15607_v5 = vpop.f32.mrb[162].mxu0 }
 0x4f8   : > { %v5533_v2 = vadd.f32 %v5492_v4, %v15465_v14  ;;  %v11017_v50 = vpop.f32.mrb[89].mxu1  ;;  %v11174_v11 = vpop.f32.mrb[163].mxu0 }
 0x4f9   : > { %v5495_v28 = vpop.f32.mrb[90].mxu1 }
 0x4fa   : > { %v5534_v49 = vadd.f32 %v5495_v28, %v15471_v60  ;;  %v11018_v58 = vpop.f32.mrb[91].mxu1  ;;  %v15612_v15 = vadd.f32 %v15446_v63, %v5533_v2 }
 0x4fc   : > { %11328 = vmatmul.mubr.bf16.gmra.mrb[196].mxu1 %v16693_v19  ;;  %v15616_v37 = vadd.f32 %v15452_v24, %v5534_v49 }
 0x4fd   : > { %11331 = vmatprep.mubr.msk.bf16.mxu1 %vm11913_vm1, %v15438_v46  ;;  %v15620_v56 = vpop.f32.mrb[164].mxu0 }
 0x4fe   : > { %v11177_v14 = vpop.f32.mrb[165].mxu0 }
 0x4ff   : > { %v5500_v30 = vpop.f32.mrb[92].mxu1  ;;  %v15622_v31 = vpop.f32.mrb[166].mxu0 }
 0x500   : > { %v5535_v60 = vadd.f32 %v5500_v30, %v15484_v47  ;;  %v11021_v16 = vpop.f32.mrb[93].mxu1  ;;  %v11178_v61 = vpop.f32.mrb[167].mxu0 }
 0x501   : > { %v5503_v63 = vpop.f32.mrb[94].mxu1 }
 0x502   : > { %v5536_v0 = vadd.f32 %v5503_v63, %v15490_v42  ;;  %v11022_v52 = vpop.f32.mrb[95].mxu1  ;;  %v15627_v24 = vadd.f32 %v15473_v38, %v5535_v60 }
 0x504   : > { %11332 = vmatmul.mubr.bf16.gmra.mrb[200].mxu1 %v16675_v53  ;;  %v15631_v54 = vadd.f32 %v15478_v27, %v5536_v0  ;;  %v11677_v27 = vld [vmem:[%s16435_s5] sm:$0xff]  }
 0x505   : > { %11335 = vmatprep.mubr.msk.bf16.mxu1 %vm11913_vm1, %v15438_v46  ;;  %v15635_v40 = vpop.f32.mrb[168].mxu0  ;;  %9844 = vmatpush3.bf16.msra.mxu1 %v11677_v27 }
 0x506   : > { %v11181_v47 = vpop.f32.mrb[169].mxu0 }
 0x507   : > { %v5508_v42 = vpop.f32.mrb[96].mxu1  ;;  %v15640_v32 = vpop.f32.mrb[170].mxu0 }
 0x508   : > { %v5537_v38 = vadd.f32 %v5508_v42, %v15502_v7  ;;  %v11025_v62 = vpop.f32.mrb[97].mxu1  ;;  %v11182_v26 = vpop.f32.mrb[171].mxu0 }
 0x509   : > { %v5511_v4 = vpop.f32.mrb[98].mxu1  ;;  %v11681_v62 = vld [vmem:[%s16435_s5 + $0x10] sm:$0xff]  }
 0x50a   : > { %v5538_v2 = vadd.f32 %v5511_v4, %v15509_v59  ;;  %v11026_v50 = vpop.f32.mrb[99].mxu1  ;;  %v15648_v11 = vadd.f32 %v15494_v13, %v5537_v38 }
 0x50c   : > { %11336 = vmatmul.mubr.bf16.gmra.mrb[204].mxu1 %v16675_v53  ;;  %v15652_v28 = vadd.f32 %v15496_v33, %v5538_v2  ;;  %v11678_v53 = vld [vmem:[%s16435_s5 + $0x48] sm:$0xff]  }
 0x50d   : > { %v15654_v7 = vpop.f32.mrb[172].mxu0  ;;  %11339 = vmatprep.mubr.msk.bf16.mxu1 %vm11913_vm1, %v15438_v46  ;;  %v11679_v33 = vld [vmem:[%s16435_s5 + $0x8] sm:$0xff]   ;;  %9845 = vmatprep.subr.bf16.mxu1 %v11678_v53 }
 0x50e   : > { %v11185_v49 = vpop.f32.mrb[173].mxu0  ;;  %9846 = vmatpush3.bf16.msra.mxu1 %v11679_v33 }
 0x50f   : > { %v5516_v58 = vpop.f32.mrb[100].mxu1  ;;  %v15658_v19 = vpop.f32.mrb[174].mxu0 }
 0x510   : > { %v5539_v59 = vadd.f32 %v5516_v58, %v15523_v17  ;;  %v11029_v14 = vpop.f32.mrb[101].mxu1  ;;  %v11186_v13 = vpop.f32.mrb[175].mxu0 }
 0x511   : > { %v5519_v30 = vpop.f32.mrb[102].mxu1  ;;  %v11683_v13 = vld [vmem:[%s16435_s5 + $0x18] sm:$0xff]  }
 0x512   : > { %v5540_v60 = vadd.f32 %v5519_v30, %v15526_v20  ;;  %v11030_v46 = vpop.f32.mrb[103].mxu1  ;;  %v15669_v16 = vadd.f32 %v15511_v34, %v5539_v59  ;;  %v11680_v34 = vld [vmem:[%s16435_s5 + $0x50] sm:$0xff]  }
 0x513   : > { %9847 = vmatprep.subr.bf16.mxu1 %v11680_v34 }
 0x514   : > { %11340 = vmatmul.mubr.bf16.gmra.mrb[208].mxu1 %v15382_v8  ;;  %v15673_v17 = vadd.f32 %v15515_v29, %v5540_v60 }
 0x515   : > { %v15675_v61 = vpop.f32.mrb[176].mxu0  ;;  %9848 = vmatpush3.bf16.msra.mxu1 %v11681_v62 }
 0x516   : > { %v11257_v63 = vpop.f32.mrb[177].mxu0 }
 0x517   : > { %v5919_v0 = vpop.f32.mrb[104].mxu1  ;;  %v15677_v52 = vpop.f32.mrb[178].mxu0 }
 0x518   : > { %v5990_v47 = vadd.f32 %v5919_v0, %v15537_v41  ;;  %v11101_v20 = vpop.f32.mrb[105].mxu1  ;;  %v11258_v1 = vpop.f32.mrb[179].mxu0 }
 0x519   : > { %v5922_v42 = vpop.f32.mrb[106].mxu1 }
 0x51a   : > { %v5991_v8 = vadd.f32 %v5922_v42, %v15541_v39  ;;  %v11102_v38 = vpop.f32.mrb[107].mxu1  ;;  %v15685_v29 = vadd.f32 %v15528_v6, %v5990_v47 }
 0x51c   : > { %v15691_v41 = vadd.f32 %v15532_v45, %v5991_v8  ;;  %v11682_v45 = vld [vmem:[%s16435_s5 + $0x58] sm:$0xff]  }
 0x51d   : > { %v15693_v26 = vpop.f32.mrb[180].mxu0  ;;  %9849 = vmatprep.subr.bf16.mxu1 %v11682_v45 }
 0x51e   : > { %v11261_v27 = vpop.f32.mrb[181].mxu0  ;;  %9850 = vmatpush3.bf16.msra.mxu1 %v11683_v13 }
 0x51f   : > { %v5927_v4 = vpop.f32.mrb[108].mxu1  ;;  %v15695_v2 = vpop.f32.mrb[182].mxu0 }
 0x520   : > { %v5992_v39 = vadd.f32 %v5927_v4, %v15552_v10  ;;  %v11105_v50 = vpop.f32.mrb[109].mxu1  ;;  %v11262_v6 = vpop.f32.mrb[183].mxu0 }
 0x521   : > { %v5930_v49 = vpop.f32.mrb[110].mxu1 }
 0x522   : > { %v5993_v58 = vadd.f32 %v5930_v49, %v15556_v51  ;;  %v11106_v59 = vpop.f32.mrb[111].mxu1  ;;  %v15700_v14 = vadd.f32 %v15543_v55, %v5992_v39 }
 0x524   : > { %v15709_v53 = vadd.f32 %v15547_v18, %v5993_v58 }
 0x525   : > { %v15711_v10 = vpop.f32.mrb[184].mxu0 }
 0x526   : > { %v11265_v51 = vpop.f32.mrb[185].mxu0 }
 0x527   : > { %v5935_v33 = vpop.f32.mrb[112].mxu1  ;;  %v15713_v30 = vpop.f32.mrb[186].mxu0 }
 0x528   : > { %v5994_v55 = vadd.f32 %v5935_v33, %v15567_v44  ;;  %v11109_v60 = vpop.f32.mrb[113].mxu1  ;;  %v11266_v46 = vpop.f32.mrb[187].mxu0 }
 0x529   : > { %v5938_v63 = vpop.f32.mrb[114].mxu1 }
 0x52a   : > { %v5995_v0 = vadd.f32 %v5938_v63, %v15571_v25  ;;  %v11110_v47 = vpop.f32.mrb[115].mxu1  ;;  %v15718_v20 = vadd.f32 %v15558_v21, %v5994_v55 }
 0x52c   : > { %v15721_v18 = vadd.f32 %v15562_v36, %v5995_v0 }
 0x52d   : > { %v15723_v1 = vpop.f32.mrb[188].mxu0 }
 0x52e   : > { %v11269_v34 = vpop.f32.mrb[189].mxu0 }
 0x52f   : > { %v5943_v42 = vpop.f32.mrb[116].mxu1  ;;  %v15725_v8 = vpop.f32.mrb[190].mxu0 }
 0x530   : > { %v5996_v44 = vadd.f32 %v5943_v42, %v15582_v23  ;;  %v11113_v38 = vpop.f32.mrb[117].mxu1  ;;  %v11270_v62 = vpop.f32.mrb[191].mxu0 }
 0x531   : > { %v5946_v27 = vpop.f32.mrb[118].mxu1  ;;  %v11686_v62 = vld [vmem:[%s16435_s5 + $0x68] sm:$0xff]  }
 0x532   : > { %v5997_v25 = vadd.f32 %v5946_v27, %v15586_v12  ;;  %v11114_v4 = vpop.f32.mrb[119].mxu1  ;;  %v15730_v21 = vadd.f32 %v15573_v22, %v5996_v44  ;;  %v11684_v12 = vld [vmem:[%s16435_s5 + $0x60] sm:$0xff]  }
 0x533   : > { %v11685_v22 = vld [vmem:[%s16435_s5 + $0x20] sm:$0xff]   ;;  %9851 = vmatprep.subr.bf16.mxu1 %v11684_v12 }
 0x534   : > { %v15733_v36 = vadd.f32 %v15577_v3, %v5997_v25  ;;  %9852 = vmatpush3.bf16.msra.mxu1 %v11685_v22  ;;  %v11689_v22 = vld [vmem:[%s16435_s5 + $0x100] sm:$0xff]  }
 0x535   : > { %v15735_v39 = vpop.f32.mrb[192].mxu0  ;;  %9853 = vmatprep.subr.bf16.mxu1 %v11686_v62 }
 0x536   : > { %v11273_v50 = vpop.f32.mrb[193].mxu0 }
 0x537   : > { %v5951_v6 = vpop.f32.mrb[120].mxu1  ;;  %v15737_v49 = vpop.f32.mrb[194].mxu0 }
 0x538   : > { %v5998_v23 = vadd.f32 %v5951_v6, %v15597_v43  ;;  %v11117_v58 = vpop.f32.mrb[121].mxu1  ;;  %v11274_v59 = vpop.f32.mrb[195].mxu0 }
 0x539   : > { %v5954_v3 = vpop.f32.mrb[122].mxu1  ;;  %v11688_v59 = vld [vmem:[%s16435_s5 + $0x140] sm:$0xff]  }
 0x53a   : > { %v5999_v45 = vadd.f32 %v5954_v3, %v15601_v9  ;;  %v11118_v13 = vpop.f32.mrb[123].mxu1  ;;  %v15748_v51 = vadd.f32 %v15588_v57, %v5998_v23  ;;  %9887 = vmatprep.subr.bf16.mxu0 %v11688_v59 }
 0x53b   : > { %9888 = vmatpush3.bf16.msra.mxu0 %v11689_v22 }
 0x53c   : > { %v15751_v43 = vadd.f32 %v15592_v48, %v5999_v45  ;;  %v11692_v45 = vld [vmem:[%s16435_s5 + $0x30] sm:$0xff]  }
 0x53d   : > { %v15753_v33 = vpop.f32.mrb[196].mxu0 }
 0x53e   : > { %v11277_v55 = vpop.f32.mrb[197].mxu0 }
 0x53f   : > { %v5959_v60 = vpop.f32.mrb[124].mxu1  ;;  %v15755_v46 = vpop.f32.mrb[198].mxu0 }
 0x540   : > { %v6000_v63 = vadd.f32 %v5959_v60, %v15612_v15  ;;  %v11121_v0 = vpop.f32.mrb[125].mxu1  ;;  %v11278_v47 = vpop.f32.mrb[199].mxu0  ;;  %v11687_v15 = vld [vmem:[%s16435_s5 + $0x28] sm:$0xff]  }
 0x541   : > { %v5962_v9 = vpop.f32.mrb[126].mxu1  ;;  %9854 = vmatpush3.bf16.msra.mxu1 %v11687_v15 }
 0x542   : > { %v6001_v34 = vadd.f32 %v5962_v9, %v15616_v37  ;;  %v11122_v57 = vpop.f32.mrb[127].mxu1  ;;  %v15760_v42 = vadd.f32 %v15603_v35, %v6000_v63  ;;  %v11693_v63 = vld [vmem:[%s16435_s5 + $0x108] sm:$0xff]  }
 0x544   : > { %v15763_v48 = vadd.f32 %v15607_v5, %v6001_v34 }
 0x545   : > { %v15765_v44 = vpop.f32.mrb[200].mxu0 }
 0x546   : > { %v11281_v38 = vpop.f32.mrb[201].mxu0 }
 0x547   : > { %v5967_v27 = vpop.f32.mrb[128].mxu1  ;;  %v15773_v37 = vpop.f32.mrb[202].mxu0 }
 0x548   : > { %v6002_v35 = vadd.f32 %v5967_v27, %v15627_v24  ;;  %v11125_v25 = vpop.f32.mrb[129].mxu1  ;;  %v11282_v4 = vpop.f32.mrb[203].mxu0 }
 0x549   : > { %v5970_v5 = vpop.f32.mrb[130].mxu1 }
 0x54a   : > { %v6003_v50 = vadd.f32 %v5970_v5, %v15631_v54  ;;  %v11126_v6 = vpop.f32.mrb[131].mxu1  ;;  %v15778_v23 = vadd.f32 %v15620_v56, %v6002_v35  ;;  %v11690_v56 = vld [vmem:[%s16435_s5 + $0x70] sm:$0xff]   ;;  %v11699_v35 = vld [vmem:[%s16435_s5 + $0x38] sm:$0xff]  }
 0x54b   : > { %9855 = vmatprep.subr.bf16.mxu1 %v11690_v56 }
 0x54c   : > { %v15781_v58 = vadd.f32 %v15622_v31, %v6003_v50  ;;  %v11691_v31 = vld [vmem:[%s16435_s5 + $0x148] sm:$0xff]   ;;  %9856 = vmatpush3.bf16.msra.mxu1 %v11692_v45  ;;  %v11698_v50 = vld [vmem:[%s16435_s5 + $0x118] sm:$0xff]  }
 0x54d   : > { %v15786_v12 = vpop.f32.mrb[204].mxu0  ;;  %9889 = vmatprep.subr.bf16.mxu0 %v11691_v31 }
 0x54e   : > { %v11285_v24 = vpop.f32.mrb[205].mxu0  ;;  %9890 = vmatpush3.bf16.msra.mxu0 %v11693_v63 }
 0x54f   : > { %v5975_v54 = vpop.f32.mrb[132].mxu1  ;;  %v15797_v3 = vpop.f32.mrb[206].mxu0 }
 0x550   : > { %v6004_v13 = vadd.f32 %v5975_v54, %v15648_v11  ;;  %v11129_v55 = vpop.f32.mrb[133].mxu1  ;;  %v11286_v60 = vpop.f32.mrb[207].mxu0  ;;  %v11694_v11 = vld [vmem:[%s16435_s5 + $0x150] sm:$0xff]  }
 0x551   : > { %v5978_v0 = vpop.f32.mrb[134].mxu1  ;;  %9891 = vmatprep.subr.bf16.mxu0 %v11694_v11 }
 0x552   : > { %v6005_v47 = vadd.f32 %v5978_v0, %v15652_v28  ;;  %v11130_v9 = vpop.f32.mrb[135].mxu1  ;;  %v15808_v34 = vadd.f32 %v15635_v40, %v6004_v13  ;;  %v11695_v28 = vld [vmem:[%s16435_s5 + $0x110] sm:$0xff]   ;;  %v11696_v40 = vld [vmem:[%s16435_s5 + $0x158] sm:$0xff]   ;;  %v11704_v13 = vld [vmem:[%s16435_s5 + $0xc0] sm:$0xff]  }
 0x553   : > { %9892 = vmatpush3.bf16.msra.mxu0 %v11695_v28  ;;  %v11703_v0 = vld [vmem:[%s16435_s5 + $0x128] sm:$0xff]  }
 0x554   : > { %v15811_v57 = vadd.f32 %v15640_v32, %v6005_v47  ;;  %v11697_v32 = vld [vmem:[%s16435_s5 + $0x78] sm:$0xff]   ;;  %9893 = vmatprep.subr.bf16.mxu0 %v11696_v40 }
 0x555   : > { %v15816_v38 = vpop.f32.mrb[208].mxu0  ;;  %9857 = vmatprep.subr.bf16.mxu1 %v11697_v32 }
 0x556   : > { %v11289_v62 = vpop.f32.mrb[209].mxu0  ;;  %9858 = vmatpush3.bf16.msra.mxu1 %v11699_v35 }
 0x557   : > { %v5983_v15 = vpop.f32.mrb[136].mxu1  ;;  %v15827_v27 = vpop.f32.mrb[210].mxu0  ;;  %9894 = vmatpush3.bf16.msra.mxu0 %v11698_v50  ;;  %9865 = vmatprep.subr.bf16.mxu1 %v11704_v13 }
 0x558   : > { %v6006_v25 = vadd.f32 %v5983_v15, %v15669_v16  ;;  %v11133_v4 = vpop.f32.mrb[137].mxu1  ;;  %v11290_v5 = vpop.f32.mrb[211].mxu0  ;;  %v11700_v16 = vld [vmem:[%s16435_s5 + $0x160] sm:$0xff]  }
 0x559   : > { %v5986_v6 = vpop.f32.mrb[138].mxu1  ;;  %9895 = vmatprep.subr.bf16.mxu0 %v11700_v16  ;;  %v11711_v5 = vld [vmem:[%s16435_s5 + $0x138] sm:$0xff]  }
 0x55a   : > { %v6007_v59 = vadd.f32 %v5986_v6, %v15673_v17  ;;  %v11134_v24 = vpop.f32.mrb[139].mxu1  ;;  %v15838_v22 = vadd.f32 %v15654_v7, %v6006_v25  ;;  %v11701_v17 = vld [vmem:[%s16435_s5 + $0x120] sm:$0xff]   ;;  %v11702_v7 = vld [vmem:[%s16435_s5 + $0x168] sm:$0xff]  }
 0x55b   : > { %9896 = vmatpush3.bf16.msra.mxu0 %v11701_v17  ;;  %v11714_v6 = vld [vmem:[%s16435_s5 + $0x240] sm:$0xff]  }
 0x55c   : > { %v15841_v56 = vadd.f32 %v15658_v19, %v6007_v59  ;;  %9897 = vmatprep.subr.bf16.mxu0 %v11702_v7 }
 0x55d   : > { %v15846_v31 = vpop.f32.mrb[212].mxu0 }
 0x55e   : > { %v11361_v54 = vpop.f32.mrb[213].mxu0 }
 0x55f   : > { %v6391_v45 = vpop.f32.mrb[140].mxu1  ;;  %v15854_v19 = vpop.f32.mrb[214].mxu0  ;;  %9898 = vmatpush3.bf16.msra.mxu0 %v11703_v0 }
 0x560   : > { %v6462_v55 = vadd.f32 %v6391_v45, %v15685_v29  ;;  %v11205_v60 = vpop.f32.mrb[141].mxu1  ;;  %v11362_v63 = vpop.f32.mrb[215].mxu0  ;;  %v11706_v29 = vld [vmem:[%s16435_s5 + $0x170] sm:$0xff]  }
 0x561   : > { %v6394_v47 = vpop.f32.mrb[142].mxu1  ;;  %9899 = vmatprep.subr.bf16.mxu0 %v11706_v29 }
 0x562   : > { %v6463_v9 = vadd.f32 %v6394_v47, %v15691_v41  ;;  %v11206_v11 = vpop.f32.mrb[143].mxu1  ;;  %v15865_v62 = vadd.f32 %v15675_v61, %v6462_v55  ;;  %v11707_v41 = vld [vmem:[%s16435_s5 + $0x130] sm:$0xff]   ;;  %v11710_v61 = vld [vmem:[%s16435_s5 + $0x178] sm:$0xff]  }
 0x563   : > { %9900 = vmatpush3.bf16.msra.mxu0 %v11707_v41 }
 0x564   : > { %v15868_v28 = vadd.f32 %v15677_v52, %v6463_v9  ;;  %9901 = vmatprep.subr.bf16.mxu0 %v11710_v61 }
 0x565   : > { %v15873_v40 = vpop.f32.mrb[216].mxu0 }
 0x566   : > { %v11365_v32 = vpop.f32.mrb[217].mxu0 }
 0x567   : > { %v6399_v15 = vpop.f32.mrb[144].mxu1  ;;  %v15878_v35 = vpop.f32.mrb[218].mxu0  ;;  %9902 = vmatpush3.bf16.msra.mxu0 %v11711_v5 }
 0x568   : > { %v6464_v52 = vadd.f32 %v6399_v15, %v15700_v14  ;;  %v11209_v25 = vpop.f32.mrb[145].mxu1  ;;  %v11366_v4 = vpop.f32.mrb[219].mxu0  ;;  %9931 = vmatprep.subr.bf16.mxu0 %v11714_v6 }
 0x569   : > { %v6402_v50 = vpop.f32.mrb[146].mxu1 }
 0x56a   : > { %v6465_v59 = vadd.f32 %v6402_v50, %v15709_v53  ;;  %v11210_v24 = vpop.f32.mrb[147].mxu1  ;;  %v15892_v16 = vadd.f32 %v15693_v26, %v6464_v52 }
 0x56c   : > { %v15895_v14 = vadd.f32 %v15695_v2, %v6465_v59 }
 0x56d   : > { %v15897_v54 = vpop.f32.mrb[220].mxu0 }
 0x56e   : > { %v11369_v17 = vpop.f32.mrb[221].mxu0 }
 0x56f   : > { %v6407_v7 = vpop.f32.mrb[148].mxu1  ;;  %v15899_v45 = vpop.f32.mrb[222].mxu0 }
 0x570   : > { %v6466_v13 = vadd.f32 %v6407_v7, %v15718_v20  ;;  %v11213_v55 = vpop.f32.mrb[149].mxu1  ;;  %v11370_v60 = vpop.f32.mrb[223].mxu0 }
 0x571   : > { %v6410_v53 = vpop.f32.mrb[150].mxu1 }
 0x572   : > { %v6467_v63 = vadd.f32 %v6410_v53, %v15721_v18  ;;  %v11214_v26 = vpop.f32.mrb[151].mxu1  ;;  %v15904_v0 = vadd.f32 %v15711_v10, %v6466_v13 }
 0x574   : > { %v15907_v2 = vadd.f32 %v15713_v30, %v6467_v63 }
 0x575   : > { %v15909_v47 = vpop.f32.mrb[224].mxu0 }
 0x576   : > { %v11373_v9 = vpop.f32.mrb[225].mxu0 }
 0x577   : > { %v6415_v11 = vpop.f32.mrb[152].mxu1  ;;  %v15911_v29 = vpop.f32.mrb[226].mxu0 }
 0x578   : > { %v6468_v20 = vadd.f32 %v6415_v11, %v15730_v21  ;;  %v11217_v32 = vpop.f32.mrb[153].mxu1  ;;  %v11374_v41 = vpop.f32.mrb[227].mxu0 }
 0x579   : > { %v6418_v15 = vpop.f32.mrb[154].mxu1 }
 0x57a   : > { %v6469_v18 = vadd.f32 %v6418_v15, %v15733_v36  ;;  %v11218_v61 = vpop.f32.mrb[155].mxu1  ;;  %v15916_v10 = vadd.f32 %v15723_v1, %v6468_v20 }
 0x57c   : > { %v15919_v30 = vadd.f32 %v15725_v8, %v6469_v18 }
 0x57d   : > { %v15921_v52 = vpop.f32.mrb[228].mxu0 }
 0x57e   : > { %v11377_v25 = vpop.f32.mrb[229].mxu0 }
 0x57f   : > { %v6423_v4 = vpop.f32.mrb[156].mxu1  ;;  %v15923_v5 = vpop.f32.mrb[230].mxu0 }
 0x580   : > { %v6470_v21 = vadd.f32 %v6423_v4, %v15748_v51  ;;  %v11221_v50 = vpop.f32.mrb[157].mxu1  ;;  %v11378_v6 = vpop.f32.mrb[231].mxu0 }
 0x581   : > { %v6426_v59 = vpop.f32.mrb[158].mxu1 }
 0x582   : > { %v6471_v36 = vadd.f32 %v6426_v59, %v15751_v43  ;;  %v11222_v24 = vpop.f32.mrb[159].mxu1  ;;  %v15928_v1 = vadd.f32 %v15735_v39, %v6470_v21 }
 0x584   : > { %v15931_v8 = vadd.f32 %v15737_v49, %v6471_v36 }
 0x585   : > { %v15933_v17 = vpop.f32.mrb[232].mxu0 }
 0x586   : > { %v11381_v7 = vpop.f32.mrb[233].mxu0 }
 0x587   : > { %v6431_v13 = vpop.f32.mrb[160].mxu1  ;;  %v15935_v55 = vpop.f32.mrb[234].mxu0 }
 0x588   : > { %v6472_v51 = vadd.f32 %v6431_v13, %v15760_v42  ;;  %v11225_v60 = vpop.f32.mrb[161].mxu1  ;;  %v11382_v53 = vpop.f32.mrb[235].mxu0 }
 0x589   : > { %v6434_v63 = vpop.f32.mrb[162].mxu1 }
 0x58a   : > { %v6473_v43 = vadd.f32 %v6434_v63, %v15763_v48  ;;  %v11226_v26 = vpop.f32.mrb[163].mxu1  ;;  %v15940_v39 = vadd.f32 %v15753_v33, %v6472_v51 }
 0x58c   : > { %v15943_v49 = vadd.f32 %v15755_v46, %v6473_v43 }
 0x58d   : > { %v15945_v9 = vpop.f32.mrb[236].mxu0 }
 0x58e   : > { %v11385_v11 = vpop.f32.mrb[237].mxu0 }
 0x58f   : > { %v6439_v20 = vpop.f32.mrb[164].mxu1  ;;  %v15947_v32 = vpop.f32.mrb[238].mxu0 }
 0x590   : > { %v6474_v42 = vadd.f32 %v6439_v20, %v15778_v23  ;;  %v11229_v41 = vpop.f32.mrb[165].mxu1  ;;  %v11386_v15 = vpop.f32.mrb[239].mxu0 }
 0x591   : > { %v6442_v18 = vpop.f32.mrb[166].mxu1 }
 0x592   : > { %v6475_v48 = vadd.f32 %v6442_v18, %v15781_v58  ;;  %v11230_v61 = vpop.f32.mrb[167].mxu1  ;;  %v15952_v33 = vadd.f32 %v15765_v44, %v6474_v42 }
 0x594   : > { %v15955_v46 = vadd.f32 %v15773_v37, %v6475_v48 }
 0x595   : > { %v15957_v25 = vpop.f32.mrb[240].mxu0 }
 0x596   : > { %v11389_v4 = vpop.f32.mrb[241].mxu0 }
 0x597   : > { %v6447_v21 = vpop.f32.mrb[168].mxu1  ;;  %v15959_v50 = vpop.f32.mrb[242].mxu0 }
 0x598   : > { %v6476_v23 = vadd.f32 %v6447_v21, %v15808_v34  ;;  %v11233_v6 = vpop.f32.mrb[169].mxu1  ;;  %v11390_v59 = vpop.f32.mrb[243].mxu0 }
 0x599   : > { %v6450_v36 = vpop.f32.mrb[170].mxu1 }
 0x59a   : > { %v6477_v58 = vadd.f32 %v6450_v36, %v15811_v57  ;;  %v11234_v24 = vpop.f32.mrb[171].mxu1  ;;  %v15964_v44 = vadd.f32 %v15786_v12, %v6476_v23 }
 0x59c   : > { %v15967_v37 = vadd.f32 %v15797_v3, %v6477_v58 }
 0x59d   : > { %v15969_v7 = vpop.f32.mrb[244].mxu0 }
 0x59e   : > { %v11393_v13 = vpop.f32.mrb[245].mxu0 }
 0x59f   : > { %v6455_v51 = vpop.f32.mrb[172].mxu1  ;;  %v15971_v60 = vpop.f32.mrb[246].mxu0 }
 0x5a0   : > { %v6478_v34 = vadd.f32 %v6455_v51, %v15838_v22  ;;  %v11237_v53 = vpop.f32.mrb[173].mxu1  ;;  %v11394_v63 = vpop.f32.mrb[247].mxu0  ;;  %v15985_v22 = vld [vmem:[%s16434_s4] ss:$0 sm:$0xff] }
 0x5a1   : > { %v6458_v43 = vpop.f32.mrb[174].mxu1 }
 0x5a2   : > { %v6479_v57 = vadd.f32 %v6458_v43, %v15841_v56  ;;  %v11238_v26 = vpop.f32.mrb[175].mxu1  ;;  %v15976_v12 = vadd.f32 %v15816_v38, %v6478_v34 }
 0x5a4   : > { %v15979_v3 = vadd.f32 %v15827_v27, %v6479_v57 }
 0x5a7   : > { %v6865_v11 = vpop.f32.mrb[176].mxu1 }
 0x5a8   : > { %v6936_v20 = vadd.f32 %v6865_v11, %v15865_v62  ;;  %v11309_v42 = vpop.f32.mrb[177].mxu1 }
 0x5a9   : > { %v6868_v41 = vpop.f32.mrb[178].mxu1 }
 0x5aa   : > { %v7155_v15 = vadd.f32 %v15846_v31, %v6936_v20  ;;  %v6937_v56 = vadd.f32 %v6868_v41, %v15868_v28  ;;  %v11310_v18 = vpop.f32.mrb[179].mxu1 }
 0x5ac   : > { %v7179_v38 = vadd.f32 %v15985_v22, %v7155_v15  ;;  %v7156_v27 = vadd.f32 %v15854_v19, %v6937_v56 }
 0x5ae   : > { %7197 = vst [vmem:[#allocation3] sm:$0xff] %v7179_v38  ;;  %v7180_v48 = vadd.f32 %v15985_v22, %v7156_v27 }
 0x5af   : > { %v6873_v62 = vpop.f32.mrb[180].mxu1 }
 0x5b0   : > { %7198 = vst [vmem:[#allocation3 + $0x8] sm:$0xff] %v7180_v48  ;;  %v6938_v61 = vadd.f32 %v6873_v62, %v15892_v16  ;;  %v11313_v4 = vpop.f32.mrb[181].mxu1 }
 0x5b1   : > { %v6876_v21 = vpop.f32.mrb[182].mxu1 }
 0x5b2   : > { %v7157_v23 = vadd.f32 %v15873_v40, %v6938_v61  ;;  %v6939_v31 = vadd.f32 %v6876_v21, %v15895_v14  ;;  %v11314_v6 = vpop.f32.mrb[183].mxu1 }
 0x5b4   : > { %v7181_v28 = vadd.f32 %v15985_v22, %v7157_v23  ;;  %v7158_v59 = vadd.f32 %v15878_v35, %v6939_v31 }
 0x5b6   : > { %7199 = vst [vmem:[#allocation3 + $0x10] sm:$0xff] %v7181_v28  ;;  %v7182_v19 = vadd.f32 %v15985_v22, %v7158_v59 }
 0x5b7   : > { %v6881_v36 = vpop.f32.mrb[184].mxu1  ;;  %v7233_v14 = vld [vmem:[#allocation3 + $0x1] sm:$0xff] }
 0x5b8   : > { %7200 = vst [vmem:[#allocation3 + $0x18] sm:$0xff] %v7182_v19  ;;  %v6940_v58 = vadd.f32 %v6881_v36, %v15904_v0  ;;  %v11317_v24 = vpop.f32.mrb[185].mxu1  ;;  %v7251_v57 = vmax.f32 %v7179_v38, %v7233_v14 }
 0x5b9   : > { %v6884_v16 = vpop.f32.mrb[186].mxu1 }
 0x5ba   : > { %v7159_v13 = vadd.f32 %v15897_v54, %v6940_v58  ;;  %v6941_v40 = vadd.f32 %v6884_v16, %v15907_v2  ;;  %v11318_v51 = vpop.f32.mrb[187].mxu1 }
 0x5bc   : > { %v16002_v34 = vadd.f32 %v15985_v22, %v7159_v13  ;;  %v7160_v35 = vadd.f32 %v15899_v45, %v6941_v40 }
 0x5bd   : > { %v7234_v53 = vld [vmem:[#allocation3 + $0x9] sm:$0xff] }
 0x5be   : > { %v7269_v63 = vld [vmem:[#allocation3 + $0xc] sm:$0xff]  ;;  %7201 = vst [vmem:[#allocation3 + $0x20] sm:$0xff] %v16002_v34  ;;  %v16007_v0 = vadd.f32 %v15985_v22, %v7160_v35  ;;  %v7252_v20 = vmax.f32 %v7180_v48, %v7234_v53 }
 0x5bf   : > { %v7287_v43 = vld [vmem:[#allocation3 + $0xd] sm:$0xff]  ;;  %v7288_v11 = vld [vmem:[#allocation3 + $0x15] sm:$0xff]  ;;  %v6889_v2 = vpop.f32.mrb[188].mxu1 }
 0x5c0   : > { %v7305_v26 = vmax.f32 %v7269_v63, %v7287_v43  ;;  %v7270_v54 = vld [vmem:[#allocation3 + $0x14] sm:$0xff]  ;;  %7202 = vst [vmem:[#allocation3 + $0x28] sm:$0xff] %v16007_v0  ;;  %v6942_v45 = vadd.f32 %v6889_v2, %v15916_v10  ;;  %v11321_v15 = vpop.f32.mrb[189].mxu1 }
 0x5c1   : > { %v7306_v41 = vmax.f32 %v7270_v54, %v7288_v11  ;;  %v6892_v56 = vpop.f32.mrb[190].mxu1  ;;  %v7235_v4 = vld [vmem:[#allocation3 + $0x11] sm:$0xff] }
 0x5c2   : > { %v7323_v42 = vmax.f32 %v7251_v57, %v7305_v26  ;;  %v7161_v27 = vadd.f32 %v15909_v47, %v6942_v45  ;;  %v6943_v62 = vadd.f32 %v6892_v56, %v15919_v30  ;;  %v11322_v61 = vpop.f32.mrb[191].mxu1  ;;  %v7253_v59 = vmax.f32 %v7181_v28, %v7235_v4 }
 0x5c3   : > { %v7324_v38 = vmax.f32 %v7252_v20, %v7306_v41  ;;  %v11705_v20 = vld [vmem:[%s16435_s5 + $0x80] sm:$0xff]  }
 0x5c4   : > { %v7341_v18 = vmax.f32 %v7323_v42, 0.0  ;;  %v16014_v48 = vadd.f32 %v15985_v22, %v7161_v27  ;;  %v7162_v23 = vadd.f32 %v15911_v29, %v6943_v62 }
 0x5c5   : > { %v7342_v21 = vmax.f32 %v7324_v38, 0.0  ;;  %v7236_v31 = vld [vmem:[#allocation3 + $0x19] sm:$0xff] }
 0x5c6   : > { %7359 = vst [vmem:[#allocation3] sm:$0xff] %v7341_v18  ;;  %v7271_v6 = vld [vmem:[#allocation3 + $0x1c] sm:$0xff]  ;;  %7203 = vst [vmem:[#allocation3 + $0x30] sm:$0xff] %v16014_v48  ;;  %v16019_v47 = vadd.f32 %v15985_v22, %v7162_v23  ;;  %v7254_v16 = vmax.f32 %v7182_v19, %v7236_v31 }
 0x5c7   : > { %v7289_v10 = vld [vmem:[#allocation3 + $0x1d] sm:$0xff]  ;;  %7360 = vst [vmem:[#allocation3 + $0x8] sm:$0xff] %v7342_v21  ;;  %v7290_v58 = vld [vmem:[#allocation3 + $0x25] sm:$0xff]  ;;  %v6897_v24 = vpop.f32.mrb[192].mxu1 }
 0x5c8   : > { %v7307_v36 = vmax.f32 %v7271_v6, %v7289_v10  ;;  %v7272_v30 = vld [vmem:[#allocation3 + $0x24] sm:$0xff]  ;;  %7204 = vst [vmem:[#allocation3 + $0x38] sm:$0xff] %v16019_v47  ;;  %v6944_v29 = vadd.f32 %v6897_v24, %v15928_v1  ;;  %v11325_v51 = vpop.f32.mrb[193].mxu1  ;;  %v11709_v6 = vld [vmem:[%s16435_s5 + $0x88] sm:$0xff]  }
 0x5c9   : > { %v7308_v40 = vmax.f32 %v7272_v30, %v7290_v58  ;;  %v6900_v14 = vpop.f32.mrb[194].mxu1  ;;  %v7237_v57 = vld [vmem:[#allocation3 + $0x21] sm:$0xff] }
 0x5ca   : > { %v7325_v13 = vmax.f32 %v7253_v59, %v7307_v36  ;;  %v7163_v53 = vadd.f32 %v15921_v52, %v6944_v29  ;;  %v6945_v63 = vadd.f32 %v6900_v14, %v15931_v8  ;;  %v11326_v43 = vpop.f32.mrb[195].mxu1  ;;  %v11708_v52 = vld [vmem:[%s16435_s5 + $0xc8] sm:$0xff]   ;;  %v7255_v56 = vmax.f32 %v16002_v34, %v7237_v57  ;;  %v11712_v59 = vld [vmem:[%s16435_s5 + $0xd0] sm:$0xff]  }
 0x5cb   : > { %v7326_v35 = vmax.f32 %v7254_v16, %v7308_v40  ;;  %v11713_v29 = vld [vmem:[%s16435_s5 + $0x90] sm:$0xff]  }
 0x5cc   : > { %v7343_v28 = vmax.f32 %v7325_v13, 0.0  ;;  %v16026_v11 = vadd.f32 %v15985_v22, %v7163_v53  ;;  %v7164_v2 = vadd.f32 %v15923_v5, %v6945_v63 }
 0x5cd   : > { %v7378_v26 = vld [vmem:[#allocation3 + $0x2] sm:$0x1]  ;;  %v7377_v54 = vld [vmem:[#allocation3] sm:$0x1]  ;;  %v7344_v19 = vmax.f32 %v7326_v35, 0.0  ;;  %v7238_v8 = vld [vmem:[#allocation3 + $0x29] sm:$0xff] }
 0x5ce   : > { %7361 = vst [vmem:[#allocation3 + $0x10] sm:$0xff] %v7343_v28  ;;  %v7394_v1 = vpack.c.bf16 %v7378_v26, %v7378_v26  ;;  %v7380_v42 = vld [vmem:[#allocation3 + $0x6] sm:$0x1]  ;;  %v7273_v41 = vld [vmem:[#allocation3 + $0x2c] sm:$0xff]  ;;  %v7393_v15 = vpack.c.bf16 %v7377_v54, %v7377_v54  ;;  %7205 = vst [vmem:[#allocation3 + $0x40] sm:$0xff] %v16026_v11  ;;  %v16038_v5 = vadd.f32 %v15985_v22, %v7164_v2 }
 0x5cf   : > { %v7291_v45 = vld [vmem:[#allocation3 + $0x2d] sm:$0xff]  ;;  %7362 = vst [vmem:[#allocation3 + $0x18] sm:$0xff] %v7344_v19  ;;  %v7292_v27 = vld [vmem:[#allocation3 + $0x35] sm:$0xff]  ;;  %v6905_v62 = vpop.f32.mrb[196].mxu1  ;;  %v7396_v61 = vpack.c.bf16 %v7380_v42, %v7380_v42  ;;  %v7256_v4 = vmax.f32 %v16007_v0, %v7238_v8 }
 0x5d0   : > { %v7309_v18 = vmax.f32 %v7273_v41, %v7291_v45  ;;  %8209 = vmatprep.mubr.bf16.mxu1 %v7394_v1  ;;  %v7274_v38 = vld [vmem:[#allocation3 + $0x34] sm:$0xff]  ;;  %7206 = vst [vmem:[#allocation3 + $0x48] sm:$0xff] %v16038_v5  ;;  %v6946_v34 = vadd.f32 %v6905_v62, %v15940_v39  ;;  %v11329_v31 = vpop.f32.mrb[197].mxu1  ;;  %v11717_v8 = vld [vmem:[%s16435_s5 + $0x98] sm:$0xff]  }
 0x5d1   : > { %8210 = vmatmul.mubr.bf16.vlgmr.msra.gmra.mrb[212].mxu1 %v7393_v15  ;;  %v7310_v23 = vmax.f32 %v7274_v38, %v7292_v27  ;;  %v6908_v10 = vpop.f32.mrb[198].mxu1  ;;  %v7239_v24 = vld [vmem:[#allocation3 + $0x31] sm:$0xff] }
 0x5d2   : > { %v7327_v21 = vmax.f32 %v7255_v56, %v7309_v18  ;;  %9866 = vmatpush3.bf16.msra.mxu1 %v11705_v20  ;;  %8249 = vmatprep.mubr.bf16.mxu1 %v7396_v61  ;;  %v7165_v30 = vadd.f32 %v15933_v17, %v6946_v34  ;;  %v6947_v58 = vadd.f32 %v6908_v10, %v15943_v49  ;;  %v11330_v39 = vpop.f32.mrb[199].mxu1  ;;  %v11716_v17 = vld [vmem:[%s16435_s5 + $0xd8] sm:$0xff]   ;;  %v11715_v2 = vld [vmem:[%s16435_s5 + $0x200] sm:$0xff]   ;;  %v11718_v41 = vld [vmem:[%s16435_s5 + $0x248] sm:$0xff]  }
 0x5d3   : > { %9867 = vmatprep.subr.bf16.mxu1 %v11708_v52  ;;  %v7328_v36 = vmax.f32 %v7256_v4, %v7310_v23  ;;  %v7257_v28 = vmax.f32 %v16014_v48, %v7239_v24  ;;  %v11719_v62 = vld [vmem:[%s16435_s5 + $0x208] sm:$0xff]  }
 0x5d4   : > { %v7345_v0 = vmax.f32 %v7327_v21, 0.0  ;;  %v16052_v13 = vadd.f32 %v15985_v22, %v7165_v30  ;;  %v7166_v40 = vadd.f32 %v15935_v55, %v6947_v58  ;;  %v11724_v23 = vld [vmem:[%s16435_s5 + $0xe8] sm:$0xff]   ;;  %v11723_v58 = vld [vmem:[%s16435_s5 + $0x210] sm:$0xff]  }
 0x5d5   : > { %v7346_v16 = vmax.f32 %v7328_v36, 0.0  ;;  %v7240_v51 = vld [vmem:[#allocation3 + $0x39] sm:$0xff] }
 0x5d6   : > { %7363 = vst [vmem:[#allocation3 + $0x20] sm:$0xff] %v7345_v0  ;;  %9868 = vmatpush3.bf16.msra.mxu1 %v11709_v6  ;;  %v7275_v49 = vld [vmem:[#allocation3 + $0x3c] sm:$0xff]  ;;  %7207 = vst [vmem:[#allocation3 + $0x50] sm:$0xff] %v16052_v13  ;;  %v16064_v55 = vadd.f32 %v15985_v22, %v7166_v40  ;;  %v7382_v53 = vld [vmem:[#allocation3 + $0x1a] sm:$0x1]  ;;  %v7258_v48 = vmax.f32 %v16019_v47, %v7240_v51 }
 0x5d7   : > { %v7293_v14 = vld [vmem:[#allocation3 + $0x3d] sm:$0xff]  ;;  %9869 = vmatprep.subr.bf16.mxu1 %v11712_v59  ;;  %7364 = vst [vmem:[#allocation3 + $0x28] sm:$0xff] %v7346_v16  ;;  %v7381_v63 = vld [vmem:[#allocation3 + $0x18] sm:$0x1]  ;;  %v7294_v57 = vld [vmem:[#allocation3 + $0x45] sm:$0xff]  ;;  %v6913_v26 = vpop.f32.mrb[200].mxu1  ;;  %v7398_v54 = vpack.c.bf16 %v7382_v53, %v7382_v53 }
 0x5d8   : > { %v7311_v35 = vmax.f32 %v7275_v49, %v7293_v14  ;;  %v7276_v43 = vld [vmem:[#allocation3 + $0x44] sm:$0xff]  ;;  %v7397_v19 = vpack.c.bf16 %v7381_v63, %v7381_v63  ;;  %7208 = vst [vmem:[#allocation3 + $0x58] sm:$0xff] %v16064_v55  ;;  %v6948_v42 = vadd.f32 %v6913_v26, %v15952_v33  ;;  %v11333_v52 = vpop.f32.mrb[201].mxu1  ;;  %v11720_v47 = vld [vmem:[%s16435_s5 + $0xe0] sm:$0xff]  }
 0x5d9   : > { %v7312_v20 = vmax.f32 %v7276_v43, %v7294_v57  ;;  %8289 = vmatprep.mubr.bf16.mxu0 %v7398_v54  ;;  %v6916_v45 = vpop.f32.mrb[202].mxu1  ;;  %v7241_v27 = vld [vmem:[#allocation3 + $0x41] sm:$0xff] }
 0x5da   : > { %v7329_v1 = vmax.f32 %v7257_v28, %v7311_v35  ;;  %9870 = vmatpush3.bf16.msra.mxu1 %v11713_v29  ;;  %v6949_v33 = vadd.f32 %v6916_v45, %v15955_v46  ;;  %v7167_v18 = vadd.f32 %v15945_v9, %v6948_v42  ;;  %8290 = vmatmul.mubr.bf16.vlgmr.msra.gmra.mrb[248].mxu0 %v7397_v19  ;;  %v11334_v38 = vpop.f32.mrb[203].mxu1  ;;  %v11721_v9 = vld [vmem:[%s16435_s5 + $0xa0] sm:$0xff]   ;;  %v11722_v46 = vld [vmem:[%s16435_s5 + $0x250] sm:$0xff]   ;;  %v11725_v29 = vld [vmem:[%s16435_s5 + $0xa8] sm:$0xff]  }
 0x5db   : > { %9871 = vmatprep.subr.bf16.mxu1 %v11716_v17  ;;  %v7330_v56 = vmax.f32 %v7258_v48, %v7312_v20  ;;  %9932 = vmatpush3.bf16.msra.mxu0 %v11715_v2  ;;  %v11726_v17 = vld [vmem:[%s16435_s5 + $0x258] sm:$0xff]   ;;  %v11730_v19 = vld [vmem:[%s16435_s5 + $0x260] sm:$0xff]  }
 0x5dc   : > { %v7347_v15 = vmax.f32 %v7329_v1, 0.0  ;;  %v16087_v4 = vadd.f32 %v15985_v22, %v7167_v18  ;;  %v7168_v21 = vadd.f32 %v15947_v32, %v6949_v33  ;;  %9933 = vmatprep.subr.bf16.mxu0 %v11718_v41  ;;  %v7259_v32 = vmax.f32 %v16026_v11, %v7241_v27  ;;  %v11727_v63 = vld [vmem:[%s16435_s5 + $0x218] sm:$0xff]   ;;  %v11734_v27 = vld [vmem:[%s16435_s5 + $0x268] sm:$0xff]  }
 0x5dd   : > { %v7348_v61 = vmax.f32 %v7330_v56, 0.0  ;;  %v7242_v34 = vld [vmem:[#allocation3 + $0x49] sm:$0xff] }
 0x5de   : > { %7365 = vst [vmem:[#allocation3 + $0x30] sm:$0xff] %v7347_v15  ;;  %9872 = vmatpush3.bf16.msra.mxu1 %v11717_v8  ;;  %v7277_v31 = vld [vmem:[#allocation3 + $0x4c] sm:$0xff]  ;;  %7209 = vst [vmem:[#allocation3 + $0x60] sm:$0xff] %v16087_v4  ;;  %v16102_v59 = vadd.f32 %v15985_v22, %v7168_v21  ;;  %v7260_v39 = vmax.f32 %v16038_v5, %v7242_v34  ;;  %v11728_v5 = vld [vmem:[%s16435_s5 + $0xf0] sm:$0xff]  }
 0x5df   : > { %v7295_v6 = vld [vmem:[#allocation3 + $0x4d] sm:$0xff]  ;;  %9873 = vmatprep.subr.bf16.mxu1 %v11720_v47  ;;  %7366 = vst [vmem:[#allocation3 + $0x38] sm:$0xff] %v7348_v61  ;;  %v7296_v36 = vld [vmem:[#allocation3 + $0x55] sm:$0xff]  ;;  %9934 = vmatpush3.bf16.msra.mxu0 %v11719_v62  ;;  %v6921_v30 = vpop.f32.mrb[204].mxu1 }
 0x5e0   : > { %v7313_v10 = vmax.f32 %v7277_v31, %v7295_v6  ;;  %v7278_v0 = vld [vmem:[#allocation3 + $0x54] sm:$0xff]  ;;  %7210 = vst [vmem:[#allocation3 + $0x68] sm:$0xff] %v16102_v59  ;;  %v6950_v11 = vadd.f32 %v6921_v30, %v15964_v44  ;;  %v11337_v40 = vpop.f32.mrb[205].mxu1  ;;  %9935 = vmatprep.subr.bf16.mxu0 %v11722_v46  ;;  %v11732_v2 = vld [vmem:[%s16435_s5 + $0xf8] sm:$0xff]   ;;  %v7379_v46 = vld [vmem:[#allocation3 + $0x4] sm:$0x1] }
 0x5e1   : > { %v7314_v16 = vmax.f32 %v7278_v0, %v7296_v36  ;;  %v6924_v51 = vpop.f32.mrb[206].mxu1  ;;  %v7243_v53 = vld [vmem:[#allocation3 + $0x51] sm:$0xff]  ;;  %v11733_v38 = vld [vmem:[%s16435_s5 + $0xb8] sm:$0xff]   ;;  %v7384_v6 = vld [vmem:[#allocation3 + $0x1e] sm:$0x1] }
 0x5e2   : > { %v7331_v24 = vmax.f32 %v7259_v32, %v7313_v10  ;;  %9874 = vmatpush3.bf16.msra.mxu1 %v11721_v9  ;;  %v6951_v44 = vadd.f32 %v6924_v51, %v15967_v37  ;;  %v7169_v28 = vadd.f32 %v15957_v25, %v6950_v11  ;;  %v11338_v35 = vpop.f32.mrb[207].mxu1  ;;  %v11729_v25 = vld [vmem:[%s16435_s5 + $0xb0] sm:$0xff]   ;;  %v11731_v47 = vld [vmem:[%s16435_s5 + $0x220] sm:$0xff]   ;;  %v11735_v31 = vld [vmem:[%s16435_s5 + $0x228] sm:$0xff]   ;;  %v7400_v40 = vpack.c.bf16 %v7384_v6, %v7384_v6 }
 0x5e3   : > { %9875 = vmatprep.subr.bf16.mxu1 %v11724_v23  ;;  %v7332_v14 = vmax.f32 %v7260_v39, %v7314_v16  ;;  %9936 = vmatpush3.bf16.msra.mxu0 %v11723_v58  ;;  %v11740_v36 = vld [vmem:[%s16435_s5 + $0x1c8] sm:$0xff]   ;;  %v11739_v51 = vld [vmem:[%s16435_s5 + $0x230] sm:$0xff]  }
 0x5e4   : > { %v7349_v49 = vmax.f32 %v7331_v24, 0.0  ;;  %v16125_v26 = vadd.f32 %v15985_v22, %v7169_v28  ;;  %v7170_v54 = vadd.f32 %v15959_v50, %v6951_v44  ;;  %9937 = vmatprep.subr.bf16.mxu0 %v11726_v17  ;;  %v7261_v50 = vmax.f32 %v16052_v13, %v7243_v53  ;;  %v7286_v35 = vld [vmem:[#allocation3 + $0x94] sm:$0xff] }
 0x5e5   : > { %v7386_v43 = vld [vmem:[#allocation3 + $0x32] sm:$0x1]  ;;  %v7350_v57 = vmax.f32 %v7332_v14, 0.0  ;;  %v7244_v48 = vld [vmem:[#allocation3 + $0x59] sm:$0xff]  ;;  %v7395_v24 = vpack.c.bf16 %v7379_v46, %v7379_v46  ;;  %v11742_v14 = vld [vmem:[%s16435_s5 + $0x278] sm:$0xff]  }
 0x5e6   : > { %7367 = vst [vmem:[#allocation3 + $0x40] sm:$0xff] %v7349_v49  ;;  %9876 = vmatpush3.bf16.msra.mxu1 %v11725_v29  ;;  %v7402_v37 = vpack.c.bf16 %v7386_v43, %v7386_v43  ;;  %v7279_v1 = vld [vmem:[#allocation3 + $0x5c] sm:$0xff]  ;;  %7211 = vst [vmem:[#allocation3 + $0x70] sm:$0xff] %v16125_v26  ;;  %v16140_v52 = vadd.f32 %v15985_v22, %v7170_v54  ;;  %v7262_v15 = vmax.f32 %v16064_v55, %v7244_v48  ;;  %v11736_v55 = vld [vmem:[%s16435_s5 + $0x1c0] sm:$0xff]  }
 0x5e7   : > { %v7297_v20 = vld [vmem:[#allocation3 + $0x5d] sm:$0xff]  ;;  %9877 = vmatprep.subr.bf16.mxu1 %v11728_v5  ;;  %7368 = vst [vmem:[#allocation3 + $0x48] sm:$0xff] %v7350_v57  ;;  %v7298_v41 = vld [vmem:[#allocation3 + $0x65] sm:$0xff]  ;;  %9938 = vmatpush3.bf16.msra.mxu0 %v11727_v63  ;;  %v6929_v45 = vpop.f32.mrb[208].mxu1  ;;  %v7304_v63 = vld [vmem:[#allocation3 + $0x95] sm:$0xff] }
 0x5e8   : > { %v7315_v42 = vmax.f32 %v7279_v1, %v7297_v20  ;;  %8369 = vmatprep.mubr.bf16.mxu0 %v7402_v37  ;;  %v7280_v8 = vld [vmem:[#allocation3 + $0x64] sm:$0xff]  ;;  %7212 = vst [vmem:[#allocation3 + $0x78] sm:$0xff] %v16140_v52  ;;  %v6952_v33 = vadd.f32 %v6929_v45, %v15976_v12  ;;  %v11341_v18 = vpop.f32.mrb[209].mxu1  ;;  %9939 = vmatprep.subr.bf16.mxu0 %v11730_v19  ;;  %v7385_v37 = vld [vmem:[#allocation3 + $0x30] sm:$0x1] }
 0x5e9   : > { %v7316_v13 = vmax.f32 %v7280_v8, %v7298_v41  ;;  %v6932_v62 = vpop.f32.mrb[210].mxu1  ;;  %v7245_v34 = vld [vmem:[#allocation3 + $0x61] sm:$0xff]  ;;  %v11747_v48 = vld [vmem:[%s16435_s5 + $0x300] sm:$0xff]   ;;  %v7322_v8 = vmax.f32 %v7286_v35, %v7304_v63  ;;  %v11773_v63 = vld [vmem:[%s16435_s5 + $0x288] sm:$0xff]  }
 0x5ea   : > { %v7333_v56 = vmax.f32 %v7261_v50, %v7315_v42  ;;  %9878 = vmatpush3.bf16.msra.mxu1 %v11729_v25  ;;  %v6953_v12 = vadd.f32 %v6932_v62, %v15979_v3  ;;  %v7171_v9 = vadd.f32 %v15969_v7, %v6952_v33  ;;  %v11342_v23 = vpop.f32.mrb[211].mxu1  ;;  %v11737_v7 = vld [vmem:[%s16435_s5 + $0x180] sm:$0xff]   ;;  %v11738_v3 = vld [vmem:[%s16435_s5 + $0x270] sm:$0xff]   ;;  %v11743_v43 = vld [vmem:[%s16435_s5 + $0x238] sm:$0xff]   ;;  %v7401_v33 = vpack.c.bf16 %v7385_v37, %v7385_v37 }
 0x5eb   : > { %9879 = vmatprep.subr.bf16.mxu1 %v11732_v2  ;;  %v7334_v21 = vmax.f32 %v7262_v15, %v7316_v13  ;;  %9940 = vmatpush3.bf16.msra.mxu0 %v11731_v47  ;;  %v11745_v54 = vld [vmem:[%s16435_s5 + $0x190] sm:$0xff]   ;;  %v11746_v25 = vld [vmem:[%s16435_s5 + $0x340] sm:$0xff]   ;;  %v11748_v1 = vld [vmem:[%s16435_s5 + $0x1d8] sm:$0xff]  }
 0x5ec   : > { %v7351_v61 = vmax.f32 %v7333_v56, 0.0  ;;  %v16163_v10 = vadd.f32 %v15985_v22, %v7171_v9  ;;  %v7172_v0 = vadd.f32 %v15971_v60, %v6953_v12  ;;  %9941 = vmatprep.subr.bf16.mxu0 %v11734_v27  ;;  %v7263_v60 = vmax.f32 %v16087_v4, %v7245_v34  ;;  %v11749_v45 = vld [vmem:[%s16435_s5 + $0x198] sm:$0xff]   ;;  %v11750_v47 = vld [vmem:[%s16435_s5 + $0x348] sm:$0xff]   ;;  %v11752_v46 = vld [vmem:[%s16435_s5 + $0x1e0] sm:$0xff]  }
 0x5ed   : > { %v7352_v32 = vmax.f32 %v7334_v21, 0.0  ;;  %v7246_v30 = vld [vmem:[#allocation3 + $0x69] sm:$0xff]  ;;  %v11777_v37 = vld [vmem:[%s16435_s5 + $0x290] sm:$0xff]  }
 0x5ee   : > { %7369 = vst [vmem:[#allocation3 + $0x50] sm:$0xff] %v7351_v61  ;;  %9880 = vmatpush3.bf16.msra.mxu1 %v11733_v38  ;;  %v7281_v58 = vld [vmem:[#allocation3 + $0x6c] sm:$0xff]  ;;  %7213 = vst [vmem:[#allocation3 + $0x80] sm:$0xff] %v16163_v10  ;;  %v16178_v11 = vadd.f32 %v15985_v22, %v7172_v0  ;;  %v7264_v5 = vmax.f32 %v16102_v59, %v7246_v30  ;;  %v11741_v22 = vld [vmem:[%s16435_s5 + $0x188] sm:$0xff]  }
 0x5ef   : > { %v7299_v39 = vld [vmem:[#allocation3 + $0x6d] sm:$0xff]  ;;  %9909 = vmatprep.subr.bf16.mxu1 %v11736_v55  ;;  %7370 = vst [vmem:[#allocation3 + $0x58] sm:$0xff] %v7352_v32  ;;  %v7300_v17 = vld [vmem:[#allocation3 + $0x75] sm:$0xff]  ;;  %9942 = vmatpush3.bf16.msra.mxu0 %v11735_v31  ;;  %v11744_v59 = vld [vmem:[%s16435_s5 + $0x1d0] sm:$0xff]  }
 0x5f0   : > { %v7317_v16 = vmax.f32 %v7281_v58, %v7299_v39  ;;  %v7282_v29 = vld [vmem:[#allocation3 + $0x74] sm:$0xff]  ;;  %7214 = vst [vmem:[#allocation3 + $0x88] sm:$0xff] %v16178_v11  ;;  %9943 = vmatprep.subr.bf16.mxu0 %v11738_v3  ;;  %v7390_v41 = vld [vmem:[#allocation3 + $0x4a] sm:$0x1]  ;;  %v11754_v0 = vld [vmem:[%s16435_s5 + $0x350] sm:$0xff]  }
 0x5f1   : > { %8250 = vmatmul.mubr.bf16.vlgmr.msra.gmra.mrb[216].mxu1 %v7395_v24  ;;  %v7318_v4 = vmax.f32 %v7282_v29, %v7300_v17  ;;  %v7247_v53 = vld [vmem:[#allocation3 + $0x71] sm:$0xff]  ;;  %v7406_v9 = vpack.c.bf16 %v7390_v41, %v7390_v41  ;;  %v11755_v30 = vld [vmem:[%s16435_s5 + $0x310] sm:$0xff]   ;;  %v11758_v39 = vld [vmem:[%s16435_s5 + $0x358] sm:$0xff]  }
 0x5f2   : > { %v7335_v49 = vmax.f32 %v7263_v60, %v7317_v16  ;;  %9910 = vmatpush3.bf16.msra.mxu1 %v11737_v7  ;;  %8329 = vmatprep.mubr.bf16.mxu1 %v7400_v40  ;;  %v7265_v20 = vmax.f32 %v16125_v26, %v7247_v53  ;;  %v11751_v32 = vld [vmem:[%s16435_s5 + $0x308] sm:$0xff]   ;;  %v11760_v24 = vld [vmem:[%s16435_s5 + $0x1f0] sm:$0xff]   ;;  %v11759_v60 = vld [vmem:[%s16435_s5 + $0x318] sm:$0xff]  }
 0x5f3   : > { %9911 = vmatprep.subr.bf16.mxu1 %v11740_v36  ;;  %v7336_v28 = vmax.f32 %v7264_v5, %v7318_v4  ;;  %9944 = vmatpush3.bf16.msra.mxu0 %v11739_v51  ;;  %v11756_v36 = vld [vmem:[%s16435_s5 + $0x1e8] sm:$0xff]   ;;  %v11761_v16 = vld [vmem:[%s16435_s5 + $0x1b0] sm:$0xff]   ;;  %v11764_v40 = vld [vmem:[%s16435_s5 + $0x1f8] sm:$0xff]  }
 0x5f4   : > { %v7353_v44 = vmax.f32 %v7335_v49, 0.0  ;;  %9945 = vmatprep.subr.bf16.mxu0 %v11742_v14  ;;  %v11757_v58 = vld [vmem:[%s16435_s5 + $0x1a8] sm:$0xff]   ;;  %v11763_v29 = vld [vmem:[%s16435_s5 + $0x320] sm:$0xff]   ;;  %v11765_v17 = vld [vmem:[%s16435_s5 + $0x1b8] sm:$0xff]  }
 0x5f5   : > { %v7354_v57 = vmax.f32 %v7336_v28, 0.0  ;;  %v7283_v19 = vld [vmem:[#allocation3 + $0x7c] sm:$0xff]  ;;  %v11768_v5 = vld [vmem:[%s16435_s5 + $0x2c0] sm:$0xff]  }
 0x5f6   : > { %7371 = vst [vmem:[#allocation3 + $0x60] sm:$0xff] %v7353_v44  ;;  %9912 = vmatpush3.bf16.msra.mxu1 %v11741_v22  ;;  %v7301_v2 = vld [vmem:[#allocation3 + $0x7d] sm:$0xff]  ;;  %v7383_v49 = vld [vmem:[#allocation3 + $0x1c] sm:$0x1]  ;;  %v7388_v22 = vld [vmem:[#allocation3 + $0x36] sm:$0x1] }
 0x5f7   : > { %9913 = vmatprep.subr.bf16.mxu1 %v11744_v59  ;;  %7372 = vst [vmem:[#allocation3 + $0x68] sm:$0xff] %v7354_v57  ;;  %v7248_v50 = vld [vmem:[#allocation3 + $0x79] sm:$0xff]  ;;  %v7319_v42 = vmax.f32 %v7283_v19, %v7301_v2  ;;  %v7249_v15 = vld [vmem:[#allocation3 + $0x81] sm:$0xff]  ;;  %v7250_v56 = vld [vmem:[#allocation3 + $0x89] sm:$0xff]  ;;  %9946 = vmatpush3.bf16.msra.mxu0 %v11743_v43  ;;  %v7399_v59 = vpack.c.bf16 %v7383_v49, %v7383_v49 }
 0x5f8   : > { %v7284_v13 = vld [vmem:[#allocation3 + $0x84] sm:$0xff]  ;;  %v7267_v26 = vmax.f32 %v16163_v10, %v7249_v15  ;;  %v7268_v38 = vmax.f32 %v16178_v11, %v7250_v56  ;;  %v7285_v27 = vld [vmem:[#allocation3 + $0x8c] sm:$0xff]  ;;  %9975 = vmatprep.subr.bf16.mxu0 %v11746_v25  ;;  %v7266_v61 = vmax.f32 %v16140_v52, %v7248_v50  ;;  %v11766_v51 = vld [vmem:[%s16435_s5 + $0x368] sm:$0xff]   ;;  %v7404_v35 = vpack.c.bf16 %v7388_v22, %v7388_v22 }
 0x5f9   : > { %v7337_v18 = vmax.f32 %v7265_v20, %v7319_v42  ;;  %v7302_v62 = vld [vmem:[#allocation3 + $0x85] sm:$0xff]  ;;  %v7303_v55 = vld [vmem:[#allocation3 + $0x8d] sm:$0xff]  ;;  %v11767_v4 = vld [vmem:[%s16435_s5 + $0x328] sm:$0xff]  }
 0x5fa   : > { %9914 = vmatpush3.bf16.msra.mxu1 %v11745_v54  ;;  %v7320_v21 = vmax.f32 %v7284_v13, %v7302_v62  ;;  %v7321_v12 = vmax.f32 %v7285_v27, %v7303_v55  ;;  %v7340_v34 = vmax.f32 %v7268_v38, %v7322_v8  ;;  %8370 = vmatmul.mubr.bf16.vlgmr.msra.gmra.mrb[252].mxu0 %v7401_v33  ;;  %v11753_v10 = vld [vmem:[%s16435_s5 + $0x1a0] sm:$0xff]   ;;  %v11770_v44 = vld [vmem:[%s16435_s5 + $0x370] sm:$0xff]   ;;  %v11772_v28 = vld [vmem:[%s16435_s5 + $0x2c8] sm:$0xff]  }
 0x5fb   : > { %9915 = vmatprep.subr.bf16.mxu1 %v11748_v1  ;;  %v7355_v23 = vmax.f32 %v7337_v18, 0.0  ;;  %9976 = vmatpush3.bf16.msra.mxu0 %v11747_v48  ;;  %v11762_v11 = vld [vmem:[%s16435_s5 + $0x360] sm:$0xff]   ;;  %v11771_v53 = vld [vmem:[%s16435_s5 + $0x330] sm:$0xff]   ;;  %v11774_v43 = vld [vmem:[%s16435_s5 + $0x378] sm:$0xff]  }
 0x5fc   : > { %v7338_v31 = vmax.f32 %v7266_v61, %v7320_v21  ;;  %v7339_v6 = vmax.f32 %v7267_v26, %v7321_v12  ;;  %8449 = vmatprep.mubr.bf16.mxu0 %v7406_v9  ;;  %v7358_v52 = vmax.f32 %v7340_v34, 0.0  ;;  %9977 = vmatprep.subr.bf16.mxu0 %v11750_v47  ;;  %v11769_v14 = vld [vmem:[%s16435_s5 + $0x280] sm:$0xff]   ;;  %v11776_v57 = vld [vmem:[%s16435_s5 + $0x2d0] sm:$0xff]   ;;  %v11775_v54 = vld [vmem:[%s16435_s5 + $0x338] sm:$0xff]  }
 0x5fd   : > { %7373 = vst [vmem:[#allocation3 + $0x70] sm:$0xff] %v7355_v23  ;;  %v7389_v25 = vld [vmem:[#allocation3 + $0x48] sm:$0x1]  ;;  %v11780_v1 = vld [vmem:[%s16435_s5 + $0x2e0] sm:$0xff]   ;;  %v11782_v50 = vld [vmem:[%s16435_s5 + $0x2e8] sm:$0xff]  }
 0x5fe   : > { %9916 = vmatpush3.bf16.msra.mxu1 %v11749_v45  ;;  %v7356_v7 = vmax.f32 %v7338_v31, 0.0  ;;  %v7357_v3 = vmax.f32 %v7339_v6, 0.0  ;;  %7376 = vst [vmem:[#allocation3 + $0x88] sm:$0xff] %v7358_v52  ;;  %v11778_v19 = vld [vmem:[%s16435_s5 + $0x2d8] sm:$0xff]   ;;  %v7405_v2 = vpack.c.bf16 %v7389_v25, %v7389_v25  ;;  %v11781_v20 = vld [vmem:[%s16435_s5 + $0x2a0] sm:$0xff]   ;;  %v11783_v42 = vld [vmem:[%s16435_s5 + $0x2a8] sm:$0xff]  }
 0x5ff   : > { %9917 = vmatprep.subr.bf16.mxu1 %v11752_v46  ;;  %9978 = vmatpush3.bf16.msra.mxu0 %v11751_v32  ;;  %v11779_v48 = vld [vmem:[%s16435_s5 + $0x298] sm:$0xff]   ;;  %v11784_v8 = vld [vmem:[%s16435_s5 + $0x2f0] sm:$0xff]   ;;  %v11788_v15 = vld [vmem:[%s16435_s5 + $0x3c0] sm:$0xff]  }
 0x600   : > { %7374 = vst [vmem:[#allocation3 + $0x78] sm:$0xff] %v7356_v7  ;;  %7375 = vst [vmem:[#allocation3 + $0x80] sm:$0xff] %v7357_v3  ;;  %9979 = vmatprep.subr.bf16.mxu0 %v11754_v0  ;;  %v11785_v41 = vld [vmem:[%s16435_s5 + $0x2b0] sm:$0xff]   ;;  %v11786_v45 = vld [vmem:[%s16435_s5 + $0x2f8] sm:$0xff]  }
 0x601   : > { %v11787_v47 = vld [vmem:[%s16435_s5 + $0x2b8] sm:$0xff]   ;;  %v7387_v56 = vld [vmem:[#allocation3 + $0x34] sm:$0x1]  ;;  %v11790_v26 = vld [vmem:[%s16435_s5 + $0x3c8] sm:$0xff]  }
 0x602   : > { %9918 = vmatpush3.bf16.msra.mxu1 %v11753_v10  ;;  %v7392_v13 = vld [vmem:[#allocation3 + $0x4e] sm:$0x1]  ;;  %v11789_v33 = vld [vmem:[%s16435_s5 + $0x380] sm:$0xff]   ;;  %v7403_v18 = vpack.c.bf16 %v7387_v56, %v7387_v56  ;;  %v11791_v27 = vld [vmem:[%s16435_s5 + $0x388] sm:$0xff]   ;;  %v8497_v56 = vlaneseq }
 0x603   : > { %9919 = vmatprep.subr.bf16.mxu1 %v11756_v36  ;;  %9980 = vmatpush3.bf16.msra.mxu0 %v11755_v30  ;;  %v7408_v38 = vpack.c.bf16 %v7392_v13, %v7392_v13  ;;  %v11792_v62 = vld [vmem:[%s16435_s5 + $0x3d0] sm:$0xff]   ;;  %v11794_v61 = vld [vmem:[%s16435_s5 + $0x3d8] sm:$0xff]   ;;  %v11796_v12 = vld [vmem:[%s16435_s5 + $0x3e0] sm:$0xff]  }
 0x604   : > { %9981 = vmatprep.subr.bf16.mxu0 %v11758_v39  ;;  %v11793_v55 = vld [vmem:[%s16435_s5 + $0x390] sm:$0xff]   ;;  %v11795_v21 = vld [vmem:[%s16435_s5 + $0x398] sm:$0xff]   ;;  %v11797_v9 = vld [vmem:[%s16435_s5 + $0x3a0] sm:$0xff]   ;;  %v8498_v13 = vand.u32 127, %v8497_v56 }
 0x605   : > { %v11798_v46 = vld [vmem:[%s16435_s5 + $0x3e8] sm:$0xff]   ;;  %v11800_v34 = vld [vmem:[%s16435_s5 + $0x3f0] sm:$0xff]   ;;  %v11802_v6 = vld [vmem:[%s16435_s5 + $0x3f8] sm:$0xff]  }
 0x606   : > { %9920 = vmatpush3.bf16.msra.mxu1 %v11757_v58  ;;  %v11799_v23 = vld [vmem:[%s16435_s5 + $0x3a8] sm:$0xff]   ;;  %v11801_v31 = vld [vmem:[%s16435_s5 + $0x3b0] sm:$0xff]   ;;  %v11803_v32 = vld [vmem:[%s16435_s5 + $0x3b8] sm:$0xff]   ;;  %vm8499_vm1 = vcmp.lt.s32.totalorder %v8498_v13, 10 }
 0x607   : > { %9921 = vmatprep.subr.bf16.mxu1 %v11760_v24  ;;  %9982 = vmatpush3.bf16.msra.mxu0 %v11759_v60  ;;  %v7391_v52 = vld [vmem:[#allocation3 + $0x4c] sm:$0x1] }
 0x608   : > { %9983 = vmatprep.subr.bf16.mxu0 %v11762_v11  ;;  %v7407_v10 = vpack.c.bf16 %v7391_v52, %v7391_v52  ;;  %v539_v11 = vld [vmem:[%s16436_s6] sm:$0x1] }
 0x60a   : > { %9922 = vmatpush3.bf16.msra.mxu1 %v11761_v16 }
 0x60b   : > { %9923 = vmatprep.subr.bf16.mxu1 %v11764_v40  ;;  %9984 = vmatpush3.bf16.msra.mxu0 %v11763_v29 }
 0x60c   : > { %9985 = vmatprep.subr.bf16.mxu0 %v11766_v51 }
 0x60e   : > { %9924 = vmatpush3.bf16.msra.mxu1 %v11765_v17 }
 0x60f   : > { %9953 = vmatprep.subr.bf16.mxu1 %v11768_v5  ;;  %9986 = vmatpush3.bf16.msra.mxu0 %v11767_v4 }
 0x610   : > { %9987 = vmatprep.subr.bf16.mxu0 %v11770_v44 }
 0x611   : > { %8330 = vmatmul.mubr.bf16.vlgmr.msra.gmra.mrb[220].mxu1 %v7399_v59 }
 0x612   : > { %9954 = vmatpush3.bf16.msra.mxu1 %v11769_v14  ;;  %8409 = vmatprep.mubr.bf16.mxu1 %v7404_v35 }
 0x613   : > { %9955 = vmatprep.subr.bf16.mxu1 %v11772_v28  ;;  %9988 = vmatpush3.bf16.msra.mxu0 %v11771_v53 }
 0x614   : > { %9989 = vmatprep.subr.bf16.mxu0 %v11774_v43 }
 0x616   : > { %9956 = vmatpush3.bf16.msra.mxu1 %v11773_v63 }
 0x617   : > { %9957 = vmatprep.subr.bf16.mxu1 %v11776_v57  ;;  %9990 = vmatpush3.bf16.msra.mxu0 %v11775_v54 }
 0x61a   : > { %9958 = vmatpush3.bf16.msra.mxu1 %v11777_v37  ;;  %8450 = vmatmul.mubr.bf16.vlgmr.msra.gmra.mrb[0].mxu0 %v7405_v2 }
 0x61b   : > { %9959 = vmatprep.subr.bf16.mxu1 %v11778_v19 }
 0x61e   : > { %9960 = vmatpush3.bf16.msra.mxu1 %v11779_v48 }
 0x61f   : > { %9961 = vmatprep.subr.bf16.mxu1 %v11780_v1 }
 0x622   : > { %9962 = vmatpush3.bf16.msra.mxu1 %v11781_v20 }
 0x623   : > { %9963 = vmatprep.subr.bf16.mxu1 %v11782_v50 }
 0x626   : > { %9964 = vmatpush3.bf16.msra.mxu1 %v11783_v42 }
 0x627   : > { %9965 = vmatprep.subr.bf16.mxu1 %v11784_v8 }
 0x62a   : > { %9966 = vmatpush3.bf16.msra.mxu1 %v11785_v41 }
 0x62b   : > { %9967 = vmatprep.subr.bf16.mxu1 %v11786_v45 }
 0x62e   : > { %9968 = vmatpush3.bf16.msra.mxu1 %v11787_v47 }
 0x62f   : > { %9997 = vmatprep.subr.bf16.mxu1 %v11788_v15 }
 0x631   : > { %8410 = vmatmul.mubr.bf16.vlgmr.msra.gmra.mrb[224].mxu1 %v7403_v18 }
 0x632   : > { %9998 = vmatpush3.bf16.msra.mxu1 %v11789_v33  ;;  %8489 = vmatprep.mubr.bf16.mxu1 %v7408_v38 }
 0x633   : > { %9999 = vmatprep.subr.bf16.mxu1 %v11790_v26 }
 0x636   : > { %10000 = vmatpush3.bf16.msra.mxu1 %v11791_v27 }
 0x637   : > { %10001 = vmatprep.subr.bf16.mxu1 %v11792_v62 }
 0x63a   : > { %10002 = vmatpush3.bf16.msra.mxu1 %v11793_v55 }
 0x63b   : > { %10003 = vmatprep.subr.bf16.mxu1 %v11794_v61 }
 0x63e   : > { %10004 = vmatpush3.bf16.msra.mxu1 %v11795_v21 }
 0x63f   : > { %10005 = vmatprep.subr.bf16.mxu1 %v11796_v12 }
 0x642   : > { %10006 = vmatpush3.bf16.msra.mxu1 %v11797_v9 }
 0x643   : > { %10007 = vmatprep.subr.bf16.mxu1 %v11798_v46 }
 0x646   : > { %10008 = vmatpush3.bf16.msra.mxu1 %v11799_v23 }
 0x647   : > { %10009 = vmatprep.subr.bf16.mxu1 %v11800_v34 }
 0x64a   : > { %10010 = vmatpush3.bf16.msra.mxu1 %v11801_v31 }
 0x64b   : > { %10011 = vmatprep.subr.bf16.mxu1 %v11802_v6 }
 0x64e   : > { %10012 = vmatpush3.bf16.msra.mxu1 %v11803_v32 }
 0x651   : > { %8490 = vmatmul.mubr.bf16.vlgmr.msra.gmra.mrb[228].mxu1 %v7407_v10 }
 0x6a4   : > { %v9859_v0 = vpop.f32.mrb[212].mxu1 }
 0x6a5   : > { %v9860_v7 = vpop.f32.mrb[213].mxu1 }
 0x6a6   : > { %v9861_v3 = vadd.f32 %v9860_v7, %v9859_v0  ;;  %v9862_v36 = vpop.f32.mrb[214].mxu1 }
 0x6a7   : > { %v9863_v30 = vpop.f32.mrb[215].mxu1 }
 0x6a8   : > { %v8212_v17 = vadd.f32 %v9861_v3, %v539_v11 }
 0x6ad   : > { %v9903_v58 = vpop.f32.mrb[248].mxu0 }
 0x6ae   : > { %v9904_v39 = vpop.f32.mrb[249].mxu0 }
 0x6af   : > { %v9905_v24 = vadd.f32 %v9904_v39, %v9903_v58  ;;  %v9906_v60 = vpop.f32.mrb[250].mxu0 }
 0x6b0   : > { %v9907_v16 = vpop.f32.mrb[251].mxu0 }
 0x6c4   : > { %v9881_v40 = vpop.f32.mrb[216].mxu1 }
 0x6c5   : > { %v9882_v29 = vpop.f32.mrb[217].mxu1 }
 0x6c6   : > { %v9883_v51 = vadd.f32 %v9882_v29, %v9881_v40  ;;  %v9884_v5 = vpop.f32.mrb[218].mxu1 }
 0x6c7   : > { %v9885_v49 = vpop.f32.mrb[219].mxu1 }
 0x6c8   : > { %v8252_v4 = vadd.f32 %v9883_v51, %v8212_v17 }
 0x6ca   : > { %v8292_v22 = vadd.f32 %v9905_v24, %v8252_v4 }
 0x6cd   : > { %v9947_v14 = vpop.f32.mrb[252].mxu0 }
 0x6ce   : > { %v9948_v59 = vpop.f32.mrb[253].mxu0 }
 0x6cf   : > { %v9949_v44 = vadd.f32 %v9948_v59, %v9947_v14  ;;  %v9950_v28 = vpop.f32.mrb[254].mxu0 }
 0x6d0   : > { %v9951_v35 = vpop.f32.mrb[255].mxu0 }
 0x6e4   : > { %v9925_v53 = vpop.f32.mrb[220].mxu1 }
 0x6e5   : > { %v9926_v63 = vpop.f32.mrb[221].mxu1 }
 0x6e6   : > { %v9927_v43 = vadd.f32 %v9926_v63, %v9925_v53  ;;  %v9928_v57 = vpop.f32.mrb[222].mxu1 }
 0x6e7   : > { %v9929_v54 = vpop.f32.mrb[223].mxu1 }
 0x6e8   : > { %v8332_v37 = vadd.f32 %v9927_v43, %v8292_v22 }
 0x6ea   : > { %v8372_v25 = vadd.f32 %v9949_v44, %v8332_v37 }
 0x6ed   : > { %v9991_v19 = vpop.f32.mrb[0].mxu0 }
 0x6ee   : > { %v9992_v2 = vpop.f32.mrb[1].mxu0 }
 0x6ef   : > { %v9993_v48 = vadd.f32 %v9992_v2, %v9991_v19  ;;  %v9994_v1 = vpop.f32.mrb[2].mxu0 }
 0x6f0   : > { %v9995_v20 = vpop.f32.mrb[3].mxu0 }
 0x704   : > { %v9969_v50 = vpop.f32.mrb[224].mxu1 }
 0x705   : > { %v9970_v42 = vpop.f32.mrb[225].mxu1 }
 0x706   : > { %v9971_v8 = vadd.f32 %v9970_v42, %v9969_v50  ;;  %v9972_v41 = vpop.f32.mrb[226].mxu1 }
 0x707   : > { %v9973_v45 = vpop.f32.mrb[227].mxu1 }
 0x708   : > { %v8412_v47 = vadd.f32 %v9971_v8, %v8372_v25 }
 0x70a   : > { %v8452_v15 = vadd.f32 %v9993_v48, %v8412_v47 }
 0x724   : > { %v10013_v33 = vpop.f32.mrb[228].mxu1 }
 0x725   : > { %v10014_v18 = vpop.f32.mrb[229].mxu1 }
 0x726   : > { %v10015_v26 = vadd.f32 %v10014_v18, %v10013_v33  ;;  %v10016_v38 = vpop.f32.mrb[230].mxu1 }
 0x727   : > { %v10017_v27 = vpop.f32.mrb[231].mxu1 }
 0x728   : > { %v8492_v62 = vadd.f32 %v10015_v26, %v8452_v15 }
 0x72a   : > { %v8500_v55 = vsel %vm8499_vm1, %v8492_v62, -1e+30 }
 0x72b   : > { %v8502_v61 = vsel %vm2962_vm14, %v8500_v55, -inf }
 0x72c   : > { %8503 = vmax.xlane.f32.xlu0 %v8502_v61 }
 0x7b9   : > { %v8504_v21 = vpop.xlane.xlu0 %8503 }
 0x7ba   : > { %v8505_v12 = vsub.f32 %v8500_v55, %v8504_v21 }
 0x7bc   : > { %v8506_v9 = vmul.f32 1.442695, %v8505_v12 }
 0x7be   : > { %11804 = vpow2.f32 %v8506_v9 }
 0x7c8   : > { %v11805_v46 = vpop.eup %11804 }
 0x7c9   : > { %v8508_v23 = vsel %vm2962_vm14, %v11805_v46, 0.0 }
 0x7ca   : > { %8509 = vadd.xlane.f32.xlu0 %v8508_v23 }
 0x857   : > { %v8510_v34 = vpop.xlane.xlu0 %8509 }
 0x858   : > { %11806 = vlog2.f32 %v8510_v34 }
 0x862   : > { %v11807_v31 = vpop.eup %11806 }
 0x863   : > { %v8512_v6 = vmul.f32 0.6931472, %v11807_v31 }
 0x865   : > { %v8513_v32 = vadd.f32 %v8512_v6, %v8504_v21 }
 0x867   : > { %v8514_v52 = vsub.f32 %v8500_v55, %v8513_v32 }
 0x869   : > { %8515 = vst [vmem:[%s270_s14] sm:$0x1] %v8514_v52 }
 0x86a   : > { %11861 = shalt.err (!%p11858_p3)
}
 0x86b   : > { %s11862_s23 = scalar_lea.hbm %s16388_s18, 16  ;;  %s11866_s9 = scalar_lea.hbm %s16437_s7, 32 }
 0x86c   : > { %p11863_p4 = scmp.ne.s32.totalorder %s16388_s18, %s11862_s23  ;;  %p11867_p9 = scmp.lt.u32.totalorder %s16388_s18, %s16437_s7 }
 0x86d   : > { %p11868_p10 = scmp.lt.u32.totalorder %s11866_s9, %s11862_s23  ;;  %p11870_p12 = scmp.lt.u32.totalorder %s11862_s23, %s16388_s18 }
 0x86e   : > { %p11864_p7 = pnand %p11863_p4, %p11994_p5 }
 0x86f   : > { %p11869_p11 = por %p11868_p10, %p11867_p9 }
 0x870   : > { %p11865_p8 = pneg %p11864_p7 }
 0x871   : > { %p11871_p13 = por %p11870_p12, %p11869_p11 }
 0x873   : > { %p11872_p0 = pnand %p11871_p13, %p11865_p8 }
 0x875   : > { %11875 = shalt.err (!%p11872_p0)
}
 0x876   : > { %11396 = dma.vmem_to_hbm [thread:$0]  (%p11994_p5), %s16390_s15, 16, %s16388_s18, %s8517_s19  }
 0x877 PF: > { %p11402_p1 = scmp.ge.s32.totalorder %s11910_s27, 2  ;;  %s8541_s16 = sand.u32 1, %s11898_s24  }
 0x878   : > { %s8542_s17 = scalar_lea.sflag [#allocation5], %s8541_s16 }
 0x879   : > { %p11399_p2 = pnand %p11402_p1, %p11998_p6 }
 0x87b   : > { %11893 = dma.done.wait (!%p11399_p2), %s8542_s17, 16  }
 0x87c   : > { %11895 = vsyncadd (!%p11399_p2), %s8542_s17, 4294967280  ;;  %p17_p3 = scmp.ge.s32.totalorder %s11981_s30, 4   ;;  %s16694_s24 = smov %s11902_s25 }
 0x87d   : > { %s16695_s25 = smov %s11906_s26  ;;  %s16696_s26 = smov %s11992_s10 }
 0x87e   : > { %s16697_s27 = smov %s11981_s30  ;;  %19 = sbr.rel (!%p17_p3) target bundleno = 3 (0x3), region = 107 }
 0x885   :  { %8546 = vsyncpa [#allocation5], 1 }
 0x886   :  { %8548 = vsyncpa [#allocation5 + $0x1], 1 }

</bundles_post_ra>
